<compile_context>
chip_gen: v6e
topology: v6e:2x2x1
jax: 0.10.0
libtpu: 0.0.40
codegen_flags: <defaults>
</compile_context>

<pallas_src>
import jax
import jax.numpy as jnp
import numpy as np
from jax import lax
from jax.experimental import pallas as pl
from jax.experimental.pallas import tpu as pltpu


# ----------------------------------------------------------------------------
# Fused Pallas kernel (whole forward pass for one batch element)
# ----------------------------------------------------------------------------
def _imnv_fused_kernel(xpp_ref, wf_ref, bf_ref, w2_ref, b2_ref,
                       wg_ref, bg_ref, w3a_ref, w3b_ref, b3_ref,
                       o_ref, x2p_ref):
    # xpp_ref : (4, Hp, Wp, C)   parity planes of pad-2 input, plane = 2a+b
    # wf_ref  : (25, C, 3C)      fused conv1_{1,2,3} taps   bf_ref: (1, 3C)
    # w2_ref  : (3C, C)          conv2 (1x1)                b2_ref: (1, C)
    # wg_ref  : (25, C, 3C)      fused conv2_{1,2,3} taps   bg_ref: (1, 3C)
    # w3a_ref : (3C, C), w3b_ref: (C, C)  conv3 split       b3_ref: (1, C)
    # o_ref   : (1, Ho, Wo, C)
    # x2p_ref : VMEM scratch (4, Ho+9, Wo+9, C)  padded x2 parity planes
    c = w2_ref.shape[1]
    ho, wo = o_ref.shape[1], o_ref.shape[2]
    m = ho * wo

    # ---------------- stage 1: conv1_* (fused 5x5, 3C out) + conv2 + ReLU ----
    # Evaluated jointly for the 4 output parity planes, stacked on sublanes.
    acc1 = jnp.zeros((4 * m, 3 * c), jnp.float32)
    for i in range(5):
        for j in range(5):
            pieces = []
            for p in range(2):
                for q in range(2):
                    a, ri = (p + i) % 2, (p + i) // 2
                    b, sj = (q + j) % 2, (q + j) // 2
                    pieces.append(
                        xpp_ref[2 * a + b, ri:ri + ho, sj:sj + wo, :]
                        .reshape(m, c))
            taps = jnp.concatenate(pieces, axis=0)            # (4m, C)
            acc1 = acc1 + jnp.dot(taps, wf_ref[i * 5 + j],
                                  preferred_element_type=jnp.float32)
    xc = acc1 + bf_ref[...]                                   # (4m, 3C)
    x2 = jnp.maximum(
        jnp.dot(xc, w2_ref[...], preferred_element_type=jnp.float32)
        + b2_ref[...], 0.0)                                   # (4m, C)

    # Park x2 parity planes in a zero ring (realises stride-2 conv padding).
    # Interior starts at offset 8 -> aligned, unmasked sublane stores.
    x2p_ref[...] = jnp.zeros(x2p_ref.shape, x2p_ref.dtype)
    x2r = x2.reshape(4, ho, wo, c)
    for k in range(4):
        x2p_ref[k, 8:8 + ho, 8:8 + wo, :] = x2r[k]

    # ---------------- stage 2: fused stride-2 convs + maxpool + conv3 --------
    acc2 = jnp.zeros((m, 3 * c), jnp.float32)
    for i in range(5):
        for j in range(5):
            patch = x2p_ref[2 * (i % 2) + (j % 2),
                            7 + i // 2: 7 + i // 2 + ho,
                            7 + j // 2: 7 + j // 2 + wo, :].reshape(m, c)
            acc2 = acc2 + jnp.dot(patch, wg_ref[i * 5 + j],
                                  preferred_element_type=jnp.float32)
    branches = acc2 + bg_ref[...]                              # (m, 3C)

    # MaxPool2d(2,2) == elementwise max of the four x2 parity planes.
    pool = jnp.maximum(
        jnp.maximum(x2p_ref[0, 8:8 + ho, 8:8 + wo, :],
                    x2p_ref[1, 8:8 + ho, 8:8 + wo, :]),
        jnp.maximum(x2p_ref[2, 8:8 + ho, 8:8 + wo, :],
                    x2p_ref[3, 8:8 + ho, 8:8 + wo, :])).reshape(m, c)

    # conv3 (1x1 over the 4C concat) as a split matmul -> no in-kernel concat.
    out = (jnp.dot(branches, w3a_ref[...], preferred_element_type=jnp.float32)
           + jnp.dot(pool, w3b_ref[...], preferred_element_type=jnp.float32)
           + b3_ref[...])
    o_ref[...] = jnp.maximum(out, 0.0).reshape(1, ho, wo, c)


# ----------------------------------------------------------------------------
# Wrapper: layout / weight-fusion glue (input-side only) + pallas_call
# ----------------------------------------------------------------------------
def _fuse_branch_weights(w1, w3, w5, c):
    """Zero-pad 1x1 and 3x3 HWIO kernels into one 5x5 tap set, concat Cout."""
    wf = jnp.zeros((5, 5, c, 3 * c), jnp.float32)
    wf = wf.at[2, 2, :, 0:c].set(w1[0, 0])
    wf = wf.at[1:4, 1:4, :, c:2 * c].set(w3)
    wf = wf.at[:, :, :, 2 * c:3 * c].set(w5)
    return wf.reshape(25, c, 3 * c)


def imnv_forward(params, x_nchw, adjust=False):
    if adjust:
        # TODO(synk): adjust=True is shape-inconsistent in the source module
        # (adjustCon 2x2/pad1 turns the 8x8 pooled map into 9x9, so torch.cat
        # with the 8x8 conv branches would fail); only adjust=False is done.
        raise NotImplementedError("adjust=True path not supported")

    n, c, h, w = x_nchw.shape
    assert h % 2 == 0 and w % 2 == 0, "even spatial sizes required"
    ho, wo = h // 2, w // 2
    hp, wp = ho + 2, wo + 2     # parity-plane size of the pad-2 input

    # Input: NCHW -> NHWC, pad by 2, split into the 4 parity planes.
    x_nhwc = jnp.transpose(x_nchw, (0, 2, 3, 1)).astype(jnp.float32)
    xpad = jnp.pad(x_nhwc, ((0, 0), (2, 2), (2, 2), (0, 0)))
    xpp = (xpad.reshape(n, hp, 2, wp, 2, c)
               .transpose(0, 2, 4, 1, 3, 5)
               .reshape(n * 4, hp, wp, c))       # plane index = 4*n + 2a + b

    # Fused / reshaped weights.
    (w11, b11), (w12, b12), (w13, b13) = (params["conv1_1"],
                                          params["conv1_2"],
                                          params["conv1_3"])
    (w21, b21), (w22, b22), (w23, b23) = (params["conv2_1"],
                                          params["conv2_2"],
                                          params["conv2_3"])
    wf = _fuse_branch_weights(w11, w12, w13, c)
    bf = jnp.concatenate([b11, b12, b13]).reshape(1, 3 * c)
    wg = _fuse_branch_weights(w21, w22, w23, c)
    bg = jnp.concatenate([b21, b22, b23]).reshape(1, 3 * c)
    w2 = params["conv2"][0].reshape(3 * c, c)
    b2 = params["conv2"][1].reshape(1, c)
    w3full = params["conv3"][0].reshape(4 * c, c)
    w3a, w3b = w3full[:3 * c], w3full[3 * c:]
    b3 = params["conv3"][1].reshape(1, c)

    full2d = lambda shp: pl.BlockSpec(shp, lambda i: (0, 0))
    full3d = lambda shp: pl.BlockSpec(shp, lambda i: (0, 0, 0))

    out = pl.pallas_call(
        _imnv_fused_kernel,
        out_shape=jax.ShapeDtypeStruct((n, ho, wo, c), jnp.float32),
        grid=(n,),
        in_specs=[
            pl.BlockSpec((4, hp, wp, c), lambda i: (i, 0, 0, 0)),   # xpp
            full3d((25, c, 3 * c)),   # wf
            full2d((1, 3 * c)),       # bf
            full2d((3 * c, c)),       # w2
            full2d((1, c)),           # b2
            full3d((25, c, 3 * c)),   # wg
            full2d((1, 3 * c)),       # bg
            full2d((3 * c, c)),       # w3a
            full2d((c, c)),           # w3b
            full2d((1, c)),           # b3
        ],
        out_specs=pl.BlockSpec((1, ho, wo, c), lambda i: (i, 0, 0, 0)),
        scratch_shapes=[pltpu.VMEM((4, ho + 9, wo + 9, c), jnp.float32)],
        compiler_params=pltpu.CompilerParams(
            dimension_semantics=("parallel",)),
    )(xpp, wf, bf, w2, b2, wg, bg, w3a, w3b, b3)

    return jnp.transpose(out, (0, 3, 1, 2))                    # NHWC -> NCHW


# ----------------------------------------------------------------------------
# Parameters (deterministic init, PyTorch Conv2d fan-in bounds, HWIO layout)
# ----------------------------------------------------------------------------
def init_params(key, c):
    def conv_param(k, kh, kw, cin, cout):
        k1, k2 = jax.random.split(k)
        bound = 1.0 / float(np.sqrt(cin * kh * kw))
        w = jax.random.uniform(k1, (kh, kw, cin, cout), jnp.float32, -bound, bound)
        b = jax.random.uniform(k2, (cout,), jnp.float32, -bound, bound)
        return w, b

    keys = jax.random.split(key, 9)
    return {
        "conv1_1": conv_param(keys[0], 1, 1, c, c),
        "conv1_2": conv_param(keys[1], 3, 3, c, c),
        "conv1_3": conv_param(keys[2], 5, 5, c, c),
        "conv2": conv_param(keys[3], 1, 1, 3 * c, c),
        "conv2_1": conv_param(keys[4], 1, 1, c, c),
        "conv2_2": conv_param(keys[5], 3, 3, c, c),
        "conv2_3": conv_param(keys[6], 5, 5, c, c),
        "adjustCon": conv_param(keys[7], 2, 2, c, c),
        "conv3": conv_param(keys[8], 1, 1, 4 * c, c),
    }


# ----------------------------------------------------------------------------
# Pure-JAX (XLA) reference for validation
# ----------------------------------------------------------------------------
def ref_forward(params, x, adjust=False):
    def conv(inp, name, stride, pad, relu=False):
        wgt, b = params[name]
        out = lax.conv_general_dilated(
            inp, wgt, (stride, stride), ((pad, pad), (pad, pad)),
            dimension_numbers=("NCHW", "HWIO", "NCHW"))
        out = out + b.reshape(1, -1, 1, 1)
        return jnp.maximum(out, 0.0) if relu else out

    x1_1 = conv(x, "conv1_1", 1, 0)
    x1_2 = conv(x, "conv1_2", 1, 1)
    x1_3 = conv(x, "conv1_3", 1, 2)
    xc = jnp.concatenate([x1_1, x1_2, x1_3], axis=1)
    x2 = conv(xc, "conv2", 1, 0, relu=True)
    x2_1 = conv(x2, "conv2_1", 2, 0)
    x2_2 = conv(x2, "conv2_2", 2, 1)
    x2_3 = conv(x2, "conv2_3", 2, 2)
    xpool = lax.reduce_window(x2, -jnp.inf, lax.max,
                              (1, 1, 2, 2), (1, 1, 2, 2), "VALID")
    if adjust:
        xpool = conv(xpool, "adjustCon", 1, 1)
    xc2 = jnp.concatenate([x2_1, x2_2, x2_3, xpool], axis=1)
    return conv(xc2, "conv3", 1, 0, relu=True)


# ----------------------------------------------------------------------------
if __name__ == "__main__":
    key = jax.random.PRNGKey(0)
    kx, kp = jax.random.split(key)

    N, C, H, W = 2, 4, 16, 16
    x = jax.random.normal(kx, (N, C, H, W), jnp.float32)
    params = init_params(kp, C)

    out = jax.jit(lambda p, v: imnv_forward(p, v, adjust=False))(params, x)
    out = jax.block_until_ready(out)

    ref = jax.block_until_ready(ref_forward(params, x, adjust=False))

    assert out.shape == (N, C, H // 2, W // 2), out.shape
    np.testing.assert_allclose(np.asarray(out), np.asarray(ref),
                               rtol=1e-4, atol=1e-4)
    print("KERNEL_OK")
</pallas_src>

<mosaic_0001>
module attributes {stable_mosaic.version = 11 : i64} {
  func.func @_imnv_fused_kernel(%arg0: i32, %arg1: memref<4x10x10x4xf32, #tpu.memory_space<vmem>>, %arg2: memref<25x4x12xf32, #tpu.memory_space<vmem>>, %arg3: memref<1x12xf32, #tpu.memory_space<vmem>>, %arg4: memref<12x4xf32, #tpu.memory_space<vmem>>, %arg5: memref<1x4xf32, #tpu.memory_space<vmem>>, %arg6: memref<25x4x12xf32, #tpu.memory_space<vmem>>, %arg7: memref<1x12xf32, #tpu.memory_space<vmem>>, %arg8: memref<12x4xf32, #tpu.memory_space<vmem>>, %arg9: memref<4x4xf32, #tpu.memory_space<vmem>>, %arg10: memref<1x4xf32, #tpu.memory_space<vmem>>, %arg11: memref<1x8x8x4xf32, #tpu.memory_space<vmem>>, %arg12: memref<4x17x17x4xf32, #tpu.memory_space<vmem>>) attributes {dimension_semantics = [#tpu.dimension_semantics<parallel>], iteration_bounds = array<i64: 2>, scalar_prefetch = 0 : i64, scratch_operands = 1 : i64, tpu.core_type = #tpu.core_type<tc>, window_params = [{transform_indices = @transform_0, window_bounds = array<i64: 4, 10, 10, 4>}, {pipeline_mode = #tpu.pipeline_mode<synchronous>, transform_indices = @transform_1, window_bounds = array<i64: 25, 4, 12>}, {pipeline_mode = #tpu.pipeline_mode<synchronous>, transform_indices = @transform_2, window_bounds = array<i64: 1, 12>}, {pipeline_mode = #tpu.pipeline_mode<synchronous>, transform_indices = @transform_3, window_bounds = array<i64: 12, 4>}, {pipeline_mode = #tpu.pipeline_mode<synchronous>, transform_indices = @transform_4, window_bounds = array<i64: 1, 4>}, {pipeline_mode = #tpu.pipeline_mode<synchronous>, transform_indices = @transform_5, window_bounds = array<i64: 25, 4, 12>}, {pipeline_mode = #tpu.pipeline_mode<synchronous>, transform_indices = @transform_6, window_bounds = array<i64: 1, 12>}, {pipeline_mode = #tpu.pipeline_mode<synchronous>, transform_indices = @transform_7, window_bounds = array<i64: 12, 4>}, {pipeline_mode = #tpu.pipeline_mode<synchronous>, transform_indices = @transform_8, window_bounds = array<i64: 4, 4>}, {pipeline_mode = #tpu.pipeline_mode<synchronous>, transform_indices = @transform_9, window_bounds = array<i64: 1, 4>}, {transform_indices = @transform_10, window_bounds = array<i64: 1, 8, 8, 4>}]} {
    %cst = arith.constant 0.000000e+00 : f32
    %0 = vector.broadcast %cst : f32 to vector<256x12xf32>
    %c0 = arith.constant 0 : index
    %c0_0 = arith.constant 0 : index
    %c0_1 = arith.constant 0 : index
    %c0_2 = arith.constant 0 : index
    %1 = vector.load %arg1[%c0, %c0_0, %c0_1, %c0_2] : memref<4x10x10x4xf32, #tpu.memory_space<vmem>>, vector<1x8x8x4xf32>
    %2 = vector.shape_cast %1 : vector<1x8x8x4xf32> to vector<8x8x4xf32>
    %3 = vector.shape_cast %2 : vector<8x8x4xf32> to vector<64x4xf32>
    %c1 = arith.constant 1 : index
    %c0_3 = arith.constant 0 : index
    %c0_4 = arith.constant 0 : index
    %c0_5 = arith.constant 0 : index
    %4 = vector.load %arg1[%c1, %c0_3, %c0_4, %c0_5] : memref<4x10x10x4xf32, #tpu.memory_space<vmem>>, vector<1x8x8x4xf32>
    %5 = vector.shape_cast %4 : vector<1x8x8x4xf32> to vector<8x8x4xf32>
    %6 = vector.shape_cast %5 : vector<8x8x4xf32> to vector<64x4xf32>
    %c2 = arith.constant 2 : index
    %c0_6 = arith.constant 0 : index
    %c0_7 = arith.constant 0 : index
    %c0_8 = arith.constant 0 : index
    %7 = vector.load %arg1[%c2, %c0_6, %c0_7, %c0_8] : memref<4x10x10x4xf32, #tpu.memory_space<vmem>>, vector<1x8x8x4xf32>
    %8 = vector.shape_cast %7 : vector<1x8x8x4xf32> to vector<8x8x4xf32>
    %9 = vector.shape_cast %8 : vector<8x8x4xf32> to vector<64x4xf32>
    %c3 = arith.constant 3 : index
    %c0_9 = arith.constant 0 : index
    %c0_10 = arith.constant 0 : index
    %c0_11 = arith.constant 0 : index
    %10 = vector.load %arg1[%c3, %c0_9, %c0_10, %c0_11] : memref<4x10x10x4xf32, #tpu.memory_space<vmem>>, vector<1x8x8x4xf32>
    %11 = vector.shape_cast %10 : vector<1x8x8x4xf32> to vector<8x8x4xf32>
    %12 = vector.shape_cast %11 : vector<8x8x4xf32> to vector<64x4xf32>
    %13 = tpu.concatenate %3, %6, %9, %12 in 0 : vector<64x4xf32>, vector<64x4xf32>, vector<64x4xf32>, vector<64x4xf32> -> vector<256x4xf32>
    %c0_12 = arith.constant 0 : index
    %c0_13 = arith.constant 0 : index
    %c0_14 = arith.constant 0 : index
    %14 = vector.load %arg2[%c0_12, %c0_13, %c0_14] : memref<25x4x12xf32, #tpu.memory_space<vmem>>, vector<1x4x12xf32>
    %15 = vector.shape_cast %14 : vector<1x4x12xf32> to vector<4x12xf32>
    %cst_15 = arith.constant dense<0.000000e+00> : vector<256x12xf32>
    %16 = tpu.matmul %13, %15, %cst_15 {dimension_numbers = #tpu.dot_dimension_numbers<[1], [0], [0], [1], [0, 0, 1, 1], [], []>} : vector<256x4xf32>, vector<4x12xf32>, vector<256x12xf32> -> vector<256x12xf32>
    %17 = arith.addf %0, %16 : vector<256x12xf32>
    %c1_16 = arith.constant 1 : index
    %c0_17 = arith.constant 0 : index
    %c0_18 = arith.constant 0 : index
    %c0_19 = arith.constant 0 : index
    %18 = vector.load %arg1[%c1_16, %c0_17, %c0_18, %c0_19] : memref<4x10x10x4xf32, #tpu.memory_space<vmem>>, vector<1x8x8x4xf32>
    %19 = vector.shape_cast %18 : vector<1x8x8x4xf32> to vector<8x8x4xf32>
    %20 = vector.shape_cast %19 : vector<8x8x4xf32> to vector<64x4xf32>
    %c0_20 = arith.constant 0 : index
    %c0_21 = arith.constant 0 : index
    %c1_22 = arith.constant 1 : index
    %c0_23 = arith.constant 0 : index
    %21 = vector.load %arg1[%c0_20, %c0_21, %c1_22, %c0_23] : memref<4x10x10x4xf32, #tpu.memory_space<vmem>>, vector<1x8x8x4xf32>
    %22 = vector.shape_cast %21 : vector<1x8x8x4xf32> to vector<8x8x4xf32>
    %23 = vector.shape_cast %22 : vector<8x8x4xf32> to vector<64x4xf32>
    %c3_24 = arith.constant 3 : index
    %c0_25 = arith.constant 0 : index
    %c0_26 = arith.constant 0 : index
    %c0_27 = arith.constant 0 : index
    %24 = vector.load %arg1[%c3_24, %c0_25, %c0_26, %c0_27] : memref<4x10x10x4xf32, #tpu.memory_space<vmem>>, vector<1x8x8x4xf32>
    %25 = vector.shape_cast %24 : vector<1x8x8x4xf32> to vector<8x8x4xf32>
    %26 = vector.shape_cast %25 : vector<8x8x4xf32> to vector<64x4xf32>
    %c2_28 = arith.constant 2 : index
    %c0_29 = arith.constant 0 : index
    %c1_30 = arith.constant 1 : index
    %c0_31 = arith.constant 0 : index
    %27 = vector.load %arg1[%c2_28, %c0_29, %c1_30, %c0_31] : memref<4x10x10x4xf32, #tpu.memory_space<vmem>>, vector<1x8x8x4xf32>
    %28 = vector.shape_cast %27 : vector<1x8x8x4xf32> to vector<8x8x4xf32>
    %29 = vector.shape_cast %28 : vector<8x8x4xf32> to vector<64x4xf32>
    %30 = tpu.concatenate %20, %23, %26, %29 in 0 : vector<64x4xf32>, vector<64x4xf32>, vector<64x4xf32>, vector<64x4xf32> -> vector<256x4xf32>
    %c1_32 = arith.constant 1 : index
    %c0_33 = arith.constant 0 : index
    %c0_34 = arith.constant 0 : index
    %31 = vector.load %arg2[%c1_32, %c0_33, %c0_34] : memref<25x4x12xf32, #tpu.memory_space<vmem>>, vector<1x4x12xf32>
    %32 = vector.shape_cast %31 : vector<1x4x12xf32> to vector<4x12xf32>
    %cst_35 = arith.constant dense<0.000000e+00> : vector<256x12xf32>
    %33 = tpu.matmul %30, %32, %cst_35 {dimension_numbers = #tpu.dot_dimension_numbers<[1], [0], [0], [1], [0, 0, 1, 1], [], []>} : vector<256x4xf32>, vector<4x12xf32>, vector<256x12xf32> -> vector<256x12xf32>
    %34 = arith.addf %17, %33 : vector<256x12xf32>
    %c0_36 = arith.constant 0 : index
    %c0_37 = arith.constant 0 : index
    %c1_38 = arith.constant 1 : index
    %c0_39 = arith.constant 0 : index
    %35 = vector.load %arg1[%c0_36, %c0_37, %c1_38, %c0_39] : memref<4x10x10x4xf32, #tpu.memory_space<vmem>>, vector<1x8x8x4xf32>
    %36 = vector.shape_cast %35 : vector<1x8x8x4xf32> to vector<8x8x4xf32>
    %37 = vector.shape_cast %36 : vector<8x8x4xf32> to vector<64x4xf32>
    %c1_40 = arith.constant 1 : index
    %c0_41 = arith.constant 0 : index
    %c1_42 = arith.constant 1 : index
    %c0_43 = arith.constant 0 : index
    %38 = vector.load %arg1[%c1_40, %c0_41, %c1_42, %c0_43] : memref<4x10x10x4xf32, #tpu.memory_space<vmem>>, vector<1x8x8x4xf32>
    %39 = vector.shape_cast %38 : vector<1x8x8x4xf32> to vector<8x8x4xf32>
    %40 = vector.shape_cast %39 : vector<8x8x4xf32> to vector<64x4xf32>
    %c2_44 = arith.constant 2 : index
    %c0_45 = arith.constant 0 : index
    %c1_46 = arith.constant 1 : index
    %c0_47 = arith.constant 0 : index
    %41 = vector.load %arg1[%c2_44, %c0_45, %c1_46, %c0_47] : memref<4x10x10x4xf32, #tpu.memory_space<vmem>>, vector<1x8x8x4xf32>
    %42 = vector.shape_cast %41 : vector<1x8x8x4xf32> to vector<8x8x4xf32>
    %43 = vector.shape_cast %42 : vector<8x8x4xf32> to vector<64x4xf32>
    %c3_48 = arith.constant 3 : index
    %c0_49 = arith.constant 0 : index
    %c1_50 = arith.constant 1 : index
    %c0_51 = arith.constant 0 : index
    %44 = vector.load %arg1[%c3_48, %c0_49, %c1_50, %c0_51] : memref<4x10x10x4xf32, #tpu.memory_space<vmem>>, vector<1x8x8x4xf32>
    %45 = vector.shape_cast %44 : vector<1x8x8x4xf32> to vector<8x8x4xf32>
    %46 = vector.shape_cast %45 : vector<8x8x4xf32> to vector<64x4xf32>
    %47 = tpu.concatenate %37, %40, %43, %46 in 0 : vector<64x4xf32>, vector<64x4xf32>, vector<64x4xf32>, vector<64x4xf32> -> vector<256x4xf32>
    %c2_52 = arith.constant 2 : index
    %c0_53 = arith.constant 0 : index
    %c0_54 = arith.constant 0 : index
    %48 = vector.load %arg2[%c2_52, %c0_53, %c0_54] : memref<25x4x12xf32, #tpu.memory_space<vmem>>, vector<1x4x12xf32>
    %49 = vector.shape_cast %48 : vector<1x4x12xf32> to vector<4x12xf32>
    %cst_55 = arith.constant dense<0.000000e+00> : vector<256x12xf32>
    %50 = tpu.matmul %47, %49, %cst_55 {dimension_numbers = #tpu.dot_dimension_numbers<[1], [0], [0], [1], [0, 0, 1, 1], [], []>} : vector<256x4xf32>, vector<4x12xf32>, vector<256x12xf32> -> vector<256x12xf32>
    %51 = arith.addf %34, %50 : vector<256x12xf32>
    %c1_56 = arith.constant 1 : index
    %c0_57 = arith.constant 0 : index
    %c1_58 = arith.constant 1 : index
    %c0_59 = arith.constant 0 : index
    %52 = vector.load %arg1[%c1_56, %c0_57, %c1_58, %c0_59] : memref<4x10x10x4xf32, #tpu.memory_space<vmem>>, vector<1x8x8x4xf32>
    %53 = vector.shape_cast %52 : vector<1x8x8x4xf32> to vector<8x8x4xf32>
    %54 = vector.shape_cast %53 : vector<8x8x4xf32> to vector<64x4xf32>
    %c0_60 = arith.constant 0 : index
    %c0_61 = arith.constant 0 : index
    %c2_62 = arith.constant 2 : index
    %c0_63 = arith.constant 0 : index
    %55 = vector.load %arg1[%c0_60, %c0_61, %c2_62, %c0_63] : memref<4x10x10x4xf32, #tpu.memory_space<vmem>>, vector<1x8x8x4xf32>
    %56 = vector.shape_cast %55 : vector<1x8x8x4xf32> to vector<8x8x4xf32>
    %57 = vector.shape_cast %56 : vector<8x8x4xf32> to vector<64x4xf32>
    %c3_64 = arith.constant 3 : index
    %c0_65 = arith.constant 0 : index
    %c1_66 = arith.constant 1 : index
    %c0_67 = arith.constant 0 : index
    %58 = vector.load %arg1[%c3_64, %c0_65, %c1_66, %c0_67] : memref<4x10x10x4xf32, #tpu.memory_space<vmem>>, vector<1x8x8x4xf32>
    %59 = vector.shape_cast %58 : vector<1x8x8x4xf32> to vector<8x8x4xf32>
    %60 = vector.shape_cast %59 : vector<8x8x4xf32> to vector<64x4xf32>
    %c2_68 = arith.constant 2 : index
    %c0_69 = arith.constant 0 : index
    %c2_70 = arith.constant 2 : index
    %c0_71 = arith.constant 0 : index
    %61 = vector.load %arg1[%c2_68, %c0_69, %c2_70, %c0_71] : memref<4x10x10x4xf32, #tpu.memory_space<vmem>>, vector<1x8x8x4xf32>
    %62 = vector.shape_cast %61 : vector<1x8x8x4xf32> to vector<8x8x4xf32>
    %63 = vector.shape_cast %62 : vector<8x8x4xf32> to vector<64x4xf32>
    %64 = tpu.concatenate %54, %57, %60, %63 in 0 : vector<64x4xf32>, vector<64x4xf32>, vector<64x4xf32>, vector<64x4xf32> -> vector<256x4xf32>
    %c3_72 = arith.constant 3 : index
    %c0_73 = arith.constant 0 : index
    %c0_74 = arith.constant 0 : index
    %65 = vector.load %arg2[%c3_72, %c0_73, %c0_74] : memref<25x4x12xf32, #tpu.memory_space<vmem>>, vector<1x4x12xf32>
    %66 = vector.shape_cast %65 : vector<1x4x12xf32> to vector<4x12xf32>
    %cst_75 = arith.constant dense<0.000000e+00> : vector<256x12xf32>
    %67 = tpu.matmul %64, %66, %cst_75 {dimension_numbers = #tpu.dot_dimension_numbers<[1], [0], [0], [1], [0, 0, 1, 1], [], []>} : vector<256x4xf32>, vector<4x12xf32>, vector<256x12xf32> -> vector<256x12xf32>
    %68 = arith.addf %51, %67 : vector<256x12xf32>
    %c0_76 = arith.constant 0 : index
    %c0_77 = arith.constant 0 : index
    %c2_78 = arith.constant 2 : index
    %c0_79 = arith.constant 0 : index
    %69 = vector.load %arg1[%c0_76, %c0_77, %c2_78, %c0_79] : memref<4x10x10x4xf32, #tpu.memory_space<vmem>>, vector<1x8x8x4xf32>
    %70 = vector.shape_cast %69 : vector<1x8x8x4xf32> to vector<8x8x4xf32>
    %71 = vector.shape_cast %70 : vector<8x8x4xf32> to vector<64x4xf32>
    %c1_80 = arith.constant 1 : index
    %c0_81 = arith.constant 0 : index
    %c2_82 = arith.constant 2 : index
    %c0_83 = arith.constant 0 : index
    %72 = vector.load %arg1[%c1_80, %c0_81, %c2_82, %c0_83] : memref<4x10x10x4xf32, #tpu.memory_space<vmem>>, vector<1x8x8x4xf32>
    %73 = vector.shape_cast %72 : vector<1x8x8x4xf32> to vector<8x8x4xf32>
    %74 = vector.shape_cast %73 : vector<8x8x4xf32> to vector<64x4xf32>
    %c2_84 = arith.constant 2 : index
    %c0_85 = arith.constant 0 : index
    %c2_86 = arith.constant 2 : index
    %c0_87 = arith.constant 0 : index
    %75 = vector.load %arg1[%c2_84, %c0_85, %c2_86, %c0_87] : memref<4x10x10x4xf32, #tpu.memory_space<vmem>>, vector<1x8x8x4xf32>
    %76 = vector.shape_cast %75 : vector<1x8x8x4xf32> to vector<8x8x4xf32>
    %77 = vector.shape_cast %76 : vector<8x8x4xf32> to vector<64x4xf32>
    %c3_88 = arith.constant 3 : index
    %c0_89 = arith.constant 0 : index
    %c2_90 = arith.constant 2 : index
    %c0_91 = arith.constant 0 : index
    %78 = vector.load %arg1[%c3_88, %c0_89, %c2_90, %c0_91] : memref<4x10x10x4xf32, #tpu.memory_space<vmem>>, vector<1x8x8x4xf32>
    %79 = vector.shape_cast %78 : vector<1x8x8x4xf32> to vector<8x8x4xf32>
    %80 = vector.shape_cast %79 : vector<8x8x4xf32> to vector<64x4xf32>
    %81 = tpu.concatenate %71, %74, %77, %80 in 0 : vector<64x4xf32>, vector<64x4xf32>, vector<64x4xf32>, vector<64x4xf32> -> vector<256x4xf32>
    %c4 = arith.constant 4 : index
    %c0_92 = arith.constant 0 : index
    %c0_93 = arith.constant 0 : index
    %82 = vector.load %arg2[%c4, %c0_92, %c0_93] : memref<25x4x12xf32, #tpu.memory_space<vmem>>, vector<1x4x12xf32>
    %83 = vector.shape_cast %82 : vector<1x4x12xf32> to vector<4x12xf32>
    %cst_94 = arith.constant dense<0.000000e+00> : vector<256x12xf32>
    %84 = tpu.matmul %81, %83, %cst_94 {dimension_numbers = #tpu.dot_dimension_numbers<[1], [0], [0], [1], [0, 0, 1, 1], [], []>} : vector<256x4xf32>, vector<4x12xf32>, vector<256x12xf32> -> vector<256x12xf32>
    %85 = arith.addf %68, %84 : vector<256x12xf32>
    %c2_95 = arith.constant 2 : index
    %c0_96 = arith.constant 0 : index
    %c0_97 = arith.constant 0 : index
    %c0_98 = arith.constant 0 : index
    %86 = vector.load %arg1[%c2_95, %c0_96, %c0_97, %c0_98] : memref<4x10x10x4xf32, #tpu.memory_space<vmem>>, vector<1x8x8x4xf32>
    %87 = vector.shape_cast %86 : vector<1x8x8x4xf32> to vector<8x8x4xf32>
    %88 = vector.shape_cast %87 : vector<8x8x4xf32> to vector<64x4xf32>
    %c3_99 = arith.constant 3 : index
    %c0_100 = arith.constant 0 : index
    %c0_101 = arith.constant 0 : index
    %c0_102 = arith.constant 0 : index
    %89 = vector.load %arg1[%c3_99, %c0_100, %c0_101, %c0_102] : memref<4x10x10x4xf32, #tpu.memory_space<vmem>>, vector<1x8x8x4xf32>
    %90 = vector.shape_cast %89 : vector<1x8x8x4xf32> to vector<8x8x4xf32>
    %91 = vector.shape_cast %90 : vector<8x8x4xf32> to vector<64x4xf32>
    %c0_103 = arith.constant 0 : index
    %c1_104 = arith.constant 1 : index
    %c0_105 = arith.constant 0 : index
    %c0_106 = arith.constant 0 : index
    %92 = vector.load %arg1[%c0_103, %c1_104, %c0_105, %c0_106] : memref<4x10x10x4xf32, #tpu.memory_space<vmem>>, vector<1x8x8x4xf32>
    %93 = vector.shape_cast %92 : vector<1x8x8x4xf32> to vector<8x8x4xf32>
    %94 = vector.shape_cast %93 : vector<8x8x4xf32> to vector<64x4xf32>
    %c1_107 = arith.constant 1 : index
    %c1_108 = arith.constant 1 : index
    %c0_109 = arith.constant 0 : index
    %c0_110 = arith.constant 0 : index
    %95 = vector.load %arg1[%c1_107, %c1_108, %c0_109, %c0_110] : memref<4x10x10x4xf32, #tpu.memory_space<vmem>>, vector<1x8x8x4xf32>
    %96 = vector.shape_cast %95 : vector<1x8x8x4xf32> to vector<8x8x4xf32>
    %97 = vector.shape_cast %96 : vector<8x8x4xf32> to vector<64x4xf32>
    %98 = tpu.concatenate %88, %91, %94, %97 in 0 : vector<64x4xf32>, vector<64x4xf32>, vector<64x4xf32>, vector<64x4xf32> -> vector<256x4xf32>
    %c5 = arith.constant 5 : index
    %c0_111 = arith.constant 0 : index
    %c0_112 = arith.constant 0 : index
    %99 = vector.load %arg2[%c5, %c0_111, %c0_112] : memref<25x4x12xf32, #tpu.memory_space<vmem>>, vector<1x4x12xf32>
    %100 = vector.shape_cast %99 : vector<1x4x12xf32> to vector<4x12xf32>
    %cst_113 = arith.constant dense<0.000000e+00> : vector<256x12xf32>
    %101 = tpu.matmul %98, %100, %cst_113 {dimension_numbers = #tpu.dot_dimension_numbers<[1], [0], [0], [1], [0, 0, 1, 1], [], []>} : vector<256x4xf32>, vector<4x12xf32>, vector<256x12xf32> -> vector<256x12xf32>
    %102 = arith.addf %85, %101 : vector<256x12xf32>
    %c3_114 = arith.constant 3 : index
    %c0_115 = arith.constant 0 : index
    %c0_116 = arith.constant 0 : index
    %c0_117 = arith.constant 0 : index
    %103 = vector.load %arg1[%c3_114, %c0_115, %c0_116, %c0_117] : memref<4x10x10x4xf32, #tpu.memory_space<vmem>>, vector<1x8x8x4xf32>
    %104 = vector.shape_cast %103 : vector<1x8x8x4xf32> to vector<8x8x4xf32>
    %105 = vector.shape_cast %104 : vector<8x8x4xf32> to vector<64x4xf32>
    %c2_118 = arith.constant 2 : index
    %c0_119 = arith.constant 0 : index
    %c1_120 = arith.constant 1 : index
    %c0_121 = arith.constant 0 : index
    %106 = vector.load %arg1[%c2_118, %c0_119, %c1_120, %c0_121] : memref<4x10x10x4xf32, #tpu.memory_space<vmem>>, vector<1x8x8x4xf32>
    %107 = vector.shape_cast %106 : vector<1x8x8x4xf32> to vector<8x8x4xf32>
    %108 = vector.shape_cast %107 : vector<8x8x4xf32> to vector<64x4xf32>
    %c1_122 = arith.constant 1 : index
    %c1_123 = arith.constant 1 : index
    %c0_124 = arith.constant 0 : index
    %c0_125 = arith.constant 0 : index
    %109 = vector.load %arg1[%c1_122, %c1_123, %c0_124, %c0_125] : memref<4x10x10x4xf32, #tpu.memory_space<vmem>>, vector<1x8x8x4xf32>
    %110 = vector.shape_cast %109 : vector<1x8x8x4xf32> to vector<8x8x4xf32>
    %111 = vector.shape_cast %110 : vector<8x8x4xf32> to vector<64x4xf32>
    %c0_126 = arith.constant 0 : index
    %c1_127 = arith.constant 1 : index
    %c1_128 = arith.constant 1 : index
    %c0_129 = arith.constant 0 : index
    %112 = vector.load %arg1[%c0_126, %c1_127, %c1_128, %c0_129] : memref<4x10x10x4xf32, #tpu.memory_space<vmem>>, vector<1x8x8x4xf32>
    %113 = vector.shape_cast %112 : vector<1x8x8x4xf32> to vector<8x8x4xf32>
    %114 = vector.shape_cast %113 : vector<8x8x4xf32> to vector<64x4xf32>
    %115 = tpu.concatenate %105, %108, %111, %114 in 0 : vector<64x4xf32>, vector<64x4xf32>, vector<64x4xf32>, vector<64x4xf32> -> vector<256x4xf32>
    %c6 = arith.constant 6 : index
    %c0_130 = arith.constant 0 : index
    %c0_131 = arith.constant 0 : index
    %116 = vector.load %arg2[%c6, %c0_130, %c0_131] : memref<25x4x12xf32, #tpu.memory_space<vmem>>, vector<1x4x12xf32>
    %117 = vector.shape_cast %116 : vector<1x4x12xf32> to vector<4x12xf32>
    %cst_132 = arith.constant dense<0.000000e+00> : vector<256x12xf32>
    %118 = tpu.matmul %115, %117, %cst_132 {dimension_numbers = #tpu.dot_dimension_numbers<[1], [0], [0], [1], [0, 0, 1, 1], [], []>} : vector<256x4xf32>, vector<4x12xf32>, vector<256x12xf32> -> vector<256x12xf32>
    %119 = arith.addf %102, %118 : vector<256x12xf32>
    %c2_133 = arith.constant 2 : index
    %c0_134 = arith.constant 0 : index
    %c1_135 = arith.constant 1 : index
    %c0_136 = arith.constant 0 : index
    %120 = vector.load %arg1[%c2_133, %c0_134, %c1_135, %c0_136] : memref<4x10x10x4xf32, #tpu.memory_space<vmem>>, vector<1x8x8x4xf32>
    %121 = vector.shape_cast %120 : vector<1x8x8x4xf32> to vector<8x8x4xf32>
    %122 = vector.shape_cast %121 : vector<8x8x4xf32> to vector<64x4xf32>
    %c3_137 = arith.constant 3 : index
    %c0_138 = arith.constant 0 : index
    %c1_139 = arith.constant 1 : index
    %c0_140 = arith.constant 0 : index
    %123 = vector.load %arg1[%c3_137, %c0_138, %c1_139, %c0_140] : memref<4x10x10x4xf32, #tpu.memory_space<vmem>>, vector<1x8x8x4xf32>
    %124 = vector.shape_cast %123 : vector<1x8x8x4xf32> to vector<8x8x4xf32>
    %125 = vector.shape_cast %124 : vector<8x8x4xf32> to vector<64x4xf32>
    %c0_141 = arith.constant 0 : index
    %c1_142 = arith.constant 1 : index
    %c1_143 = arith.constant 1 : index
    %c0_144 = arith.constant 0 : index
    %126 = vector.load %arg1[%c0_141, %c1_142, %c1_143, %c0_144] : memref<4x10x10x4xf32, #tpu.memory_space<vmem>>, vector<1x8x8x4xf32>
    %127 = vector.shape_cast %126 : vector<1x8x8x4xf32> to vector<8x8x4xf32>
    %128 = vector.shape_cast %127 : vector<8x8x4xf32> to vector<64x4xf32>
    %c1_145 = arith.constant 1 : index
    %c1_146 = arith.constant 1 : index
    %c1_147 = arith.constant 1 : index
    %c0_148 = arith.constant 0 : index
    %129 = vector.load %arg1[%c1_145, %c1_146, %c1_147, %c0_148] : memref<4x10x10x4xf32, #tpu.memory_space<vmem>>, vector<1x8x8x4xf32>
    %130 = vector.shape_cast %129 : vector<1x8x8x4xf32> to vector<8x8x4xf32>
    %131 = vector.shape_cast %130 : vector<8x8x4xf32> to vector<64x4xf32>
    %132 = tpu.concatenate %122, %125, %128, %131 in 0 : vector<64x4xf32>, vector<64x4xf32>, vector<64x4xf32>, vector<64x4xf32> -> vector<256x4xf32>
    %c7 = arith.constant 7 : index
    %c0_149 = arith.constant 0 : index
    %c0_150 = arith.constant 0 : index
    %133 = vector.load %arg2[%c7, %c0_149, %c0_150] : memref<25x4x12xf32, #tpu.memory_space<vmem>>, vector<1x4x12xf32>
    %134 = vector.shape_cast %133 : vector<1x4x12xf32> to vector<4x12xf32>
    %cst_151 = arith.constant dense<0.000000e+00> : vector<256x12xf32>
    %135 = tpu.matmul %132, %134, %cst_151 {dimension_numbers = #tpu.dot_dimension_numbers<[1], [0], [0], [1], [0, 0, 1, 1], [], []>} : vector<256x4xf32>, vector<4x12xf32>, vector<256x12xf32> -> vector<256x12xf32>
    %136 = arith.addf %119, %135 : vector<256x12xf32>
    %c3_152 = arith.constant 3 : index
    %c0_153 = arith.constant 0 : index
    %c1_154 = arith.constant 1 : index
    %c0_155 = arith.constant 0 : index
    %137 = vector.load %arg1[%c3_152, %c0_153, %c1_154, %c0_155] : memref<4x10x10x4xf32, #tpu.memory_space<vmem>>, vector<1x8x8x4xf32>
    %138 = vector.shape_cast %137 : vector<1x8x8x4xf32> to vector<8x8x4xf32>
    %139 = vector.shape_cast %138 : vector<8x8x4xf32> to vector<64x4xf32>
    %c2_156 = arith.constant 2 : index
    %c0_157 = arith.constant 0 : index
    %c2_158 = arith.constant 2 : index
    %c0_159 = arith.constant 0 : index
    %140 = vector.load %arg1[%c2_156, %c0_157, %c2_158, %c0_159] : memref<4x10x10x4xf32, #tpu.memory_space<vmem>>, vector<1x8x8x4xf32>
    %141 = vector.shape_cast %140 : vector<1x8x8x4xf32> to vector<8x8x4xf32>
    %142 = vector.shape_cast %141 : vector<8x8x4xf32> to vector<64x4xf32>
    %c1_160 = arith.constant 1 : index
    %c1_161 = arith.constant 1 : index
    %c1_162 = arith.constant 1 : index
    %c0_163 = arith.constant 0 : index
    %143 = vector.load %arg1[%c1_160, %c1_161, %c1_162, %c0_163] : memref<4x10x10x4xf32, #tpu.memory_space<vmem>>, vector<1x8x8x4xf32>
    %144 = vector.shape_cast %143 : vector<1x8x8x4xf32> to vector<8x8x4xf32>
    %145 = vector.shape_cast %144 : vector<8x8x4xf32> to vector<64x4xf32>
    %c0_164 = arith.constant 0 : index
    %c1_165 = arith.constant 1 : index
    %c2_166 = arith.constant 2 : index
    %c0_167 = arith.constant 0 : index
    %146 = vector.load %arg1[%c0_164, %c1_165, %c2_166, %c0_167] : memref<4x10x10x4xf32, #tpu.memory_space<vmem>>, vector<1x8x8x4xf32>
    %147 = vector.shape_cast %146 : vector<1x8x8x4xf32> to vector<8x8x4xf32>
    %148 = vector.shape_cast %147 : vector<8x8x4xf32> to vector<64x4xf32>
    %149 = tpu.concatenate %139, %142, %145, %148 in 0 : vector<64x4xf32>, vector<64x4xf32>, vector<64x4xf32>, vector<64x4xf32> -> vector<256x4xf32>
    %c8 = arith.constant 8 : index
    %c0_168 = arith.constant 0 : index
    %c0_169 = arith.constant 0 : index
    %150 = vector.load %arg2[%c8, %c0_168, %c0_169] : memref<25x4x12xf32, #tpu.memory_space<vmem>>, vector<1x4x12xf32>
    %151 = vector.shape_cast %150 : vector<1x4x12xf32> to vector<4x12xf32>
    %cst_170 = arith.constant dense<0.000000e+00> : vector<256x12xf32>
    %152 = tpu.matmul %149, %151, %cst_170 {dimension_numbers = #tpu.dot_dimension_numbers<[1], [0], [0], [1], [0, 0, 1, 1], [], []>} : vector<256x4xf32>, vector<4x12xf32>, vector<256x12xf32> -> vector<256x12xf32>
    %153 = arith.addf %136, %152 : vector<256x12xf32>
    %c2_171 = arith.constant 2 : index
    %c0_172 = arith.constant 0 : index
    %c2_173 = arith.constant 2 : index
    %c0_174 = arith.constant 0 : index
    %154 = vector.load %arg1[%c2_171, %c0_172, %c2_173, %c0_174] : memref<4x10x10x4xf32, #tpu.memory_space<vmem>>, vector<1x8x8x4xf32>
    %155 = vector.shape_cast %154 : vector<1x8x8x4xf32> to vector<8x8x4xf32>
    %156 = vector.shape_cast %155 : vector<8x8x4xf32> to vector<64x4xf32>
    %c3_175 = arith.constant 3 : index
    %c0_176 = arith.constant 0 : index
    %c2_177 = arith.constant 2 : index
    %c0_178 = arith.constant 0 : index
    %157 = vector.load %arg1[%c3_175, %c0_176, %c2_177, %c0_178] : memref<4x10x10x4xf32, #tpu.memory_space<vmem>>, vector<1x8x8x4xf32>
    %158 = vector.shape_cast %157 : vector<1x8x8x4xf32> to vector<8x8x4xf32>
    %159 = vector.shape_cast %158 : vector<8x8x4xf32> to vector<64x4xf32>
    %c0_179 = arith.constant 0 : index
    %c1_180 = arith.constant 1 : index
    %c2_181 = arith.constant 2 : index
    %c0_182 = arith.constant 0 : index
    %160 = vector.load %arg1[%c0_179, %c1_180, %c2_181, %c0_182] : memref<4x10x10x4xf32, #tpu.memory_space<vmem>>, vector<1x8x8x4xf32>
    %161 = vector.shape_cast %160 : vector<1x8x8x4xf32> to vector<8x8x4xf32>
    %162 = vector.shape_cast %161 : vector<8x8x4xf32> to vector<64x4xf32>
    %c1_183 = arith.constant 1 : index
    %c1_184 = arith.constant 1 : index
    %c2_185 = arith.constant 2 : index
    %c0_186 = arith.constant 0 : index
    %163 = vector.load %arg1[%c1_183, %c1_184, %c2_185, %c0_186] : memref<4x10x10x4xf32, #tpu.memory_space<vmem>>, vector<1x8x8x4xf32>
    %164 = vector.shape_cast %163 : vector<1x8x8x4xf32> to vector<8x8x4xf32>
    %165 = vector.shape_cast %164 : vector<8x8x4xf32> to vector<64x4xf32>
    %166 = tpu.concatenate %156, %159, %162, %165 in 0 : vector<64x4xf32>, vector<64x4xf32>, vector<64x4xf32>, vector<64x4xf32> -> vector<256x4xf32>
    %c9 = arith.constant 9 : index
    %c0_187 = arith.constant 0 : index
    %c0_188 = arith.constant 0 : index
    %167 = vector.load %arg2[%c9, %c0_187, %c0_188] : memref<25x4x12xf32, #tpu.memory_space<vmem>>, vector<1x4x12xf32>
    %168 = vector.shape_cast %167 : vector<1x4x12xf32> to vector<4x12xf32>
    %cst_189 = arith.constant dense<0.000000e+00> : vector<256x12xf32>
    %169 = tpu.matmul %166, %168, %cst_189 {dimension_numbers = #tpu.dot_dimension_numbers<[1], [0], [0], [1], [0, 0, 1, 1], [], []>} : vector<256x4xf32>, vector<4x12xf32>, vector<256x12xf32> -> vector<256x12xf32>
    %170 = arith.addf %153, %169 : vector<256x12xf32>
    %c0_190 = arith.constant 0 : index
    %c1_191 = arith.constant 1 : index
    %c0_192 = arith.constant 0 : index
    %c0_193 = arith.constant 0 : index
    %171 = vector.load %arg1[%c0_190, %c1_191, %c0_192, %c0_193] : memref<4x10x10x4xf32, #tpu.memory_space<vmem>>, vector<1x8x8x4xf32>
    %172 = vector.shape_cast %171 : vector<1x8x8x4xf32> to vector<8x8x4xf32>
    %173 = vector.shape_cast %172 : vector<8x8x4xf32> to vector<64x4xf32>
    %c1_194 = arith.constant 1 : index
    %c1_195 = arith.constant 1 : index
    %c0_196 = arith.constant 0 : index
    %c0_197 = arith.constant 0 : index
    %174 = vector.load %arg1[%c1_194, %c1_195, %c0_196, %c0_197] : memref<4x10x10x4xf32, #tpu.memory_space<vmem>>, vector<1x8x8x4xf32>
    %175 = vector.shape_cast %174 : vector<1x8x8x4xf32> to vector<8x8x4xf32>
    %176 = vector.shape_cast %175 : vector<8x8x4xf32> to vector<64x4xf32>
    %c2_198 = arith.constant 2 : index
    %c1_199 = arith.constant 1 : index
    %c0_200 = arith.constant 0 : index
    %c0_201 = arith.constant 0 : index
    %177 = vector.load %arg1[%c2_198, %c1_199, %c0_200, %c0_201] : memref<4x10x10x4xf32, #tpu.memory_space<vmem>>, vector<1x8x8x4xf32>
    %178 = vector.shape_cast %177 : vector<1x8x8x4xf32> to vector<8x8x4xf32>
    %179 = vector.shape_cast %178 : vector<8x8x4xf32> to vector<64x4xf32>
    %c3_202 = arith.constant 3 : index
    %c1_203 = arith.constant 1 : index
    %c0_204 = arith.constant 0 : index
    %c0_205 = arith.constant 0 : index
    %180 = vector.load %arg1[%c3_202, %c1_203, %c0_204, %c0_205] : memref<4x10x10x4xf32, #tpu.memory_space<vmem>>, vector<1x8x8x4xf32>
    %181 = vector.shape_cast %180 : vector<1x8x8x4xf32> to vector<8x8x4xf32>
    %182 = vector.shape_cast %181 : vector<8x8x4xf32> to vector<64x4xf32>
    %183 = tpu.concatenate %173, %176, %179, %182 in 0 : vector<64x4xf32>, vector<64x4xf32>, vector<64x4xf32>, vector<64x4xf32> -> vector<256x4xf32>
    %c10 = arith.constant 10 : index
    %c0_206 = arith.constant 0 : index
    %c0_207 = arith.constant 0 : index
    %184 = vector.load %arg2[%c10, %c0_206, %c0_207] : memref<25x4x12xf32, #tpu.memory_space<vmem>>, vector<1x4x12xf32>
    %185 = vector.shape_cast %184 : vector<1x4x12xf32> to vector<4x12xf32>
    %cst_208 = arith.constant dense<0.000000e+00> : vector<256x12xf32>
    %186 = tpu.matmul %183, %185, %cst_208 {dimension_numbers = #tpu.dot_dimension_numbers<[1], [0], [0], [1], [0, 0, 1, 1], [], []>} : vector<256x4xf32>, vector<4x12xf32>, vector<256x12xf32> -> vector<256x12xf32>
    %187 = arith.addf %170, %186 : vector<256x12xf32>
    %c1_209 = arith.constant 1 : index
    %c1_210 = arith.constant 1 : index
    %c0_211 = arith.constant 0 : index
    %c0_212 = arith.constant 0 : index
    %188 = vector.load %arg1[%c1_209, %c1_210, %c0_211, %c0_212] : memref<4x10x10x4xf32, #tpu.memory_space<vmem>>, vector<1x8x8x4xf32>
    %189 = vector.shape_cast %188 : vector<1x8x8x4xf32> to vector<8x8x4xf32>
    %190 = vector.shape_cast %189 : vector<8x8x4xf32> to vector<64x4xf32>
    %c0_213 = arith.constant 0 : index
    %c1_214 = arith.constant 1 : index
    %c1_215 = arith.constant 1 : index
    %c0_216 = arith.constant 0 : index
    %191 = vector.load %arg1[%c0_213, %c1_214, %c1_215, %c0_216] : memref<4x10x10x4xf32, #tpu.memory_space<vmem>>, vector<1x8x8x4xf32>
    %192 = vector.shape_cast %191 : vector<1x8x8x4xf32> to vector<8x8x4xf32>
    %193 = vector.shape_cast %192 : vector<8x8x4xf32> to vector<64x4xf32>
    %c3_217 = arith.constant 3 : index
    %c1_218 = arith.constant 1 : index
    %c0_219 = arith.constant 0 : index
    %c0_220 = arith.constant 0 : index
    %194 = vector.load %arg1[%c3_217, %c1_218, %c0_219, %c0_220] : memref<4x10x10x4xf32, #tpu.memory_space<vmem>>, vector<1x8x8x4xf32>
    %195 = vector.shape_cast %194 : vector<1x8x8x4xf32> to vector<8x8x4xf32>
    %196 = vector.shape_cast %195 : vector<8x8x4xf32> to vector<64x4xf32>
    %c2_221 = arith.constant 2 : index
    %c1_222 = arith.constant 1 : index
    %c1_223 = arith.constant 1 : index
    %c0_224 = arith.constant 0 : index
    %197 = vector.load %arg1[%c2_221, %c1_222, %c1_223, %c0_224] : memref<4x10x10x4xf32, #tpu.memory_space<vmem>>, vector<1x8x8x4xf32>
    %198 = vector.shape_cast %197 : vector<1x8x8x4xf32> to vector<8x8x4xf32>
    %199 = vector.shape_cast %198 : vector<8x8x4xf32> to vector<64x4xf32>
    %200 = tpu.concatenate %190, %193, %196, %199 in 0 : vector<64x4xf32>, vector<64x4xf32>, vector<64x4xf32>, vector<64x4xf32> -> vector<256x4xf32>
    %c11 = arith.constant 11 : index
    %c0_225 = arith.constant 0 : index
    %c0_226 = arith.constant 0 : index
    %201 = vector.load %arg2[%c11, %c0_225, %c0_226] : memref<25x4x12xf32, #tpu.memory_space<vmem>>, vector<1x4x12xf32>
    %202 = vector.shape_cast %201 : vector<1x4x12xf32> to vector<4x12xf32>
    %cst_227 = arith.constant dense<0.000000e+00> : vector<256x12xf32>
    %203 = tpu.matmul %200, %202, %cst_227 {dimension_numbers = #tpu.dot_dimension_numbers<[1], [0], [0], [1], [0, 0, 1, 1], [], []>} : vector<256x4xf32>, vector<4x12xf32>, vector<256x12xf32> -> vector<256x12xf32>
    %204 = arith.addf %187, %203 : vector<256x12xf32>
    %c0_228 = arith.constant 0 : index
    %c1_229 = arith.constant 1 : index
    %c1_230 = arith.constant 1 : index
    %c0_231 = arith.constant 0 : index
    %205 = vector.load %arg1[%c0_228, %c1_229, %c1_230, %c0_231] : memref<4x10x10x4xf32, #tpu.memory_space<vmem>>, vector<1x8x8x4xf32>
    %206 = vector.shape_cast %205 : vector<1x8x8x4xf32> to vector<8x8x4xf32>
    %207 = vector.shape_cast %206 : vector<8x8x4xf32> to vector<64x4xf32>
    %c1_232 = arith.constant 1 : index
    %c1_233 = arith.constant 1 : index
    %c1_234 = arith.constant 1 : index
    %c0_235 = arith.constant 0 : index
    %208 = vector.load %arg1[%c1_232, %c1_233, %c1_234, %c0_235] : memref<4x10x10x4xf32, #tpu.memory_space<vmem>>, vector<1x8x8x4xf32>
    %209 = vector.shape_cast %208 : vector<1x8x8x4xf32> to vector<8x8x4xf32>
    %210 = vector.shape_cast %209 : vector<8x8x4xf32> to vector<64x4xf32>
    %c2_236 = arith.constant 2 : index
    %c1_237 = arith.constant 1 : index
    %c1_238 = arith.constant 1 : index
    %c0_239 = arith.constant 0 : index
    %211 = vector.load %arg1[%c2_236, %c1_237, %c1_238, %c0_239] : memref<4x10x10x4xf32, #tpu.memory_space<vmem>>, vector<1x8x8x4xf32>
    %212 = vector.shape_cast %211 : vector<1x8x8x4xf32> to vector<8x8x4xf32>
    %213 = vector.shape_cast %212 : vector<8x8x4xf32> to vector<64x4xf32>
    %c3_240 = arith.constant 3 : index
    %c1_241 = arith.constant 1 : index
    %c1_242 = arith.constant 1 : index
    %c0_243 = arith.constant 0 : index
    %214 = vector.load %arg1[%c3_240, %c1_241, %c1_242, %c0_243] : memref<4x10x10x4xf32, #tpu.memory_space<vmem>>, vector<1x8x8x4xf32>
    %215 = vector.shape_cast %214 : vector<1x8x8x4xf32> to vector<8x8x4xf32>
    %216 = vector.shape_cast %215 : vector<8x8x4xf32> to vector<64x4xf32>
    %217 = tpu.concatenate %207, %210, %213, %216 in 0 : vector<64x4xf32>, vector<64x4xf32>, vector<64x4xf32>, vector<64x4xf32> -> vector<256x4xf32>
    %c12 = arith.constant 12 : index
    %c0_244 = arith.constant 0 : index
    %c0_245 = arith.constant 0 : index
    %218 = vector.load %arg2[%c12, %c0_244, %c0_245] : memref<25x4x12xf32, #tpu.memory_space<vmem>>, vector<1x4x12xf32>
    %219 = vector.shape_cast %218 : vector<1x4x12xf32> to vector<4x12xf32>
    %cst_246 = arith.constant dense<0.000000e+00> : vector<256x12xf32>
    %220 = tpu.matmul %217, %219, %cst_246 {dimension_numbers = #tpu.dot_dimension_numbers<[1], [0], [0], [1], [0, 0, 1, 1], [], []>} : vector<256x4xf32>, vector<4x12xf32>, vector<256x12xf32> -> vector<256x12xf32>
    %221 = arith.addf %204, %220 : vector<256x12xf32>
    %c1_247 = arith.constant 1 : index
    %c1_248 = arith.constant 1 : index
    %c1_249 = arith.constant 1 : index
    %c0_250 = arith.constant 0 : index
    %222 = vector.load %arg1[%c1_247, %c1_248, %c1_249, %c0_250] : memref<4x10x10x4xf32, #tpu.memory_space<vmem>>, vector<1x8x8x4xf32>
    %223 = vector.shape_cast %222 : vector<1x8x8x4xf32> to vector<8x8x4xf32>
    %224 = vector.shape_cast %223 : vector<8x8x4xf32> to vector<64x4xf32>
    %c0_251 = arith.constant 0 : index
    %c1_252 = arith.constant 1 : index
    %c2_253 = arith.constant 2 : index
    %c0_254 = arith.constant 0 : index
    %225 = vector.load %arg1[%c0_251, %c1_252, %c2_253, %c0_254] : memref<4x10x10x4xf32, #tpu.memory_space<vmem>>, vector<1x8x8x4xf32>
    %226 = vector.shape_cast %225 : vector<1x8x8x4xf32> to vector<8x8x4xf32>
    %227 = vector.shape_cast %226 : vector<8x8x4xf32> to vector<64x4xf32>
    %c3_255 = arith.constant 3 : index
    %c1_256 = arith.constant 1 : index
    %c1_257 = arith.constant 1 : index
    %c0_258 = arith.constant 0 : index
    %228 = vector.load %arg1[%c3_255, %c1_256, %c1_257, %c0_258] : memref<4x10x10x4xf32, #tpu.memory_space<vmem>>, vector<1x8x8x4xf32>
    %229 = vector.shape_cast %228 : vector<1x8x8x4xf32> to vector<8x8x4xf32>
    %230 = vector.shape_cast %229 : vector<8x8x4xf32> to vector<64x4xf32>
    %c2_259 = arith.constant 2 : index
    %c1_260 = arith.constant 1 : index
    %c2_261 = arith.constant 2 : index
    %c0_262 = arith.constant 0 : index
    %231 = vector.load %arg1[%c2_259, %c1_260, %c2_261, %c0_262] : memref<4x10x10x4xf32, #tpu.memory_space<vmem>>, vector<1x8x8x4xf32>
    %232 = vector.shape_cast %231 : vector<1x8x8x4xf32> to vector<8x8x4xf32>
    %233 = vector.shape_cast %232 : vector<8x8x4xf32> to vector<64x4xf32>
    %234 = tpu.concatenate %224, %227, %230, %233 in 0 : vector<64x4xf32>, vector<64x4xf32>, vector<64x4xf32>, vector<64x4xf32> -> vector<256x4xf32>
    %c13 = arith.constant 13 : index
    %c0_263 = arith.constant 0 : index
    %c0_264 = arith.constant 0 : index
    %235 = vector.load %arg2[%c13, %c0_263, %c0_264] : memref<25x4x12xf32, #tpu.memory_space<vmem>>, vector<1x4x12xf32>
    %236 = vector.shape_cast %235 : vector<1x4x12xf32> to vector<4x12xf32>
    %cst_265 = arith.constant dense<0.000000e+00> : vector<256x12xf32>
    %237 = tpu.matmul %234, %236, %cst_265 {dimension_numbers = #tpu.dot_dimension_numbers<[1], [0], [0], [1], [0, 0, 1, 1], [], []>} : vector<256x4xf32>, vector<4x12xf32>, vector<256x12xf32> -> vector<256x12xf32>
    %238 = arith.addf %221, %237 : vector<256x12xf32>
    %c0_266 = arith.constant 0 : index
    %c1_267 = arith.constant 1 : index
    %c2_268 = arith.constant 2 : index
    %c0_269 = arith.constant 0 : index
    %239 = vector.load %arg1[%c0_266, %c1_267, %c2_268, %c0_269] : memref<4x10x10x4xf32, #tpu.memory_space<vmem>>, vector<1x8x8x4xf32>
    %240 = vector.shape_cast %239 : vector<1x8x8x4xf32> to vector<8x8x4xf32>
    %241 = vector.shape_cast %240 : vector<8x8x4xf32> to vector<64x4xf32>
    %c1_270 = arith.constant 1 : index
    %c1_271 = arith.constant 1 : index
    %c2_272 = arith.constant 2 : index
    %c0_273 = arith.constant 0 : index
    %242 = vector.load %arg1[%c1_270, %c1_271, %c2_272, %c0_273] : memref<4x10x10x4xf32, #tpu.memory_space<vmem>>, vector<1x8x8x4xf32>
    %243 = vector.shape_cast %242 : vector<1x8x8x4xf32> to vector<8x8x4xf32>
    %244 = vector.shape_cast %243 : vector<8x8x4xf32> to vector<64x4xf32>
    %c2_274 = arith.constant 2 : index
    %c1_275 = arith.constant 1 : index
    %c2_276 = arith.constant 2 : index
    %c0_277 = arith.constant 0 : index
    %245 = vector.load %arg1[%c2_274, %c1_275, %c2_276, %c0_277] : memref<4x10x10x4xf32, #tpu.memory_space<vmem>>, vector<1x8x8x4xf32>
    %246 = vector.shape_cast %245 : vector<1x8x8x4xf32> to vector<8x8x4xf32>
    %247 = vector.shape_cast %246 : vector<8x8x4xf32> to vector<64x4xf32>
    %c3_278 = arith.constant 3 : index
    %c1_279 = arith.constant 1 : index
    %c2_280 = arith.constant 2 : index
    %c0_281 = arith.constant 0 : index
    %248 = vector.load %arg1[%c3_278, %c1_279, %c2_280, %c0_281] : memref<4x10x10x4xf32, #tpu.memory_space<vmem>>, vector<1x8x8x4xf32>
    %249 = vector.shape_cast %248 : vector<1x8x8x4xf32> to vector<8x8x4xf32>
    %250 = vector.shape_cast %249 : vector<8x8x4xf32> to vector<64x4xf32>
    %251 = tpu.concatenate %241, %244, %247, %250 in 0 : vector<64x4xf32>, vector<64x4xf32>, vector<64x4xf32>, vector<64x4xf32> -> vector<256x4xf32>
    %c14 = arith.constant 14 : index
    %c0_282 = arith.constant 0 : index
    %c0_283 = arith.constant 0 : index
    %252 = vector.load %arg2[%c14, %c0_282, %c0_283] : memref<25x4x12xf32, #tpu.memory_space<vmem>>, vector<1x4x12xf32>
    %253 = vector.shape_cast %252 : vector<1x4x12xf32> to vector<4x12xf32>
    %cst_284 = arith.constant dense<0.000000e+00> : vector<256x12xf32>
    %254 = tpu.matmul %251, %253, %cst_284 {dimension_numbers = #tpu.dot_dimension_numbers<[1], [0], [0], [1], [0, 0, 1, 1], [], []>} : vector<256x4xf32>, vector<4x12xf32>, vector<256x12xf32> -> vector<256x12xf32>
    %255 = arith.addf %238, %254 : vector<256x12xf32>
    %c2_285 = arith.constant 2 : index
    %c1_286 = arith.constant 1 : index
    %c0_287 = arith.constant 0 : index
    %c0_288 = arith.constant 0 : index
    %256 = vector.load %arg1[%c2_285, %c1_286, %c0_287, %c0_288] : memref<4x10x10x4xf32, #tpu.memory_space<vmem>>, vector<1x8x8x4xf32>
    %257 = vector.shape_cast %256 : vector<1x8x8x4xf32> to vector<8x8x4xf32>
    %258 = vector.shape_cast %257 : vector<8x8x4xf32> to vector<64x4xf32>
    %c3_289 = arith.constant 3 : index
    %c1_290 = arith.constant 1 : index
    %c0_291 = arith.constant 0 : index
    %c0_292 = arith.constant 0 : index
    %259 = vector.load %arg1[%c3_289, %c1_290, %c0_291, %c0_292] : memref<4x10x10x4xf32, #tpu.memory_space<vmem>>, vector<1x8x8x4xf32>
    %260 = vector.shape_cast %259 : vector<1x8x8x4xf32> to vector<8x8x4xf32>
    %261 = vector.shape_cast %260 : vector<8x8x4xf32> to vector<64x4xf32>
    %c0_293 = arith.constant 0 : index
    %c2_294 = arith.constant 2 : index
    %c0_295 = arith.constant 0 : index
    %c0_296 = arith.constant 0 : index
    %262 = vector.load %arg1[%c0_293, %c2_294, %c0_295, %c0_296] : memref<4x10x10x4xf32, #tpu.memory_space<vmem>>, vector<1x8x8x4xf32>
    %263 = vector.shape_cast %262 : vector<1x8x8x4xf32> to vector<8x8x4xf32>
    %264 = vector.shape_cast %263 : vector<8x8x4xf32> to vector<64x4xf32>
    %c1_297 = arith.constant 1 : index
    %c2_298 = arith.constant 2 : index
    %c0_299 = arith.constant 0 : index
    %c0_300 = arith.constant 0 : index
    %265 = vector.load %arg1[%c1_297, %c2_298, %c0_299, %c0_300] : memref<4x10x10x4xf32, #tpu.memory_space<vmem>>, vector<1x8x8x4xf32>
    %266 = vector.shape_cast %265 : vector<1x8x8x4xf32> to vector<8x8x4xf32>
    %267 = vector.shape_cast %266 : vector<8x8x4xf32> to vector<64x4xf32>
    %268 = tpu.concatenate %258, %261, %264, %267 in 0 : vector<64x4xf32>, vector<64x4xf32>, vector<64x4xf32>, vector<64x4xf32> -> vector<256x4xf32>
    %c15 = arith.constant 15 : index
    %c0_301 = arith.constant 0 : index
    %c0_302 = arith.constant 0 : index
    %269 = vector.load %arg2[%c15, %c0_301, %c0_302] : memref<25x4x12xf32, #tpu.memory_space<vmem>>, vector<1x4x12xf32>
    %270 = vector.shape_cast %269 : vector<1x4x12xf32> to vector<4x12xf32>
    %cst_303 = arith.constant dense<0.000000e+00> : vector<256x12xf32>
    %271 = tpu.matmul %268, %270, %cst_303 {dimension_numbers = #tpu.dot_dimension_numbers<[1], [0], [0], [1], [0, 0, 1, 1], [], []>} : vector<256x4xf32>, vector<4x12xf32>, vector<256x12xf32> -> vector<256x12xf32>
    %272 = arith.addf %255, %271 : vector<256x12xf32>
    %c3_304 = arith.constant 3 : index
    %c1_305 = arith.constant 1 : index
    %c0_306 = arith.constant 0 : index
    %c0_307 = arith.constant 0 : index
    %273 = vector.load %arg1[%c3_304, %c1_305, %c0_306, %c0_307] : memref<4x10x10x4xf32, #tpu.memory_space<vmem>>, vector<1x8x8x4xf32>
    %274 = vector.shape_cast %273 : vector<1x8x8x4xf32> to vector<8x8x4xf32>
    %275 = vector.shape_cast %274 : vector<8x8x4xf32> to vector<64x4xf32>
    %c2_308 = arith.constant 2 : index
    %c1_309 = arith.constant 1 : index
    %c1_310 = arith.constant 1 : index
    %c0_311 = arith.constant 0 : index
    %276 = vector.load %arg1[%c2_308, %c1_309, %c1_310, %c0_311] : memref<4x10x10x4xf32, #tpu.memory_space<vmem>>, vector<1x8x8x4xf32>
    %277 = vector.shape_cast %276 : vector<1x8x8x4xf32> to vector<8x8x4xf32>
    %278 = vector.shape_cast %277 : vector<8x8x4xf32> to vector<64x4xf32>
    %c1_312 = arith.constant 1 : index
    %c2_313 = arith.constant 2 : index
    %c0_314 = arith.constant 0 : index
    %c0_315 = arith.constant 0 : index
    %279 = vector.load %arg1[%c1_312, %c2_313, %c0_314, %c0_315] : memref<4x10x10x4xf32, #tpu.memory_space<vmem>>, vector<1x8x8x4xf32>
    %280 = vector.shape_cast %279 : vector<1x8x8x4xf32> to vector<8x8x4xf32>
    %281 = vector.shape_cast %280 : vector<8x8x4xf32> to vector<64x4xf32>
    %c0_316 = arith.constant 0 : index
    %c2_317 = arith.constant 2 : index
    %c1_318 = arith.constant 1 : index
    %c0_319 = arith.constant 0 : index
    %282 = vector.load %arg1[%c0_316, %c2_317, %c1_318, %c0_319] : memref<4x10x10x4xf32, #tpu.memory_space<vmem>>, vector<1x8x8x4xf32>
    %283 = vector.shape_cast %282 : vector<1x8x8x4xf32> to vector<8x8x4xf32>
    %284 = vector.shape_cast %283 : vector<8x8x4xf32> to vector<64x4xf32>
    %285 = tpu.concatenate %275, %278, %281, %284 in 0 : vector<64x4xf32>, vector<64x4xf32>, vector<64x4xf32>, vector<64x4xf32> -> vector<256x4xf32>
    %c16 = arith.constant 16 : index
    %c0_320 = arith.constant 0 : index
    %c0_321 = arith.constant 0 : index
    %286 = vector.load %arg2[%c16, %c0_320, %c0_321] : memref<25x4x12xf32, #tpu.memory_space<vmem>>, vector<1x4x12xf32>
    %287 = vector.shape_cast %286 : vector<1x4x12xf32> to vector<4x12xf32>
    %cst_322 = arith.constant dense<0.000000e+00> : vector<256x12xf32>
    %288 = tpu.matmul %285, %287, %cst_322 {dimension_numbers = #tpu.dot_dimension_numbers<[1], [0], [0], [1], [0, 0, 1, 1], [], []>} : vector<256x4xf32>, vector<4x12xf32>, vector<256x12xf32> -> vector<256x12xf32>
    %289 = arith.addf %272, %288 : vector<256x12xf32>
    %c2_323 = arith.constant 2 : index
    %c1_324 = arith.constant 1 : index
    %c1_325 = arith.constant 1 : index
    %c0_326 = arith.constant 0 : index
    %290 = vector.load %arg1[%c2_323, %c1_324, %c1_325, %c0_326] : memref<4x10x10x4xf32, #tpu.memory_space<vmem>>, vector<1x8x8x4xf32>
    %291 = vector.shape_cast %290 : vector<1x8x8x4xf32> to vector<8x8x4xf32>
    %292 = vector.shape_cast %291 : vector<8x8x4xf32> to vector<64x4xf32>
    %c3_327 = arith.constant 3 : index
    %c1_328 = arith.constant 1 : index
    %c1_329 = arith.constant 1 : index
    %c0_330 = arith.constant 0 : index
    %293 = vector.load %arg1[%c3_327, %c1_328, %c1_329, %c0_330] : memref<4x10x10x4xf32, #tpu.memory_space<vmem>>, vector<1x8x8x4xf32>
    %294 = vector.shape_cast %293 : vector<1x8x8x4xf32> to vector<8x8x4xf32>
    %295 = vector.shape_cast %294 : vector<8x8x4xf32> to vector<64x4xf32>
    %c0_331 = arith.constant 0 : index
    %c2_332 = arith.constant 2 : index
    %c1_333 = arith.constant 1 : index
    %c0_334 = arith.constant 0 : index
    %296 = vector.load %arg1[%c0_331, %c2_332, %c1_333, %c0_334] : memref<4x10x10x4xf32, #tpu.memory_space<vmem>>, vector<1x8x8x4xf32>
    %297 = vector.shape_cast %296 : vector<1x8x8x4xf32> to vector<8x8x4xf32>
    %298 = vector.shape_cast %297 : vector<8x8x4xf32> to vector<64x4xf32>
    %c1_335 = arith.constant 1 : index
    %c2_336 = arith.constant 2 : index
    %c1_337 = arith.constant 1 : index
    %c0_338 = arith.constant 0 : index
    %299 = vector.load %arg1[%c1_335, %c2_336, %c1_337, %c0_338] : memref<4x10x10x4xf32, #tpu.memory_space<vmem>>, vector<1x8x8x4xf32>
    %300 = vector.shape_cast %299 : vector<1x8x8x4xf32> to vector<8x8x4xf32>
    %301 = vector.shape_cast %300 : vector<8x8x4xf32> to vector<64x4xf32>
    %302 = tpu.concatenate %292, %295, %298, %301 in 0 : vector<64x4xf32>, vector<64x4xf32>, vector<64x4xf32>, vector<64x4xf32> -> vector<256x4xf32>
    %c17 = arith.constant 17 : index
    %c0_339 = arith.constant 0 : index
    %c0_340 = arith.constant 0 : index
    %303 = vector.load %arg2[%c17, %c0_339, %c0_340] : memref<25x4x12xf32, #tpu.memory_space<vmem>>, vector<1x4x12xf32>
    %304 = vector.shape_cast %303 : vector<1x4x12xf32> to vector<4x12xf32>
    %cst_341 = arith.constant dense<0.000000e+00> : vector<256x12xf32>
    %305 = tpu.matmul %302, %304, %cst_341 {dimension_numbers = #tpu.dot_dimension_numbers<[1], [0], [0], [1], [0, 0, 1, 1], [], []>} : vector<256x4xf32>, vector<4x12xf32>, vector<256x12xf32> -> vector<256x12xf32>
    %306 = arith.addf %289, %305 : vector<256x12xf32>
    %c3_342 = arith.constant 3 : index
    %c1_343 = arith.constant 1 : index
    %c1_344 = arith.constant 1 : index
    %c0_345 = arith.constant 0 : index
    %307 = vector.load %arg1[%c3_342, %c1_343, %c1_344, %c0_345] : memref<4x10x10x4xf32, #tpu.memory_space<vmem>>, vector<1x8x8x4xf32>
    %308 = vector.shape_cast %307 : vector<1x8x8x4xf32> to vector<8x8x4xf32>
    %309 = vector.shape_cast %308 : vector<8x8x4xf32> to vector<64x4xf32>
    %c2_346 = arith.constant 2 : index
    %c1_347 = arith.constant 1 : index
    %c2_348 = arith.constant 2 : index
    %c0_349 = arith.constant 0 : index
    %310 = vector.load %arg1[%c2_346, %c1_347, %c2_348, %c0_349] : memref<4x10x10x4xf32, #tpu.memory_space<vmem>>, vector<1x8x8x4xf32>
    %311 = vector.shape_cast %310 : vector<1x8x8x4xf32> to vector<8x8x4xf32>
    %312 = vector.shape_cast %311 : vector<8x8x4xf32> to vector<64x4xf32>
    %c1_350 = arith.constant 1 : index
    %c2_351 = arith.constant 2 : index
    %c1_352 = arith.constant 1 : index
    %c0_353 = arith.constant 0 : index
    %313 = vector.load %arg1[%c1_350, %c2_351, %c1_352, %c0_353] : memref<4x10x10x4xf32, #tpu.memory_space<vmem>>, vector<1x8x8x4xf32>
    %314 = vector.shape_cast %313 : vector<1x8x8x4xf32> to vector<8x8x4xf32>
    %315 = vector.shape_cast %314 : vector<8x8x4xf32> to vector<64x4xf32>
    %c0_354 = arith.constant 0 : index
    %c2_355 = arith.constant 2 : index
    %c2_356 = arith.constant 2 : index
    %c0_357 = arith.constant 0 : index
    %316 = vector.load %arg1[%c0_354, %c2_355, %c2_356, %c0_357] : memref<4x10x10x4xf32, #tpu.memory_space<vmem>>, vector<1x8x8x4xf32>
    %317 = vector.shape_cast %316 : vector<1x8x8x4xf32> to vector<8x8x4xf32>
    %318 = vector.shape_cast %317 : vector<8x8x4xf32> to vector<64x4xf32>
    %319 = tpu.concatenate %309, %312, %315, %318 in 0 : vector<64x4xf32>, vector<64x4xf32>, vector<64x4xf32>, vector<64x4xf32> -> vector<256x4xf32>
    %c18 = arith.constant 18 : index
    %c0_358 = arith.constant 0 : index
    %c0_359 = arith.constant 0 : index
    %320 = vector.load %arg2[%c18, %c0_358, %c0_359] : memref<25x4x12xf32, #tpu.memory_space<vmem>>, vector<1x4x12xf32>
    %321 = vector.shape_cast %320 : vector<1x4x12xf32> to vector<4x12xf32>
    %cst_360 = arith.constant dense<0.000000e+00> : vector<256x12xf32>
    %322 = tpu.matmul %319, %321, %cst_360 {dimension_numbers = #tpu.dot_dimension_numbers<[1], [0], [0], [1], [0, 0, 1, 1], [], []>} : vector<256x4xf32>, vector<4x12xf32>, vector<256x12xf32> -> vector<256x12xf32>
    %323 = arith.addf %306, %322 : vector<256x12xf32>
    %c2_361 = arith.constant 2 : index
    %c1_362 = arith.constant 1 : index
    %c2_363 = arith.constant 2 : index
    %c0_364 = arith.constant 0 : index
    %324 = vector.load %arg1[%c2_361, %c1_362, %c2_363, %c0_364] : memref<4x10x10x4xf32, #tpu.memory_space<vmem>>, vector<1x8x8x4xf32>
    %325 = vector.shape_cast %324 : vector<1x8x8x4xf32> to vector<8x8x4xf32>
    %326 = vector.shape_cast %325 : vector<8x8x4xf32> to vector<64x4xf32>
    %c3_365 = arith.constant 3 : index
    %c1_366 = arith.constant 1 : index
    %c2_367 = arith.constant 2 : index
    %c0_368 = arith.constant 0 : index
    %327 = vector.load %arg1[%c3_365, %c1_366, %c2_367, %c0_368] : memref<4x10x10x4xf32, #tpu.memory_space<vmem>>, vector<1x8x8x4xf32>
    %328 = vector.shape_cast %327 : vector<1x8x8x4xf32> to vector<8x8x4xf32>
    %329 = vector.shape_cast %328 : vector<8x8x4xf32> to vector<64x4xf32>
    %c0_369 = arith.constant 0 : index
    %c2_370 = arith.constant 2 : index
    %c2_371 = arith.constant 2 : index
    %c0_372 = arith.constant 0 : index
    %330 = vector.load %arg1[%c0_369, %c2_370, %c2_371, %c0_372] : memref<4x10x10x4xf32, #tpu.memory_space<vmem>>, vector<1x8x8x4xf32>
    %331 = vector.shape_cast %330 : vector<1x8x8x4xf32> to vector<8x8x4xf32>
    %332 = vector.shape_cast %331 : vector<8x8x4xf32> to vector<64x4xf32>
    %c1_373 = arith.constant 1 : index
    %c2_374 = arith.constant 2 : index
    %c2_375 = arith.constant 2 : index
    %c0_376 = arith.constant 0 : index
    %333 = vector.load %arg1[%c1_373, %c2_374, %c2_375, %c0_376] : memref<4x10x10x4xf32, #tpu.memory_space<vmem>>, vector<1x8x8x4xf32>
    %334 = vector.shape_cast %333 : vector<1x8x8x4xf32> to vector<8x8x4xf32>
    %335 = vector.shape_cast %334 : vector<8x8x4xf32> to vector<64x4xf32>
    %336 = tpu.concatenate %326, %329, %332, %335 in 0 : vector<64x4xf32>, vector<64x4xf32>, vector<64x4xf32>, vector<64x4xf32> -> vector<256x4xf32>
    %c19 = arith.constant 19 : index
    %c0_377 = arith.constant 0 : index
    %c0_378 = arith.constant 0 : index
    %337 = vector.load %arg2[%c19, %c0_377, %c0_378] : memref<25x4x12xf32, #tpu.memory_space<vmem>>, vector<1x4x12xf32>
    %338 = vector.shape_cast %337 : vector<1x4x12xf32> to vector<4x12xf32>
    %cst_379 = arith.constant dense<0.000000e+00> : vector<256x12xf32>
    %339 = tpu.matmul %336, %338, %cst_379 {dimension_numbers = #tpu.dot_dimension_numbers<[1], [0], [0], [1], [0, 0, 1, 1], [], []>} : vector<256x4xf32>, vector<4x12xf32>, vector<256x12xf32> -> vector<256x12xf32>
    %340 = arith.addf %323, %339 : vector<256x12xf32>
    %c0_380 = arith.constant 0 : index
    %c2_381 = arith.constant 2 : index
    %c0_382 = arith.constant 0 : index
    %c0_383 = arith.constant 0 : index
    %341 = vector.load %arg1[%c0_380, %c2_381, %c0_382, %c0_383] : memref<4x10x10x4xf32, #tpu.memory_space<vmem>>, vector<1x8x8x4xf32>
    %342 = vector.shape_cast %341 : vector<1x8x8x4xf32> to vector<8x8x4xf32>
    %343 = vector.shape_cast %342 : vector<8x8x4xf32> to vector<64x4xf32>
    %c1_384 = arith.constant 1 : index
    %c2_385 = arith.constant 2 : index
    %c0_386 = arith.constant 0 : index
    %c0_387 = arith.constant 0 : index
    %344 = vector.load %arg1[%c1_384, %c2_385, %c0_386, %c0_387] : memref<4x10x10x4xf32, #tpu.memory_space<vmem>>, vector<1x8x8x4xf32>
    %345 = vector.shape_cast %344 : vector<1x8x8x4xf32> to vector<8x8x4xf32>
    %346 = vector.shape_cast %345 : vector<8x8x4xf32> to vector<64x4xf32>
    %c2_388 = arith.constant 2 : index
    %c2_389 = arith.constant 2 : index
    %c0_390 = arith.constant 0 : index
    %c0_391 = arith.constant 0 : index
    %347 = vector.load %arg1[%c2_388, %c2_389, %c0_390, %c0_391] : memref<4x10x10x4xf32, #tpu.memory_space<vmem>>, vector<1x8x8x4xf32>
    %348 = vector.shape_cast %347 : vector<1x8x8x4xf32> to vector<8x8x4xf32>
    %349 = vector.shape_cast %348 : vector<8x8x4xf32> to vector<64x4xf32>
    %c3_392 = arith.constant 3 : index
    %c2_393 = arith.constant 2 : index
    %c0_394 = arith.constant 0 : index
    %c0_395 = arith.constant 0 : index
    %350 = vector.load %arg1[%c3_392, %c2_393, %c0_394, %c0_395] : memref<4x10x10x4xf32, #tpu.memory_space<vmem>>, vector<1x8x8x4xf32>
    %351 = vector.shape_cast %350 : vector<1x8x8x4xf32> to vector<8x8x4xf32>
    %352 = vector.shape_cast %351 : vector<8x8x4xf32> to vector<64x4xf32>
    %353 = tpu.concatenate %343, %346, %349, %352 in 0 : vector<64x4xf32>, vector<64x4xf32>, vector<64x4xf32>, vector<64x4xf32> -> vector<256x4xf32>
    %c20 = arith.constant 20 : index
    %c0_396 = arith.constant 0 : index
    %c0_397 = arith.constant 0 : index
    %354 = vector.load %arg2[%c20, %c0_396, %c0_397] : memref<25x4x12xf32, #tpu.memory_space<vmem>>, vector<1x4x12xf32>
    %355 = vector.shape_cast %354 : vector<1x4x12xf32> to vector<4x12xf32>
    %cst_398 = arith.constant dense<0.000000e+00> : vector<256x12xf32>
    %356 = tpu.matmul %353, %355, %cst_398 {dimension_numbers = #tpu.dot_dimension_numbers<[1], [0], [0], [1], [0, 0, 1, 1], [], []>} : vector<256x4xf32>, vector<4x12xf32>, vector<256x12xf32> -> vector<256x12xf32>
    %357 = arith.addf %340, %356 : vector<256x12xf32>
    %c1_399 = arith.constant 1 : index
    %c2_400 = arith.constant 2 : index
    %c0_401 = arith.constant 0 : index
    %c0_402 = arith.constant 0 : index
    %358 = vector.load %arg1[%c1_399, %c2_400, %c0_401, %c0_402] : memref<4x10x10x4xf32, #tpu.memory_space<vmem>>, vector<1x8x8x4xf32>
    %359 = vector.shape_cast %358 : vector<1x8x8x4xf32> to vector<8x8x4xf32>
    %360 = vector.shape_cast %359 : vector<8x8x4xf32> to vector<64x4xf32>
    %c0_403 = arith.constant 0 : index
    %c2_404 = arith.constant 2 : index
    %c1_405 = arith.constant 1 : index
    %c0_406 = arith.constant 0 : index
    %361 = vector.load %arg1[%c0_403, %c2_404, %c1_405, %c0_406] : memref<4x10x10x4xf32, #tpu.memory_space<vmem>>, vector<1x8x8x4xf32>
    %362 = vector.shape_cast %361 : vector<1x8x8x4xf32> to vector<8x8x4xf32>
    %363 = vector.shape_cast %362 : vector<8x8x4xf32> to vector<64x4xf32>
    %c3_407 = arith.constant 3 : index
    %c2_408 = arith.constant 2 : index
    %c0_409 = arith.constant 0 : index
    %c0_410 = arith.constant 0 : index
    %364 = vector.load %arg1[%c3_407, %c2_408, %c0_409, %c0_410] : memref<4x10x10x4xf32, #tpu.memory_space<vmem>>, vector<1x8x8x4xf32>
    %365 = vector.shape_cast %364 : vector<1x8x8x4xf32> to vector<8x8x4xf32>
    %366 = vector.shape_cast %365 : vector<8x8x4xf32> to vector<64x4xf32>
    %c2_411 = arith.constant 2 : index
    %c2_412 = arith.constant 2 : index
    %c1_413 = arith.constant 1 : index
    %c0_414 = arith.constant 0 : index
    %367 = vector.load %arg1[%c2_411, %c2_412, %c1_413, %c0_414] : memref<4x10x10x4xf32, #tpu.memory_space<vmem>>, vector<1x8x8x4xf32>
    %368 = vector.shape_cast %367 : vector<1x8x8x4xf32> to vector<8x8x4xf32>
    %369 = vector.shape_cast %368 : vector<8x8x4xf32> to vector<64x4xf32>
    %370 = tpu.concatenate %360, %363, %366, %369 in 0 : vector<64x4xf32>, vector<64x4xf32>, vector<64x4xf32>, vector<64x4xf32> -> vector<256x4xf32>
    %c21 = arith.constant 21 : index
    %c0_415 = arith.constant 0 : index
    %c0_416 = arith.constant 0 : index
    %371 = vector.load %arg2[%c21, %c0_415, %c0_416] : memref<25x4x12xf32, #tpu.memory_space<vmem>>, vector<1x4x12xf32>
    %372 = vector.shape_cast %371 : vector<1x4x12xf32> to vector<4x12xf32>
    %cst_417 = arith.constant dense<0.000000e+00> : vector<256x12xf32>
    %373 = tpu.matmul %370, %372, %cst_417 {dimension_numbers = #tpu.dot_dimension_numbers<[1], [0], [0], [1], [0, 0, 1, 1], [], []>} : vector<256x4xf32>, vector<4x12xf32>, vector<256x12xf32> -> vector<256x12xf32>
    %374 = arith.addf %357, %373 : vector<256x12xf32>
    %c0_418 = arith.constant 0 : index
    %c2_419 = arith.constant 2 : index
    %c1_420 = arith.constant 1 : index
    %c0_421 = arith.constant 0 : index
    %375 = vector.load %arg1[%c0_418, %c2_419, %c1_420, %c0_421] : memref<4x10x10x4xf32, #tpu.memory_space<vmem>>, vector<1x8x8x4xf32>
    %376 = vector.shape_cast %375 : vector<1x8x8x4xf32> to vector<8x8x4xf32>
    %377 = vector.shape_cast %376 : vector<8x8x4xf32> to vector<64x4xf32>
    %c1_422 = arith.constant 1 : index
    %c2_423 = arith.constant 2 : index
    %c1_424 = arith.constant 1 : index
    %c0_425 = arith.constant 0 : index
    %378 = vector.load %arg1[%c1_422, %c2_423, %c1_424, %c0_425] : memref<4x10x10x4xf32, #tpu.memory_space<vmem>>, vector<1x8x8x4xf32>
    %379 = vector.shape_cast %378 : vector<1x8x8x4xf32> to vector<8x8x4xf32>
    %380 = vector.shape_cast %379 : vector<8x8x4xf32> to vector<64x4xf32>
    %c2_426 = arith.constant 2 : index
    %c2_427 = arith.constant 2 : index
    %c1_428 = arith.constant 1 : index
    %c0_429 = arith.constant 0 : index
    %381 = vector.load %arg1[%c2_426, %c2_427, %c1_428, %c0_429] : memref<4x10x10x4xf32, #tpu.memory_space<vmem>>, vector<1x8x8x4xf32>
    %382 = vector.shape_cast %381 : vector<1x8x8x4xf32> to vector<8x8x4xf32>
    %383 = vector.shape_cast %382 : vector<8x8x4xf32> to vector<64x4xf32>
    %c3_430 = arith.constant 3 : index
    %c2_431 = arith.constant 2 : index
    %c1_432 = arith.constant 1 : index
    %c0_433 = arith.constant 0 : index
    %384 = vector.load %arg1[%c3_430, %c2_431, %c1_432, %c0_433] : memref<4x10x10x4xf32, #tpu.memory_space<vmem>>, vector<1x8x8x4xf32>
    %385 = vector.shape_cast %384 : vector<1x8x8x4xf32> to vector<8x8x4xf32>
    %386 = vector.shape_cast %385 : vector<8x8x4xf32> to vector<64x4xf32>
    %387 = tpu.concatenate %377, %380, %383, %386 in 0 : vector<64x4xf32>, vector<64x4xf32>, vector<64x4xf32>, vector<64x4xf32> -> vector<256x4xf32>
    %c22 = arith.constant 22 : index
    %c0_434 = arith.constant 0 : index
    %c0_435 = arith.constant 0 : index
    %388 = vector.load %arg2[%c22, %c0_434, %c0_435] : memref<25x4x12xf32, #tpu.memory_space<vmem>>, vector<1x4x12xf32>
    %389 = vector.shape_cast %388 : vector<1x4x12xf32> to vector<4x12xf32>
    %cst_436 = arith.constant dense<0.000000e+00> : vector<256x12xf32>
    %390 = tpu.matmul %387, %389, %cst_436 {dimension_numbers = #tpu.dot_dimension_numbers<[1], [0], [0], [1], [0, 0, 1, 1], [], []>} : vector<256x4xf32>, vector<4x12xf32>, vector<256x12xf32> -> vector<256x12xf32>
    %391 = arith.addf %374, %390 : vector<256x12xf32>
    %c1_437 = arith.constant 1 : index
    %c2_438 = arith.constant 2 : index
    %c1_439 = arith.constant 1 : index
    %c0_440 = arith.constant 0 : index
    %392 = vector.load %arg1[%c1_437, %c2_438, %c1_439, %c0_440] : memref<4x10x10x4xf32, #tpu.memory_space<vmem>>, vector<1x8x8x4xf32>
    %393 = vector.shape_cast %392 : vector<1x8x8x4xf32> to vector<8x8x4xf32>
    %394 = vector.shape_cast %393 : vector<8x8x4xf32> to vector<64x4xf32>
    %c0_441 = arith.constant 0 : index
    %c2_442 = arith.constant 2 : index
    %c2_443 = arith.constant 2 : index
    %c0_444 = arith.constant 0 : index
    %395 = vector.load %arg1[%c0_441, %c2_442, %c2_443, %c0_444] : memref<4x10x10x4xf32, #tpu.memory_space<vmem>>, vector<1x8x8x4xf32>
    %396 = vector.shape_cast %395 : vector<1x8x8x4xf32> to vector<8x8x4xf32>
    %397 = vector.shape_cast %396 : vector<8x8x4xf32> to vector<64x4xf32>
    %c3_445 = arith.constant 3 : index
    %c2_446 = arith.constant 2 : index
    %c1_447 = arith.constant 1 : index
    %c0_448 = arith.constant 0 : index
    %398 = vector.load %arg1[%c3_445, %c2_446, %c1_447, %c0_448] : memref<4x10x10x4xf32, #tpu.memory_space<vmem>>, vector<1x8x8x4xf32>
    %399 = vector.shape_cast %398 : vector<1x8x8x4xf32> to vector<8x8x4xf32>
    %400 = vector.shape_cast %399 : vector<8x8x4xf32> to vector<64x4xf32>
    %c2_449 = arith.constant 2 : index
    %c2_450 = arith.constant 2 : index
    %c2_451 = arith.constant 2 : index
    %c0_452 = arith.constant 0 : index
    %401 = vector.load %arg1[%c2_449, %c2_450, %c2_451, %c0_452] : memref<4x10x10x4xf32, #tpu.memory_space<vmem>>, vector<1x8x8x4xf32>
    %402 = vector.shape_cast %401 : vector<1x8x8x4xf32> to vector<8x8x4xf32>
    %403 = vector.shape_cast %402 : vector<8x8x4xf32> to vector<64x4xf32>
    %404 = tpu.concatenate %394, %397, %400, %403 in 0 : vector<64x4xf32>, vector<64x4xf32>, vector<64x4xf32>, vector<64x4xf32> -> vector<256x4xf32>
    %c23 = arith.constant 23 : index
    %c0_453 = arith.constant 0 : index
    %c0_454 = arith.constant 0 : index
    %405 = vector.load %arg2[%c23, %c0_453, %c0_454] : memref<25x4x12xf32, #tpu.memory_space<vmem>>, vector<1x4x12xf32>
    %406 = vector.shape_cast %405 : vector<1x4x12xf32> to vector<4x12xf32>
    %cst_455 = arith.constant dense<0.000000e+00> : vector<256x12xf32>
    %407 = tpu.matmul %404, %406, %cst_455 {dimension_numbers = #tpu.dot_dimension_numbers<[1], [0], [0], [1], [0, 0, 1, 1], [], []>} : vector<256x4xf32>, vector<4x12xf32>, vector<256x12xf32> -> vector<256x12xf32>
    %408 = arith.addf %391, %407 : vector<256x12xf32>
    %c0_456 = arith.constant 0 : index
    %c2_457 = arith.constant 2 : index
    %c2_458 = arith.constant 2 : index
    %c0_459 = arith.constant 0 : index
    %409 = vector.load %arg1[%c0_456, %c2_457, %c2_458, %c0_459] : memref<4x10x10x4xf32, #tpu.memory_space<vmem>>, vector<1x8x8x4xf32>
    %410 = vector.shape_cast %409 : vector<1x8x8x4xf32> to vector<8x8x4xf32>
    %411 = vector.shape_cast %410 : vector<8x8x4xf32> to vector<64x4xf32>
    %c1_460 = arith.constant 1 : index
    %c2_461 = arith.constant 2 : index
    %c2_462 = arith.constant 2 : index
    %c0_463 = arith.constant 0 : index
    %412 = vector.load %arg1[%c1_460, %c2_461, %c2_462, %c0_463] : memref<4x10x10x4xf32, #tpu.memory_space<vmem>>, vector<1x8x8x4xf32>
    %413 = vector.shape_cast %412 : vector<1x8x8x4xf32> to vector<8x8x4xf32>
    %414 = vector.shape_cast %413 : vector<8x8x4xf32> to vector<64x4xf32>
    %c2_464 = arith.constant 2 : index
    %c2_465 = arith.constant 2 : index
    %c2_466 = arith.constant 2 : index
    %c0_467 = arith.constant 0 : index
    %415 = vector.load %arg1[%c2_464, %c2_465, %c2_466, %c0_467] : memref<4x10x10x4xf32, #tpu.memory_space<vmem>>, vector<1x8x8x4xf32>
    %416 = vector.shape_cast %415 : vector<1x8x8x4xf32> to vector<8x8x4xf32>
    %417 = vector.shape_cast %416 : vector<8x8x4xf32> to vector<64x4xf32>
    %c3_468 = arith.constant 3 : index
    %c2_469 = arith.constant 2 : index
    %c2_470 = arith.constant 2 : index
    %c0_471 = arith.constant 0 : index
    %418 = vector.load %arg1[%c3_468, %c2_469, %c2_470, %c0_471] : memref<4x10x10x4xf32, #tpu.memory_space<vmem>>, vector<1x8x8x4xf32>
    %419 = vector.shape_cast %418 : vector<1x8x8x4xf32> to vector<8x8x4xf32>
    %420 = vector.shape_cast %419 : vector<8x8x4xf32> to vector<64x4xf32>
    %421 = tpu.concatenate %411, %414, %417, %420 in 0 : vector<64x4xf32>, vector<64x4xf32>, vector<64x4xf32>, vector<64x4xf32> -> vector<256x4xf32>
    %c24 = arith.constant 24 : index
    %c0_472 = arith.constant 0 : index
    %c0_473 = arith.constant 0 : index
    %422 = vector.load %arg2[%c24, %c0_472, %c0_473] : memref<25x4x12xf32, #tpu.memory_space<vmem>>, vector<1x4x12xf32>
    %423 = vector.shape_cast %422 : vector<1x4x12xf32> to vector<4x12xf32>
    %cst_474 = arith.constant dense<0.000000e+00> : vector<256x12xf32>
    %424 = tpu.matmul %421, %423, %cst_474 {dimension_numbers = #tpu.dot_dimension_numbers<[1], [0], [0], [1], [0, 0, 1, 1], [], []>} : vector<256x4xf32>, vector<4x12xf32>, vector<256x12xf32> -> vector<256x12xf32>
    %425 = arith.addf %408, %424 : vector<256x12xf32>
    %c0_475 = arith.constant 0 : index
    %c0_476 = arith.constant 0 : index
    %426 = vector.load %arg3[%c0_475, %c0_476] : memref<1x12xf32, #tpu.memory_space<vmem>>, vector<1x12xf32>
    %427 = vector.broadcast %426 : vector<1x12xf32> to vector<256x12xf32>
    %428 = arith.addf %425, %427 : vector<256x12xf32>
    %c0_477 = arith.constant 0 : index
    %c0_478 = arith.constant 0 : index
    %429 = vector.load %arg4[%c0_477, %c0_478] : memref<12x4xf32, #tpu.memory_space<vmem>>, vector<12x4xf32>
    %cst_479 = arith.constant dense<0.000000e+00> : vector<256x4xf32>
    %430 = tpu.matmul %428, %429, %cst_479 {dimension_numbers = #tpu.dot_dimension_numbers<[1], [0], [0], [1], [0, 0, 1, 1], [], []>} : vector<256x12xf32>, vector<12x4xf32>, vector<256x4xf32> -> vector<256x4xf32>
    %c0_480 = arith.constant 0 : index
    %c0_481 = arith.constant 0 : index
    %431 = vector.load %arg5[%c0_480, %c0_481] : memref<1x4xf32, #tpu.memory_space<vmem>>, vector<1x4xf32>
    %432 = vector.broadcast %431 : vector<1x4xf32> to vector<256x4xf32>
    %433 = arith.addf %430, %432 : vector<256x4xf32>
    %cst_482 = arith.constant 0.000000e+00 : f32
    %434 = vector.broadcast %cst_482 : f32 to vector<256x4xf32>
    %435 = arith.maximumf %433, %434 : vector<256x4xf32>
    %cst_483 = arith.constant 0.000000e+00 : f32
    %436 = vector.broadcast %cst_483 : f32 to vector<4x17x17x4xf32>
    %c0_484 = arith.constant 0 : index
    %c0_485 = arith.constant 0 : index
    %c0_486 = arith.constant 0 : index
    %c0_487 = arith.constant 0 : index
    %437 = vector.load %arg12[%c0_484, %c0_485, %c0_486, %c0_487] : memref<4x17x17x4xf32, #tpu.memory_space<vmem>>, vector<4x17x17x4xf32>
    tpu.vector_store %arg12[%c0_484, %c0_485, %c0_486, %c0_487], %436 {strides = array<i32>} : memref<4x17x17x4xf32, #tpu.memory_space<vmem>>, vector<4x17x17x4xf32>,
    %438 = vector.shape_cast %435 : vector<256x4xf32> to vector<4x8x8x4xf32>
    %439 = vector.extract_strided_slice %438 {offsets = [0, 0, 0, 0], sizes = [1, 8, 8, 4], strides = [1, 1, 1, 1]} : vector<4x8x8x4xf32> to vector<1x8x8x4xf32>
    %440 = vector.shape_cast %439 : vector<1x8x8x4xf32> to vector<8x8x4xf32>
    %c0_488 = arith.constant 0 : index
    %c8_489 = arith.constant 8 : index
    %c8_490 = arith.constant 8 : index
    %c0_491 = arith.constant 0 : index
    %441 = vector.load %arg12[%c0_488, %c8_489, %c8_490, %c0_491] : memref<4x17x17x4xf32, #tpu.memory_space<vmem>>, vector<1x8x8x4xf32>
    %442 = vector.shape_cast %441 : vector<1x8x8x4xf32> to vector<8x8x4xf32>
    %443 = vector.shape_cast %440 : vector<8x8x4xf32> to vector<1x8x8x4xf32>
    tpu.vector_store %arg12[%c0_488, %c8_489, %c8_490, %c0_491], %443 {strides = array<i32>} : memref<4x17x17x4xf32, #tpu.memory_space<vmem>>, vector<1x8x8x4xf32>,
    %444 = vector.extract_strided_slice %438 {offsets = [1, 0, 0, 0], sizes = [1, 8, 8, 4], strides = [1, 1, 1, 1]} : vector<4x8x8x4xf32> to vector<1x8x8x4xf32>
    %445 = vector.shape_cast %444 : vector<1x8x8x4xf32> to vector<8x8x4xf32>
    %c1_492 = arith.constant 1 : index
    %c8_493 = arith.constant 8 : index
    %c8_494 = arith.constant 8 : index
    %c0_495 = arith.constant 0 : index
    %446 = vector.load %arg12[%c1_492, %c8_493, %c8_494, %c0_495] : memref<4x17x17x4xf32, #tpu.memory_space<vmem>>, vector<1x8x8x4xf32>
    %447 = vector.shape_cast %446 : vector<1x8x8x4xf32> to vector<8x8x4xf32>
    %448 = vector.shape_cast %445 : vector<8x8x4xf32> to vector<1x8x8x4xf32>
    tpu.vector_store %arg12[%c1_492, %c8_493, %c8_494, %c0_495], %448 {strides = array<i32>} : memref<4x17x17x4xf32, #tpu.memory_space<vmem>>, vector<1x8x8x4xf32>,
    %449 = vector.extract_strided_slice %438 {offsets = [2, 0, 0, 0], sizes = [1, 8, 8, 4], strides = [1, 1, 1, 1]} : vector<4x8x8x4xf32> to vector<1x8x8x4xf32>
    %450 = vector.shape_cast %449 : vector<1x8x8x4xf32> to vector<8x8x4xf32>
    %c2_496 = arith.constant 2 : index
    %c8_497 = arith.constant 8 : index
    %c8_498 = arith.constant 8 : index
    %c0_499 = arith.constant 0 : index
    %451 = vector.load %arg12[%c2_496, %c8_497, %c8_498, %c0_499] : memref<4x17x17x4xf32, #tpu.memory_space<vmem>>, vector<1x8x8x4xf32>
    %452 = vector.shape_cast %451 : vector<1x8x8x4xf32> to vector<8x8x4xf32>
    %453 = vector.shape_cast %450 : vector<8x8x4xf32> to vector<1x8x8x4xf32>
    tpu.vector_store %arg12[%c2_496, %c8_497, %c8_498, %c0_499], %453 {strides = array<i32>} : memref<4x17x17x4xf32, #tpu.memory_space<vmem>>, vector<1x8x8x4xf32>,
    %454 = vector.extract_strided_slice %438 {offsets = [3, 0, 0, 0], sizes = [1, 8, 8, 4], strides = [1, 1, 1, 1]} : vector<4x8x8x4xf32> to vector<1x8x8x4xf32>
    %455 = vector.shape_cast %454 : vector<1x8x8x4xf32> to vector<8x8x4xf32>
    %c3_500 = arith.constant 3 : index
    %c8_501 = arith.constant 8 : index
    %c8_502 = arith.constant 8 : index
    %c0_503 = arith.constant 0 : index
    %456 = vector.load %arg12[%c3_500, %c8_501, %c8_502, %c0_503] : memref<4x17x17x4xf32, #tpu.memory_space<vmem>>, vector<1x8x8x4xf32>
    %457 = vector.shape_cast %456 : vector<1x8x8x4xf32> to vector<8x8x4xf32>
    %458 = vector.shape_cast %455 : vector<8x8x4xf32> to vector<1x8x8x4xf32>
    tpu.vector_store %arg12[%c3_500, %c8_501, %c8_502, %c0_503], %458 {strides = array<i32>} : memref<4x17x17x4xf32, #tpu.memory_space<vmem>>, vector<1x8x8x4xf32>,
    %cst_504 = arith.constant 0.000000e+00 : f32
    %459 = vector.broadcast %cst_504 : f32 to vector<64x12xf32>
    %c0_505 = arith.constant 0 : index
    %c7_506 = arith.constant 7 : index
    %c7_507 = arith.constant 7 : index
    %c0_508 = arith.constant 0 : index
    %460 = vector.load %arg12[%c0_505, %c7_506, %c7_507, %c0_508] : memref<4x17x17x4xf32, #tpu.memory_space<vmem>>, vector<1x8x8x4xf32>
    %461 = vector.shape_cast %460 : vector<1x8x8x4xf32> to vector<8x8x4xf32>
    %462 = vector.shape_cast %461 : vector<8x8x4xf32> to vector<64x4xf32>
    %c0_509 = arith.constant 0 : index
    %c0_510 = arith.constant 0 : index
    %c0_511 = arith.constant 0 : index
    %463 = vector.load %arg6[%c0_509, %c0_510, %c0_511] : memref<25x4x12xf32, #tpu.memory_space<vmem>>, vector<1x4x12xf32>
    %464 = vector.shape_cast %463 : vector<1x4x12xf32> to vector<4x12xf32>
    %cst_512 = arith.constant dense<0.000000e+00> : vector<64x12xf32>
    %465 = tpu.matmul %462, %464, %cst_512 {dimension_numbers = #tpu.dot_dimension_numbers<[1], [0], [0], [1], [0, 0, 1, 1], [], []>} : vector<64x4xf32>, vector<4x12xf32>, vector<64x12xf32> -> vector<64x12xf32>
    %466 = arith.addf %459, %465 : vector<64x12xf32>
    %c1_513 = arith.constant 1 : index
    %c7_514 = arith.constant 7 : index
    %c7_515 = arith.constant 7 : index
    %c0_516 = arith.constant 0 : index
    %467 = vector.load %arg12[%c1_513, %c7_514, %c7_515, %c0_516] : memref<4x17x17x4xf32, #tpu.memory_space<vmem>>, vector<1x8x8x4xf32>
    %468 = vector.shape_cast %467 : vector<1x8x8x4xf32> to vector<8x8x4xf32>
    %469 = vector.shape_cast %468 : vector<8x8x4xf32> to vector<64x4xf32>
    %c1_517 = arith.constant 1 : index
    %c0_518 = arith.constant 0 : index
    %c0_519 = arith.constant 0 : index
    %470 = vector.load %arg6[%c1_517, %c0_518, %c0_519] : memref<25x4x12xf32, #tpu.memory_space<vmem>>, vector<1x4x12xf32>
    %471 = vector.shape_cast %470 : vector<1x4x12xf32> to vector<4x12xf32>
    %cst_520 = arith.constant dense<0.000000e+00> : vector<64x12xf32>
    %472 = tpu.matmul %469, %471, %cst_520 {dimension_numbers = #tpu.dot_dimension_numbers<[1], [0], [0], [1], [0, 0, 1, 1], [], []>} : vector<64x4xf32>, vector<4x12xf32>, vector<64x12xf32> -> vector<64x12xf32>
    %473 = arith.addf %466, %472 : vector<64x12xf32>
    %c0_521 = arith.constant 0 : index
    %c7_522 = arith.constant 7 : index
    %c8_523 = arith.constant 8 : index
    %c0_524 = arith.constant 0 : index
    %474 = vector.load %arg12[%c0_521, %c7_522, %c8_523, %c0_524] : memref<4x17x17x4xf32, #tpu.memory_space<vmem>>, vector<1x8x8x4xf32>
    %475 = vector.shape_cast %474 : vector<1x8x8x4xf32> to vector<8x8x4xf32>
    %476 = vector.shape_cast %475 : vector<8x8x4xf32> to vector<64x4xf32>
    %c2_525 = arith.constant 2 : index
    %c0_526 = arith.constant 0 : index
    %c0_527 = arith.constant 0 : index
    %477 = vector.load %arg6[%c2_525, %c0_526, %c0_527] : memref<25x4x12xf32, #tpu.memory_space<vmem>>, vector<1x4x12xf32>
    %478 = vector.shape_cast %477 : vector<1x4x12xf32> to vector<4x12xf32>
    %cst_528 = arith.constant dense<0.000000e+00> : vector<64x12xf32>
    %479 = tpu.matmul %476, %478, %cst_528 {dimension_numbers = #tpu.dot_dimension_numbers<[1], [0], [0], [1], [0, 0, 1, 1], [], []>} : vector<64x4xf32>, vector<4x12xf32>, vector<64x12xf32> -> vector<64x12xf32>
    %480 = arith.addf %473, %479 : vector<64x12xf32>
    %c1_529 = arith.constant 1 : index
    %c7_530 = arith.constant 7 : index
    %c8_531 = arith.constant 8 : index
    %c0_532 = arith.constant 0 : index
    %481 = vector.load %arg12[%c1_529, %c7_530, %c8_531, %c0_532] : memref<4x17x17x4xf32, #tpu.memory_space<vmem>>, vector<1x8x8x4xf32>
    %482 = vector.shape_cast %481 : vector<1x8x8x4xf32> to vector<8x8x4xf32>
    %483 = vector.shape_cast %482 : vector<8x8x4xf32> to vector<64x4xf32>
    %c3_533 = arith.constant 3 : index
    %c0_534 = arith.constant 0 : index
    %c0_535 = arith.constant 0 : index
    %484 = vector.load %arg6[%c3_533, %c0_534, %c0_535] : memref<25x4x12xf32, #tpu.memory_space<vmem>>, vector<1x4x12xf32>
    %485 = vector.shape_cast %484 : vector<1x4x12xf32> to vector<4x12xf32>
    %cst_536 = arith.constant dense<0.000000e+00> : vector<64x12xf32>
    %486 = tpu.matmul %483, %485, %cst_536 {dimension_numbers = #tpu.dot_dimension_numbers<[1], [0], [0], [1], [0, 0, 1, 1], [], []>} : vector<64x4xf32>, vector<4x12xf32>, vector<64x12xf32> -> vector<64x12xf32>
    %487 = arith.addf %480, %486 : vector<64x12xf32>
    %c0_537 = arith.constant 0 : index
    %c7_538 = arith.constant 7 : index
    %c9_539 = arith.constant 9 : index
    %c0_540 = arith.constant 0 : index
    %488 = vector.load %arg12[%c0_537, %c7_538, %c9_539, %c0_540] : memref<4x17x17x4xf32, #tpu.memory_space<vmem>>, vector<1x8x8x4xf32>
    %489 = vector.shape_cast %488 : vector<1x8x8x4xf32> to vector<8x8x4xf32>
    %490 = vector.shape_cast %489 : vector<8x8x4xf32> to vector<64x4xf32>
    %c4_541 = arith.constant 4 : index
    %c0_542 = arith.constant 0 : index
    %c0_543 = arith.constant 0 : index
    %491 = vector.load %arg6[%c4_541, %c0_542, %c0_543] : memref<25x4x12xf32, #tpu.memory_space<vmem>>, vector<1x4x12xf32>
    %492 = vector.shape_cast %491 : vector<1x4x12xf32> to vector<4x12xf32>
    %cst_544 = arith.constant dense<0.000000e+00> : vector<64x12xf32>
    %493 = tpu.matmul %490, %492, %cst_544 {dimension_numbers = #tpu.dot_dimension_numbers<[1], [0], [0], [1], [0, 0, 1, 1], [], []>} : vector<64x4xf32>, vector<4x12xf32>, vector<64x12xf32> -> vector<64x12xf32>
    %494 = arith.addf %487, %493 : vector<64x12xf32>
    %c2_545 = arith.constant 2 : index
    %c7_546 = arith.constant 7 : index
    %c7_547 = arith.constant 7 : index
    %c0_548 = arith.constant 0 : index
    %495 = vector.load %arg12[%c2_545, %c7_546, %c7_547, %c0_548] : memref<4x17x17x4xf32, #tpu.memory_space<vmem>>, vector<1x8x8x4xf32>
    %496 = vector.shape_cast %495 : vector<1x8x8x4xf32> to vector<8x8x4xf32>
    %497 = vector.shape_cast %496 : vector<8x8x4xf32> to vector<64x4xf32>
    %c5_549 = arith.constant 5 : index
    %c0_550 = arith.constant 0 : index
    %c0_551 = arith.constant 0 : index
    %498 = vector.load %arg6[%c5_549, %c0_550, %c0_551] : memref<25x4x12xf32, #tpu.memory_space<vmem>>, vector<1x4x12xf32>
    %499 = vector.shape_cast %498 : vector<1x4x12xf32> to vector<4x12xf32>
    %cst_552 = arith.constant dense<0.000000e+00> : vector<64x12xf32>
    %500 = tpu.matmul %497, %499, %cst_552 {dimension_numbers = #tpu.dot_dimension_numbers<[1], [0], [0], [1], [0, 0, 1, 1], [], []>} : vector<64x4xf32>, vector<4x12xf32>, vector<64x12xf32> -> vector<64x12xf32>
    %501 = arith.addf %494, %500 : vector<64x12xf32>
    %c3_553 = arith.constant 3 : index
    %c7_554 = arith.constant 7 : index
    %c7_555 = arith.constant 7 : index
    %c0_556 = arith.constant 0 : index
    %502 = vector.load %arg12[%c3_553, %c7_554, %c7_555, %c0_556] : memref<4x17x17x4xf32, #tpu.memory_space<vmem>>, vector<1x8x8x4xf32>
    %503 = vector.shape_cast %502 : vector<1x8x8x4xf32> to vector<8x8x4xf32>
    %504 = vector.shape_cast %503 : vector<8x8x4xf32> to vector<64x4xf32>
    %c6_557 = arith.constant 6 : index
    %c0_558 = arith.constant 0 : index
    %c0_559 = arith.constant 0 : index
    %505 = vector.load %arg6[%c6_557, %c0_558, %c0_559] : memref<25x4x12xf32, #tpu.memory_space<vmem>>, vector<1x4x12xf32>
    %506 = vector.shape_cast %505 : vector<1x4x12xf32> to vector<4x12xf32>
    %cst_560 = arith.constant dense<0.000000e+00> : vector<64x12xf32>
    %507 = tpu.matmul %504, %506, %cst_560 {dimension_numbers = #tpu.dot_dimension_numbers<[1], [0], [0], [1], [0, 0, 1, 1], [], []>} : vector<64x4xf32>, vector<4x12xf32>, vector<64x12xf32> -> vector<64x12xf32>
    %508 = arith.addf %501, %507 : vector<64x12xf32>
    %c2_561 = arith.constant 2 : index
    %c7_562 = arith.constant 7 : index
    %c8_563 = arith.constant 8 : index
    %c0_564 = arith.constant 0 : index
    %509 = vector.load %arg12[%c2_561, %c7_562, %c8_563, %c0_564] : memref<4x17x17x4xf32, #tpu.memory_space<vmem>>, vector<1x8x8x4xf32>
    %510 = vector.shape_cast %509 : vector<1x8x8x4xf32> to vector<8x8x4xf32>
    %511 = vector.shape_cast %510 : vector<8x8x4xf32> to vector<64x4xf32>
    %c7_565 = arith.constant 7 : index
    %c0_566 = arith.constant 0 : index
    %c0_567 = arith.constant 0 : index
    %512 = vector.load %arg6[%c7_565, %c0_566, %c0_567] : memref<25x4x12xf32, #tpu.memory_space<vmem>>, vector<1x4x12xf32>
    %513 = vector.shape_cast %512 : vector<1x4x12xf32> to vector<4x12xf32>
    %cst_568 = arith.constant dense<0.000000e+00> : vector<64x12xf32>
    %514 = tpu.matmul %511, %513, %cst_568 {dimension_numbers = #tpu.dot_dimension_numbers<[1], [0], [0], [1], [0, 0, 1, 1], [], []>} : vector<64x4xf32>, vector<4x12xf32>, vector<64x12xf32> -> vector<64x12xf32>
    %515 = arith.addf %508, %514 : vector<64x12xf32>
    %c3_569 = arith.constant 3 : index
    %c7_570 = arith.constant 7 : index
    %c8_571 = arith.constant 8 : index
    %c0_572 = arith.constant 0 : index
    %516 = vector.load %arg12[%c3_569, %c7_570, %c8_571, %c0_572] : memref<4x17x17x4xf32, #tpu.memory_space<vmem>>, vector<1x8x8x4xf32>
    %517 = vector.shape_cast %516 : vector<1x8x8x4xf32> to vector<8x8x4xf32>
    %518 = vector.shape_cast %517 : vector<8x8x4xf32> to vector<64x4xf32>
    %c8_573 = arith.constant 8 : index
    %c0_574 = arith.constant 0 : index
    %c0_575 = arith.constant 0 : index
    %519 = vector.load %arg6[%c8_573, %c0_574, %c0_575] : memref<25x4x12xf32, #tpu.memory_space<vmem>>, vector<1x4x12xf32>
    %520 = vector.shape_cast %519 : vector<1x4x12xf32> to vector<4x12xf32>
    %cst_576 = arith.constant dense<0.000000e+00> : vector<64x12xf32>
    %521 = tpu.matmul %518, %520, %cst_576 {dimension_numbers = #tpu.dot_dimension_numbers<[1], [0], [0], [1], [0, 0, 1, 1], [], []>} : vector<64x4xf32>, vector<4x12xf32>, vector<64x12xf32> -> vector<64x12xf32>
    %522 = arith.addf %515, %521 : vector<64x12xf32>
    %c2_577 = arith.constant 2 : index
    %c7_578 = arith.constant 7 : index
    %c9_579 = arith.constant 9 : index
    %c0_580 = arith.constant 0 : index
    %523 = vector.load %arg12[%c2_577, %c7_578, %c9_579, %c0_580] : memref<4x17x17x4xf32, #tpu.memory_space<vmem>>, vector<1x8x8x4xf32>
    %524 = vector.shape_cast %523 : vector<1x8x8x4xf32> to vector<8x8x4xf32>
    %525 = vector.shape_cast %524 : vector<8x8x4xf32> to vector<64x4xf32>
    %c9_581 = arith.constant 9 : index
    %c0_582 = arith.constant 0 : index
    %c0_583 = arith.constant 0 : index
    %526 = vector.load %arg6[%c9_581, %c0_582, %c0_583] : memref<25x4x12xf32, #tpu.memory_space<vmem>>, vector<1x4x12xf32>
    %527 = vector.shape_cast %526 : vector<1x4x12xf32> to vector<4x12xf32>
    %cst_584 = arith.constant dense<0.000000e+00> : vector<64x12xf32>
    %528 = tpu.matmul %525, %527, %cst_584 {dimension_numbers = #tpu.dot_dimension_numbers<[1], [0], [0], [1], [0, 0, 1, 1], [], []>} : vector<64x4xf32>, vector<4x12xf32>, vector<64x12xf32> -> vector<64x12xf32>
    %529 = arith.addf %522, %528 : vector<64x12xf32>
    %c0_585 = arith.constant 0 : index
    %c8_586 = arith.constant 8 : index
    %c7_587 = arith.constant 7 : index
    %c0_588 = arith.constant 0 : index
    %530 = vector.load %arg12[%c0_585, %c8_586, %c7_587, %c0_588] : memref<4x17x17x4xf32, #tpu.memory_space<vmem>>, vector<1x8x8x4xf32>
    %531 = vector.shape_cast %530 : vector<1x8x8x4xf32> to vector<8x8x4xf32>
    %532 = vector.shape_cast %531 : vector<8x8x4xf32> to vector<64x4xf32>
    %c10_589 = arith.constant 10 : index
    %c0_590 = arith.constant 0 : index
    %c0_591 = arith.constant 0 : index
    %533 = vector.load %arg6[%c10_589, %c0_590, %c0_591] : memref<25x4x12xf32, #tpu.memory_space<vmem>>, vector<1x4x12xf32>
    %534 = vector.shape_cast %533 : vector<1x4x12xf32> to vector<4x12xf32>
    %cst_592 = arith.constant dense<0.000000e+00> : vector<64x12xf32>
    %535 = tpu.matmul %532, %534, %cst_592 {dimension_numbers = #tpu.dot_dimension_numbers<[1], [0], [0], [1], [0, 0, 1, 1], [], []>} : vector<64x4xf32>, vector<4x12xf32>, vector<64x12xf32> -> vector<64x12xf32>
    %536 = arith.addf %529, %535 : vector<64x12xf32>
    %c1_593 = arith.constant 1 : index
    %c8_594 = arith.constant 8 : index
    %c7_595 = arith.constant 7 : index
    %c0_596 = arith.constant 0 : index
    %537 = vector.load %arg12[%c1_593, %c8_594, %c7_595, %c0_596] : memref<4x17x17x4xf32, #tpu.memory_space<vmem>>, vector<1x8x8x4xf32>
    %538 = vector.shape_cast %537 : vector<1x8x8x4xf32> to vector<8x8x4xf32>
    %539 = vector.shape_cast %538 : vector<8x8x4xf32> to vector<64x4xf32>
    %c11_597 = arith.constant 11 : index
    %c0_598 = arith.constant 0 : index
    %c0_599 = arith.constant 0 : index
    %540 = vector.load %arg6[%c11_597, %c0_598, %c0_599] : memref<25x4x12xf32, #tpu.memory_space<vmem>>, vector<1x4x12xf32>
    %541 = vector.shape_cast %540 : vector<1x4x12xf32> to vector<4x12xf32>
    %cst_600 = arith.constant dense<0.000000e+00> : vector<64x12xf32>
    %542 = tpu.matmul %539, %541, %cst_600 {dimension_numbers = #tpu.dot_dimension_numbers<[1], [0], [0], [1], [0, 0, 1, 1], [], []>} : vector<64x4xf32>, vector<4x12xf32>, vector<64x12xf32> -> vector<64x12xf32>
    %543 = arith.addf %536, %542 : vector<64x12xf32>
    %c0_601 = arith.constant 0 : index
    %c8_602 = arith.constant 8 : index
    %c8_603 = arith.constant 8 : index
    %c0_604 = arith.constant 0 : index
    %544 = vector.load %arg12[%c0_601, %c8_602, %c8_603, %c0_604] : memref<4x17x17x4xf32, #tpu.memory_space<vmem>>, vector<1x8x8x4xf32>
    %545 = vector.shape_cast %544 : vector<1x8x8x4xf32> to vector<8x8x4xf32>
    %546 = vector.shape_cast %545 : vector<8x8x4xf32> to vector<64x4xf32>
    %c12_605 = arith.constant 12 : index
    %c0_606 = arith.constant 0 : index
    %c0_607 = arith.constant 0 : index
    %547 = vector.load %arg6[%c12_605, %c0_606, %c0_607] : memref<25x4x12xf32, #tpu.memory_space<vmem>>, vector<1x4x12xf32>
    %548 = vector.shape_cast %547 : vector<1x4x12xf32> to vector<4x12xf32>
    %cst_608 = arith.constant dense<0.000000e+00> : vector<64x12xf32>
    %549 = tpu.matmul %546, %548, %cst_608 {dimension_numbers = #tpu.dot_dimension_numbers<[1], [0], [0], [1], [0, 0, 1, 1], [], []>} : vector<64x4xf32>, vector<4x12xf32>, vector<64x12xf32> -> vector<64x12xf32>
    %550 = arith.addf %543, %549 : vector<64x12xf32>
    %c1_609 = arith.constant 1 : index
    %c8_610 = arith.constant 8 : index
    %c8_611 = arith.constant 8 : index
    %c0_612 = arith.constant 0 : index
    %551 = vector.load %arg12[%c1_609, %c8_610, %c8_611, %c0_612] : memref<4x17x17x4xf32, #tpu.memory_space<vmem>>, vector<1x8x8x4xf32>
    %552 = vector.shape_cast %551 : vector<1x8x8x4xf32> to vector<8x8x4xf32>
    %553 = vector.shape_cast %552 : vector<8x8x4xf32> to vector<64x4xf32>
    %c13_613 = arith.constant 13 : index
    %c0_614 = arith.constant 0 : index
    %c0_615 = arith.constant 0 : index
    %554 = vector.load %arg6[%c13_613, %c0_614, %c0_615] : memref<25x4x12xf32, #tpu.memory_space<vmem>>, vector<1x4x12xf32>
    %555 = vector.shape_cast %554 : vector<1x4x12xf32> to vector<4x12xf32>
    %cst_616 = arith.constant dense<0.000000e+00> : vector<64x12xf32>
    %556 = tpu.matmul %553, %555, %cst_616 {dimension_numbers = #tpu.dot_dimension_numbers<[1], [0], [0], [1], [0, 0, 1, 1], [], []>} : vector<64x4xf32>, vector<4x12xf32>, vector<64x12xf32> -> vector<64x12xf32>
    %557 = arith.addf %550, %556 : vector<64x12xf32>
    %c0_617 = arith.constant 0 : index
    %c8_618 = arith.constant 8 : index
    %c9_619 = arith.constant 9 : index
    %c0_620 = arith.constant 0 : index
    %558 = vector.load %arg12[%c0_617, %c8_618, %c9_619, %c0_620] : memref<4x17x17x4xf32, #tpu.memory_space<vmem>>, vector<1x8x8x4xf32>
    %559 = vector.shape_cast %558 : vector<1x8x8x4xf32> to vector<8x8x4xf32>
    %560 = vector.shape_cast %559 : vector<8x8x4xf32> to vector<64x4xf32>
    %c14_621 = arith.constant 14 : index
    %c0_622 = arith.constant 0 : index
    %c0_623 = arith.constant 0 : index
    %561 = vector.load %arg6[%c14_621, %c0_622, %c0_623] : memref<25x4x12xf32, #tpu.memory_space<vmem>>, vector<1x4x12xf32>
    %562 = vector.shape_cast %561 : vector<1x4x12xf32> to vector<4x12xf32>
    %cst_624 = arith.constant dense<0.000000e+00> : vector<64x12xf32>
    %563 = tpu.matmul %560, %562, %cst_624 {dimension_numbers = #tpu.dot_dimension_numbers<[1], [0], [0], [1], [0, 0, 1, 1], [], []>} : vector<64x4xf32>, vector<4x12xf32>, vector<64x12xf32> -> vector<64x12xf32>
    %564 = arith.addf %557, %563 : vector<64x12xf32>
    %c2_625 = arith.constant 2 : index
    %c8_626 = arith.constant 8 : index
    %c7_627 = arith.constant 7 : index
    %c0_628 = arith.constant 0 : index
    %565 = vector.load %arg12[%c2_625, %c8_626, %c7_627, %c0_628] : memref<4x17x17x4xf32, #tpu.memory_space<vmem>>, vector<1x8x8x4xf32>
    %566 = vector.shape_cast %565 : vector<1x8x8x4xf32> to vector<8x8x4xf32>
    %567 = vector.shape_cast %566 : vector<8x8x4xf32> to vector<64x4xf32>
    %c15_629 = arith.constant 15 : index
    %c0_630 = arith.constant 0 : index
    %c0_631 = arith.constant 0 : index
    %568 = vector.load %arg6[%c15_629, %c0_630, %c0_631] : memref<25x4x12xf32, #tpu.memory_space<vmem>>, vector<1x4x12xf32>
    %569 = vector.shape_cast %568 : vector<1x4x12xf32> to vector<4x12xf32>
    %cst_632 = arith.constant dense<0.000000e+00> : vector<64x12xf32>
    %570 = tpu.matmul %567, %569, %cst_632 {dimension_numbers = #tpu.dot_dimension_numbers<[1], [0], [0], [1], [0, 0, 1, 1], [], []>} : vector<64x4xf32>, vector<4x12xf32>, vector<64x12xf32> -> vector<64x12xf32>
    %571 = arith.addf %564, %570 : vector<64x12xf32>
    %c3_633 = arith.constant 3 : index
    %c8_634 = arith.constant 8 : index
    %c7_635 = arith.constant 7 : index
    %c0_636 = arith.constant 0 : index
    %572 = vector.load %arg12[%c3_633, %c8_634, %c7_635, %c0_636] : memref<4x17x17x4xf32, #tpu.memory_space<vmem>>, vector<1x8x8x4xf32>
    %573 = vector.shape_cast %572 : vector<1x8x8x4xf32> to vector<8x8x4xf32>
    %574 = vector.shape_cast %573 : vector<8x8x4xf32> to vector<64x4xf32>
    %c16_637 = arith.constant 16 : index
    %c0_638 = arith.constant 0 : index
    %c0_639 = arith.constant 0 : index
    %575 = vector.load %arg6[%c16_637, %c0_638, %c0_639] : memref<25x4x12xf32, #tpu.memory_space<vmem>>, vector<1x4x12xf32>
    %576 = vector.shape_cast %575 : vector<1x4x12xf32> to vector<4x12xf32>
    %cst_640 = arith.constant dense<0.000000e+00> : vector<64x12xf32>
    %577 = tpu.matmul %574, %576, %cst_640 {dimension_numbers = #tpu.dot_dimension_numbers<[1], [0], [0], [1], [0, 0, 1, 1], [], []>} : vector<64x4xf32>, vector<4x12xf32>, vector<64x12xf32> -> vector<64x12xf32>
    %578 = arith.addf %571, %577 : vector<64x12xf32>
    %c2_641 = arith.constant 2 : index
    %c8_642 = arith.constant 8 : index
    %c8_643 = arith.constant 8 : index
    %c0_644 = arith.constant 0 : index
    %579 = vector.load %arg12[%c2_641, %c8_642, %c8_643, %c0_644] : memref<4x17x17x4xf32, #tpu.memory_space<vmem>>, vector<1x8x8x4xf32>
    %580 = vector.shape_cast %579 : vector<1x8x8x4xf32> to vector<8x8x4xf32>
    %581 = vector.shape_cast %580 : vector<8x8x4xf32> to vector<64x4xf32>
    %c17_645 = arith.constant 17 : index
    %c0_646 = arith.constant 0 : index
    %c0_647 = arith.constant 0 : index
    %582 = vector.load %arg6[%c17_645, %c0_646, %c0_647] : memref<25x4x12xf32, #tpu.memory_space<vmem>>, vector<1x4x12xf32>
    %583 = vector.shape_cast %582 : vector<1x4x12xf32> to vector<4x12xf32>
    %cst_648 = arith.constant dense<0.000000e+00> : vector<64x12xf32>
    %584 = tpu.matmul %581, %583, %cst_648 {dimension_numbers = #tpu.dot_dimension_numbers<[1], [0], [0], [1], [0, 0, 1, 1], [], []>} : vector<64x4xf32>, vector<4x12xf32>, vector<64x12xf32> -> vector<64x12xf32>
    %585 = arith.addf %578, %584 : vector<64x12xf32>
    %c3_649 = arith.constant 3 : index
    %c8_650 = arith.constant 8 : index
    %c8_651 = arith.constant 8 : index
    %c0_652 = arith.constant 0 : index
    %586 = vector.load %arg12[%c3_649, %c8_650, %c8_651, %c0_652] : memref<4x17x17x4xf32, #tpu.memory_space<vmem>>, vector<1x8x8x4xf32>
    %587 = vector.shape_cast %586 : vector<1x8x8x4xf32> to vector<8x8x4xf32>
    %588 = vector.shape_cast %587 : vector<8x8x4xf32> to vector<64x4xf32>
    %c18_653 = arith.constant 18 : index
    %c0_654 = arith.constant 0 : index
    %c0_655 = arith.constant 0 : index
    %589 = vector.load %arg6[%c18_653, %c0_654, %c0_655] : memref<25x4x12xf32, #tpu.memory_space<vmem>>, vector<1x4x12xf32>
    %590 = vector.shape_cast %589 : vector<1x4x12xf32> to vector<4x12xf32>
    %cst_656 = arith.constant dense<0.000000e+00> : vector<64x12xf32>
    %591 = tpu.matmul %588, %590, %cst_656 {dimension_numbers = #tpu.dot_dimension_numbers<[1], [0], [0], [1], [0, 0, 1, 1], [], []>} : vector<64x4xf32>, vector<4x12xf32>, vector<64x12xf32> -> vector<64x12xf32>
    %592 = arith.addf %585, %591 : vector<64x12xf32>
    %c2_657 = arith.constant 2 : index
    %c8_658 = arith.constant 8 : index
    %c9_659 = arith.constant 9 : index
    %c0_660 = arith.constant 0 : index
    %593 = vector.load %arg12[%c2_657, %c8_658, %c9_659, %c0_660] : memref<4x17x17x4xf32, #tpu.memory_space<vmem>>, vector<1x8x8x4xf32>
    %594 = vector.shape_cast %593 : vector<1x8x8x4xf32> to vector<8x8x4xf32>
    %595 = vector.shape_cast %594 : vector<8x8x4xf32> to vector<64x4xf32>
    %c19_661 = arith.constant 19 : index
    %c0_662 = arith.constant 0 : index
    %c0_663 = arith.constant 0 : index
    %596 = vector.load %arg6[%c19_661, %c0_662, %c0_663] : memref<25x4x12xf32, #tpu.memory_space<vmem>>, vector<1x4x12xf32>
    %597 = vector.shape_cast %596 : vector<1x4x12xf32> to vector<4x12xf32>
    %cst_664 = arith.constant dense<0.000000e+00> : vector<64x12xf32>
    %598 = tpu.matmul %595, %597, %cst_664 {dimension_numbers = #tpu.dot_dimension_numbers<[1], [0], [0], [1], [0, 0, 1, 1], [], []>} : vector<64x4xf32>, vector<4x12xf32>, vector<64x12xf32> -> vector<64x12xf32>
    %599 = arith.addf %592, %598 : vector<64x12xf32>
    %c0_665 = arith.constant 0 : index
    %c9_666 = arith.constant 9 : index
    %c7_667 = arith.constant 7 : index
    %c0_668 = arith.constant 0 : index
    %600 = vector.load %arg12[%c0_665, %c9_666, %c7_667, %c0_668] : memref<4x17x17x4xf32, #tpu.memory_space<vmem>>, vector<1x8x8x4xf32>
    %601 = vector.shape_cast %600 : vector<1x8x8x4xf32> to vector<8x8x4xf32>
    %602 = vector.shape_cast %601 : vector<8x8x4xf32> to vector<64x4xf32>
    %c20_669 = arith.constant 20 : index
    %c0_670 = arith.constant 0 : index
    %c0_671 = arith.constant 0 : index
    %603 = vector.load %arg6[%c20_669, %c0_670, %c0_671] : memref<25x4x12xf32, #tpu.memory_space<vmem>>, vector<1x4x12xf32>
    %604 = vector.shape_cast %603 : vector<1x4x12xf32> to vector<4x12xf32>
    %cst_672 = arith.constant dense<0.000000e+00> : vector<64x12xf32>
    %605 = tpu.matmul %602, %604, %cst_672 {dimension_numbers = #tpu.dot_dimension_numbers<[1], [0], [0], [1], [0, 0, 1, 1], [], []>} : vector<64x4xf32>, vector<4x12xf32>, vector<64x12xf32> -> vector<64x12xf32>
    %606 = arith.addf %599, %605 : vector<64x12xf32>
    %c1_673 = arith.constant 1 : index
    %c9_674 = arith.constant 9 : index
    %c7_675 = arith.constant 7 : index
    %c0_676 = arith.constant 0 : index
    %607 = vector.load %arg12[%c1_673, %c9_674, %c7_675, %c0_676] : memref<4x17x17x4xf32, #tpu.memory_space<vmem>>, vector<1x8x8x4xf32>
    %608 = vector.shape_cast %607 : vector<1x8x8x4xf32> to vector<8x8x4xf32>
    %609 = vector.shape_cast %608 : vector<8x8x4xf32> to vector<64x4xf32>
    %c21_677 = arith.constant 21 : index
    %c0_678 = arith.constant 0 : index
    %c0_679 = arith.constant 0 : index
    %610 = vector.load %arg6[%c21_677, %c0_678, %c0_679] : memref<25x4x12xf32, #tpu.memory_space<vmem>>, vector<1x4x12xf32>
    %611 = vector.shape_cast %610 : vector<1x4x12xf32> to vector<4x12xf32>
    %cst_680 = arith.constant dense<0.000000e+00> : vector<64x12xf32>
    %612 = tpu.matmul %609, %611, %cst_680 {dimension_numbers = #tpu.dot_dimension_numbers<[1], [0], [0], [1], [0, 0, 1, 1], [], []>} : vector<64x4xf32>, vector<4x12xf32>, vector<64x12xf32> -> vector<64x12xf32>
    %613 = arith.addf %606, %612 : vector<64x12xf32>
    %c0_681 = arith.constant 0 : index
    %c9_682 = arith.constant 9 : index
    %c8_683 = arith.constant 8 : index
    %c0_684 = arith.constant 0 : index
    %614 = vector.load %arg12[%c0_681, %c9_682, %c8_683, %c0_684] : memref<4x17x17x4xf32, #tpu.memory_space<vmem>>, vector<1x8x8x4xf32>
    %615 = vector.shape_cast %614 : vector<1x8x8x4xf32> to vector<8x8x4xf32>
    %616 = vector.shape_cast %615 : vector<8x8x4xf32> to vector<64x4xf32>
    %c22_685 = arith.constant 22 : index
    %c0_686 = arith.constant 0 : index
    %c0_687 = arith.constant 0 : index
    %617 = vector.load %arg6[%c22_685, %c0_686, %c0_687] : memref<25x4x12xf32, #tpu.memory_space<vmem>>, vector<1x4x12xf32>
    %618 = vector.shape_cast %617 : vector<1x4x12xf32> to vector<4x12xf32>
    %cst_688 = arith.constant dense<0.000000e+00> : vector<64x12xf32>
    %619 = tpu.matmul %616, %618, %cst_688 {dimension_numbers = #tpu.dot_dimension_numbers<[1], [0], [0], [1], [0, 0, 1, 1], [], []>} : vector<64x4xf32>, vector<4x12xf32>, vector<64x12xf32> -> vector<64x12xf32>
    %620 = arith.addf %613, %619 : vector<64x12xf32>
    %c1_689 = arith.constant 1 : index
    %c9_690 = arith.constant 9 : index
    %c8_691 = arith.constant 8 : index
    %c0_692 = arith.constant 0 : index
    %621 = vector.load %arg12[%c1_689, %c9_690, %c8_691, %c0_692] : memref<4x17x17x4xf32, #tpu.memory_space<vmem>>, vector<1x8x8x4xf32>
    %622 = vector.shape_cast %621 : vector<1x8x8x4xf32> to vector<8x8x4xf32>
    %623 = vector.shape_cast %622 : vector<8x8x4xf32> to vector<64x4xf32>
    %c23_693 = arith.constant 23 : index
    %c0_694 = arith.constant 0 : index
    %c0_695 = arith.constant 0 : index
    %624 = vector.load %arg6[%c23_693, %c0_694, %c0_695] : memref<25x4x12xf32, #tpu.memory_space<vmem>>, vector<1x4x12xf32>
    %625 = vector.shape_cast %624 : vector<1x4x12xf32> to vector<4x12xf32>
    %cst_696 = arith.constant dense<0.000000e+00> : vector<64x12xf32>
    %626 = tpu.matmul %623, %625, %cst_696 {dimension_numbers = #tpu.dot_dimension_numbers<[1], [0], [0], [1], [0, 0, 1, 1], [], []>} : vector<64x4xf32>, vector<4x12xf32>, vector<64x12xf32> -> vector<64x12xf32>
    %627 = arith.addf %620, %626 : vector<64x12xf32>
    %c0_697 = arith.constant 0 : index
    %c9_698 = arith.constant 9 : index
    %c9_699 = arith.constant 9 : index
    %c0_700 = arith.constant 0 : index
    %628 = vector.load %arg12[%c0_697, %c9_698, %c9_699, %c0_700] : memref<4x17x17x4xf32, #tpu.memory_space<vmem>>, vector<1x8x8x4xf32>
    %629 = vector.shape_cast %628 : vector<1x8x8x4xf32> to vector<8x8x4xf32>
    %630 = vector.shape_cast %629 : vector<8x8x4xf32> to vector<64x4xf32>
    %c24_701 = arith.constant 24 : index
    %c0_702 = arith.constant 0 : index
    %c0_703 = arith.constant 0 : index
    %631 = vector.load %arg6[%c24_701, %c0_702, %c0_703] : memref<25x4x12xf32, #tpu.memory_space<vmem>>, vector<1x4x12xf32>
    %632 = vector.shape_cast %631 : vector<1x4x12xf32> to vector<4x12xf32>
    %cst_704 = arith.constant dense<0.000000e+00> : vector<64x12xf32>
    %633 = tpu.matmul %630, %632, %cst_704 {dimension_numbers = #tpu.dot_dimension_numbers<[1], [0], [0], [1], [0, 0, 1, 1], [], []>} : vector<64x4xf32>, vector<4x12xf32>, vector<64x12xf32> -> vector<64x12xf32>
    %634 = arith.addf %627, %633 : vector<64x12xf32>
    %c0_705 = arith.constant 0 : index
    %c0_706 = arith.constant 0 : index
    %635 = vector.load %arg7[%c0_705, %c0_706] : memref<1x12xf32, #tpu.memory_space<vmem>>, vector<1x12xf32>
    %636 = vector.broadcast %635 : vector<1x12xf32> to vector<64x12xf32>
    %637 = arith.addf %634, %636 : vector<64x12xf32>
    %c0_707 = arith.constant 0 : index
    %c8_708 = arith.constant 8 : index
    %c8_709 = arith.constant 8 : index
    %c0_710 = arith.constant 0 : index
    %638 = vector.load %arg12[%c0_707, %c8_708, %c8_709, %c0_710] : memref<4x17x17x4xf32, #tpu.memory_space<vmem>>, vector<1x8x8x4xf32>
    %639 = vector.shape_cast %638 : vector<1x8x8x4xf32> to vector<8x8x4xf32>
    %c1_711 = arith.constant 1 : index
    %c8_712 = arith.constant 8 : index
    %c8_713 = arith.constant 8 : index
    %c0_714 = arith.constant 0 : index
    %640 = vector.load %arg12[%c1_711, %c8_712, %c8_713, %c0_714] : memref<4x17x17x4xf32, #tpu.memory_space<vmem>>, vector<1x8x8x4xf32>
    %641 = vector.shape_cast %640 : vector<1x8x8x4xf32> to vector<8x8x4xf32>
    %642 = arith.maximumf %639, %641 : vector<8x8x4xf32>
    %c2_715 = arith.constant 2 : index
    %c8_716 = arith.constant 8 : index
    %c8_717 = arith.constant 8 : index
    %c0_718 = arith.constant 0 : index
    %643 = vector.load %arg12[%c2_715, %c8_716, %c8_717, %c0_718] : memref<4x17x17x4xf32, #tpu.memory_space<vmem>>, vector<1x8x8x4xf32>
    %644 = vector.shape_cast %643 : vector<1x8x8x4xf32> to vector<8x8x4xf32>
    %c3_719 = arith.constant 3 : index
    %c8_720 = arith.constant 8 : index
    %c8_721 = arith.constant 8 : index
    %c0_722 = arith.constant 0 : index
    %645 = vector.load %arg12[%c3_719, %c8_720, %c8_721, %c0_722] : memref<4x17x17x4xf32, #tpu.memory_space<vmem>>, vector<1x8x8x4xf32>
    %646 = vector.shape_cast %645 : vector<1x8x8x4xf32> to vector<8x8x4xf32>
    %647 = arith.maximumf %644, %646 : vector<8x8x4xf32>
    %648 = arith.maximumf %642, %647 : vector<8x8x4xf32>
    %649 = vector.shape_cast %648 : vector<8x8x4xf32> to vector<64x4xf32>
    %c0_723 = arith.constant 0 : index
    %c0_724 = arith.constant 0 : index
    %650 = vector.load %arg8[%c0_723, %c0_724] : memref<12x4xf32, #tpu.memory_space<vmem>>, vector<12x4xf32>
    %cst_725 = arith.constant dense<0.000000e+00> : vector<64x4xf32>
    %651 = tpu.matmul %637, %650, %cst_725 {dimension_numbers = #tpu.dot_dimension_numbers<[1], [0], [0], [1], [0, 0, 1, 1], [], []>} : vector<64x12xf32>, vector<12x4xf32>, vector<64x4xf32> -> vector<64x4xf32>
    %c0_726 = arith.constant 0 : index
    %c0_727 = arith.constant 0 : index
    %652 = vector.load %arg9[%c0_726, %c0_727] : memref<4x4xf32, #tpu.memory_space<vmem>>, vector<4x4xf32>
    %cst_728 = arith.constant dense<0.000000e+00> : vector<64x4xf32>
    %653 = tpu.matmul %649, %652, %cst_728 {dimension_numbers = #tpu.dot_dimension_numbers<[1], [0], [0], [1], [0, 0, 1, 1], [], []>} : vector<64x4xf32>, vector<4x4xf32>, vector<64x4xf32> -> vector<64x4xf32>
    %654 = arith.addf %651, %653 : vector<64x4xf32>
    %c0_729 = arith.constant 0 : index
    %c0_730 = arith.constant 0 : index
    %655 = vector.load %arg10[%c0_729, %c0_730] : memref<1x4xf32, #tpu.memory_space<vmem>>, vector<1x4xf32>
    %656 = vector.broadcast %655 : vector<1x4xf32> to vector<64x4xf32>
    %657 = arith.addf %654, %656 : vector<64x4xf32>
    %cst_731 = arith.constant 0.000000e+00 : f32
    %658 = vector.broadcast %cst_731 : f32 to vector<64x4xf32>
    %659 = arith.maximumf %657, %658 : vector<64x4xf32>
    %660 = vector.shape_cast %659 : vector<64x4xf32> to vector<1x8x8x4xf32>
    %c0_732 = arith.constant 0 : index
    %c0_733 = arith.constant 0 : index
    %c0_734 = arith.constant 0 : index
    %c0_735 = arith.constant 0 : index
    %661 = vector.load %arg11[%c0_732, %c0_733, %c0_734, %c0_735] : memref<1x8x8x4xf32, #tpu.memory_space<vmem>>, vector<1x8x8x4xf32>
    tpu.vector_store %arg11[%c0_732, %c0_733, %c0_734, %c0_735], %660 {strides = array<i32>} : memref<1x8x8x4xf32, #tpu.memory_space<vmem>>, vector<1x8x8x4xf32>,
    return
  }
  func.func @transform_0(%arg0: i32) -> (i32, i32, i32, i32) {
    %c0_i32 = arith.constant 0 : i32
    %c0_i32_0 = arith.constant 0 : i32
    %c0_i32_1 = arith.constant 0 : i32
    %c0_i32_2 = arith.constant 0 : i32
    return %arg0, %c0_i32, %c0_i32_0, %c0_i32_1 : i32, i32, i32, i32
  }
  func.func @transform_1(%arg0: i32) -> (i32, i32, i32) {
    %c0_i32 = arith.constant 0 : i32
    %c0_i32_0 = arith.constant 0 : i32
    %c0_i32_1 = arith.constant 0 : i32
    %c0_i32_2 = arith.constant 0 : i32
    return %c0_i32, %c0_i32_0, %c0_i32_1 : i32, i32, i32
  }
  func.func @transform_2(%arg0: i32) -> (i32, i32) {
    %c0_i32 = arith.constant 0 : i32
    %c0_i32_0 = arith.constant 0 : i32
    %c0_i32_1 = arith.constant 0 : i32
    return %c0_i32, %c0_i32_0 : i32, i32
  }
  func.func @transform_3(%arg0: i32) -> (i32, i32) {
    %c0_i32 = arith.constant 0 : i32
    %c0_i32_0 = arith.constant 0 : i32
    %c0_i32_1 = arith.constant 0 : i32
    return %c0_i32, %c0_i32_0 : i32, i32
  }
  func.func @transform_4(%arg0: i32) -> (i32, i32) {
    %c0_i32 = arith.constant 0 : i32
    %c0_i32_0 = arith.constant 0 : i32
    %c0_i32_1 = arith.constant 0 : i32
    return %c0_i32, %c0_i32_0 : i32, i32
  }
  func.func @transform_5(%arg0: i32) -> (i32, i32, i32) {
    %c0_i32 = arith.constant 0 : i32
    %c0_i32_0 = arith.constant 0 : i32
    %c0_i32_1 = arith.constant 0 : i32
    %c0_i32_2 = arith.constant 0 : i32
    return %c0_i32, %c0_i32_0, %c0_i32_1 : i32, i32, i32
  }
  func.func @transform_6(%arg0: i32) -> (i32, i32) {
    %c0_i32 = arith.constant 0 : i32
    %c0_i32_0 = arith.constant 0 : i32
    %c0_i32_1 = arith.constant 0 : i32
    return %c0_i32, %c0_i32_0 : i32, i32
  }
  func.func @transform_7(%arg0: i32) -> (i32, i32) {
    %c0_i32 = arith.constant 0 : i32
    %c0_i32_0 = arith.constant 0 : i32
    %c0_i32_1 = arith.constant 0 : i32
    return %c0_i32, %c0_i32_0 : i32, i32
  }
  func.func @transform_8(%arg0: i32) -> (i32, i32) {
    %c0_i32 = arith.constant 0 : i32
    %c0_i32_0 = arith.constant 0 : i32
    %c0_i32_1 = arith.constant 0 : i32
    return %c0_i32, %c0_i32_0 : i32, i32
  }
  func.func @transform_9(%arg0: i32) -> (i32, i32) {
    %c0_i32 = arith.constant 0 : i32
    %c0_i32_0 = arith.constant 0 : i32
    %c0_i32_1 = arith.constant 0 : i32
    return %c0_i32, %c0_i32_0 : i32, i32
  }
  func.func @transform_10(%arg0: i32) -> (i32, i32, i32, i32) {
    %c0_i32 = arith.constant 0 : i32
    %c0_i32_0 = arith.constant 0 : i32
    %c0_i32_1 = arith.constant 0 : i32
    %c0_i32_2 = arith.constant 0 : i32
    return %arg0, %c0_i32, %c0_i32_0, %c0_i32_1 : i32, i32, i32, i32
  }
}

</mosaic_0001>

<bundles_post_ra>
// kernel: _lambda_.1
= control target key start
LH: loop header
LB: loop body
LE: loop exit
PB: predicated region body
PF: predicated region fallthrough
CT: control target
= control target key end

     0   :  { %s17124_s13 = smov 0   ;;  %s22309_s0 = inlined_call_operand.vmem [shape: f32[8,10,10,4], index: 0, kind: input, shape index: {}]   ;;  %s22310_s1 = inlined_call_operand.vmem [shape: f32[25,4,12], index: 1, kind: input, shape index: {}]   ;;  %s22311_s2 = inlined_call_operand.vmem [shape: f32[1,12], index: 2, kind: input, shape index: {}]   ;;  %s22312_s3 = inlined_call_operand.vmem [shape: f32[12,4], index: 3, kind: input, shape index: {}]   ;;  %s22313_s4 = inlined_call_operand.vmem [shape: f32[1,4], index: 4, kind: input, shape index: {}]   ;;  %s22314_s5 = inlined_call_operand.vmem [shape: f32[25,4,12], index: 5, kind: input, shape index: {}]   ;;  %s22315_s6 = inlined_call_operand.vmem [shape: f32[1,12], index: 6, kind: input, shape index: {}]   ;;  %s22316_s7 = inlined_call_operand.vmem [shape: f32[12,4], index: 7, kind: input, shape index: {}]   ;;  %s22317_s8 = inlined_call_operand.vmem [shape: f32[4,4], index: 8, kind: input, shape index: {}]   ;;  %s22318_s9 = inlined_call_operand.vmem [shape: f32[1,4], index: 9, kind: input, shape index: {}]   ;;  %s22319_s10 = inlined_call_operand.vmem [shape: f32[2,8,8,4], index: 10, kind: output, shape index: {}]  }
   0x1 LB: > { %s17130_s14 = sadd.s32 4294967295, %s17066_s13   ;;  %p12796_p0 = scmp.ge.s32.totalorder %s17066_s13, 1  ;;  %s17066_s13 = sphi %s17124_s13, %s20_s13  }
   0x2   : > { %p314_p1 = scmp.lt.s32.totalorder %s17066_s13, 3 }
   0x4   : > { %p315_p2 = pnand %p12796_p0, %p314_p1 }
   0x6   : > { %318 = sbr.rel (%p315_p2) target bundleno = 1809 (0x711), region = 60 }
   0xb   : > { %v12833_v0 = vld [vmem:[%s22310_s1 + $0x4] sm:$0xf]  ;;  %vm516_vm0 = vcmask 1043456   ;;  %s12797_s17 = sshll.u32 %s17130_s14, 2  ;;  %v12916_v1 = vld [vmem:[%s22310_s1 + $0x8] sm:$0xf] }
   0xc   : > { %15324 = vmatprep.subr.msk.mxu0 %vm516_vm0, %v12833_v0  ;;  %17006 = vmatprep.subr.msk.mxu1 %vm516_vm0, %v12833_v0  ;;  %p354_p3 = scmp.lt.s32.totalorder %s12797_s17, 7  ;;  %v400_v2 = vld [vmem:[%s22310_s1] sm:$0xf]  ;;  %vm419_vm1 = vcmask 31744   ;;  %v12958_v9 = vld [vmem:[%s22310_s1 + $0xc] sm:$0xf] }
   0xd   : > { %15325 = vmatpush3.msk.msra.mxu0 %vm516_vm0, %v12833_v0  ;;  %17007 = vmatpush3.msk.msra.mxu1 %vm516_vm0, %v12833_v0  ;;  %v17184_v10 = vld [vmem:[%s22310_s1 + $0x10] sm:$0xf]  ;;  %v17231_v19 = vld [vmem:[%s22310_s1 + $0x14] sm:$0xf]  ;;  %v17432_v54 = vld [vmem:[%s22310_s1 + $0x18] sm:$0xf] }
   0xe   : > { %s22953_s17 = smov (!%p354_p3, %s12797_s17), 7  ;;  %15424 = vmatprep.subr.msk.mxu0 %vm516_vm0, %v12916_v1  ;;  %15374 = vmatprep.subr.msk.mxu1 %vm516_vm0, %v400_v2  ;;  %v17482_v58 = vld [vmem:[%s22310_s1 + $0x1c] sm:$0xf]  ;;  %vm8063_vm2 = vcmask 97280   ;;  %vm8422_vm3 = vcmask 24576   ;;  %p360_p4 = scmp.lt.s32.totalorder %s17130_s14, 1 }
   0xf   : > { %s17008_s22 = smul.u32 160, %s22953_s17 }
  0x10   : > { %s22955_s14 = smov (!%p360_p4, %s17130_s14), 1 }
  0x11   : > { %s17153_s25 = scalar_lea.vmem %s22309_s0, %s17008_s22  ;;  %s14220_s12 = sshll.u32 %s22955_s14, 6 }
  0x12   : > { %v12801_v3 = vld [vmem:[%s17153_s25 + $0xa0] sm:$0xff]  ;;  %v17160_v5 = vld [vmem:[%s17153_s25 + $0xb0] sm:$0xff]  ;;  %s22288_s17 = scalar_lea.vmem %s22319_s10, %s14220_s12 }
  0x13   : > { %v17157_v4 = vld [vmem:[%s17153_s25 + $0x181] sm:$0xff]  ;;  %15326 = vmatprep.mubr.msk.f32.mxu0 %vm419_vm1, %v12801_v3  ;;  %v17166_v6 = vld [vmem:[%s17153_s25 + $0x191] sm:$0xff] }
  0x14   : > { %15368 = vmatprep.mubr.msk.f32.mxu1 %vm419_vm1, %v17157_v4  ;;  %v17169_v7 = vld [vmem:[%s17153_s25 + $0xc0] sm:$0xff]  ;;  %15327 = vmatmul.mubr.msk.f32.vlgmr.msra.gmra.mxu0 %vm419_vm1, %v17160_v5  ;;  %v17190_v11 = vld [vmem:[%s17153_s25 + $0xd0] sm:$0xff] }
  0x15   : > { %v17172_v8 = vld [vmem:[%s17153_s25 + $0x1a1] sm:$0xff]  ;;  %15369 = vmatmul.mubr.msk.f32.vlgmr.msra.gmra.mxu1 %vm419_vm1, %v17166_v6  ;;  %15425 = vmatpush3.msk.msra.mxu0 %vm516_vm0, %v12916_v1  ;;  %v17193_v12 = vld [vmem:[%s17153_s25 + $0x1b1] sm:$0xff] }
  0x16   : > { %15329 = vmatprep.mubr.msk.f32.mxu0 %vm419_vm1, %v17169_v7  ;;  %15371 = vmatprep.mubr.msk.f32.mxu1 %vm419_vm1, %v17172_v8  ;;  %v17198_v13 = vld [vmem:[%s17153_s25 + $0xe0] sm:$0xff]  ;;  %v17213_v15 = vld [vmem:[%s17153_s25 + $0xf0] sm:$0xff] }
  0x17   : > { %15375 = vmatpush3.msk.msra.mxu1 %vm516_vm0, %v400_v2  ;;  %v365_v14 = vld [vmem:[%s17153_s25] sm:$0xff]  ;;  %15524 = vmatprep.subr.msk.mxu0 %vm516_vm0, %v17184_v10  ;;  %v17216_v16 = vld [vmem:[%s17153_s25 + $0x10] sm:$0xff] }
  0x18   : > { %15474 = vmatprep.subr.msk.mxu1 %vm516_vm0, %v12958_v9  ;;  %15330 = vmatmul.mubr.msk.f32.gmra.mxu0 %vm419_vm1, %v17190_v11  ;;  %v17219_v17 = vld [vmem:[%s17153_s25 + $0x100] sm:$0xff]  ;;  %v17238_v20 = vld [vmem:[%s17153_s25 + $0x110] sm:$0xff] }
  0x19   : > { %15372 = vmatmul.mubr.msk.f32.gmra.mxu1 %vm419_vm1, %v17193_v12  ;;  %15332 = vmatprep.mubr.msk.f32.mxu0 %vm419_vm1, %v17198_v13  ;;  %v17222_v18 = vld [vmem:[%s17153_s25 + $0x20] sm:$0xff]  ;;  %v17241_v21 = vld [vmem:[%s17153_s25 + $0x30] sm:$0xff] }
  0x1a   : > { %15376 = vmatprep.mubr.msk.f32.mxu1 %vm419_vm1, %v365_v14  ;;  %v17244_v22 = vld [vmem:[%s17153_s25 + $0x1] sm:$0xff]  ;;  %v17261_v24 = vld [vmem:[%s17153_s25 + $0x11] sm:$0xff] }
  0x1b   : > { %v17247_v23 = vld [vmem:[%s17153_s25 + $0x40] sm:$0xff]  ;;  %v17264_v25 = vld [vmem:[%s17153_s25 + $0x50] sm:$0xff] }
  0x1c   : > { %15333 = vmatmul.mubr.msk.f32.gmra.mxu0 %vm419_vm1, %v17213_v15  ;;  %v17267_v26 = vld [vmem:[%s17153_s25 + $0x21] sm:$0xff]  ;;  %v17281_v28 = vld [vmem:[%s17153_s25 + $0x31] sm:$0xff] }
  0x1d   : > { %15377 = vmatmul.mubr.msk.f32.vlgmr.msra.gmra.mxu1 %vm419_vm1, %v17216_v16  ;;  %15335 = vmatprep.mubr.msk.f32.mxu0 %vm419_vm1, %v17219_v17  ;;  %v17270_v27 = vld [vmem:[%s17153_s25 + $0x60] sm:$0xff]  ;;  %v17284_v29 = vld [vmem:[%s17153_s25 + $0x70] sm:$0xff] }
  0x1e   : > { %15379 = vmatprep.mubr.msk.f32.mxu1 %vm419_vm1, %v17222_v18  ;;  %15475 = vmatpush3.msk.msra.mxu1 %vm516_vm0, %v12958_v9  ;;  %v17287_v30 = vld [vmem:[%s17153_s25 + $0x41] sm:$0xff]  ;;  %v17297_v31 = vld [vmem:[%s17153_s25 + $0x51] sm:$0xff] }
  0x1f   : > { %15574 = vmatprep.subr.msk.mxu1 %vm516_vm0, %v17231_v19  ;;  %22490 = vst [vmem:[#allocation3_spill] sm:$0xff] %v17287_v30  ;;  %22491 = vst [vmem:[#allocation4_spill] sm:$0xff] %v17297_v31  ;;  %v17300_v32 = vld [vmem:[%s17153_s25 + $0x61] sm:$0xff]  ;;  %v17311_v33 = vld [vmem:[%s17153_s25 + $0x71] sm:$0xff] }
  0x20   : > { %15336 = vmatmul.mubr.msk.f32.gmra.mxu0 %vm419_vm1, %v17238_v20  ;;  %22492 = vst [vmem:[#allocation5_spill] sm:$0xff] %v17300_v32  ;;  %22493 = vst [vmem:[#allocation6_spill] sm:$0xff] %v17311_v33  ;;  %v17314_v34 = vld [vmem:[%s17153_s25 + $0x1e0] sm:$0xff]  ;;  %v17325_v35 = vld [vmem:[%s17153_s25 + $0x1f0] sm:$0xff] }
  0x21   : > { %15380 = vmatmul.mubr.msk.f32.gmra.mxu1 %vm419_vm1, %v17241_v21  ;;  %15338 = vmatprep.mubr.msk.f32.mxu0 %vm419_vm1, %v17244_v22  ;;  %v17328_v36 = vld [vmem:[%s17153_s25 + $0x200] sm:$0xff]  ;;  %v17339_v37 = vld [vmem:[%s17153_s25 + $0x210] sm:$0xff] }
  0x22   : > { %15382 = vmatprep.mubr.msk.f32.mxu1 %vm419_vm1, %v17247_v23  ;;  %v17342_v38 = vld [vmem:[%s17153_s25 + $0x220] sm:$0xff]  ;;  %v17356_v40 = vld [vmem:[%s17153_s25 + $0x230] sm:$0xff] }
  0x23   : > { %v17345_v39 = vld [vmem:[%s17153_s25 + $0x140] sm:$0xff]  ;;  %v17359_v41 = vld [vmem:[%s17153_s25 + $0x150] sm:$0xff] }
  0x24   : > { %15339 = vmatmul.mubr.msk.f32.gmra.mxu0 %vm419_vm1, %v17261_v24  ;;  %v17362_v42 = vld [vmem:[%s17153_s25 + $0x240] sm:$0xff]  ;;  %v17376_v44 = vld [vmem:[%s17153_s25 + $0x250] sm:$0xff] }
  0x25   : > { %15383 = vmatmul.mubr.msk.f32.gmra.mxu1 %vm419_vm1, %v17264_v25  ;;  %15341 = vmatprep.mubr.msk.f32.mxu0 %vm419_vm1, %v17267_v26  ;;  %v17365_v43 = vld [vmem:[%s17153_s25 + $0x160] sm:$0xff]  ;;  %v17379_v45 = vld [vmem:[%s17153_s25 + $0x170] sm:$0xff] }
  0x26   : > { %15385 = vmatprep.mubr.msk.f32.mxu1 %vm419_vm1, %v17270_v27  ;;  %v17382_v46 = vld [vmem:[%s17153_s25 + $0x141] sm:$0xff]  ;;  %v17396_v48 = vld [vmem:[%s17153_s25 + $0x151] sm:$0xff] }
  0x27   : > { %v17385_v47 = vld [vmem:[%s17153_s25 + $0x180] sm:$0xff]  ;;  %v17399_v49 = vld [vmem:[%s17153_s25 + $0x190] sm:$0xff] }
  0x28   : > { %15342 = vmatmul.mubr.msk.f32.gmra.mxu0 %vm419_vm1, %v17281_v28  ;;  %v17402_v50 = vld [vmem:[%s17153_s25 + $0x161] sm:$0xff]  ;;  %v17416_v52 = vld [vmem:[%s17153_s25 + $0x171] sm:$0xff] }
  0x29   : > { %15386 = vmatmul.mubr.msk.f32.gmra.mxu1 %vm419_vm1, %v17284_v29  ;;  %15344 = vmatprep.mubr.msk.f32.mxu0 %vm419_vm1, %v17287_v30  ;;  %v17405_v51 = vld [vmem:[%s17153_s25 + $0x1a0] sm:$0xff]  ;;  %v17419_v53 = vld [vmem:[%s17153_s25 + $0x1b0] sm:$0xff] }
  0x2a   : > { %15388 = vmatprep.mubr.msk.f32.mxu1 %vm419_vm1, %v12801_v3  ;;  %v12900_v55 = vld [vmem:[%s17153_s25 + $0xa1] sm:$0xff]  ;;  %v17470_v56 = vld [vmem:[%s17153_s25 + $0xb1] sm:$0xff] }
  0x2b   : > { %22494 = vst [vmem:[#allocation7_spill] sm:$0xff] %v17470_v56  ;;  %v17473_v57 = vld [vmem:[%s17153_s25 + $0xc1] sm:$0xff]  ;;  %v17489_v59 = vld [vmem:[%s17153_s25 + $0xd1] sm:$0xff] }
  0x2c   : > { %15345 = vmatmul.mubr.msk.f32.gmra.mxu0 %vm419_vm1, %v17297_v31  ;;  %22495 = vst [vmem:[#allocation8_spill] sm:$0xff] %v17473_v57  ;;  %22496 = vst [vmem:[#allocation9_spill] sm:$0xff] %v17489_v59  ;;  %v17492_v60 = vld [vmem:[%s17153_s25 + $0xe1] sm:$0xff]  ;;  %v17507_v61 = vld [vmem:[%s17153_s25 + $0xf1] sm:$0xff] }
  0x2d   : > { %15389 = vmatmul.mubr.msk.f32.gmra.mxu1 %vm419_vm1, %v17160_v5  ;;  %15347 = vmatprep.mubr.msk.f32.mxu0 %vm419_vm1, %v17300_v32  ;;  %22497 = vst [vmem:[#allocation10_spill] sm:$0xff] %v17492_v60  ;;  %22498 = vst [vmem:[#allocation11_spill] sm:$0xff] %v17507_v61  ;;  %v17510_v62 = vld [vmem:[%s17153_s25 + $0x101] sm:$0xff]  ;;  %v17521_v63 = vld [vmem:[%s17153_s25 + $0x111] sm:$0xff] }
  0x2e   : > { %15391 = vmatprep.mubr.msk.f32.mxu1 %vm419_vm1, %v17169_v7  ;;  %22499 = vst [vmem:[#allocation12_spill] sm:$0xff] %v17510_v62  ;;  %22500 = vst [vmem:[#allocation13_spill] sm:$0xff] %v17521_v63  ;;  %v1347_v0 = vld [vmem:[%s17153_s25 + $0x2] sm:$0xff]  ;;  %v17532_v1 = vld [vmem:[%s17153_s25 + $0x12] sm:$0xff] }
  0x2f   : > { %22501 = vst [vmem:[#allocation14_spill] sm:$0xff] %v17532_v1  ;;  %v17535_v2 = vld [vmem:[%s17153_s25 + $0x22] sm:$0xff]  ;;  %v17546_v3 = vld [vmem:[%s17153_s25 + $0x32] sm:$0xff] }
  0x30   : > { %15348 = vmatmul.mubr.msk.f32.gmra.mxu0 %vm419_vm1, %v17311_v33  ;;  %22502 = vst [vmem:[#allocation15_spill] sm:$0xff] %v17535_v2  ;;  %22503 = vst [vmem:[#allocation16_spill] sm:$0xff] %v17546_v3  ;;  %v17549_v9 = vld [vmem:[%s17153_s25 + $0x42] sm:$0xff] }
  0x31   : > { %15392 = vmatmul.mubr.msk.f32.gmra.mxu1 %vm419_vm1, %v17190_v11  ;;  %15350 = vmatprep.mubr.msk.f32.mxu0 %vm419_vm1, %v17314_v34  ;;  %22504 = vst [vmem:[#allocation17_spill] sm:$0xff] %v17549_v9  ;;  %v17563_v14 = vld [vmem:[%s17153_s25 + $0x62] sm:$0xff] }
  0x32   : > { %15394 = vmatprep.mubr.msk.f32.mxu1 %vm419_vm1, %v17198_v13  ;;  %22506 = vst [vmem:[#allocation19_spill] sm:$0xff] %v17563_v14 }
  0x34   : > { %15351 = vmatmul.mubr.msk.f32.gmra.mxu0 %vm419_vm1, %v17325_v35 }
  0x35   : > { %15395 = vmatmul.mubr.msk.f32.gmra.mxu1 %vm419_vm1, %v17213_v15  ;;  %15353 = vmatprep.mubr.msk.f32.mxu0 %vm419_vm1, %v17328_v36 }
  0x36   : > { %15397 = vmatprep.mubr.msk.f32.mxu1 %vm419_vm1, %v17219_v17 }
  0x38   : > { %15354 = vmatmul.mubr.msk.f32.gmra.mxu0 %vm419_vm1, %v17339_v37 }
  0x39   : > { %15398 = vmatmul.mubr.msk.f32.gmra.mxu1 %vm419_vm1, %v17238_v20  ;;  %15356 = vmatprep.mubr.msk.f32.mxu0 %vm419_vm1, %v17342_v38 }
  0x3a   : > { %15400 = vmatprep.mubr.msk.f32.mxu1 %vm419_vm1, %v17345_v39 }
  0x3c   : > { %15357 = vmatmul.mubr.msk.f32.gmra.mxu0 %vm419_vm1, %v17356_v40 }
  0x3d   : > { %15401 = vmatmul.mubr.msk.f32.gmra.mxu1 %vm419_vm1, %v17359_v41  ;;  %15359 = vmatprep.mubr.msk.f32.mxu0 %vm419_vm1, %v17362_v42 }
  0x3e   : > { %15403 = vmatprep.mubr.msk.f32.mxu1 %vm419_vm1, %v17365_v43 }
  0x40   : > { %15360 = vmatmul.mubr.msk.f32.gmra.mxu0 %vm419_vm1, %v17376_v44 }
  0x41   : > { %15404 = vmatmul.mubr.msk.f32.gmra.mxu1 %vm419_vm1, %v17379_v45  ;;  %15362 = vmatprep.mubr.msk.f32.mxu0 %vm419_vm1, %v17382_v46 }
  0x42   : > { %15406 = vmatprep.mubr.msk.f32.mxu1 %vm419_vm1, %v17385_v47 }
  0x44   : > { %15363 = vmatmul.mubr.msk.f32.gmra.mxu0 %vm419_vm1, %v17396_v48 }
  0x45   : > { %15407 = vmatmul.mubr.msk.f32.gmra.mxu1 %vm419_vm1, %v17399_v49  ;;  %15365 = vmatprep.mubr.msk.f32.mxu0 %vm419_vm1, %v17402_v50 }
  0x46   : > { %15409 = vmatprep.mubr.msk.f32.mxu1 %vm419_vm1, %v17405_v51 }
  0x48   : > { %15366 = vmatmul.mubr.msk.f32.gmra.mxu0 %vm419_vm1, %v17416_v52 }
  0x49   : > { %15410 = vmatmul.mubr.msk.f32.gmra.mxu1 %vm419_vm1, %v17419_v53  ;;  %15426 = vmatprep.mubr.msk.f32.mxu0 %vm419_vm1, %v17244_v22  ;;  %v17577_v22 = vld [vmem:[%s17153_s25 + $0x1e1] sm:$0xff] }
  0x4a   : > { %15412 = vmatprep.mubr.msk.f32.mxu1 %vm419_vm1, %v17314_v34 }
  0x4c   : > { %15427 = vmatmul.mubr.msk.f32.vlgmr.msra.gmra.mxu0 %vm419_vm1, %v17261_v24 }
  0x4d   : > { %15413 = vmatmul.mubr.msk.f32.gmra.mxu1 %vm419_vm1, %v17325_v35  ;;  %15525 = vmatpush3.msk.msra.mxu0 %vm516_vm0, %v17184_v10  ;;  %v17560_v10 = vld [vmem:[%s17153_s25 + $0x52] sm:$0xff] }
  0x4e   : > { %15415 = vmatprep.mubr.msk.f32.mxu1 %vm419_vm1, %v17328_v36  ;;  %15429 = vmatprep.mubr.msk.f32.mxu0 %vm419_vm1, %v17267_v26  ;;  %22505 = vst [vmem:[#allocation18_spill] sm:$0xff] %v17560_v10 }
  0x4f   : > { %15624 = vmatprep.subr.msk.mxu0 %vm516_vm0, %v17432_v54 }
  0x50   : > { %15430 = vmatmul.mubr.msk.f32.gmra.mxu0 %vm419_vm1, %v17281_v28 }
  0x51   : > { %15416 = vmatmul.mubr.msk.f32.gmra.mxu1 %vm419_vm1, %v17339_v37  ;;  %15432 = vmatprep.mubr.msk.f32.mxu0 %vm419_vm1, %v17287_v30  ;;  %v17667_v30 = vld [vmem:[%s17153_s25 + $0x182] sm:$0xff] }
  0x52   : > { %15418 = vmatprep.mubr.msk.f32.mxu1 %vm419_vm1, %v17342_v38 }
  0x54   : > { %15433 = vmatmul.mubr.msk.f32.gmra.mxu0 %vm419_vm1, %v17297_v31  ;;  %v17651_v31 = vld [vmem:[%s22310_s1 + $0x20] sm:$0xf] }
  0x55   : > { %15419 = vmatmul.mubr.msk.f32.gmra.mxu1 %vm419_vm1, %v17356_v40  ;;  %15435 = vmatprep.mubr.msk.f32.mxu0 %vm419_vm1, %v17300_v32  ;;  %v17646_v32 = vld [vmem:[%s17153_s25 + $0x162] sm:$0xff] }
  0x56   : > { %15421 = vmatprep.mubr.msk.f32.mxu1 %vm419_vm1, %v17362_v42 }
  0x58   : > { %15436 = vmatmul.mubr.msk.f32.gmra.mxu0 %vm419_vm1, %v17311_v33  ;;  %v17643_v33 = vld [vmem:[%s17153_s25 + $0x152] sm:$0xff] }
  0x59   : > { %15422 = vmatmul.mubr.msk.f32.gmra.mxu1 %vm419_vm1, %v17376_v44  ;;  %15438 = vmatprep.mubr.msk.f32.mxu0 %vm419_vm1, %v12900_v55 }
  0x5a   : > { %15476 = vmatprep.mubr.msk.f32.mxu1 %vm419_vm1, %v12900_v55  ;;  %v17588_v55 = vld [vmem:[%s17153_s25 + $0x1f1] sm:$0xff] }
  0x5c   : > { %15439 = vmatmul.mubr.msk.f32.gmra.mxu0 %vm419_vm1, %v17470_v56 }
  0x5d   : > { %15477 = vmatmul.mubr.msk.f32.vlgmr.msra.gmra.mxu1 %vm419_vm1, %v17470_v56  ;;  %15441 = vmatprep.mubr.msk.f32.mxu0 %vm419_vm1, %v17473_v57  ;;  %v17633_v56 = vld [vmem:[%s17153_s25 + $0x142] sm:$0xff] }
  0x5e   : > { %15479 = vmatprep.mubr.msk.f32.mxu1 %vm419_vm1, %v17473_v57  ;;  %15575 = vmatpush3.msk.msra.mxu1 %vm516_vm0, %v17231_v19  ;;  %v17574_v19 = vld [vmem:[%s17153_s25 + $0x72] sm:$0xff] }
  0x5f   : > { %15674 = vmatprep.subr.msk.mxu1 %vm516_vm0, %v17482_v58  ;;  %22507 = vst [vmem:[#allocation20_spill] sm:$0xff] %v17574_v19  ;;  %v17630_v57 = vld [vmem:[%s17153_s25 + $0x251] sm:$0xff] }
  0x60   : > { %15442 = vmatmul.mubr.msk.f32.gmra.mxu0 %vm419_vm1, %v17489_v59 }
  0x61   : > { %15480 = vmatmul.mubr.msk.f32.gmra.mxu1 %vm419_vm1, %v17489_v59  ;;  %15444 = vmatprep.mubr.msk.f32.mxu0 %vm419_vm1, %v17492_v60  ;;  %v17619_v59 = vld [vmem:[%s17153_s25 + $0x241] sm:$0xff] }
  0x62   : > { %15482 = vmatprep.mubr.msk.f32.mxu1 %vm419_vm1, %v17492_v60  ;;  %v17616_v60 = vld [vmem:[%s17153_s25 + $0x231] sm:$0xff] }
  0x64   : > { %15445 = vmatmul.mubr.msk.f32.gmra.mxu0 %vm419_vm1, %v17507_v61 }
  0x65   : > { %15483 = vmatmul.mubr.msk.f32.gmra.mxu1 %vm419_vm1, %v17507_v61  ;;  %15447 = vmatprep.mubr.msk.f32.mxu0 %vm419_vm1, %v17510_v62  ;;  %v17605_v61 = vld [vmem:[%s17153_s25 + $0x221] sm:$0xff] }
  0x66   : > { %15485 = vmatprep.mubr.msk.f32.mxu1 %vm419_vm1, %v17510_v62  ;;  %v17602_v62 = vld [vmem:[%s17153_s25 + $0x211] sm:$0xff] }
  0x68   : > { %15448 = vmatmul.mubr.msk.f32.gmra.mxu0 %vm419_vm1, %v17521_v63 }
  0x69   : > { %15486 = vmatmul.mubr.msk.f32.gmra.mxu1 %vm419_vm1, %v17521_v63  ;;  %15450 = vmatprep.mubr.msk.f32.mxu0 %vm419_vm1, %v17382_v46  ;;  %v17591_v63 = vld [vmem:[%s17153_s25 + $0x201] sm:$0xff] }
  0x6a   : > { %15488 = vmatprep.mubr.msk.f32.mxu1 %vm419_vm1, %v1347_v0 }
  0x6c   : > { %15451 = vmatmul.mubr.msk.f32.gmra.mxu0 %vm419_vm1, %v17396_v48 }
  0x6d   : > { %15489 = vmatmul.mubr.msk.f32.gmra.mxu1 %vm419_vm1, %v17532_v1  ;;  %15453 = vmatprep.mubr.msk.f32.mxu0 %vm419_vm1, %v17402_v50 }
  0x6e   : > { %15491 = vmatprep.mubr.msk.f32.mxu1 %vm419_vm1, %v17535_v2 }
  0x70   : > { %15454 = vmatmul.mubr.msk.f32.gmra.mxu0 %vm419_vm1, %v17416_v52 }
  0x71   : > { %15492 = vmatmul.mubr.msk.f32.gmra.mxu1 %vm419_vm1, %v17546_v3  ;;  %15456 = vmatprep.mubr.msk.f32.mxu0 %vm419_vm1, %v17157_v4 }
  0x72   : > { %15494 = vmatprep.mubr.msk.f32.mxu1 %vm419_vm1, %v17549_v9 }
  0x74   : > { %15457 = vmatmul.mubr.msk.f32.gmra.mxu0 %vm419_vm1, %v17166_v6 }
  0x75   : > { %15495 = vmatmul.mubr.msk.f32.gmra.mxu1 %vm419_vm1, %v17560_v10  ;;  %15459 = vmatprep.mubr.msk.f32.mxu0 %vm419_vm1, %v17172_v8 }
  0x76   : > { %15497 = vmatprep.mubr.msk.f32.mxu1 %vm419_vm1, %v17563_v14 }
  0x78   : > { %15460 = vmatmul.mubr.msk.f32.gmra.mxu0 %vm419_vm1, %v17193_v12 }
  0x79   : > { %15498 = vmatmul.mubr.msk.f32.gmra.mxu1 %vm419_vm1, %v17574_v19  ;;  %15462 = vmatprep.mubr.msk.f32.mxu0 %vm419_vm1, %v17577_v22 }
  0x7a   : > { %15500 = vmatprep.mubr.msk.f32.mxu1 %vm419_vm1, %v17577_v22 }
  0x7c   : > { %15463 = vmatmul.mubr.msk.f32.gmra.mxu0 %vm419_vm1, %v17588_v55 }
  0x7d   : > { %15501 = vmatmul.mubr.msk.f32.gmra.mxu1 %vm419_vm1, %v17588_v55  ;;  %15465 = vmatprep.mubr.msk.f32.mxu0 %vm419_vm1, %v17591_v63 }
  0x7e   : > { %15503 = vmatprep.mubr.msk.f32.mxu1 %vm419_vm1, %v17591_v63 }
  0x80   : > { %15466 = vmatmul.mubr.msk.f32.gmra.mxu0 %vm419_vm1, %v17602_v62 }
  0x81   : > { %15504 = vmatmul.mubr.msk.f32.gmra.mxu1 %vm419_vm1, %v17602_v62  ;;  %15468 = vmatprep.mubr.msk.f32.mxu0 %vm419_vm1, %v17605_v61 }
  0x82   : > { %15506 = vmatprep.mubr.msk.f32.mxu1 %vm419_vm1, %v17605_v61 }
  0x84   : > { %15469 = vmatmul.mubr.msk.f32.gmra.mxu0 %vm419_vm1, %v17616_v60 }
  0x85   : > { %15507 = vmatmul.mubr.msk.f32.gmra.mxu1 %vm419_vm1, %v17616_v60  ;;  %15471 = vmatprep.mubr.msk.f32.mxu0 %vm419_vm1, %v17619_v59 }
  0x86   : > { %15509 = vmatprep.mubr.msk.f32.mxu1 %vm419_vm1, %v17619_v59 }
  0x88   : > { %15472 = vmatmul.mubr.msk.f32.gmra.mxu0 %vm419_vm1, %v17630_v57 }
  0x89   : > { %15510 = vmatmul.mubr.msk.f32.gmra.mxu1 %vm419_vm1, %v17630_v57  ;;  %15526 = vmatprep.mubr.msk.f32.mxu0 %vm419_vm1, %v1347_v0  ;;  %v17662_v0 = vld [vmem:[%s17153_s25 + $0x172] sm:$0xff] }
  0x8a   : > { %15512 = vmatprep.mubr.msk.f32.mxu1 %vm419_vm1, %v17633_v56 }
  0x8c   : > { %15527 = vmatmul.mubr.msk.f32.vlgmr.msra.gmra.mxu0 %vm419_vm1, %v17532_v1  ;;  %v17708_v1 = vld [vmem:[%s17153_s25 + $0xc2] sm:$0xff] }
  0x8d   : > { %15513 = vmatmul.mubr.msk.f32.gmra.mxu1 %vm419_vm1, %v17643_v33  ;;  %15625 = vmatpush3.msk.msra.mxu0 %vm516_vm0, %v17432_v54  ;;  %v17680_v54 = vld [vmem:[%s17153_s25 + $0x192] sm:$0xff]  ;;  %22509 = vst [vmem:[#allocation22_spill] sm:$0xff] %v17708_v1 }
  0x8e   : > { %15515 = vmatprep.mubr.msk.f32.mxu1 %vm419_vm1, %v17646_v32  ;;  %15529 = vmatprep.mubr.msk.f32.mxu0 %vm419_vm1, %v17535_v2  ;;  %v17683_v2 = vld [vmem:[%s17153_s25 + $0x1a2] sm:$0xff] }
  0x8f   : > { %15724 = vmatprep.subr.msk.mxu0 %vm516_vm0, %v17651_v31 }
  0x90   : > { %15530 = vmatmul.mubr.msk.f32.gmra.mxu0 %vm419_vm1, %v17546_v3  ;;  %v17694_v3 = vld [vmem:[%s17153_s25 + $0x1b2] sm:$0xff] }
  0x91   : > { %15516 = vmatmul.mubr.msk.f32.gmra.mxu1 %vm419_vm1, %v17662_v0  ;;  %15532 = vmatprep.mubr.msk.f32.mxu0 %vm419_vm1, %v17549_v9  ;;  %v12992_v9 = vld [vmem:[%s17153_s25 + $0xa2] sm:$0xff] }
  0x92   : > { %15518 = vmatprep.mubr.msk.f32.mxu1 %vm419_vm1, %v17667_v30 }
  0x94   : > { %15533 = vmatmul.mubr.msk.f32.gmra.mxu0 %vm419_vm1, %v17560_v10  ;;  %v17705_v10 = vld [vmem:[%s17153_s25 + $0xb2] sm:$0xff] }
  0x95   : > { %15519 = vmatmul.mubr.msk.f32.gmra.mxu1 %vm419_vm1, %v17680_v54  ;;  %15535 = vmatprep.mubr.msk.f32.mxu0 %vm419_vm1, %v17563_v14  ;;  %22508 = vst [vmem:[#allocation21_spill] sm:$0xff] %v17705_v10 }
  0x96   : > { %15521 = vmatprep.mubr.msk.f32.mxu1 %vm419_vm1, %v17683_v2 }
  0x98   : > { %15536 = vmatmul.mubr.msk.f32.gmra.mxu0 %vm419_vm1, %v17574_v19  ;;  %v17717_v19 = vld [vmem:[%s22310_s1 + $0x24] sm:$0xf] }
  0x99   : > { %15522 = vmatmul.mubr.msk.f32.gmra.mxu1 %vm419_vm1, %v17694_v3  ;;  %15538 = vmatprep.mubr.msk.f32.mxu0 %vm419_vm1, %v12992_v9  ;;  %v17727_v9 = vld [vmem:[%s17153_s25 + $0xe2] sm:$0xff] }
  0x9a   : > { %15576 = vmatprep.mubr.msk.f32.mxu1 %vm419_vm1, %v17345_v39  ;;  %v17724_v39 = vld [vmem:[%s17153_s25 + $0xd2] sm:$0xff]  ;;  %22511 = vst [vmem:[#allocation24_spill] sm:$0xff] %v17727_v9 }
  0x9b   : > { %22510 = vst [vmem:[#allocation23_spill] sm:$0xff] %v17724_v39 }
  0x9c   : > { %15539 = vmatmul.mubr.msk.f32.gmra.mxu0 %vm419_vm1, %v17705_v10  ;;  %v22521_v10 = vld [vmem:[#allocation5_spill] sm:$0xff] }
  0x9d   : > { %15577 = vmatmul.mubr.msk.f32.vlgmr.msra.gmra.mxu1 %vm419_vm1, %v17359_v41  ;;  %15541 = vmatprep.mubr.msk.f32.mxu0 %vm419_vm1, %v17708_v1  ;;  %v17742_v41 = vld [vmem:[%s17153_s25 + $0xf2] sm:$0xff] }
  0x9e   : > { %15579 = vmatprep.mubr.msk.f32.mxu1 %vm419_vm1, %v17365_v43  ;;  %15675 = vmatpush3.msk.msra.mxu1 %vm516_vm0, %v17482_v58  ;;  %22512 = vst [vmem:[#allocation25_spill] sm:$0xff] %v17742_v41  ;;  %v17745_v43 = vld [vmem:[%s17153_s25 + $0x102] sm:$0xff] }
  0x9f   : > { %15774 = vmatprep.subr.msk.mxu1 %vm516_vm0, %v17717_v19  ;;  %22513 = vst [vmem:[#allocation26_spill] sm:$0xff] %v17745_v43  ;;  %v17833_v58 = vld [vmem:[%s17153_s25 + $0x242] sm:$0xff] }
  0xa0   : > { %15542 = vmatmul.mubr.msk.f32.gmra.mxu0 %vm419_vm1, %v17724_v39  ;;  %22515 = vst [vmem:[#allocation28_spill] sm:$0xff] %v17833_v58  ;;  %v22519_v39 = vld [vmem:[#allocation3_spill] sm:$0xff] }
  0xa1   : > { %15580 = vmatmul.mubr.msk.f32.gmra.mxu1 %vm419_vm1, %v17379_v45  ;;  %15544 = vmatprep.mubr.msk.f32.mxu0 %vm419_vm1, %v17727_v9  ;;  %v17756_v45 = vld [vmem:[%s17153_s25 + $0x112] sm:$0xff] }
  0xa2   : > { %15582 = vmatprep.mubr.msk.f32.mxu1 %vm419_vm1, %v17385_v47  ;;  %22514 = vst [vmem:[#allocation27_spill] sm:$0xff] %v17756_v45  ;;  %v17791_v47 = vld [vmem:[%s17153_s25 + $0x1e2] sm:$0xff] }
  0xa4   : > { %15545 = vmatmul.mubr.msk.f32.gmra.mxu0 %vm419_vm1, %v17742_v41 }
  0xa5   : > { %15583 = vmatmul.mubr.msk.f32.gmra.mxu1 %vm419_vm1, %v17399_v49  ;;  %15547 = vmatprep.mubr.msk.f32.mxu0 %vm419_vm1, %v17745_v43  ;;  %v17802_v49 = vld [vmem:[%s17153_s25 + $0x1f2] sm:$0xff] }
  0xa6   : > { %15585 = vmatprep.mubr.msk.f32.mxu1 %vm419_vm1, %v17405_v51  ;;  %v17805_v51 = vld [vmem:[%s17153_s25 + $0x202] sm:$0xff] }
  0xa8   : > { %15548 = vmatmul.mubr.msk.f32.gmra.mxu0 %vm419_vm1, %v17756_v45 }
  0xa9   : > { %15586 = vmatmul.mubr.msk.f32.gmra.mxu1 %vm419_vm1, %v17419_v53  ;;  %15550 = vmatprep.mubr.msk.f32.mxu0 %vm419_vm1, %v17633_v56  ;;  %v17816_v53 = vld [vmem:[%s17153_s25 + $0x212] sm:$0xff] }
  0xaa   : > { %15588 = vmatprep.mubr.msk.f32.mxu1 %vm419_vm1, %v17314_v34 }
  0xac   : > { %15551 = vmatmul.mubr.msk.f32.gmra.mxu0 %vm419_vm1, %v17643_v33 }
  0xad   : > { %15589 = vmatmul.mubr.msk.f32.gmra.mxu1 %vm419_vm1, %v17325_v35  ;;  %15553 = vmatprep.mubr.msk.f32.mxu0 %vm419_vm1, %v17646_v32 }
  0xae   : > { %15591 = vmatprep.mubr.msk.f32.mxu1 %vm419_vm1, %v17328_v36 }
  0xb0   : > { %15554 = vmatmul.mubr.msk.f32.gmra.mxu0 %vm419_vm1, %v17662_v0 }
  0xb1   : > { %15592 = vmatmul.mubr.msk.f32.gmra.mxu1 %vm419_vm1, %v17339_v37  ;;  %15556 = vmatprep.mubr.msk.f32.mxu0 %vm419_vm1, %v17667_v30 }
  0xb2   : > { %15594 = vmatprep.mubr.msk.f32.mxu1 %vm419_vm1, %v17342_v38 }
  0xb4   : > { %15557 = vmatmul.mubr.msk.f32.gmra.mxu0 %vm419_vm1, %v17680_v54 }
  0xb5   : > { %15595 = vmatmul.mubr.msk.f32.gmra.mxu1 %vm419_vm1, %v17356_v40  ;;  %15559 = vmatprep.mubr.msk.f32.mxu0 %vm419_vm1, %v17683_v2 }
  0xb6   : > { %15597 = vmatprep.mubr.msk.f32.mxu1 %vm419_vm1, %v17362_v42 }
  0xb8   : > { %15560 = vmatmul.mubr.msk.f32.gmra.mxu0 %vm419_vm1, %v17694_v3 }
  0xb9   : > { %15598 = vmatmul.mubr.msk.f32.gmra.mxu1 %vm419_vm1, %v17376_v44  ;;  %15562 = vmatprep.mubr.msk.f32.mxu0 %vm419_vm1, %v17791_v47 }
  0xba   : > { %15600 = vmatprep.mubr.msk.f32.mxu1 %vm419_vm1, %v17216_v16  ;;  %v17819_v16 = vld [vmem:[%s17153_s25 + $0x222] sm:$0xff] }
  0xbc   : > { %15563 = vmatmul.mubr.msk.f32.gmra.mxu0 %vm419_vm1, %v17802_v49 }
  0xbd   : > { %15601 = vmatmul.mubr.msk.f32.gmra.mxu1 %vm419_vm1, %v17222_v18  ;;  %15565 = vmatprep.mubr.msk.f32.mxu0 %vm419_vm1, %v17805_v51  ;;  %v17830_v18 = vld [vmem:[%s17153_s25 + $0x232] sm:$0xff] }
  0xbe   : > { %15603 = vmatprep.mubr.msk.f32.mxu1 %vm419_vm1, %v17241_v21  ;;  %v17844_v21 = vld [vmem:[%s17153_s25 + $0x252] sm:$0xff] }
  0xbf   : > { %22516 = vst [vmem:[#allocation29_spill] sm:$0xff] %v17844_v21 }
  0xc0   : > { %15566 = vmatmul.mubr.msk.f32.gmra.mxu0 %vm419_vm1, %v17816_v53 }
  0xc1   : > { %15604 = vmatmul.mubr.msk.f32.gmra.mxu1 %vm419_vm1, %v17247_v23  ;;  %15568 = vmatprep.mubr.msk.f32.mxu0 %vm419_vm1, %v17819_v16  ;;  %v17847_v23 = vld [vmem:[%s17153_s25 + $0x80] sm:$0xff] }
  0xc2   : > { %15606 = vmatprep.mubr.msk.f32.mxu1 %vm419_vm1, %v17264_v25  ;;  %22517 = vst [vmem:[#allocation30_spill] sm:$0xff] %v17847_v23  ;;  %v17860_v25 = vld [vmem:[%s22310_s1 + $0x28] sm:$0xf] }
  0xc4   : > { %15569 = vmatmul.mubr.msk.f32.gmra.mxu0 %vm419_vm1, %v17830_v18 }
  0xc5   : > { %15607 = vmatmul.mubr.msk.f32.gmra.mxu1 %vm419_vm1, %v17270_v27  ;;  %15571 = vmatprep.mubr.msk.f32.mxu0 %vm419_vm1, %v17833_v58 }
  0xc6   : > { %15609 = vmatprep.mubr.msk.f32.mxu1 %vm419_vm1, %v17284_v29 }
  0xc8   : > { %15572 = vmatmul.mubr.msk.f32.gmra.mxu0 %vm419_vm1, %v17844_v21 }
  0xc9   : > { %15610 = vmatmul.mubr.msk.f32.gmra.mxu1 %vm419_vm1, %v17847_v23  ;;  %15626 = vmatprep.mubr.msk.f32.mxu0 %vm419_vm1, %v17314_v34 }
  0xca   : > { %15612 = vmatprep.mubr.msk.f32.mxu1 %vm419_vm1, %v17160_v5 }
  0xcc   : > { %15627 = vmatmul.mubr.msk.f32.vlgmr.msra.gmra.mxu0 %vm419_vm1, %v17325_v35 }
  0xcd   : > { %15613 = vmatmul.mubr.msk.f32.gmra.mxu1 %vm419_vm1, %v17169_v7  ;;  %15725 = vmatpush3.msk.msra.mxu0 %vm516_vm0, %v17651_v31  ;;  %v17893_v31 = vld [vmem:[%s17153_s25 + $0x120] sm:$0xff] }
  0xce   : > { %15615 = vmatprep.mubr.msk.f32.mxu1 %vm419_vm1, %v17190_v11  ;;  %15629 = vmatprep.mubr.msk.f32.mxu0 %vm419_vm1, %v17328_v36  ;;  %22518 = vst [vmem:[#allocation31_spill] sm:$0xff] %v17893_v31 }
  0xcf   : > { %15824 = vmatprep.subr.msk.mxu0 %vm516_vm0, %v17860_v25 }
  0xd0   : > { %15630 = vmatmul.mubr.msk.f32.gmra.mxu0 %vm419_vm1, %v17339_v37 }
  0xd1   : > { %15616 = vmatmul.mubr.msk.f32.gmra.mxu1 %vm419_vm1, %v17198_v13  ;;  %15632 = vmatprep.mubr.msk.f32.mxu0 %vm419_vm1, %v17342_v38 }
  0xd2   : > { %15618 = vmatprep.mubr.msk.f32.mxu1 %vm419_vm1, %v17213_v15 }
  0xd4   : > { %v15328_v27 = vpop.f32.mrf.mxu0  ;;  %15633 = vmatmul.mubr.msk.f32.gmra.mxu0 %vm419_vm1, %v17356_v40 }
  0xd5   : > { %v17882_v29 = vpop.f32.mrf.mxu1  ;;  %15619 = vmatmul.mubr.msk.f32.gmra.mxu1 %vm419_vm1, %v17219_v17  ;;  %15635 = vmatprep.mubr.msk.f32.mxu0 %vm419_vm1, %v17362_v42 }
  0xd6   : > { %15621 = vmatprep.mubr.msk.f32.mxu1 %vm419_vm1, %v17238_v20  ;;  %v586_v34 = vpop.f32.mrf.mxu0 }
  0xd7   : > { %v17895_v35 = vpop.f32.mrf.mxu1 }
  0xd8   : > { %v15331_v36 = vpop.f32.mrf.mxu0  ;;  %15636 = vmatmul.mubr.msk.f32.gmra.mxu0 %vm419_vm1, %v17376_v44  ;;  %v17916_v44 = vld [vmem:[%s22310_s1 + $0x2c] sm:$0xf] }
  0xd9   : > { %v17897_v37 = vpop.f32.mrf.mxu1  ;;  %15622 = vmatmul.mubr.msk.f32.gmra.mxu1 %vm419_vm1, %v17893_v31  ;;  %15638 = vmatprep.mubr.msk.f32.mxu0 %vm419_vm1, %v17382_v46 }
  0xda   : > { %15676 = vmatprep.mubr.msk.f32.mxu1 %vm419_vm1, %v17382_v46  ;;  %v596_v38 = vpop.f32.mrf.mxu0 }
  0xdb   : > { %v17907_v40 = vpop.f32.mrf.mxu1 }
  0xdc   : > { %v15334_v42 = vpop.f32.mrf.mxu0  ;;  %15639 = vmatmul.mubr.msk.f32.gmra.mxu0 %vm419_vm1, %v17396_v48 }
  0xdd   : > { %v15378_v23 = vpop.f32.mrf.mxu1  ;;  %15677 = vmatmul.mubr.msk.f32.vlgmr.msra.gmra.mxu1 %vm419_vm1, %v17396_v48  ;;  %15641 = vmatprep.mubr.msk.f32.mxu0 %vm419_vm1, %v17402_v50 }
  0xde   : > { %v17918_v45 = vadd.f32 %v15378_v23, %v15328_v27  ;;  %15679 = vmatprep.mubr.msk.f32.mxu1 %vm419_vm1, %v17402_v50  ;;  %v606_v46 = vpop.f32.mrf.mxu0  ;;  %15775 = vmatpush3.msk.msra.mxu1 %vm516_vm0, %v17717_v19 }
  0xdf   : > { %v862_v43 = vpop.f32.mrf.mxu1  ;;  %15874 = vmatprep.subr.msk.mxu1 %vm516_vm0, %v17916_v44 }
  0xe0   : > { %v17926_v41 = vadd.f32 %v862_v43, %v586_v34  ;;  %v15337_v48 = vpop.f32.mrf.mxu0  ;;  %15642 = vmatmul.mubr.msk.f32.gmra.mxu0 %vm419_vm1, %v17416_v52 }
  0xe1   : > { %v15381_v9 = vpop.f32.mrf.mxu1  ;;  %15680 = vmatmul.mubr.msk.f32.gmra.mxu1 %vm419_vm1, %v17416_v52  ;;  %15644 = vmatprep.mubr.msk.f32.mxu0 %vm419_vm1, %v17157_v4 }
  0xe2   : > { %v17934_v23 = vadd.f32 %v15381_v9, %v15331_v36  ;;  %15682 = vmatprep.mubr.msk.f32.mxu1 %vm419_vm1, %v17157_v4  ;;  %v616_v50 = vpop.f32.mrf.mxu0 }
  0xe3   : > { %v872_v19 = vpop.f32.mrf.mxu1 }
  0xe4   : > { %v17940_v43 = vadd.f32 %v872_v19, %v596_v38  ;;  %v15340_v27 = vpop.f32.mrf.mxu0  ;;  %15645 = vmatmul.mubr.msk.f32.gmra.mxu0 %vm419_vm1, %v17166_v6 }
  0xe5   : > { %v15384_v34 = vpop.f32.mrf.mxu1  ;;  %15683 = vmatmul.mubr.msk.f32.gmra.mxu1 %vm419_vm1, %v17166_v6  ;;  %15647 = vmatprep.mubr.msk.f32.mxu0 %vm419_vm1, %v17172_v8 }
  0xe6   : > { %v17946_v52 = vadd.f32 %v15384_v34, %v15334_v42  ;;  %15685 = vmatprep.mubr.msk.f32.mxu1 %vm419_vm1, %v17172_v8  ;;  %v626_v4 = vpop.f32.mrf.mxu0 }
  0xe7   : > { %v882_v9 = vpop.f32.mrf.mxu1 }
  0xe8   : > { %v17952_v36 = vadd.f32 %v882_v9, %v606_v46  ;;  %v15343_v38 = vpop.f32.mrf.mxu0  ;;  %15648 = vmatmul.mubr.msk.f32.gmra.mxu0 %vm419_vm1, %v17193_v12 }
  0xe9   : > { %v15387_v19 = vpop.f32.mrf.mxu1  ;;  %15686 = vmatmul.mubr.msk.f32.gmra.mxu1 %vm419_vm1, %v17193_v12  ;;  %15650 = vmatprep.mubr.msk.f32.mxu0 %vm419_vm1, %v17160_v5 }
  0xea   : > { %v17958_v6 = vadd.f32 %v15387_v19, %v15337_v48  ;;  %15688 = vmatprep.mubr.msk.f32.mxu1 %vm419_vm1, %v17577_v22  ;;  %v636_v8 = vpop.f32.mrf.mxu0 }
  0xeb   : > { %v892_v42 = vpop.f32.mrf.mxu1 }
  0xec   : > { %v17964_v46 = vadd.f32 %v892_v42, %v616_v50  ;;  %v15346_v34 = vpop.f32.mrf.mxu0  ;;  %15651 = vmatmul.mubr.msk.f32.gmra.mxu0 %vm419_vm1, %v17169_v7 }
  0xed   : > { %v15390_v9 = vpop.f32.mrf.mxu1  ;;  %15689 = vmatmul.mubr.msk.f32.gmra.mxu1 %vm419_vm1, %v17588_v55  ;;  %15653 = vmatprep.mubr.msk.f32.mxu0 %vm419_vm1, %v17190_v11 }
  0xee   : > { %v17970_v12 = vadd.f32 %v15390_v9, %v15340_v27  ;;  %15691 = vmatprep.mubr.msk.f32.mxu1 %vm419_vm1, %v17591_v63  ;;  %v646_v5 = vpop.f32.mrf.mxu0 }
  0xef   : > { %v902_v48 = vpop.f32.mrf.mxu1 }
  0xf0   : > { %v17976_v50 = vadd.f32 %v902_v48, %v626_v4  ;;  %v15349_v19 = vpop.f32.mrf.mxu0  ;;  %15654 = vmatmul.mubr.msk.f32.gmra.mxu0 %vm419_vm1, %v17198_v13 }
  0xf1   : > { %v15393_v42 = vpop.f32.mrf.mxu1  ;;  %15692 = vmatmul.mubr.msk.f32.gmra.mxu1 %vm419_vm1, %v17602_v62  ;;  %15656 = vmatprep.mubr.msk.f32.mxu0 %vm419_vm1, %v17213_v15 }
  0xf2   : > { %v17982_v7 = vadd.f32 %v15393_v42, %v15343_v38  ;;  %15694 = vmatprep.mubr.msk.f32.mxu1 %vm419_vm1, %v17605_v61  ;;  %v656_v11 = vpop.f32.mrf.mxu0 }
  0xf3   : > { %v912_v27 = vpop.f32.mrf.mxu1 }
  0xf4   : > { %v17988_v4 = vadd.f32 %v912_v27, %v636_v8  ;;  %v15352_v9 = vpop.f32.mrf.mxu0  ;;  %15657 = vmatmul.mubr.msk.f32.gmra.mxu0 %vm419_vm1, %v17219_v17 }
  0xf5   : > { %v15396_v48 = vpop.f32.mrf.mxu1  ;;  %15695 = vmatmul.mubr.msk.f32.gmra.mxu1 %vm419_vm1, %v17616_v60  ;;  %15659 = vmatprep.mubr.msk.f32.mxu0 %vm419_vm1, %v17238_v20 }
  0xf6   : > { %v17994_v13 = vadd.f32 %v15396_v48, %v15346_v34  ;;  %15697 = vmatprep.mubr.msk.f32.mxu1 %vm419_vm1, %v17619_v59  ;;  %v666_v15 = vpop.f32.mrf.mxu0 }
  0xf7   : > { %v922_v38 = vpop.f32.mrf.mxu1 }
  0xf8   : > { %v18000_v8 = vadd.f32 %v922_v38, %v646_v5  ;;  %v15355_v42 = vpop.f32.mrf.mxu0  ;;  %15660 = vmatmul.mubr.msk.f32.gmra.mxu0 %vm419_vm1, %v17893_v31 }
  0xf9   : > { %v15399_v27 = vpop.f32.mrf.mxu1  ;;  %15698 = vmatmul.mubr.msk.f32.gmra.mxu1 %vm419_vm1, %v17630_v57  ;;  %15662 = vmatprep.mubr.msk.f32.mxu0 %vm419_vm1, %v17261_v24 }
  0xfa   : > { %v18006_v17 = vadd.f32 %v15399_v27, %v15349_v19  ;;  %15700 = vmatprep.mubr.msk.f32.mxu1 %vm419_vm1, %v17261_v24  ;;  %v676_v20 = vpop.f32.mrf.mxu0 }
  0xfb   : > { %v932_v34 = vpop.f32.mrf.mxu1 }
  0xfc   : > { %v18012_v5 = vadd.f32 %v932_v34, %v656_v11  ;;  %v15358_v48 = vpop.f32.mrf.mxu0  ;;  %15663 = vmatmul.mubr.msk.f32.gmra.mxu0 %vm419_vm1, %v17267_v26 }
  0xfd   : > { %v15402_v38 = vpop.f32.mrf.mxu1  ;;  %15701 = vmatmul.mubr.msk.f32.gmra.mxu1 %vm419_vm1, %v17267_v26  ;;  %15665 = vmatprep.mubr.msk.f32.mxu0 %vm419_vm1, %v17281_v28 }
  0xfe   : > { %v18018_v19 = vadd.f32 %v15402_v38, %v15352_v9  ;;  %15703 = vmatprep.mubr.msk.f32.mxu1 %vm419_vm1, %v17281_v28  ;;  %v686_v24 = vpop.f32.mrf.mxu0  ;;  %v22520_v9 = vld [vmem:[#allocation4_spill] sm:$0xff] }
  0xff   : > { %v942_v27 = vpop.f32.mrf.mxu1 }
 0x100   : > { %v18024_v11 = vadd.f32 %v942_v27, %v666_v15  ;;  %v15361_v34 = vpop.f32.mrf.mxu0  ;;  %15666 = vmatmul.mubr.msk.f32.gmra.mxu0 %vm419_vm1, %v22519_v39 }
 0x101   : > { %v15405_v31 = vpop.f32.mrf.mxu1  ;;  %15704 = vmatmul.mubr.msk.f32.gmra.mxu1 %vm419_vm1, %v22519_v39  ;;  %15668 = vmatprep.mubr.msk.f32.mxu0 %vm419_vm1, %v22520_v9 }
 0x102   : > { %v18030_v26 = vadd.f32 %v15405_v31, %v15355_v42  ;;  %15706 = vmatprep.mubr.msk.f32.mxu1 %vm419_vm1, %v22520_v9  ;;  %v696_v28 = vpop.f32.mrf.mxu0  ;;  %v22522_v31 = vld [vmem:[#allocation6_spill] sm:$0xff]  ;;  %v18049_v42 = vld [vmem:[%s17153_s25 + $0x81] sm:$0xff] }
 0x103   : > { %v952_v15 = vpop.f32.mrf.mxu1  ;;  %22523 = vst [vmem:[#allocation3_spill] sm:$0xff] %v18049_v42 }
 0x104   : > { %v18036_v38 = vadd.f32 %v952_v15, %v676_v20  ;;  %v15364_v27 = vpop.f32.mrf.mxu0  ;;  %15669 = vmatmul.mubr.msk.f32.gmra.mxu0 %vm419_vm1, %v22521_v10 }
 0x105   : > { %v15408_v1 = vpop.f32.mrf.mxu1  ;;  %15707 = vmatmul.mubr.msk.f32.gmra.mxu1 %vm419_vm1, %v22521_v10  ;;  %15671 = vmatprep.mubr.msk.f32.mxu0 %vm419_vm1, %v22522_v31  ;;  %v22525_v10 = vld [vmem:[#allocation7_spill] sm:$0xff] }
 0x106   : > { %v18042_v39 = vadd.f32 %v15408_v1, %v15358_v48  ;;  %15709 = vmatprep.mubr.msk.f32.mxu1 %vm419_vm1, %v22522_v31  ;;  %v706_v20 = vpop.f32.mrf.mxu0 }
 0x107   : > { %v962_v9 = vpop.f32.mrf.mxu1 }
 0x108   : > { %v18051_v15 = vadd.f32 %v962_v9, %v686_v24  ;;  %v15367_v14 = vpop.f32.mrf.mxu0  ;;  %15672 = vmatmul.mubr.msk.f32.gmra.mxu0 %vm419_vm1, %v18049_v42  ;;  %v18068_v9 = vld [vmem:[%s22310_s1 + $0x30] sm:$0xf] }
 0x109   : > { %v15411_v21 = vpop.f32.mrf.mxu1  ;;  %15710 = vmatmul.mubr.msk.f32.gmra.mxu1 %vm419_vm1, %v18049_v42  ;;  %15726 = vmatprep.mubr.msk.f32.mxu0 %vm419_vm1, %v17577_v22  ;;  %22527 = vst [vmem:[#allocation6_spill] sm:$0xff] %v18068_v9  ;;  %v22528_v42 = vld [vmem:[#allocation8_spill] sm:$0xff] }
 0x10a   : > { %22524 = vst [vmem:[#allocation4_spill] sm:$0xff] %v18051_v15  ;;  %v18057_v1 = vadd.f32 %v15411_v21, %v15361_v34  ;;  %15712 = vmatprep.mubr.msk.f32.mxu1 %vm419_vm1, %v22525_v10  ;;  %v716_v48 = vpop.f32.mrf.mxu0  ;;  %v22529_v34 = vld [vmem:[#allocation9_spill] sm:$0xff] }
 0x10b   : > { %v972_v31 = vpop.f32.mrf.mxu1 }
 0x10c   : > { %v18063_v24 = vadd.f32 %v972_v31, %v696_v28  ;;  %v15428_v58 = vpop.f32.mrf.mxu0  ;;  %15727 = vmatmul.mubr.msk.f32.vlgmr.msra.gmra.mxu0 %vm419_vm1, %v17588_v55 }
 0x10d   : > { %v15414_v15 = vpop.f32.mrf.mxu1  ;;  %15713 = vmatmul.mubr.msk.f32.gmra.mxu1 %vm419_vm1, %v22528_v42  ;;  %v1316_v22 = vadd.f32 %v15428_v58, %v17918_v45  ;;  %15825 = vmatpush3.msk.msra.mxu0 %vm516_vm0, %v17860_v25  ;;  %v22531_v58 = vld [vmem:[#allocation10_spill] sm:$0xff] }
 0x10e   : > { %22526 = vst [vmem:[#allocation5_spill] sm:$0xff] %v18063_v24  ;;  %v18074_v21 = vadd.f32 %v15414_v15, %v15364_v27  ;;  %15715 = vmatprep.mubr.msk.f32.mxu1 %vm419_vm1, %v22529_v34  ;;  %v1156_v31 = vpop.f32.mrf.mxu0  ;;  %15729 = vmatprep.mubr.msk.f32.mxu0 %vm419_vm1, %v17591_v63  ;;  %v22532_v15 = vld [vmem:[#allocation11_spill] sm:$0xff] }
 0x10f   : > { %v982_v28 = vpop.f32.mrf.mxu1  ;;  %15924 = vmatprep.subr.msk.mxu0 %vm516_vm0, %v18068_v9  ;;  %v1315_v55 = vadd.f32 %v1156_v31, %v17926_v41 }
 0x110   : > { %v18085_v24 = vadd.f32 %v982_v28, %v706_v20  ;;  %v15431_v45 = vpop.f32.mrf.mxu0  ;;  %15730 = vmatmul.mubr.msk.f32.gmra.mxu0 %vm419_vm1, %v17602_v62  ;;  %v22533_v62 = vld [vmem:[#allocation12_spill] sm:$0xff] }
 0x111   : > { %v15417_v27 = vpop.f32.mrf.mxu1  ;;  %15716 = vmatmul.mubr.msk.f32.gmra.mxu1 %vm419_vm1, %v22531_v58  ;;  %v1318_v63 = vadd.f32 %v15431_v45, %v17934_v23  ;;  %15732 = vmatprep.mubr.msk.f32.mxu0 %vm419_vm1, %v17605_v61  ;;  %v22534_v61 = vld [vmem:[#allocation13_spill] sm:$0xff] }
 0x112   : > { %22530 = vst [vmem:[#allocation7_spill] sm:$0xff] %v18085_v24  ;;  %v18092_v25 = vadd.f32 %v15417_v27, %v15367_v14  ;;  %15718 = vmatprep.mubr.msk.f32.mxu1 %vm419_vm1, %v22532_v15  ;;  %v1166_v20 = vpop.f32.mrf.mxu0 }
 0x113   : > { %v992_v41 = vpop.f32.mrf.mxu1  ;;  %v1317_v31 = vadd.f32 %v1166_v20, %v17940_v43  ;;  %v18115_v43 = vld [vmem:[%s17153_s25 + $0x121] sm:$0xff] }
 0x114   : > { %v18099_v28 = vadd.f32 %v992_v41, %v716_v48  ;;  %v15434_v24 = vpop.f32.mrf.mxu0  ;;  %15733 = vmatmul.mubr.msk.f32.gmra.mxu0 %vm419_vm1, %v17616_v60 }
 0x115   : > { %v15420_v9 = vpop.f32.mrf.mxu1  ;;  %15719 = vmatmul.mubr.msk.f32.gmra.mxu1 %vm419_vm1, %v22533_v62  ;;  %v1320_v23 = vadd.f32 %v15434_v24, %v17946_v52  ;;  %15735 = vmatprep.mubr.msk.f32.mxu0 %vm419_vm1, %v17619_v59 }
 0x116   : > { %v18107_v14 = vadd.f32 %v15420_v9, %v17882_v29  ;;  %15721 = vmatprep.mubr.msk.f32.mxu1 %vm419_vm1, %v22534_v61  ;;  %v1176_v27 = vpop.f32.mrf.mxu0 }
 0x117   : > { %v1002_v48 = vpop.f32.mrf.mxu1  ;;  %v1319_v60 = vadd.f32 %v1176_v27, %v17952_v36 }
 0x118   : > { %v18118_v45 = vadd.f32 %v1002_v48, %v17895_v35  ;;  %v15437_v29 = vpop.f32.mrf.mxu0  ;;  %15736 = vmatmul.mubr.msk.f32.gmra.mxu0 %vm419_vm1, %v17630_v57 }
 0x119   : > { %v15423_v41 = vpop.f32.mrf.mxu1  ;;  %15722 = vmatmul.mubr.msk.f32.gmra.mxu1 %vm419_vm1, %v18115_v43  ;;  %v1322_v59 = vadd.f32 %v15437_v29, %v17958_v6  ;;  %15738 = vmatprep.mubr.msk.f32.mxu0 %vm419_vm1, %v17633_v56 }
 0x11a   : > { %v18126_v52 = vadd.f32 %v15423_v41, %v17897_v37  ;;  %15776 = vmatprep.mubr.msk.f32.mxu1 %vm419_vm1, %v17633_v56  ;;  %v1186_v36 = vpop.f32.mrf.mxu0  ;;  %v18144_v37 = vld [vmem:[%s22310_s1 + $0x34] sm:$0xf] }
 0x11b   : > { %v1012_v35 = vpop.f32.mrf.mxu1  ;;  %v1321_v9 = vadd.f32 %v1186_v36, %v17964_v46 }
 0x11c   : > { %v18134_v24 = vadd.f32 %v1012_v35, %v17907_v40  ;;  %v15440_v20 = vpop.f32.mrf.mxu0  ;;  %15739 = vmatmul.mubr.msk.f32.gmra.mxu0 %vm419_vm1, %v17643_v33 }
 0x11d   : > { %v15478_v57 = vpop.f32.mrf.mxu1  ;;  %15777 = vmatmul.mubr.msk.f32.vlgmr.msra.gmra.mxu1 %vm419_vm1, %v17643_v33  ;;  %v1324_v56 = vadd.f32 %v15440_v20, %v17970_v12  ;;  %15741 = vmatprep.mubr.msk.f32.mxu0 %vm419_vm1, %v17646_v32 }
 0x11e   : > { %v18147_v6 = vadd.f32 %v15478_v57, %v1316_v22  ;;  %15779 = vmatprep.mubr.msk.f32.mxu1 %vm419_vm1, %v17646_v32  ;;  %v1196_v40 = vpop.f32.mrf.mxu0  ;;  %15875 = vmatpush3.msk.msra.mxu1 %vm516_vm0, %v17916_v44 }
 0x11f   : > { %v1482_v46 = vpop.f32.mrf.mxu1  ;;  %v1323_v33 = vadd.f32 %v1196_v40, %v17976_v50  ;;  %15974 = vmatprep.subr.msk.mxu1 %vm516_vm0, %v18144_v37 }
 0x120   : > { %v18156_v48 = vadd.f32 %v1482_v46, %v1315_v55  ;;  %v15443_v12 = vpop.f32.mrf.mxu0  ;;  %15742 = vmatmul.mubr.msk.f32.gmra.mxu0 %vm419_vm1, %v17662_v0 }
 0x121   : > { %v15481_v22 = vpop.f32.mrf.mxu1  ;;  %15780 = vmatmul.mubr.msk.f32.gmra.mxu1 %vm419_vm1, %v17662_v0  ;;  %v1326_v32 = vadd.f32 %v15443_v12, %v17982_v7  ;;  %15744 = vmatprep.mubr.msk.f32.mxu0 %vm419_vm1, %v17667_v30 }
 0x122   : > { %v18165_v27 = vadd.f32 %v15481_v22, %v1318_v63  ;;  %15782 = vmatprep.mubr.msk.f32.mxu1 %vm419_vm1, %v17667_v30  ;;  %v1206_v44 = vpop.f32.mrf.mxu0 }
 0x123   : > { %v1492_v50 = vpop.f32.mrf.mxu1  ;;  %v1325_v55 = vadd.f32 %v1206_v44, %v17988_v4  ;;  %v22538_v44 = vld [vmem:[#allocation14_spill] sm:$0xff] }
 0x124   : > { %v18172_v41 = vadd.f32 %v1492_v50, %v1317_v31  ;;  %v15446_v29 = vpop.f32.mrf.mxu0  ;;  %15745 = vmatmul.mubr.msk.f32.gmra.mxu0 %vm419_vm1, %v17680_v54 }
 0x125   : > { %v15484_v35 = vpop.f32.mrf.mxu1  ;;  %15783 = vmatmul.mubr.msk.f32.gmra.mxu1 %vm419_vm1, %v17680_v54  ;;  %v1328_v0 = vadd.f32 %v15446_v29, %v17994_v13  ;;  %15747 = vmatprep.mubr.msk.f32.mxu0 %vm419_vm1, %v17683_v2  ;;  %v22539_v29 = vld [vmem:[#allocation5_spill] sm:$0xff] }
 0x126   : > { %v18179_v7 = vadd.f32 %v15484_v35, %v1320_v23  ;;  %15785 = vmatprep.mubr.msk.f32.mxu1 %vm419_vm1, %v17683_v2  ;;  %v1216_v30 = vpop.f32.mrf.mxu0 }
 0x127   : > { %v1502_v4 = vpop.f32.mrf.mxu1  ;;  %v1327_v63 = vadd.f32 %v1216_v30, %v18000_v8 }
 0x128   : > { %v18186_v31 = vadd.f32 %v1502_v4, %v1319_v60  ;;  %v15449_v36 = vpop.f32.mrf.mxu0  ;;  %15748 = vmatmul.mubr.msk.f32.gmra.mxu0 %vm419_vm1, %v17694_v3 }
 0x129   : > { %v15487_v20 = vpop.f32.mrf.mxu1  ;;  %15786 = vmatmul.mubr.msk.f32.gmra.mxu1 %vm419_vm1, %v17694_v3  ;;  %v1330_v54 = vadd.f32 %v15449_v36, %v18006_v17  ;;  %15750 = vmatprep.mubr.msk.f32.mxu0 %vm419_vm1, %v22525_v10 }
 0x12a   : > { %v18193_v13 = vadd.f32 %v15487_v20, %v1322_v59  ;;  %15788 = vmatprep.mubr.msk.f32.mxu1 %vm419_vm1, %v17791_v47  ;;  %v1226_v2 = vpop.f32.mrf.mxu0  ;;  %v22541_v20 = vld [vmem:[#allocation16_spill] sm:$0xff] }
 0x12b   : > { %v1512_v8 = vpop.f32.mrf.mxu1  ;;  %v1329_v23 = vadd.f32 %v1226_v2, %v18012_v5 }
 0x12c   : > { %v18200_v60 = vadd.f32 %v1512_v8, %v1321_v9  ;;  %v15452_v57 = vpop.f32.mrf.mxu0  ;;  %15751 = vmatmul.mubr.msk.f32.gmra.mxu0 %vm419_vm1, %v22528_v42  ;;  %v22542_v8 = vld [vmem:[#allocation7_spill] sm:$0xff] }
 0x12d   : > { %v15490_v40 = vpop.f32.mrf.mxu1  ;;  %15789 = vmatmul.mubr.msk.f32.gmra.mxu1 %vm419_vm1, %v17802_v49  ;;  %v1332_v3 = vadd.f32 %v15452_v57, %v18018_v19  ;;  %15753 = vmatprep.mubr.msk.f32.mxu0 %vm419_vm1, %v22529_v34 }
 0x12e   : > { %v18207_v17 = vadd.f32 %v15490_v40, %v1324_v56  ;;  %15791 = vmatprep.mubr.msk.f32.mxu1 %vm419_vm1, %v17805_v51  ;;  %v1236_v47 = vpop.f32.mrf.mxu0 }
 0x12f   : > { %v1522_v5 = vpop.f32.mrf.mxu1  ;;  %v1331_v10 = vadd.f32 %v1236_v47, %v18024_v11 }
 0x130   : > { %v18214_v59 = vadd.f32 %v1522_v5, %v1323_v33  ;;  %v15455_v42 = vpop.f32.mrf.mxu0  ;;  %15754 = vmatmul.mubr.msk.f32.gmra.mxu0 %vm419_vm1, %v22531_v58  ;;  %v22536_v33 = vld [vmem:[#allocation4_spill] sm:$0xff]  ;;  %v22543_v5 = vld [vmem:[#allocation17_spill] sm:$0xff] }
 0x131   : > { %v15493_v9 = vpop.f32.mrf.mxu1  ;;  %15792 = vmatmul.mubr.msk.f32.gmra.mxu1 %vm419_vm1, %v17816_v53  ;;  %v1334_v49 = vadd.f32 %v15455_v42, %v18030_v26  ;;  %15756 = vmatprep.mubr.msk.f32.mxu0 %vm419_vm1, %v22532_v15  ;;  %v22544_v42 = vld [vmem:[#allocation18_spill] sm:$0xff] }
 0x132   : > { %v18221_v19 = vadd.f32 %v15493_v9, %v1326_v32  ;;  %15794 = vmatprep.mubr.msk.f32.mxu1 %vm419_vm1, %v17819_v16  ;;  %v1246_v51 = vpop.f32.mrf.mxu0  ;;  %v22535_v16 = vld [vmem:[#allocation28_spill] sm:$0xff] }
 0x133   : > { %v1532_v11 = vpop.f32.mrf.mxu1  ;;  %v1333_v34 = vadd.f32 %v1246_v51, %v18036_v38 }
 0x134   : > { %v18228_v56 = vadd.f32 %v1532_v11, %v1325_v55  ;;  %v15458_v58 = vpop.f32.mrf.mxu0  ;;  %15757 = vmatmul.mubr.msk.f32.gmra.mxu0 %vm419_vm1, %v22533_v62 }
 0x135   : > { %v15496_v46 = vpop.f32.mrf.mxu1  ;;  %15795 = vmatmul.mubr.msk.f32.gmra.mxu1 %vm419_vm1, %v17830_v18  ;;  %v1336_v53 = vadd.f32 %v15458_v58, %v18042_v39  ;;  %15759 = vmatprep.mubr.msk.f32.mxu0 %vm419_vm1, %v22534_v61  ;;  %v22537_v18 = vld [vmem:[#allocation29_spill] sm:$0xff] }
 0x136   : > { %v18235_v26 = vadd.f32 %v15496_v46, %v1328_v0  ;;  %15797 = vmatprep.mubr.msk.f32.mxu1 %vm419_vm1, %v22535_v16  ;;  %v1256_v38 = vpop.f32.mrf.mxu0  ;;  %v22545_v16 = vld [vmem:[#allocation19_spill] sm:$0xff] }
 0x137   : > { %v1542_v15 = vpop.f32.mrf.mxu1  ;;  %v1335_v12 = vadd.f32 %v1256_v38, %v22536_v33  ;;  %v22546_v38 = vld [vmem:[#allocation20_spill] sm:$0xff] }
 0x138   : > { %v18242_v22 = vadd.f32 %v1542_v15, %v1327_v63  ;;  %v15461_v62 = vpop.f32.mrf.mxu0  ;;  %15760 = vmatmul.mubr.msk.f32.gmra.mxu0 %vm419_vm1, %v18115_v43  ;;  %v22540_v63 = vld [vmem:[#allocation15_spill] sm:$0xff] }
 0x139   : > { %v15499_v32 = vpop.f32.mrf.mxu1  ;;  %15798 = vmatmul.mubr.msk.f32.gmra.mxu1 %vm419_vm1, %v22537_v18  ;;  %v1338_v39 = vadd.f32 %v15461_v62, %v18057_v1  ;;  %15762 = vmatprep.mubr.msk.f32.mxu0 %vm419_vm1, %v22538_v44 }
 0x13a   : > { %v18249_v61 = vadd.f32 %v15499_v32, %v1330_v54  ;;  %15800 = vmatprep.mubr.msk.f32.mxu1 %vm419_vm1, %v22538_v44  ;;  %v1266_v50 = vpop.f32.mrf.mxu0  ;;  %v22547_v44 = vld [vmem:[#allocation21_spill] sm:$0xff] }
 0x13b   : > { %v1552_v55 = vpop.f32.mrf.mxu1  ;;  %v1337_v35 = vadd.f32 %v1266_v50, %v22539_v29  ;;  %v17018_v50 = vld [vmem:[%s17153_s25 + $0x10] sm:$0xff] }
 0x13c   : > { %v18256_v0 = vadd.f32 %v1552_v55, %v1329_v23  ;;  %v15464_v30 = vpop.f32.mrf.mxu0  ;;  %15763 = vmatmul.mubr.msk.f32.gmra.mxu0 %vm419_vm1, %v22540_v63 }
 0x13d   : > { %v15502_v4 = vpop.f32.mrf.mxu1  ;;  %15801 = vmatmul.mubr.msk.f32.gmra.mxu1 %vm419_vm1, %v22540_v63  ;;  %v1340_v1 = vadd.f32 %v15464_v30, %v18074_v21  ;;  %15765 = vmatprep.mubr.msk.f32.mxu0 %vm419_vm1, %v22541_v20  ;;  %v18320_v30 = vld [vmem:[%s22310_s1 + $0x38] sm:$0xf]  ;;  %v17019_v63 = vld [vmem:[%s17153_s25 + $0x20] sm:$0xff] }
 0x13e   : > { %v18263_v36 = vadd.f32 %v15502_v4, %v1332_v3  ;;  %15803 = vmatprep.mubr.msk.f32.mxu1 %vm419_vm1, %v22541_v20  ;;  %v1276_v54 = vpop.f32.mrf.mxu0  ;;  %v22548_v4 = vld [vmem:[#allocation22_spill] sm:$0xff] }
 0x13f   : > { %v1562_v2 = vpop.f32.mrf.mxu1  ;;  %v1339_v23 = vadd.f32 %v1276_v54, %v22542_v8  ;;  %v22550_v54 = vld [vmem:[#allocation23_spill] sm:$0xff] }
 0x140   : > { %v18270_v57 = vadd.f32 %v1562_v2, %v1331_v10  ;;  %v15467_v40 = vpop.f32.mrf.mxu0  ;;  %15766 = vmatmul.mubr.msk.f32.gmra.mxu0 %vm419_vm1, %v22543_v5 }
 0x141   : > { %v15505_v47 = vpop.f32.mrf.mxu1  ;;  %15804 = vmatmul.mubr.msk.f32.gmra.mxu1 %vm419_vm1, %v22543_v5  ;;  %v1342_v21 = vadd.f32 %v15467_v40, %v18092_v25  ;;  %15768 = vmatprep.mubr.msk.f32.mxu0 %vm419_vm1, %v22544_v42  ;;  %v17020_v40 = vld [vmem:[%s17153_s25 + $0x30] sm:$0xff] }
 0x142   : > { %v18277_v3 = vadd.f32 %v15505_v47, %v1334_v49  ;;  %15806 = vmatprep.mubr.msk.f32.mxu1 %vm419_vm1, %v22544_v42  ;;  %v1286_v10 = vpop.f32.mrf.mxu0  ;;  %v22551_v42 = vld [vmem:[#allocation24_spill] sm:$0xff] }
 0x143   : > { %v1572_v9 = vpop.f32.mrf.mxu1  ;;  %v1341_v51 = vadd.f32 %v1286_v10, %v18099_v28  ;;  %v18298_v28 = vld [vmem:[%s17153_s25 + $0x82] sm:$0xff] }
 0x144   : > { %v18284_v11 = vadd.f32 %v1572_v9, %v1333_v34  ;;  %v15470_v58 = vpop.f32.mrf.mxu0  ;;  %15769 = vmatmul.mubr.msk.f32.gmra.mxu0 %vm419_vm1, %v22545_v16  ;;  %v17021_v10 = vld [vmem:[%s17153_s25 + $0x40] sm:$0xff] }
 0x145   : > { %v15508_v46 = vpop.f32.mrf.mxu1  ;;  %15807 = vmatmul.mubr.msk.f32.gmra.mxu1 %vm419_vm1, %v22545_v16  ;;  %v1344_v25 = vadd.f32 %v15470_v58, %v18107_v14  ;;  %15771 = vmatprep.mubr.msk.f32.mxu0 %vm419_vm1, %v22546_v38 }
 0x146   : > { %v18291_v49 = vadd.f32 %v15508_v46, %v1336_v53  ;;  %15809 = vmatprep.mubr.msk.f32.mxu1 %vm419_vm1, %v22546_v38  ;;  %v1296_v34 = vpop.f32.mrf.mxu0  ;;  %v22552_v46 = vld [vmem:[#allocation25_spill] sm:$0xff] }
 0x147   : > { %v1582_v15 = vpop.f32.mrf.mxu1  ;;  %v1343_v33 = vadd.f32 %v1296_v34, %v18118_v45 }
 0x148   : > { %v18301_v62 = vadd.f32 %v1582_v15, %v1335_v12  ;;  %v15473_v32 = vpop.f32.mrf.mxu0  ;;  %15772 = vmatmul.mubr.msk.f32.gmra.mxu0 %vm419_vm1, %v18298_v28 }
 0x149   : > { %v15511_v18 = vpop.f32.mrf.mxu1  ;;  %15810 = vmatmul.mubr.msk.f32.gmra.mxu1 %vm419_vm1, %v18298_v28  ;;  %v1346_v14 = vadd.f32 %v15473_v32, %v18126_v52  ;;  %15826 = vmatprep.mubr.msk.f32.mxu0 %vm419_vm1, %v17018_v50  ;;  %v22554_v50 = vld [vmem:[#allocation27_spill] sm:$0xff] }
 0x14a   : > { %v18308_v53 = vadd.f32 %v15511_v18, %v1338_v39  ;;  %15812 = vmatprep.mubr.msk.f32.mxu1 %vm419_vm1, %v22547_v44  ;;  %v1306_v45 = vpop.f32.mrf.mxu0 }
 0x14b   : > { %v1592_v12 = vpop.f32.mrf.mxu1  ;;  %v1345_v55 = vadd.f32 %v1306_v45, %v18134_v24 }
 0x14c   : > { %v18315_v29 = vadd.f32 %v1592_v12, %v1337_v35  ;;  %v15528_v39 = vpop.f32.mrf.mxu0  ;;  %15827 = vmatmul.mubr.msk.f32.vlgmr.msra.gmra.mxu0 %vm419_vm1, %v17019_v63  ;;  %v22549_v35 = vld [vmem:[#allocation6_spill] sm:$0xff] }
 0x14d   : > { %v15514_v52 = vpop.f32.mrf.mxu1  ;;  %15813 = vmatmul.mubr.msk.f32.gmra.mxu1 %vm419_vm1, %v22548_v4  ;;  %v1968_v24 = vadd.f32 %v15528_v39, %v18147_v6  ;;  %15925 = vmatpush3.msk.msra.mxu0 %vm516_vm0, %v22549_v35 }
 0x14e   : > { %v18326_v20 = vadd.f32 %v15514_v52, %v1340_v1  ;;  %15815 = vmatprep.mubr.msk.f32.mxu1 %vm419_vm1, %v22550_v54  ;;  %v1808_v8 = vpop.f32.mrf.mxu0  ;;  %15829 = vmatprep.mubr.msk.f32.mxu0 %vm419_vm1, %v17020_v40  ;;  %v17025_v54 = vld [vmem:[%s17153_s25 + $0xb0] sm:$0xff] }
 0x14f   : > { %v1602_v2 = vpop.f32.mrf.mxu1  ;;  %16024 = vmatprep.subr.msk.mxu0 %vm516_vm0, %v18320_v30  ;;  %v1967_v1 = vadd.f32 %v1808_v8, %v18156_v48 }
 0x150   : > { %v18337_v47 = vadd.f32 %v1602_v2, %v1339_v23  ;;  %v15531_v5 = vpop.f32.mrf.mxu0  ;;  %15830 = vmatmul.mubr.msk.f32.gmra.mxu0 %vm419_vm1, %v17021_v10  ;;  %v17022_v23 = vld [vmem:[%s17153_s25 + $0x50] sm:$0xff] }
 0x151   : > { %v15517_v6 = vpop.f32.mrf.mxu1  ;;  %15816 = vmatmul.mubr.msk.f32.gmra.mxu1 %vm419_vm1, %v22551_v42  ;;  %v1970_v58 = vadd.f32 %v15531_v5, %v18165_v27  ;;  %15832 = vmatprep.mubr.msk.f32.mxu0 %vm419_vm1, %v17022_v23  ;;  %v17023_v27 = vld [vmem:[%s17153_s25 + $0x60] sm:$0xff] }
 0x152   : > { %v18344_v9 = vadd.f32 %v15517_v6, %v1342_v21  ;;  %15818 = vmatprep.mubr.msk.f32.mxu1 %vm419_vm1, %v22552_v46  ;;  %v1818_v16 = vpop.f32.mrf.mxu0  ;;  %v22553_v21 = vld [vmem:[#allocation26_spill] sm:$0xff]  ;;  %v17026_v5 = vld [vmem:[%s17153_s25 + $0xc0] sm:$0xff] }
 0x153   : > { %v1612_v48 = vpop.f32.mrf.mxu1  ;;  %v1969_v34 = vadd.f32 %v1818_v16, %v18172_v41  ;;  %v18366_v41 = vld [vmem:[%s17153_s25 + $0x122] sm:$0xff] }
 0x154   : > { %v18351_v38 = vadd.f32 %v1612_v48, %v1341_v51  ;;  %v15534_v32 = vpop.f32.mrf.mxu0  ;;  %15833 = vmatmul.mubr.msk.f32.gmra.mxu0 %vm419_vm1, %v17023_v27  ;;  %v17024_v51 = vld [vmem:[%s17153_s25 + $0x70] sm:$0xff]  ;;  %22555 = vst [vmem:[#allocation8_spill] sm:$0xff] %v18366_v41  ;;  %v17028_v48 = vld [vmem:[%s17153_s25 + $0xe0] sm:$0xff] }
 0x155   : > { %v15520_v15 = vpop.f32.mrf.mxu1  ;;  %15819 = vmatmul.mubr.msk.f32.gmra.mxu1 %vm419_vm1, %v22553_v21  ;;  %v1972_v44 = vadd.f32 %v15534_v32, %v18179_v7  ;;  %15835 = vmatprep.mubr.msk.f32.mxu0 %vm419_vm1, %v17024_v51  ;;  %v22556_v7 = vld [vmem:[#allocation30_spill] sm:$0xff]  ;;  %v17030_v51 = vld [vmem:[%s17153_s25 + $0x100] sm:$0xff] }
 0x156   : > { %v18358_v18 = vadd.f32 %v15520_v15, %v1344_v25  ;;  %15821 = vmatprep.mubr.msk.f32.mxu1 %vm419_vm1, %v22554_v50  ;;  %v1828_v12 = vpop.f32.mrf.mxu0 }
 0x157   : > { %v1622_v45 = vpop.f32.mrf.mxu1  ;;  %v1971_v39 = vadd.f32 %v1828_v12, %v18186_v31  ;;  %v18431_v12 = vld [vmem:[%s17153_s25 + $0x150] sm:$0xff] }
 0x158   : > { %v18368_v52 = vadd.f32 %v1622_v45, %v1343_v33  ;;  %v15537_v4 = vpop.f32.mrf.mxu0  ;;  %15836 = vmatmul.mubr.msk.f32.gmra.mxu0 %vm419_vm1, %v22556_v7  ;;  %v17031_v45 = vld [vmem:[%s17153_s25 + $0x110] sm:$0xff]  ;;  %v22557_v7 = vld [vmem:[#allocation31_spill] sm:$0xff] }
 0x159   : > { %v15523_v25 = vpop.f32.mrf.mxu1  ;;  %15822 = vmatmul.mubr.msk.f32.gmra.mxu1 %vm419_vm1, %v18366_v41  ;;  %v1974_v35 = vadd.f32 %v15537_v4, %v18193_v13  ;;  %15838 = vmatprep.mubr.msk.f32.mxu0 %vm419_vm1, %v17025_v54  ;;  %v18390_v13 = vld [vmem:[%s22310_s1 + $0x3c] sm:$0xf]  ;;  %v17040_v41 = vld [vmem:[%s17153_s25 + $0xc1] sm:$0xff] }
 0x15a   : > { %v18375_v63 = vadd.f32 %v15523_v25, %v1346_v14  ;;  %15876 = vmatprep.mubr.msk.f32.mxu1 %vm419_vm1, %v17025_v54  ;;  %v1838_v33 = vpop.f32.mrf.mxu0 }
 0x15b   : > { %v1632_v31 = vpop.f32.mrf.mxu1  ;;  %v1973_v8 = vadd.f32 %v1838_v33, %v18200_v60 }
 0x15c   : > { %v18381_v2 = vadd.f32 %v1632_v31, %v1345_v55  ;;  %v15540_v40 = vpop.f32.mrf.mxu0  ;;  %15839 = vmatmul.mubr.msk.f32.gmra.mxu0 %vm419_vm1, %v17026_v5  ;;  %v17027_v55 = vld [vmem:[%s17153_s25 + $0xd0] sm:$0xff] }
 0x15d   : > { %v15578_v6 = vpop.f32.mrf.mxu1  ;;  %15877 = vmatmul.mubr.msk.f32.vlgmr.msra.gmra.mxu1 %vm419_vm1, %v17026_v5  ;;  %v1976_v14 = vadd.f32 %v15540_v40, %v18207_v17  ;;  %15841 = vmatprep.mubr.msk.f32.mxu0 %vm419_vm1, %v17027_v55 }
 0x15e   : > { %v18393_v42 = vadd.f32 %v15578_v6, %v1968_v24  ;;  %15879 = vmatprep.mubr.msk.f32.mxu1 %vm419_vm1, %v17027_v55  ;;  %v1848_v60 = vpop.f32.mrf.mxu0  ;;  %15975 = vmatpush3.msk.msra.mxu1 %vm516_vm0, %v18144_v37  ;;  %v17029_v37 = vld [vmem:[%s17153_s25 + $0xf0] sm:$0xff] }
 0x15f   : > { %v2136_v10 = vpop.f32.mrf.mxu1  ;;  %v1975_v46 = vadd.f32 %v1848_v60, %v18214_v59  ;;  %16074 = vmatprep.subr.msk.mxu1 %vm516_vm0, %v18390_v13  ;;  %v18458_v6 = vld [vmem:[%s17153_s25 + $0x170] sm:$0xff]  ;;  %v18468_v60 = vld [vmem:[%s17153_s25 + $0x21] sm:$0xff] }
 0x160   : > { %v18401_v23 = vadd.f32 %v2136_v10, %v1967_v1  ;;  %v15543_v17 = vpop.f32.mrf.mxu0  ;;  %15842 = vmatmul.mubr.msk.f32.gmra.mxu0 %vm419_vm1, %v17028_v48 }
 0x161   : > { %v15581_v24 = vpop.f32.mrf.mxu1  ;;  %15880 = vmatmul.mubr.msk.f32.gmra.mxu1 %vm419_vm1, %v17028_v48  ;;  %v1978_v16 = vadd.f32 %v15543_v17, %v18221_v19  ;;  %15844 = vmatprep.mubr.msk.f32.mxu0 %vm419_vm1, %v17029_v37 }
 0x162   : > { %v18409_v15 = vadd.f32 %v15581_v24, %v1970_v58  ;;  %15882 = vmatprep.mubr.msk.f32.mxu1 %vm419_vm1, %v17029_v37  ;;  %v1858_v59 = vpop.f32.mrf.mxu0  ;;  %v18486_v37 = vld [vmem:[%s17153_s25 + $0x190] sm:$0xff] }
 0x163   : > { %v2146_v1 = vpop.f32.mrf.mxu1  ;;  %v18415_v32 = vadd.f32 %v1858_v59, %v18228_v56 }
 0x164   : > { %v18417_v21 = vadd.f32 %v2146_v1, %v1969_v34  ;;  %v15546_v27 = vpop.f32.mrf.mxu0  ;;  %15845 = vmatmul.mubr.msk.f32.gmra.mxu0 %vm419_vm1, %v17030_v51 }
 0x165   : > { %v15584_v50 = vpop.f32.mrf.mxu1  ;;  %15883 = vmatmul.mubr.msk.f32.gmra.mxu1 %vm419_vm1, %v17030_v51  ;;  %v18423_v19 = vadd.f32 %v15546_v27, %v18235_v26  ;;  %15847 = vmatprep.mubr.msk.f32.mxu0 %vm419_vm1, %v17031_v45  ;;  %v18494_v27 = vld [vmem:[%s17153_s25 + $0x41] sm:$0xff] }
 0x166   : > { %v18425_v58 = vadd.f32 %v15584_v50, %v1972_v44  ;;  %15885 = vmatprep.mubr.msk.f32.mxu1 %vm419_vm1, %v17031_v45  ;;  %v1868_v56 = vpop.f32.mrf.mxu0 }
 0x167   : > { %v2156_v34 = vpop.f32.mrf.mxu1  ;;  %v18434_v25 = vadd.f32 %v1868_v56, %v18242_v22  ;;  %v18450_v22 = vld [vmem:[%s17153_s25 + $0x11] sm:$0xff] }
 0x168   : > { %v18436_v4 = vadd.f32 %v2156_v34, %v1971_v39  ;;  %v15549_v26 = vpop.f32.mrf.mxu0  ;;  %15848 = vmatmul.mubr.msk.f32.gmra.mxu0 %vm419_vm1, %v22557_v7  ;;  %v18455_v39 = vld [vmem:[%s17153_s25 + $0x160] sm:$0xff]  ;;  %v18512_v34 = vld [vmem:[%s17153_s25 + $0x1b0] sm:$0xff] }
 0x169   : > { %v15587_v44 = vpop.f32.mrf.mxu1  ;;  %15886 = vmatmul.mubr.msk.f32.gmra.mxu1 %vm419_vm1, %v22557_v7  ;;  %v18443_v54 = vadd.f32 %v15549_v26, %v18249_v61  ;;  %15850 = vmatprep.mubr.msk.f32.mxu0 %vm419_vm1, %v18431_v12  ;;  %v18521_v7 = vld [vmem:[%s17153_s25 + $0x61] sm:$0xff] }
 0x16a   : > { %v18445_v31 = vadd.f32 %v15587_v44, %v1974_v35  ;;  %15888 = vmatprep.mubr.msk.f32.mxu1 %vm419_vm1, %v18450_v22  ;;  %v1878_v33 = vpop.f32.mrf.mxu0 }
 0x16b   : > { %v2166_v40 = vpop.f32.mrf.mxu1  ;;  %v18461_v61 = vadd.f32 %v1878_v33, %v18256_v0  ;;  %v18478_v0 = vld [vmem:[%s17153_s25 + $0x31] sm:$0xff] }
 0x16c   : > { %v18463_v35 = vadd.f32 %v2166_v40, %v1973_v8  ;;  %v15552_v5 = vpop.f32.mrf.mxu0  ;;  %15851 = vmatmul.mubr.msk.f32.gmra.mxu0 %vm419_vm1, %v18455_v39  ;;  %v18483_v8 = vld [vmem:[%s17153_s25 + $0x180] sm:$0xff] }
 0x16d   : > { %v15590_v55 = vpop.f32.mrf.mxu1  ;;  %15889 = vmatmul.mubr.msk.f32.gmra.mxu1 %vm419_vm1, %v18468_v60  ;;  %v1984_v10 = vadd.f32 %v15552_v5, %v18263_v36  ;;  %15853 = vmatprep.mubr.msk.f32.mxu0 %vm419_vm1, %v18458_v6 }
 0x16e   : > { %v18473_v17 = vadd.f32 %v15590_v55, %v1976_v14  ;;  %15891 = vmatprep.mubr.msk.f32.mxu1 %vm419_vm1, %v18478_v0  ;;  %v1888_v24 = vpop.f32.mrf.mxu0 }
 0x16f   : > { %v2176_v48 = vpop.f32.mrf.mxu1  ;;  %v1983_v36 = vadd.f32 %v1888_v24, %v18270_v57  ;;  %v18504_v57 = vld [vmem:[%s17153_s25 + $0x51] sm:$0xff] }
 0x170   : > { %v18489_v14 = vadd.f32 %v2176_v48, %v1975_v46  ;;  %v15555_v59 = vpop.f32.mrf.mxu0  ;;  %15854 = vmatmul.mubr.msk.f32.gmra.mxu0 %vm419_vm1, %v18483_v8  ;;  %v18509_v46 = vld [vmem:[%s17153_s25 + $0x1a0] sm:$0xff]  ;;  %v18540_v24 = vld [vmem:[%s17153_s25 + $0x1f0] sm:$0xff] }
 0x171   : > { %v15593_v1 = vpop.f32.mrf.mxu1  ;;  %15892 = vmatmul.mubr.msk.f32.gmra.mxu1 %vm419_vm1, %v18494_v27  ;;  %v1986_v50 = vadd.f32 %v15555_v59, %v18277_v3  ;;  %15856 = vmatprep.mubr.msk.f32.mxu0 %vm419_vm1, %v18486_v37  ;;  %22559 = vst [vmem:[#allocation10_spill] sm:$0xff] %v18540_v24 }
 0x172   : > { %v18499_v51 = vadd.f32 %v15593_v1, %v1978_v16  ;;  %15894 = vmatprep.mubr.msk.f32.mxu1 %vm419_vm1, %v18504_v57  ;;  %v1898_v45 = vpop.f32.mrf.mxu0  ;;  %v22560_v1 = vld [vmem:[#allocation3_spill] sm:$0xff] }
 0x173   : > { %v2186_v56 = vpop.f32.mrf.mxu1  ;;  %v1985_v3 = vadd.f32 %v1898_v45, %v18284_v11  ;;  %v18532_v11 = vld [vmem:[%s17153_s25 + $0x71] sm:$0xff] }
 0x174   : > { %v18516_v16 = vadd.f32 %v2186_v56, %v18415_v32  ;;  %v15558_v26 = vpop.f32.mrf.mxu0  ;;  %15857 = vmatmul.mubr.msk.f32.gmra.mxu0 %vm419_vm1, %v18509_v46  ;;  %v18537_v32 = vld [vmem:[%s17153_s25 + $0x1c0] sm:$0xff] }
 0x175   : > { %v15596_v44 = vpop.f32.mrf.mxu1  ;;  %15895 = vmatmul.mubr.msk.f32.gmra.mxu1 %vm419_vm1, %v18521_v7  ;;  %v1988_v33 = vadd.f32 %v15558_v26, %v18291_v49  ;;  %15859 = vmatprep.mubr.msk.f32.mxu0 %vm419_vm1, %v18512_v34  ;;  %22558 = vst [vmem:[#allocation9_spill] sm:$0xff] %v18537_v32 }
 0x176   : > { %v18527_v40 = vadd.f32 %v15596_v44, %v18423_v19  ;;  %15897 = vmatprep.mubr.msk.f32.mxu1 %vm419_vm1, %v18532_v11  ;;  %v1908_v5 = vpop.f32.mrf.mxu0  ;;  %v18562_v44 = vld [vmem:[%s17153_s25 + $0x210] sm:$0xff] }
 0x177   : > { %v2196_v55 = vpop.f32.mrf.mxu1  ;;  %v1987_v49 = vadd.f32 %v1908_v5, %v18301_v62  ;;  %v18559_v62 = vld [vmem:[%s17153_s25 + $0x200] sm:$0xff]  ;;  %22562 = vst [vmem:[#allocation12_spill] sm:$0xff] %v18562_v44 }
 0x178   : > { %v18544_v19 = vadd.f32 %v2196_v55, %v18434_v25  ;;  %v15561_v48 = vpop.f32.mrf.mxu0  ;;  %15860 = vmatmul.mubr.msk.f32.gmra.mxu0 %vm419_vm1, %v18537_v32  ;;  %22561 = vst [vmem:[#allocation11_spill] sm:$0xff] %v18559_v62 }
 0x179   : > { %v15599_v59 = vpop.f32.mrf.mxu1  ;;  %15898 = vmatmul.mubr.msk.f32.gmra.mxu1 %vm419_vm1, %v22560_v1  ;;  %v1990_v45 = vadd.f32 %v15561_v48, %v18308_v53  ;;  %15862 = vmatprep.mubr.msk.f32.mxu0 %vm419_vm1, %v18540_v24 }
 0x17a   : > { %v18552_v56 = vadd.f32 %v15599_v59, %v18443_v54  ;;  %15900 = vmatprep.mubr.msk.f32.mxu1 %vm419_vm1, %v18540_v24  ;;  %v1918_v25 = vpop.f32.mrf.mxu0 }
 0x17b   : > { %v2206_v26 = vpop.f32.mrf.mxu1  ;;  %v1989_v5 = vadd.f32 %v1918_v25, %v18315_v29  ;;  %v18580_v29 = vld [vmem:[%s17153_s25 + $0x220] sm:$0xff] }
 0x17c   : > { %v18566_v53 = vadd.f32 %v2206_v26, %v18461_v61  ;;  %v15564_v54 = vpop.f32.mrf.mxu0  ;;  %15863 = vmatmul.mubr.msk.f32.gmra.mxu0 %vm419_vm1, %v18559_v62  ;;  %22563 = vst [vmem:[#allocation13_spill] sm:$0xff] %v18580_v29  ;;  %v18583_v26 = vld [vmem:[%s17153_s25 + $0x230] sm:$0xff] }
 0x17d   : > { %v15602_v55 = vpop.f32.mrf.mxu1  ;;  %15901 = vmatmul.mubr.msk.f32.gmra.mxu1 %vm419_vm1, %v18559_v62  ;;  %v1992_v48 = vadd.f32 %v15564_v54, %v18326_v20  ;;  %15865 = vmatprep.mubr.msk.f32.mxu0 %vm419_vm1, %v18562_v44  ;;  %22564 = vst [vmem:[#allocation28_spill] sm:$0xff] %v18583_v26 }
 0x17e   : > { %v18573_v59 = vadd.f32 %v15602_v55, %v1984_v10  ;;  %15903 = vmatprep.mubr.msk.f32.mxu1 %vm419_vm1, %v18562_v44  ;;  %v1928_v61 = vpop.f32.mrf.mxu0 }
 0x17f   : > { %v2216_v25 = vpop.f32.mrf.mxu1  ;;  %v1991_v62 = vadd.f32 %v1928_v61, %v18337_v47  ;;  %v18600_v47 = vld [vmem:[%s17153_s25 + $0x240] sm:$0xff] }
 0x180   : > { %v18586_v24 = vadd.f32 %v2216_v25, %v1983_v36  ;;  %v15567_v20 = vpop.f32.mrf.mxu0  ;;  %15866 = vmatmul.mubr.msk.f32.gmra.mxu0 %vm419_vm1, %v18580_v29  ;;  %22565 = vst [vmem:[#allocation4_spill] sm:$0xff] %v18600_v47  ;;  %v18603_v25 = vld [vmem:[%s17153_s25 + $0x250] sm:$0xff] }
 0x181   : > { %v15605_v10 = vpop.f32.mrf.mxu1  ;;  %15904 = vmatmul.mubr.msk.f32.gmra.mxu1 %vm419_vm1, %v18580_v29  ;;  %v1994_v54 = vadd.f32 %v15567_v20, %v18344_v9  ;;  %15868 = vmatprep.mubr.msk.f32.mxu0 %vm419_vm1, %v18583_v26  ;;  %22566 = vst [vmem:[#allocation29_spill] sm:$0xff] %v18603_v25 }
 0x182   : > { %v18593_v55 = vadd.f32 %v15605_v10, %v1986_v50  ;;  %15906 = vmatprep.mubr.msk.f32.mxu1 %vm419_vm1, %v18583_v26  ;;  %v1938_v36 = vpop.f32.mrf.mxu0 }
 0x183   : > { %v2226_v61 = vpop.f32.mrf.mxu1  ;;  %v1993_v29 = vadd.f32 %v1938_v36, %v18351_v38  ;;  %v18620_v38 = vld [vmem:[%s17153_s25 + $0x260] sm:$0xff] }
 0x184   : > { %v18606_v44 = vadd.f32 %v2226_v61, %v1985_v3  ;;  %v15570_v9 = vpop.f32.mrf.mxu0  ;;  %15869 = vmatmul.mubr.msk.f32.gmra.mxu0 %vm419_vm1, %v18600_v47  ;;  %22567 = vst [vmem:[#allocation14_spill] sm:$0xff] %v18620_v38  ;;  %v18623_v61 = vld [vmem:[%s17153_s25 + $0x151] sm:$0xff] }
 0x185   : > { %v15608_v50 = vpop.f32.mrf.mxu1  ;;  %15907 = vmatmul.mubr.msk.f32.gmra.mxu1 %vm419_vm1, %v18600_v47  ;;  %v1996_v20 = vadd.f32 %v15570_v9, %v18358_v18  ;;  %15871 = vmatprep.mubr.msk.f32.mxu0 %vm419_vm1, %v18603_v25 }
 0x186   : > { %v18613_v10 = vadd.f32 %v15608_v50, %v1988_v33  ;;  %15909 = vmatprep.mubr.msk.f32.mxu1 %vm419_vm1, %v18603_v25  ;;  %v1948_v3 = vpop.f32.mrf.mxu0 }
 0x187   : > { %v2236_v36 = vpop.f32.mrf.mxu1  ;;  %v1995_v47 = vadd.f32 %v1948_v3, %v18368_v52  ;;  %v18640_v52 = vld [vmem:[%s17153_s25 + $0x161] sm:$0xff] }
 0x188   : > { %v18626_v26 = vadd.f32 %v2236_v36, %v1987_v49  ;;  %v15573_v18 = vpop.f32.mrf.mxu0  ;;  %15872 = vmatmul.mubr.msk.f32.gmra.mxu0 %vm419_vm1, %v18620_v38  ;;  %v18643_v36 = vld [vmem:[%s17153_s25 + $0x171] sm:$0xff] }
 0x189   : > { %v15611_v33 = vpop.f32.mrf.mxu1  ;;  %15910 = vmatmul.mubr.msk.f32.gmra.mxu1 %vm419_vm1, %v18620_v38  ;;  %v1998_v9 = vadd.f32 %v15573_v18, %v18375_v63  ;;  %15926 = vmatprep.mubr.msk.f32.mxu0 %vm419_vm1, %v18450_v22  ;;  %v18651_v63 = vld [vmem:[%s22310_s1 + $0x40] sm:$0xf] }
 0x18a   : > { %v18633_v50 = vadd.f32 %v15611_v33, %v1990_v45  ;;  %15912 = vmatprep.mubr.msk.f32.mxu1 %vm419_vm1, %v18623_v61  ;;  %v1958_v49 = vpop.f32.mrf.mxu0 }
 0x18b   : > { %v2246_v3 = vpop.f32.mrf.mxu1  ;;  %v1997_v38 = vadd.f32 %v1958_v49, %v18381_v2  ;;  %v18665_v2 = vld [vmem:[%s17153_s25 + $0x181] sm:$0xff] }
 0x18c   : > { %v18646_v25 = vadd.f32 %v2246_v3, %v1989_v5  ;;  %v15628_v18 = vpop.f32.mrf.mxu0  ;;  %15927 = vmatmul.mubr.msk.f32.vlgmr.msra.gmra.mxu0 %vm419_vm1, %v18468_v60  ;;  %22568 = vst [vmem:[#allocation5_spill] sm:$0xff] %v18665_v2  ;;  %v18670_v60 = vld [vmem:[%s17153_s25 + $0x191] sm:$0xff] }
 0x18d   : > { %v15614_v45 = vpop.f32.mrf.mxu1  ;;  %15913 = vmatmul.mubr.msk.f32.gmra.mxu1 %vm419_vm1, %v18640_v52  ;;  %v2590_v33 = vadd.f32 %v15628_v18, %v18393_v42  ;;  %16025 = vmatpush3.msk.msra.mxu0 %vm516_vm0, %v18320_v30  ;;  %22569 = vst [vmem:[#allocation15_spill] sm:$0xff] %v18670_v60 }
 0x18e   : > { %v18657_v22 = vadd.f32 %v15614_v45, %v1992_v48  ;;  %15915 = vmatprep.mubr.msk.f32.mxu1 %vm419_vm1, %v18643_v36  ;;  %v2430_v49 = vpop.f32.mrf.mxu0  ;;  %15929 = vmatprep.mubr.msk.f32.mxu0 %vm419_vm1, %v18478_v0 }
 0x18f   : > { %v2256_v5 = vpop.f32.mrf.mxu1  ;;  %16124 = vmatprep.subr.msk.mxu0 %vm516_vm0, %v18651_v63  ;;  %v2589_v30 = vadd.f32 %v2430_v49, %v18401_v23  ;;  %v18689_v23 = vld [vmem:[%s17153_s25 + $0x1a1] sm:$0xff] }
 0x190   : > { %v18674_v42 = vadd.f32 %v2256_v5, %v1991_v62  ;;  %v15631_v3 = vpop.f32.mrf.mxu0  ;;  %15930 = vmatmul.mubr.msk.f32.gmra.mxu0 %vm419_vm1, %v18494_v27  ;;  %22570 = vst [vmem:[#allocation16_spill] sm:$0xff] %v18689_v23  ;;  %v18692_v5 = vld [vmem:[%s17153_s25 + $0x1b1] sm:$0xff] }
 0x191   : > { %v15617_v48 = vpop.f32.mrf.mxu1  ;;  %15916 = vmatmul.mubr.msk.f32.gmra.mxu1 %vm419_vm1, %v18665_v2  ;;  %v2592_v0 = vadd.f32 %v15631_v3, %v18409_v15  ;;  %15932 = vmatprep.mubr.msk.f32.mxu0 %vm419_vm1, %v18504_v57  ;;  %22571 = vst [vmem:[#allocation7_spill] sm:$0xff] %v18692_v5 }
 0x192   : > { %v18681_v45 = vadd.f32 %v15617_v48, %v1994_v54  ;;  %15918 = vmatprep.mubr.msk.f32.mxu1 %vm419_vm1, %v18670_v60  ;;  %v2440_v18 = vpop.f32.mrf.mxu0 }
 0x193   : > { %v2266_v62 = vpop.f32.mrf.mxu1  ;;  %v2591_v27 = vadd.f32 %v2440_v18, %v18417_v21  ;;  %v18709_v21 = vld [vmem:[%s17153_s25 + $0x1c1] sm:$0xff] }
 0x194   : > { %v18694_v49 = vadd.f32 %v2266_v62, %v1993_v29  ;;  %v15634_v48 = vpop.f32.mrf.mxu0  ;;  %15933 = vmatmul.mubr.msk.f32.gmra.mxu0 %vm419_vm1, %v18521_v7  ;;  %22572 = vst [vmem:[#allocation17_spill] sm:$0xff] %v18709_v21 }
 0x195   : > { %v15620_v54 = vpop.f32.mrf.mxu1  ;;  %15919 = vmatmul.mubr.msk.f32.gmra.mxu1 %vm419_vm1, %v18689_v23  ;;  %v2594_v57 = vadd.f32 %v15634_v48, %v18425_v58  ;;  %15935 = vmatprep.mubr.msk.f32.mxu0 %vm419_vm1, %v18532_v11 }
 0x196   : > { %v18701_v15 = vadd.f32 %v15620_v54, %v1996_v20  ;;  %15921 = vmatprep.mubr.msk.f32.mxu1 %vm419_vm1, %v18692_v5  ;;  %v2450_v3 = vpop.f32.mrf.mxu0  ;;  %v17039_v54 = vld [vmem:[%s17153_s25 + $0xb1] sm:$0xff] }
 0x197   : > { %v2276_v29 = vpop.f32.mrf.mxu1  ;;  %v2593_v18 = vadd.f32 %v2450_v3, %v18436_v4 }
 0x198   : > { %v18711_v62 = vadd.f32 %v2276_v29, %v1995_v47  ;;  %v15637_v20 = vpop.f32.mrf.mxu0  ;;  %15936 = vmatmul.mubr.msk.f32.gmra.mxu0 %vm419_vm1, %v22560_v1 }
 0x199   : > { %v15623_v7 = vpop.f32.mrf.mxu1  ;;  %15922 = vmatmul.mubr.msk.f32.gmra.mxu1 %vm419_vm1, %v18709_v21  ;;  %v2596_v11 = vadd.f32 %v15637_v20, %v18445_v31  ;;  %15938 = vmatprep.mubr.msk.f32.mxu0 %vm419_vm1, %v17039_v54  ;;  %v18733_v31 = vld [vmem:[%s22310_s1 + $0x44] sm:$0xf] }
 0x19a   : > { %v18718_v58 = vadd.f32 %v15623_v7, %v1998_v9  ;;  %15976 = vmatprep.mubr.msk.f32.mxu1 %vm419_vm1, %v17039_v54  ;;  %v2460_v47 = vpop.f32.mrf.mxu0 }
 0x19b   : > { %v2286_v4 = vpop.f32.mrf.mxu1  ;;  %v2595_v29 = vadd.f32 %v2460_v47, %v18463_v35 }
 0x19c   : > { %v18724_v48 = vadd.f32 %v2286_v4, %v1997_v38  ;;  %v15640_v3 = vpop.f32.mrf.mxu0  ;;  %15939 = vmatmul.mubr.msk.f32.gmra.mxu0 %vm419_vm1, %v17040_v41  ;;  %v17041_v38 = vld [vmem:[%s17153_s25 + $0xd1] sm:$0xff] }
 0x19d   : > { %v15678_v32 = vpop.f32.mrf.mxu1  ;;  %15977 = vmatmul.mubr.msk.f32.vlgmr.msra.gmra.mxu1 %vm419_vm1, %v17040_v41  ;;  %v2598_v1 = vadd.f32 %v15640_v3, %v18473_v17  ;;  %15941 = vmatprep.mubr.msk.f32.mxu0 %vm419_vm1, %v17041_v38 }
 0x19e   : > { %v18736_v9 = vadd.f32 %v15678_v32, %v2590_v33  ;;  %15979 = vmatprep.mubr.msk.f32.mxu1 %vm419_vm1, %v17041_v38  ;;  %v2470_v35 = vpop.f32.mrf.mxu0  ;;  %16075 = vmatpush3.msk.msra.mxu1 %vm516_vm0, %v18390_v13  ;;  %v17042_v33 = vld [vmem:[%s17153_s25 + $0xe1] sm:$0xff]  ;;  %v17043_v13 = vld [vmem:[%s17153_s25 + $0xf1] sm:$0xff] }
 0x19f   : > { %v2724_v7 = vpop.f32.mrf.mxu1  ;;  %v2597_v41 = vadd.f32 %v2470_v35, %v18489_v14  ;;  %16174 = vmatprep.subr.msk.mxu1 %vm516_vm0, %v18733_v31 }
 0x1a0   : > { %v18744_v20 = vadd.f32 %v2724_v7, %v2589_v30  ;;  %v15643_v17 = vpop.f32.mrf.mxu0  ;;  %15942 = vmatmul.mubr.msk.f32.gmra.mxu0 %vm419_vm1, %v17042_v33  ;;  %v17044_v7 = vld [vmem:[%s17153_s25 + $0x101] sm:$0xff] }
 0x1a1   : > { %v15681_v32 = vpop.f32.mrf.mxu1  ;;  %15980 = vmatmul.mubr.msk.f32.gmra.mxu1 %vm419_vm1, %v17042_v33  ;;  %v2600_v54 = vadd.f32 %v15643_v17, %v18499_v51  ;;  %15944 = vmatprep.mubr.msk.f32.mxu0 %vm419_vm1, %v17043_v13  ;;  %v17045_v17 = vld [vmem:[%s17153_s25 + $0x111] sm:$0xff] }
 0x1a2   : > { %v18752_v4 = vadd.f32 %v15681_v32, %v2592_v0  ;;  %15982 = vmatprep.mubr.msk.f32.mxu1 %vm419_vm1, %v17043_v13  ;;  %v2480_v14 = vpop.f32.mrf.mxu0 }
 0x1a3   : > { %v2734_v30 = vpop.f32.mrf.mxu1  ;;  %v2599_v47 = vadd.f32 %v2480_v14, %v18516_v16 }
 0x1a4   : > { %v18758_v3 = vadd.f32 %v2734_v30, %v2591_v27  ;;  %v15646_v38 = vpop.f32.mrf.mxu0  ;;  %15945 = vmatmul.mubr.msk.f32.gmra.mxu0 %vm419_vm1, %v17044_v7 }
 0x1a5   : > { %v15684_v35 = vpop.f32.mrf.mxu1  ;;  %15983 = vmatmul.mubr.msk.f32.gmra.mxu1 %vm419_vm1, %v17044_v7  ;;  %v2602_v51 = vadd.f32 %v15646_v38, %v18527_v40  ;;  %15947 = vmatprep.mubr.msk.f32.mxu0 %vm419_vm1, %v17045_v17 }
 0x1a6   : > { %v18764_v0 = vadd.f32 %v15684_v35, %v2594_v57  ;;  %15985 = vmatprep.mubr.msk.f32.mxu1 %vm419_vm1, %v17045_v17  ;;  %v2490_v16 = vpop.f32.mrf.mxu0 }
 0x1a7   : > { %v2744_v27 = vpop.f32.mrf.mxu1  ;;  %v2601_v32 = vadd.f32 %v2490_v16, %v18544_v19  ;;  %v18782_v19 = vld [vmem:[%s17153_s25 + $0x12] sm:$0xff] }
 0x1a8   : > { %v18770_v33 = vadd.f32 %v2744_v27, %v2593_v18  ;;  %v15649_v13 = vpop.f32.mrf.mxu0  ;;  %15948 = vmatmul.mubr.msk.f32.gmra.mxu0 %vm419_vm1, %v18115_v43 }
 0x1a9   : > { %v15687_v14 = vpop.f32.mrf.mxu1  ;;  %15986 = vmatmul.mubr.msk.f32.gmra.mxu1 %vm419_vm1, %v18115_v43  ;;  %v2604_v40 = vadd.f32 %v15649_v13, %v18552_v56  ;;  %15950 = vmatprep.mubr.msk.f32.mxu0 %vm419_vm1, %v18623_v61  ;;  %v18792_v56 = vld [vmem:[%s17153_s25 + $0x22] sm:$0xff] }
 0x1aa   : > { %v18777_v57 = vadd.f32 %v15687_v14, %v2596_v11  ;;  %15988 = vmatprep.mubr.msk.f32.mxu1 %vm419_vm1, %v18782_v19  ;;  %v2500_v18 = vpop.f32.mrf.mxu0 }
 0x1ab   : > { %v2754_v30 = vpop.f32.mrf.mxu1  ;;  %v2603_v38 = vadd.f32 %v2500_v18, %v18566_v53  ;;  %v18802_v53 = vld [vmem:[%s17153_s25 + $0x32] sm:$0xff] }
 0x1ac   : > { %v18787_v35 = vadd.f32 %v2754_v30, %v2595_v29  ;;  %v15652_v43 = vpop.f32.mrf.mxu0  ;;  %15951 = vmatmul.mubr.msk.f32.gmra.mxu0 %vm419_vm1, %v18640_v52 }
 0x1ad   : > { %v15690_v7 = vpop.f32.mrf.mxu1  ;;  %15989 = vmatmul.mubr.msk.f32.gmra.mxu1 %vm419_vm1, %v18792_v56  ;;  %v2606_v11 = vadd.f32 %v15652_v43, %v18573_v59  ;;  %15953 = vmatprep.mubr.msk.f32.mxu0 %vm419_vm1, %v18643_v36  ;;  %v18812_v59 = vld [vmem:[%s17153_s25 + $0x42] sm:$0xff] }
 0x1ae   : > { %v18797_v17 = vadd.f32 %v15690_v7, %v2598_v1  ;;  %15991 = vmatprep.mubr.msk.f32.mxu1 %vm419_vm1, %v18802_v53  ;;  %v2510_v29 = vpop.f32.mrf.mxu0 }
 0x1af   : > { %v2764_v16 = vpop.f32.mrf.mxu1  ;;  %v2605_v27 = vadd.f32 %v2510_v29, %v18586_v24  ;;  %v18822_v24 = vld [vmem:[%s17153_s25 + $0x52] sm:$0xff] }
 0x1b0   : > { %v18807_v13 = vadd.f32 %v2764_v16, %v2597_v41  ;;  %v15655_v14 = vpop.f32.mrf.mxu0  ;;  %15954 = vmatmul.mubr.msk.f32.gmra.mxu0 %vm419_vm1, %v18665_v2 }
 0x1b1   : > { %v15693_v18 = vpop.f32.mrf.mxu1  ;;  %15992 = vmatmul.mubr.msk.f32.gmra.mxu1 %vm419_vm1, %v18812_v59  ;;  %v2608_v1 = vadd.f32 %v15655_v14, %v18593_v55  ;;  %15956 = vmatprep.mubr.msk.f32.mxu0 %vm419_vm1, %v18670_v60 }
 0x1b2   : > { %v18817_v30 = vadd.f32 %v15693_v18, %v2600_v54  ;;  %15994 = vmatprep.mubr.msk.f32.mxu1 %vm419_vm1, %v18822_v24  ;;  %v2520_v41 = vpop.f32.mrf.mxu0  ;;  %v18832_v54 = vld [vmem:[%s17153_s25 + $0x62] sm:$0xff] }
 0x1b3   : > { %v2774_v43 = vpop.f32.mrf.mxu1  ;;  %v2607_v7 = vadd.f32 %v2520_v41, %v18606_v44  ;;  %v18842_v44 = vld [vmem:[%s17153_s25 + $0x72] sm:$0xff] }
 0x1b4   : > { %v18827_v29 = vadd.f32 %v2774_v43, %v2599_v47  ;;  %v15658_v16 = vpop.f32.mrf.mxu0  ;;  %15957 = vmatmul.mubr.msk.f32.gmra.mxu0 %vm419_vm1, %v18689_v23  ;;  %v18847_v43 = vld [vmem:[%s17153_s25 + $0x1f1] sm:$0xff] }
 0x1b5   : > { %v15696_v55 = vpop.f32.mrf.mxu1  ;;  %15995 = vmatmul.mubr.msk.f32.gmra.mxu1 %vm419_vm1, %v18832_v54  ;;  %v2610_v14 = vadd.f32 %v15658_v16, %v18613_v10  ;;  %15959 = vmatprep.mubr.msk.f32.mxu0 %vm419_vm1, %v18692_v5  ;;  %22573 = vst [vmem:[#allocation18_spill] sm:$0xff] %v18847_v43 }
 0x1b6   : > { %v18837_v18 = vadd.f32 %v15696_v55, %v2602_v51  ;;  %15997 = vmatprep.mubr.msk.f32.mxu1 %vm419_vm1, %v18842_v44  ;;  %v2530_v47 = vpop.f32.mrf.mxu0 }
 0x1b7   : > { %v2784_v41 = vpop.f32.mrf.mxu1  ;;  %v2609_v23 = vadd.f32 %v2530_v47, %v18626_v26  ;;  %v18864_v26 = vld [vmem:[%s17153_s25 + $0x201] sm:$0xff] }
 0x1b8   : > { %v18850_v60 = vadd.f32 %v2784_v41, %v2601_v32  ;;  %v15661_v10 = vpop.f32.mrf.mxu0  ;;  %15960 = vmatmul.mubr.msk.f32.gmra.mxu0 %vm419_vm1, %v18709_v21  ;;  %22574 = vst [vmem:[#allocation19_spill] sm:$0xff] %v18864_v26  ;;  %v18867_v41 = vld [vmem:[%s17153_s25 + $0x211] sm:$0xff] }
 0x1b9   : > { %v15699_v51 = vpop.f32.mrf.mxu1  ;;  %15998 = vmatmul.mubr.msk.f32.gmra.mxu1 %vm419_vm1, %v18298_v28  ;;  %v2612_v16 = vadd.f32 %v15661_v10, %v18633_v50  ;;  %15962 = vmatprep.mubr.msk.f32.mxu0 %vm419_vm1, %v18847_v43  ;;  %22575 = vst [vmem:[#allocation20_spill] sm:$0xff] %v18867_v41 }
 0x1ba   : > { %v18857_v55 = vadd.f32 %v15699_v51, %v2604_v40  ;;  %16000 = vmatprep.mubr.msk.f32.mxu1 %vm419_vm1, %v18847_v43  ;;  %v2540_v32 = vpop.f32.mrf.mxu0 }
 0x1bb   : > { %v2794_v47 = vpop.f32.mrf.mxu1  ;;  %v2611_v21 = vadd.f32 %v2540_v32, %v18646_v25  ;;  %v18884_v25 = vld [vmem:[%s17153_s25 + $0x221] sm:$0xff] }
 0x1bc   : > { %v18870_v5 = vadd.f32 %v2794_v47, %v2603_v38  ;;  %v15664_v50 = vpop.f32.mrf.mxu0  ;;  %15963 = vmatmul.mubr.msk.f32.gmra.mxu0 %vm419_vm1, %v18864_v26  ;;  %22576 = vst [vmem:[#allocation21_spill] sm:$0xff] %v18884_v25  ;;  %v18887_v47 = vld [vmem:[%s17153_s25 + $0x231] sm:$0xff] }
 0x1bd   : > { %v15702_v40 = vpop.f32.mrf.mxu1  ;;  %16001 = vmatmul.mubr.msk.f32.gmra.mxu1 %vm419_vm1, %v18864_v26  ;;  %v2614_v10 = vadd.f32 %v15664_v50, %v18657_v22  ;;  %15965 = vmatprep.mubr.msk.f32.mxu0 %vm419_vm1, %v18867_v41  ;;  %22577 = vst [vmem:[#allocation22_spill] sm:$0xff] %v18887_v47 }
 0x1be   : > { %v18877_v51 = vadd.f32 %v15702_v40, %v2606_v11  ;;  %16003 = vmatprep.mubr.msk.f32.mxu1 %vm419_vm1, %v18867_v41  ;;  %v2550_v38 = vpop.f32.mrf.mxu0 }
 0x1bf   : > { %v2804_v32 = vpop.f32.mrf.mxu1  ;;  %v2613_v26 = vadd.f32 %v2550_v38, %v18674_v42  ;;  %v18904_v42 = vld [vmem:[%s17153_s25 + $0x241] sm:$0xff] }
 0x1c0   : > { %v18890_v43 = vadd.f32 %v2804_v32, %v2605_v27  ;;  %v15667_v22 = vpop.f32.mrf.mxu0  ;;  %15966 = vmatmul.mubr.msk.f32.gmra.mxu0 %vm419_vm1, %v18884_v25  ;;  %22578 = vst [vmem:[#allocation6_spill] sm:$0xff] %v18904_v42  ;;  %v18907_v32 = vld [vmem:[%s17153_s25 + $0x251] sm:$0xff] }
 0x1c1   : > { %v15705_v11 = vpop.f32.mrf.mxu1  ;;  %16004 = vmatmul.mubr.msk.f32.gmra.mxu1 %vm419_vm1, %v18884_v25  ;;  %v2616_v50 = vadd.f32 %v15667_v22, %v18681_v45  ;;  %15968 = vmatprep.mubr.msk.f32.mxu0 %vm419_vm1, %v18887_v47  ;;  %22579 = vst [vmem:[#allocation23_spill] sm:$0xff] %v18907_v32 }
 0x1c2   : > { %v18897_v40 = vadd.f32 %v15705_v11, %v2608_v1  ;;  %16006 = vmatprep.mubr.msk.f32.mxu1 %vm419_vm1, %v18887_v47  ;;  %v2560_v27 = vpop.f32.mrf.mxu0 }
 0x1c3   : > { %v2814_v38 = vpop.f32.mrf.mxu1  ;;  %v2615_v25 = vadd.f32 %v2560_v27, %v18694_v49  ;;  %v18924_v49 = vld [vmem:[%s17153_s25 + $0x261] sm:$0xff] }
 0x1c4   : > { %v18910_v41 = vadd.f32 %v2814_v38, %v2607_v7  ;;  %v15670_v45 = vpop.f32.mrf.mxu0  ;;  %15969 = vmatmul.mubr.msk.f32.gmra.mxu0 %vm419_vm1, %v18904_v42  ;;  %22580 = vst [vmem:[#allocation24_spill] sm:$0xff] %v18924_v49  ;;  %v18927_v38 = vld [vmem:[%s17153_s25 + $0x152] sm:$0xff] }
 0x1c5   : > { %v15708_v1 = vpop.f32.mrf.mxu1  ;;  %16007 = vmatmul.mubr.msk.f32.gmra.mxu1 %vm419_vm1, %v18904_v42  ;;  %v2618_v22 = vadd.f32 %v15670_v45, %v18701_v15  ;;  %15971 = vmatprep.mubr.msk.f32.mxu0 %vm419_vm1, %v18907_v32 }
 0x1c6   : > { %v18917_v11 = vadd.f32 %v15708_v1, %v2610_v14  ;;  %16009 = vmatprep.mubr.msk.f32.mxu1 %vm419_vm1, %v18907_v32  ;;  %v2570_v7 = vpop.f32.mrf.mxu0 }
 0x1c7   : > { %v2824_v27 = vpop.f32.mrf.mxu1  ;;  %v2617_v42 = vadd.f32 %v2570_v7, %v18711_v62 }
 0x1c8   : > { %v18930_v47 = vadd.f32 %v2824_v27, %v2609_v23  ;;  %v15673_v15 = vpop.f32.mrf.mxu0  ;;  %15972 = vmatmul.mubr.msk.f32.gmra.mxu0 %vm419_vm1, %v18924_v49  ;;  %v18944_v23 = vld [vmem:[%s17153_s25 + $0x162] sm:$0xff]  ;;  %v18947_v27 = vld [vmem:[%s17153_s25 + $0x172] sm:$0xff] }
 0x1c9   : > { %v15711_v14 = vpop.f32.mrf.mxu1  ;;  %16010 = vmatmul.mubr.msk.f32.gmra.mxu1 %vm419_vm1, %v18924_v49  ;;  %v2620_v45 = vadd.f32 %v15673_v15, %v18718_v58  ;;  %16026 = vmatprep.mubr.msk.f32.mxu0 %vm419_vm1, %v18782_v19  ;;  %v18955_v58 = vld [vmem:[%s22310_s1 + $0x48] sm:$0xf] }
 0x1ca   : > { %v18937_v1 = vadd.f32 %v15711_v14, %v2612_v16  ;;  %16012 = vmatprep.mubr.msk.f32.mxu1 %vm419_vm1, %v18927_v38  ;;  %v2580_v62 = vpop.f32.mrf.mxu0 }
 0x1cb   : > { %v2834_v7 = vpop.f32.mrf.mxu1  ;;  %v2619_v49 = vadd.f32 %v2580_v62, %v18724_v48 }
 0x1cc   : > { %v18950_v32 = vadd.f32 %v2834_v7, %v2611_v21  ;;  %v15728_v15 = vpop.f32.mrf.mxu0  ;;  %16027 = vmatmul.mubr.msk.f32.vlgmr.msra.gmra.mxu0 %vm419_vm1, %v18792_v56  ;;  %v18969_v21 = vld [vmem:[%s17153_s25 + $0x182] sm:$0xff]  ;;  %v18974_v56 = vld [vmem:[%s17153_s25 + $0x192] sm:$0xff] }
 0x1cd   : > { %v15714_v16 = vpop.f32.mrf.mxu1  ;;  %16013 = vmatmul.mubr.msk.f32.gmra.mxu1 %vm419_vm1, %v18944_v23  ;;  %v3178_v14 = vadd.f32 %v15728_v15, %v18736_v9  ;;  %16125 = vmatpush3.msk.msra.mxu0 %vm516_vm0, %v18651_v63 }
 0x1ce   : > { %v18961_v19 = vadd.f32 %v15714_v16, %v2614_v10  ;;  %16015 = vmatprep.mubr.msk.f32.mxu1 %vm419_vm1, %v18947_v27  ;;  %v3018_v62 = vpop.f32.mrf.mxu0  ;;  %16029 = vmatprep.mubr.msk.f32.mxu0 %vm419_vm1, %v18802_v53 }
 0x1cf   : > { %v2844_v48 = vpop.f32.mrf.mxu1  ;;  %16224 = vmatprep.subr.msk.mxu0 %vm516_vm0, %v18955_v58  ;;  %v3177_v63 = vadd.f32 %v3018_v62, %v18744_v20  ;;  %v18993_v20 = vld [vmem:[%s17153_s25 + $0x1a2] sm:$0xff] }
 0x1d0   : > { %v18978_v9 = vadd.f32 %v2844_v48, %v2613_v26  ;;  %v15731_v7 = vpop.f32.mrf.mxu0  ;;  %16030 = vmatmul.mubr.msk.f32.gmra.mxu0 %vm419_vm1, %v18812_v59  ;;  %v18996_v48 = vld [vmem:[%s17153_s25 + $0x1b2] sm:$0xff] }
 0x1d1   : > { %v15717_v10 = vpop.f32.mrf.mxu1  ;;  %16016 = vmatmul.mubr.msk.f32.gmra.mxu1 %vm419_vm1, %v18969_v21  ;;  %v3180_v53 = vadd.f32 %v15731_v7, %v18752_v4  ;;  %16032 = vmatprep.mubr.msk.f32.mxu0 %vm419_vm1, %v18822_v24 }
 0x1d2   : > { %v18985_v16 = vadd.f32 %v15717_v10, %v2616_v50  ;;  %16018 = vmatprep.mubr.msk.f32.mxu1 %vm419_vm1, %v18974_v56  ;;  %v3028_v15 = vpop.f32.mrf.mxu0 }
 0x1d3   : > { %v2854_v26 = vpop.f32.mrf.mxu1  ;;  %v3179_v59 = vadd.f32 %v3028_v15, %v18758_v3  ;;  %v19013_v3 = vld [vmem:[%s17153_s25 + $0x1c2] sm:$0xff] }
 0x1d4   : > { %v18998_v62 = vadd.f32 %v2854_v26, %v2615_v25  ;;  %v15734_v10 = vpop.f32.mrf.mxu0  ;;  %16033 = vmatmul.mubr.msk.f32.gmra.mxu0 %vm419_vm1, %v18832_v54  ;;  %22581 = vst [vmem:[#allocation25_spill] sm:$0xff] %v19013_v3 }
 0x1d5   : > { %v15720_v50 = vpop.f32.mrf.mxu1  ;;  %16019 = vmatmul.mubr.msk.f32.gmra.mxu1 %vm419_vm1, %v18993_v20  ;;  %v3182_v24 = vadd.f32 %v15734_v10, %v18764_v0  ;;  %16035 = vmatprep.mubr.msk.f32.mxu0 %vm419_vm1, %v18842_v44 }
 0x1d6   : > { %v19005_v4 = vadd.f32 %v15720_v50, %v2618_v22  ;;  %16021 = vmatprep.mubr.msk.f32.mxu1 %vm419_vm1, %v18996_v48  ;;  %v3038_v7 = vpop.f32.mrf.mxu0  ;;  %v17053_v50 = vld [vmem:[%s17153_s25 + $0xb2] sm:$0xff] }
 0x1d7   : > { %v2864_v25 = vpop.f32.mrf.mxu1  ;;  %v3181_v15 = vadd.f32 %v3038_v7, %v18770_v33 }
 0x1d8   : > { %v19015_v26 = vadd.f32 %v2864_v25, %v2617_v42  ;;  %v15737_v22 = vpop.f32.mrf.mxu0  ;;  %16036 = vmatmul.mubr.msk.f32.gmra.mxu0 %vm419_vm1, %v18298_v28  ;;  %v17054_v28 = vld [vmem:[%s17153_s25 + $0xc2] sm:$0xff] }
 0x1d9   : > { %v15723_v54 = vpop.f32.mrf.mxu1  ;;  %16022 = vmatmul.mubr.msk.f32.gmra.mxu1 %vm419_vm1, %v19013_v3  ;;  %v3184_v44 = vadd.f32 %v15737_v22, %v18777_v57  ;;  %16038 = vmatprep.mubr.msk.f32.mxu0 %vm419_vm1, %v17053_v50  ;;  %v19039_v57 = vld [vmem:[%s22310_s1 + $0x4c] sm:$0xf] }
 0x1da   : > { %v19022_v0 = vadd.f32 %v15723_v54, %v2620_v45  ;;  %16076 = vmatprep.mubr.msk.f32.mxu1 %vm419_vm1, %v18431_v12  ;;  %v3048_v42 = vpop.f32.mrf.mxu0  ;;  %v17055_v45 = vld [vmem:[%s17153_s25 + $0xd2] sm:$0xff] }
 0x1db   : > { %v2874_v33 = vpop.f32.mrf.mxu1  ;;  %v3183_v25 = vadd.f32 %v3048_v42, %v18787_v35 }
 0x1dc   : > { %v19029_v10 = vadd.f32 %v2874_v33, %v2619_v49  ;;  %v15740_v7 = vpop.f32.mrf.mxu0  ;;  %16039 = vmatmul.mubr.msk.f32.gmra.mxu0 %vm419_vm1, %v17054_v28 }
 0x1dd   : > { %v15778_v2 = vpop.f32.mrf.mxu1  ;;  %16077 = vmatmul.mubr.msk.f32.vlgmr.msra.gmra.mxu1 %vm419_vm1, %v18455_v39  ;;  %v3186_v12 = vadd.f32 %v15740_v7, %v18797_v17  ;;  %16041 = vmatprep.mubr.msk.f32.mxu0 %vm419_vm1, %v17055_v45  ;;  %v17059_v45 = vld [vmem:[%s17153_s25 + $0x112] sm:$0xff] }
 0x1de   : > { %v19042_v49 = vadd.f32 %v15778_v2, %v3178_v14  ;;  %16079 = vmatprep.mubr.msk.f32.mxu1 %vm419_vm1, %v18458_v6  ;;  %v3058_v35 = vpop.f32.mrf.mxu0  ;;  %16175 = vmatpush3.msk.msra.mxu1 %vm516_vm0, %v18733_v31  ;;  %v17056_v14 = vld [vmem:[%s17153_s25 + $0xe2] sm:$0xff] }
 0x1df   : > { %v3312_v54 = vpop.f32.mrf.mxu1  ;;  %v3185_v39 = vadd.f32 %v3058_v35, %v18807_v13  ;;  %16274 = vmatprep.subr.msk.mxu1 %vm516_vm0, %v19039_v57  ;;  %v17057_v13 = vld [vmem:[%s17153_s25 + $0xf2] sm:$0xff] }
 0x1e0   : > { %v19051_v22 = vadd.f32 %v3312_v54, %v3177_v63  ;;  %v15743_v2 = vpop.f32.mrf.mxu0  ;;  %16042 = vmatmul.mubr.msk.f32.gmra.mxu0 %vm419_vm1, %v17056_v14 }
 0x1e1   : > { %v15781_v17 = vpop.f32.mrf.mxu1  ;;  %16080 = vmatmul.mubr.msk.f32.gmra.mxu1 %vm419_vm1, %v18483_v8  ;;  %v3188_v6 = vadd.f32 %v15743_v2, %v18817_v30  ;;  %16044 = vmatprep.mubr.msk.f32.mxu0 %vm419_vm1, %v17057_v13  ;;  %v17058_v8 = vld [vmem:[%s17153_s25 + $0x102] sm:$0xff] }
 0x1e2   : > { %v19060_v31 = vadd.f32 %v15781_v17, %v3180_v53  ;;  %16082 = vmatprep.mubr.msk.f32.mxu1 %vm419_vm1, %v18486_v37  ;;  %v3068_v63 = vpop.f32.mrf.mxu0  ;;  %v22582_v17 = vld [vmem:[#allocation8_spill] sm:$0xff] }
 0x1e3   : > { %v3322_v50 = vpop.f32.mrf.mxu1  ;;  %v3187_v33 = vadd.f32 %v3068_v63, %v18827_v29 }
 0x1e4   : > { %v19067_v42 = vadd.f32 %v3322_v50, %v3179_v59  ;;  %v15746_v7 = vpop.f32.mrf.mxu0  ;;  %16045 = vmatmul.mubr.msk.f32.gmra.mxu0 %vm419_vm1, %v17058_v8 }
 0x1e5   : > { %v15784_v28 = vpop.f32.mrf.mxu1  ;;  %16083 = vmatmul.mubr.msk.f32.gmra.mxu1 %vm419_vm1, %v18509_v46  ;;  %v3190_v30 = vadd.f32 %v15746_v7, %v18837_v18  ;;  %16047 = vmatprep.mubr.msk.f32.mxu0 %vm419_vm1, %v17059_v45  ;;  %v22583_v46 = vld [vmem:[#allocation9_spill] sm:$0xff] }
 0x1e6   : > { %v19074_v53 = vadd.f32 %v15784_v28, %v3182_v24  ;;  %16085 = vmatprep.mubr.msk.f32.mxu1 %vm419_vm1, %v18512_v34  ;;  %v3078_v37 = vpop.f32.mrf.mxu0  ;;  %v22584_v34 = vld [vmem:[#allocation10_spill] sm:$0xff]  ;;  %v22586_v28 = vld [vmem:[#allocation12_spill] sm:$0xff] }
 0x1e7   : > { %v3332_v29 = vpop.f32.mrf.mxu1  ;;  %v3189_v59 = vadd.f32 %v3078_v37, %v18850_v60 }
 0x1e8   : > { %v19081_v35 = vadd.f32 %v3332_v29, %v3181_v15  ;;  %v15749_v54 = vpop.f32.mrf.mxu0  ;;  %16048 = vmatmul.mubr.msk.f32.gmra.mxu0 %vm419_vm1, %v22582_v17 }
 0x1e9   : > { %v15787_v2 = vpop.f32.mrf.mxu1  ;;  %16086 = vmatmul.mubr.msk.f32.gmra.mxu1 %vm419_vm1, %v22583_v46  ;;  %v3192_v18 = vadd.f32 %v15749_v54, %v18857_v55  ;;  %16050 = vmatprep.mubr.msk.f32.mxu0 %vm419_vm1, %v18927_v38  ;;  %v22585_v55 = vld [vmem:[#allocation11_spill] sm:$0xff] }
 0x1ea   : > { %v19088_v24 = vadd.f32 %v15787_v2, %v3184_v44  ;;  %16088 = vmatprep.mubr.msk.f32.mxu1 %vm419_vm1, %v22584_v34  ;;  %v3088_v60 = vpop.f32.mrf.mxu0  ;;  %v22588_v2 = vld [vmem:[#allocation28_spill] sm:$0xff] }
 0x1eb   : > { %v3342_v15 = vpop.f32.mrf.mxu1  ;;  %v3191_v14 = vadd.f32 %v3088_v60, %v18870_v5 }
 0x1ec   : > { %v19095_v13 = vadd.f32 %v3342_v15, %v3183_v25  ;;  %v15752_v63 = vpop.f32.mrf.mxu0  ;;  %16051 = vmatmul.mubr.msk.f32.gmra.mxu0 %vm419_vm1, %v18944_v23 }
 0x1ed   : > { %v15790_v50 = vpop.f32.mrf.mxu1  ;;  %16089 = vmatmul.mubr.msk.f32.gmra.mxu1 %vm419_vm1, %v22585_v55  ;;  %v3194_v44 = vadd.f32 %v15752_v63, %v18877_v51  ;;  %16053 = vmatprep.mubr.msk.f32.mxu0 %vm419_vm1, %v18947_v27  ;;  %v22587_v51 = vld [vmem:[#allocation13_spill] sm:$0xff] }
 0x1ee   : > { %v19102_v7 = vadd.f32 %v15790_v50, %v3186_v12  ;;  %16091 = vmatprep.mubr.msk.f32.mxu1 %vm419_vm1, %v22586_v28  ;;  %v3098_v5 = vpop.f32.mrf.mxu0 }
 0x1ef   : > { %v3352_v25 = vpop.f32.mrf.mxu1  ;;  %v3193_v8 = vadd.f32 %v3098_v5, %v18890_v43  ;;  %v19141_v5 = vld [vmem:[%s17153_s25 + $0x1f2] sm:$0xff] }
 0x1f0   : > { %v19109_v45 = vadd.f32 %v3352_v25, %v3185_v39  ;;  %v15755_v37 = vpop.f32.mrf.mxu0  ;;  %16054 = vmatmul.mubr.msk.f32.gmra.mxu0 %vm419_vm1, %v18969_v21  ;;  %22591 = vst [vmem:[#allocation26_spill] sm:$0xff] %v19141_v5  ;;  %v19144_v25 = vld [vmem:[%s17153_s25 + $0x20] sm:$0xff] }
 0x1f1   : > { %v15793_v29 = vpop.f32.mrf.mxu1  ;;  %16092 = vmatmul.mubr.msk.f32.gmra.mxu1 %vm419_vm1, %v22587_v51  ;;  %v3196_v12 = vadd.f32 %v15755_v37, %v18897_v40  ;;  %16056 = vmatprep.mubr.msk.f32.mxu0 %vm419_vm1, %v18974_v56  ;;  %v22589_v40 = vld [vmem:[#allocation4_spill] sm:$0xff]  ;;  %22592 = vst [vmem:[#allocation27_spill] sm:$0xff] %v19144_v25 }
 0x1f2   : > { %v19116_v54 = vadd.f32 %v15793_v29, %v3188_v6  ;;  %16094 = vmatprep.mubr.msk.f32.mxu1 %vm419_vm1, %v22588_v2  ;;  %v3108_v43 = vpop.f32.mrf.mxu0 }
 0x1f3   : > { %v3362_v39 = vpop.f32.mrf.mxu1  ;;  %v19123_v17 = vadd.f32 %v3108_v43, %v18910_v41  ;;  %v22590_v41 = vld [vmem:[#allocation29_spill] sm:$0xff]  ;;  %v22593_v43 = vld [vmem:[#allocation14_spill] sm:$0xff] }
 0x1f4   : > { %v19125_v46 = vadd.f32 %v3362_v39, %v3187_v33  ;;  %v15758_v60 = vpop.f32.mrf.mxu0  ;;  %16057 = vmatmul.mubr.msk.f32.gmra.mxu0 %vm419_vm1, %v18993_v20 }
 0x1f5   : > { %v15796_v15 = vpop.f32.mrf.mxu1  ;;  %16095 = vmatmul.mubr.msk.f32.gmra.mxu1 %vm419_vm1, %v22589_v40  ;;  %v19132_v6 = vadd.f32 %v15758_v60, %v18917_v11  ;;  %16059 = vmatprep.mubr.msk.f32.mxu0 %vm419_vm1, %v18996_v48 }
 0x1f6   : > { %v19134_v63 = vadd.f32 %v15796_v15, %v3190_v30  ;;  %16097 = vmatprep.mubr.msk.f32.mxu1 %vm419_vm1, %v22590_v41  ;;  %v3118_v33 = vpop.f32.mrf.mxu0 }
 0x1f7   : > { %v3372_v50 = vpop.f32.mrf.mxu1  ;;  %v19147_v11 = vadd.f32 %v3118_v33, %v18930_v47  ;;  %v19165_v47 = vld [vmem:[%s17153_s25 + $0x202] sm:$0xff] }
 0x1f8   : > { %v19149_v30 = vadd.f32 %v3372_v50, %v3189_v59  ;;  %v15761_v37 = vpop.f32.mrf.mxu0  ;;  %16060 = vmatmul.mubr.msk.f32.gmra.mxu0 %vm419_vm1, %v19013_v3  ;;  %22594 = vst [vmem:[#allocation30_spill] sm:$0xff] %v19165_v47  ;;  %v19168_v59 = vld [vmem:[%s17153_s25 + $0x30] sm:$0xff] }
 0x1f9   : > { %v15799_v29 = vpop.f32.mrf.mxu1  ;;  %16098 = vmatmul.mubr.msk.f32.gmra.mxu1 %vm419_vm1, %v22593_v43  ;;  %v19156_v39 = vadd.f32 %v15761_v37, %v18937_v1  ;;  %16062 = vmatprep.mubr.msk.f32.mxu0 %vm419_vm1, %v19141_v5  ;;  %22595 = vst [vmem:[#allocation31_spill] sm:$0xff] %v19168_v59  ;;  %v19171_v50 = vld [vmem:[%s17153_s25 + $0x212] sm:$0xff]  ;;  %v19174_v1 = vld [vmem:[%s17153_s25 + $0x40] sm:$0xff] }
 0x1fa   : > { %v19158_v60 = vadd.f32 %v15799_v29, %v3192_v18  ;;  %16100 = vmatprep.mubr.msk.f32.mxu1 %vm419_vm1, %v19144_v25  ;;  %v3128_v15 = vpop.f32.mrf.mxu0  ;;  %22596 = vst [vmem:[#allocation3_spill] sm:$0xff] %v19171_v50  ;;  %22597 = vst [vmem:[#allocation8_spill] sm:$0xff] %v19174_v1 }
 0x1fb   : > { %v3382_v33 = vpop.f32.mrf.mxu1  ;;  %v3199_v18 = vadd.f32 %v3128_v15, %v18950_v32  ;;  %v19191_v32 = vld [vmem:[%s17153_s25 + $0x222] sm:$0xff] }
 0x1fc   : > { %v19177_v37 = vadd.f32 %v3382_v33, %v3191_v14  ;;  %v15764_v29 = vpop.f32.mrf.mxu0  ;;  %16063 = vmatmul.mubr.msk.f32.gmra.mxu0 %vm419_vm1, %v19165_v47  ;;  %22598 = vst [vmem:[#allocation9_spill] sm:$0xff] %v19191_v32  ;;  %v19194_v14 = vld [vmem:[%s17153_s25 + $0x50] sm:$0xff] }
 0x1fd   : > { %v15802_v25 = vpop.f32.mrf.mxu1  ;;  %16101 = vmatmul.mubr.msk.f32.gmra.mxu1 %vm419_vm1, %v19168_v59  ;;  %v3202_v5 = vadd.f32 %v15764_v29, %v18961_v19  ;;  %16065 = vmatprep.mubr.msk.f32.mxu0 %vm419_vm1, %v19171_v50  ;;  %22599 = vst [vmem:[#allocation10_spill] sm:$0xff] %v19194_v14  ;;  %v19197_v47 = vld [vmem:[%s17153_s25 + $0x232] sm:$0xff]  ;;  %v19200_v19 = vld [vmem:[%s17153_s25 + $0x60] sm:$0xff] }
 0x1fe   : > { %v19184_v3 = vadd.f32 %v15802_v25, %v3194_v44  ;;  %16103 = vmatprep.mubr.msk.f32.mxu1 %vm419_vm1, %v19174_v1  ;;  %v3138_v15 = vpop.f32.mrf.mxu0  ;;  %22600 = vst [vmem:[#allocation11_spill] sm:$0xff] %v19197_v47  ;;  %22601 = vst [vmem:[#allocation12_spill] sm:$0xff] %v19200_v19 }
 0x1ff   : > { %v3392_v33 = vpop.f32.mrf.mxu1  ;;  %v3201_v44 = vadd.f32 %v3138_v15, %v18978_v9  ;;  %v19217_v9 = vld [vmem:[%s17153_s25 + $0x242] sm:$0xff] }
 0x200   : > { %v19203_v25 = vadd.f32 %v3392_v33, %v3193_v8  ;;  %v15767_v29 = vpop.f32.mrf.mxu0  ;;  %16066 = vmatmul.mubr.msk.f32.gmra.mxu0 %vm419_vm1, %v19191_v32  ;;  %22602 = vst [vmem:[#allocation13_spill] sm:$0xff] %v19217_v9  ;;  %v19220_v8 = vld [vmem:[%s17153_s25 + $0x70] sm:$0xff] }
 0x201   : > { %v15805_v1 = vpop.f32.mrf.mxu1  ;;  %16104 = vmatmul.mubr.msk.f32.gmra.mxu1 %vm419_vm1, %v19194_v14  ;;  %v3204_v59 = vadd.f32 %v15767_v29, %v18985_v16  ;;  %16068 = vmatprep.mubr.msk.f32.mxu0 %vm419_vm1, %v19197_v47  ;;  %22603 = vst [vmem:[#allocation28_spill] sm:$0xff] %v19220_v8  ;;  %v19223_v32 = vld [vmem:[%s17153_s25 + $0x252] sm:$0xff]  ;;  %v19226_v16 = vld [vmem:[%s17153_s25 + $0x80] sm:$0xff] }
 0x202   : > { %v19210_v50 = vadd.f32 %v15805_v1, %v3196_v12  ;;  %16106 = vmatprep.mubr.msk.f32.mxu1 %vm419_vm1, %v19200_v19  ;;  %v3148_v15 = vpop.f32.mrf.mxu0  ;;  %22604 = vst [vmem:[#allocation4_spill] sm:$0xff] %v19223_v32  ;;  %22605 = vst [vmem:[#allocation29_spill] sm:$0xff] %v19226_v16 }
 0x203   : > { %v3402_v33 = vpop.f32.mrf.mxu1  ;;  %v3203_v12 = vadd.f32 %v3148_v15, %v18998_v62  ;;  %v19245_v62 = vld [vmem:[%s17153_s25 + $0x262] sm:$0xff] }
 0x204   : > { %v19230_v1 = vadd.f32 %v3402_v33, %v19123_v17  ;;  %v15770_v29 = vpop.f32.mrf.mxu0  ;;  %16069 = vmatmul.mubr.msk.f32.gmra.mxu0 %vm419_vm1, %v19217_v9  ;;  %22606 = vst [vmem:[#allocation14_spill] sm:$0xff] %v19245_v62  ;;  %v19248_v17 = vld [vmem:[%s17153_s25 + $0x90] sm:$0xff] }
 0x205   : > { %v15808_v19 = vpop.f32.mrf.mxu1  ;;  %16107 = vmatmul.mubr.msk.f32.gmra.mxu1 %vm419_vm1, %v19220_v8  ;;  %v3206_v14 = vadd.f32 %v15770_v29, %v19005_v4  ;;  %16071 = vmatprep.mubr.msk.f32.mxu0 %vm419_vm1, %v19223_v32  ;;  %22607 = vst [vmem:[#allocation32_spill] sm:$0xff] %v19248_v17  ;;  %v19251_v8 = vld [vmem:[%s17153_s25 + $0xc0] sm:$0xff] }
 0x206   : > { %v19238_v47 = vadd.f32 %v15808_v19, %v19132_v6  ;;  %16109 = vmatprep.mubr.msk.f32.mxu1 %vm419_vm1, %v19226_v16  ;;  %v3158_v15 = vpop.f32.mrf.mxu0 }
 0x207   : > { %v3412_v33 = vpop.f32.mrf.mxu1  ;;  %v3205_v4 = vadd.f32 %v3158_v15, %v19015_v26  ;;  %v19270_v26 = vld [vmem:[%s17153_s25 + $0xd0] sm:$0xff] }
 0x208   : > { %v19255_v6 = vadd.f32 %v3412_v33, %v19147_v11  ;;  %v15773_v19 = vpop.f32.mrf.mxu0  ;;  %16072 = vmatmul.mubr.msk.f32.gmra.mxu0 %vm419_vm1, %v19245_v62  ;;  %v19273_v33 = vld [vmem:[%s17153_s25 + $0xe0] sm:$0xff] }
 0x209   : > { %v15811_v29 = vpop.f32.mrf.mxu1  ;;  %16110 = vmatmul.mubr.msk.f32.gmra.mxu1 %vm419_vm1, %v19248_v17  ;;  %v3208_v16 = vadd.f32 %v15773_v19, %v19022_v0  ;;  %16126 = vmatprep.mubr.msk.f32.mxu0 %vm419_vm1, %v22584_v34 }
 0x20a   : > { %v19263_v32 = vadd.f32 %v15811_v29, %v19156_v39  ;;  %16112 = vmatprep.mubr.msk.f32.mxu1 %vm419_vm1, %v19251_v8  ;;  %v3168_v11 = vpop.f32.mrf.mxu0  ;;  %v19281_v39 = vld [vmem:[%s22310_s1 + $0x50] sm:$0xf] }
 0x20b   : > { %v3422_v15 = vpop.f32.mrf.mxu1  ;;  %v3207_v17 = vadd.f32 %v3168_v11, %v19029_v10  ;;  %v19295_v10 = vld [vmem:[%s17153_s25 + $0xf0] sm:$0xff] }
 0x20c   : > { %v19276_v0 = vadd.f32 %v3422_v15, %v3199_v18  ;;  %v15828_v29 = vpop.f32.mrf.mxu0  ;;  %16127 = vmatmul.mubr.msk.f32.vlgmr.msra.gmra.mxu0 %vm419_vm1, %v22585_v55  ;;  %22608 = vst [vmem:[#allocation33_spill] sm:$0xff] %v19295_v10  ;;  %v19300_v55 = vld [vmem:[%s17153_s25 + $0x100] sm:$0xff] }
 0x20d   : > { %v15814_v19 = vpop.f32.mrf.mxu1  ;;  %16113 = vmatmul.mubr.msk.f32.gmra.mxu1 %vm419_vm1, %v19270_v26  ;;  %v3800_v62 = vadd.f32 %v15828_v29, %v19042_v49  ;;  %16225 = vmatpush3.msk.msra.mxu0 %vm516_vm0, %v18955_v58  ;;  %22609 = vst [vmem:[#allocation34_spill] sm:$0xff] %v19300_v55 }
 0x20e   : > { %v19287_v34 = vadd.f32 %v15814_v19, %v3202_v5  ;;  %16115 = vmatprep.mubr.msk.f32.mxu1 %vm419_vm1, %v19273_v33  ;;  %v3640_v11 = vpop.f32.mrf.mxu0  ;;  %16129 = vmatprep.mubr.msk.f32.mxu0 %vm419_vm1, %v22586_v28 }
 0x20f   : > { %v3432_v18 = vpop.f32.mrf.mxu1  ;;  %16324 = vmatprep.subr.msk.mxu0 %vm516_vm0, %v19281_v39  ;;  %v3799_v58 = vadd.f32 %v3640_v11, %v19051_v22  ;;  %v19319_v22 = vld [vmem:[%s17153_s25 + $0x110] sm:$0xff] }
 0x210   : > { %v19304_v49 = vadd.f32 %v3432_v18, %v3201_v44  ;;  %v15831_v15 = vpop.f32.mrf.mxu0  ;;  %16130 = vmatmul.mubr.msk.f32.gmra.mxu0 %vm419_vm1, %v22587_v51  ;;  %22610 = vst [vmem:[#allocation35_spill] sm:$0xff] %v19319_v22  ;;  %v19322_v18 = vld [vmem:[%s17153_s25 + $0x120] sm:$0xff] }
 0x211   : > { %v15817_v5 = vpop.f32.mrf.mxu1  ;;  %16116 = vmatmul.mubr.msk.f32.gmra.mxu1 %vm419_vm1, %v19295_v10  ;;  %v3802_v28 = vadd.f32 %v15831_v15, %v19060_v31  ;;  %16132 = vmatprep.mubr.msk.f32.mxu0 %vm419_vm1, %v22588_v2  ;;  %22611 = vst [vmem:[#allocation36_spill] sm:$0xff] %v19322_v18 }
 0x212   : > { %v19311_v19 = vadd.f32 %v15817_v5, %v3204_v59  ;;  %16118 = vmatprep.mubr.msk.f32.mxu1 %vm419_vm1, %v19300_v55  ;;  %v3650_v29 = vpop.f32.mrf.mxu0 }
 0x213   : > { %v3442_v44 = vpop.f32.mrf.mxu1  ;;  %v3801_v51 = vadd.f32 %v3650_v29, %v19067_v42 }
 0x214   : > { %v19324_v11 = vadd.f32 %v3442_v44, %v3203_v12  ;;  %v15834_v5 = vpop.f32.mrf.mxu0  ;;  %16133 = vmatmul.mubr.msk.f32.gmra.mxu0 %vm419_vm1, %v22589_v40  ;;  %v19339_v12 = vld [vmem:[%s17153_s25 + $0x130] sm:$0xff] }
 0x215   : > { %v15820_v59 = vpop.f32.mrf.mxu1  ;;  %16119 = vmatmul.mubr.msk.f32.gmra.mxu1 %vm419_vm1, %v19319_v22  ;;  %v3804_v2 = vadd.f32 %v15834_v5, %v19074_v53  ;;  %16135 = vmatprep.mubr.msk.f32.mxu0 %vm419_vm1, %v22590_v41  ;;  %22612 = vst [vmem:[#allocation37_spill] sm:$0xff] %v19339_v12 }
 0x216   : > { %v19331_v31 = vadd.f32 %v15820_v59, %v3206_v14  ;;  %16121 = vmatprep.mubr.msk.f32.mxu1 %vm419_vm1, %v19322_v18  ;;  %v3660_v15 = vpop.f32.mrf.mxu0 }
 0x217   : > { %v3452_v42 = vpop.f32.mrf.mxu1  ;;  %v3803_v29 = vadd.f32 %v3660_v15, %v19081_v35 }
 0x218   : > { %v19341_v44 = vadd.f32 %v3452_v42, %v3205_v4  ;;  %v15837_v40 = vpop.f32.mrf.mxu0  ;;  %16136 = vmatmul.mubr.msk.f32.gmra.mxu0 %vm419_vm1, %v22593_v43 }
 0x219   : > { %v15823_v9 = vpop.f32.mrf.mxu1  ;;  %16122 = vmatmul.mubr.msk.f32.gmra.mxu1 %vm419_vm1, %v19339_v12  ;;  %v3806_v41 = vadd.f32 %v15837_v40, %v19088_v24  ;;  %16138 = vmatprep.mubr.msk.f32.mxu0 %vm419_vm1, %v18623_v61  ;;  %v19365_v24 = vld [vmem:[%s22310_s1 + $0x54] sm:$0xf] }
 0x21a   : > { %v19348_v53 = vadd.f32 %v15823_v9, %v3208_v16  ;;  %16176 = vmatprep.mubr.msk.f32.mxu1 %vm419_vm1, %v18623_v61  ;;  %v3670_v35 = vpop.f32.mrf.mxu0 }
 0x21b   : > { %v3462_v14 = vpop.f32.mrf.mxu1  ;;  %v3805_v59 = vadd.f32 %v3670_v35, %v19095_v13 }
 0x21c   : > { %v19355_v4 = vadd.f32 %v3462_v14, %v3207_v17  ;;  %v15840_v5 = vpop.f32.mrf.mxu0  ;;  %16139 = vmatmul.mubr.msk.f32.gmra.mxu0 %vm419_vm1, %v18640_v52  ;;  %v22613_v17 = vld [vmem:[#allocation5_spill] sm:$0xff] }
 0x21d   : > { %v15878_v42 = vpop.f32.mrf.mxu1  ;;  %16177 = vmatmul.mubr.msk.f32.vlgmr.msra.gmra.mxu1 %vm419_vm1, %v18640_v52  ;;  %v3808_v61 = vadd.f32 %v15840_v5, %v19102_v7  ;;  %16141 = vmatprep.mubr.msk.f32.mxu0 %vm419_vm1, %v18643_v36 }
 0x21e   : > { %v19368_v43 = vadd.f32 %v15878_v42, %v3800_v62  ;;  %16179 = vmatprep.mubr.msk.f32.mxu1 %vm419_vm1, %v18643_v36  ;;  %v3680_v13 = vpop.f32.mrf.mxu0  ;;  %16275 = vmatpush3.msk.msra.mxu1 %vm516_vm0, %v19039_v57  ;;  %v22614_v57 = vld [vmem:[#allocation15_spill] sm:$0xff]  ;;  %v22615_v42 = vld [vmem:[#allocation16_spill] sm:$0xff] }
 0x21f   : > { %v3934_v9 = vpop.f32.mrf.mxu1  ;;  %v3807_v52 = vadd.f32 %v3680_v13, %v19109_v45  ;;  %16374 = vmatprep.subr.msk.mxu1 %vm516_vm0, %v19365_v24  ;;  %v22616_v13 = vld [vmem:[#allocation7_spill] sm:$0xff] }
 0x220   : > { %v19377_v16 = vadd.f32 %v3934_v9, %v3799_v58  ;;  %v15843_v7 = vpop.f32.mrf.mxu0  ;;  %16142 = vmatmul.mubr.msk.f32.gmra.mxu0 %vm419_vm1, %v22613_v17 }
 0x221   : > { %v15881_v62 = vpop.f32.mrf.mxu1  ;;  %16180 = vmatmul.mubr.msk.f32.gmra.mxu1 %vm419_vm1, %v22613_v17  ;;  %v3810_v36 = vadd.f32 %v15843_v7, %v19116_v54  ;;  %16144 = vmatprep.mubr.msk.f32.mxu0 %vm419_vm1, %v22614_v57 }
 0x222   : > { %v19386_v15 = vadd.f32 %v15881_v62, %v3802_v28  ;;  %16182 = vmatprep.mubr.msk.f32.mxu1 %vm419_vm1, %v22614_v57  ;;  %v3690_v45 = vpop.f32.mrf.mxu0  ;;  %v22617_v57 = vld [vmem:[#allocation17_spill] sm:$0xff] }
 0x223   : > { %v3944_v58 = vpop.f32.mrf.mxu1  ;;  %v3809_v40 = vadd.f32 %v3690_v45, %v19125_v46  ;;  %v22618_v45 = vld [vmem:[#allocation18_spill] sm:$0xff] }
 0x224   : > { %v19393_v14 = vadd.f32 %v3944_v58, %v3801_v51  ;;  %v15846_v35 = vpop.f32.mrf.mxu0  ;;  %16145 = vmatmul.mubr.msk.f32.gmra.mxu0 %vm419_vm1, %v22615_v42 }
 0x225   : > { %v15884_v5 = vpop.f32.mrf.mxu1  ;;  %16183 = vmatmul.mubr.msk.f32.gmra.mxu1 %vm419_vm1, %v22615_v42  ;;  %v3812_v54 = vadd.f32 %v15846_v35, %v19134_v63  ;;  %16147 = vmatprep.mubr.msk.f32.mxu0 %vm419_vm1, %v22616_v13 }
 0x226   : > { %v19400_v28 = vadd.f32 %v15884_v5, %v3804_v2  ;;  %16185 = vmatprep.mubr.msk.f32.mxu1 %vm419_vm1, %v22616_v13  ;;  %v3700_v46 = vpop.f32.mrf.mxu0 }
 0x227   : > { %v3954_v51 = vpop.f32.mrf.mxu1  ;;  %v3811_v9 = vadd.f32 %v3700_v46, %v19149_v30  ;;  %v22620_v46 = vld [vmem:[#allocation20_spill] sm:$0xff] }
 0x228   : > { %v19407_v7 = vadd.f32 %v3954_v51, %v3803_v29  ;;  %v15849_v62 = vpop.f32.mrf.mxu0  ;;  %16148 = vmatmul.mubr.msk.f32.gmra.mxu0 %vm419_vm1, %v22617_v57 }
 0x229   : > { %v15887_v17 = vpop.f32.mrf.mxu1  ;;  %16186 = vmatmul.mubr.msk.f32.gmra.mxu1 %vm419_vm1, %v22617_v57  ;;  %v3814_v63 = vadd.f32 %v15849_v62, %v19158_v60  ;;  %16150 = vmatprep.mubr.msk.f32.mxu0 %vm419_vm1, %v19251_v8  ;;  %v22619_v60 = vld [vmem:[#allocation19_spill] sm:$0xff] }
 0x22a   : > { %v19414_v2 = vadd.f32 %v15887_v17, %v3806_v41  ;;  %16188 = vmatprep.mubr.msk.f32.mxu1 %vm419_vm1, %v22618_v45  ;;  %v3710_v30 = vpop.f32.mrf.mxu0 }
 0x22b   : > { %v3964_v29 = vpop.f32.mrf.mxu1  ;;  %v3813_v58 = vadd.f32 %v3710_v30, %v19177_v37 }
 0x22c   : > { %v19421_v35 = vadd.f32 %v3964_v29, %v3805_v59  ;;  %v15852_v5 = vpop.f32.mrf.mxu0  ;;  %16151 = vmatmul.mubr.msk.f32.gmra.mxu0 %vm419_vm1, %v19270_v26  ;;  %v22622_v29 = vld [vmem:[#allocation22_spill] sm:$0xff] }
 0x22d   : > { %v15890_v42 = vpop.f32.mrf.mxu1  ;;  %16189 = vmatmul.mubr.msk.f32.gmra.mxu1 %vm419_vm1, %v22619_v60  ;;  %v3816_v41 = vadd.f32 %v15852_v5, %v19184_v3  ;;  %16153 = vmatprep.mubr.msk.f32.mxu0 %vm419_vm1, %v19273_v33  ;;  %v22621_v3 = vld [vmem:[#allocation21_spill] sm:$0xff] }
 0x22e   : > { %v19428_v13 = vadd.f32 %v15890_v42, %v3808_v61  ;;  %16191 = vmatprep.mubr.msk.f32.mxu1 %vm419_vm1, %v22620_v46  ;;  %v3720_v37 = vpop.f32.mrf.mxu0 }
 0x22f   : > { %v3974_v59 = vpop.f32.mrf.mxu1  ;;  %v3815_v51 = vadd.f32 %v3720_v37, %v19203_v25 }
 0x230   : > { %v19435_v62 = vadd.f32 %v3974_v59, %v3807_v52  ;;  %v15855_v17 = vpop.f32.mrf.mxu0  ;;  %16154 = vmatmul.mubr.msk.f32.gmra.mxu0 %vm419_vm1, %v19295_v10 }
 0x231   : > { %v15893_v57 = vpop.f32.mrf.mxu1  ;;  %16192 = vmatmul.mubr.msk.f32.gmra.mxu1 %vm419_vm1, %v22621_v3  ;;  %v3818_v61 = vadd.f32 %v15855_v17, %v19210_v50  ;;  %16156 = vmatprep.mubr.msk.f32.mxu0 %vm419_vm1, %v19300_v55  ;;  %v22623_v50 = vld [vmem:[#allocation6_spill] sm:$0xff] }
 0x232   : > { %v19442_v30 = vadd.f32 %v15893_v57, %v3810_v36  ;;  %16194 = vmatprep.mubr.msk.f32.mxu1 %vm419_vm1, %v22622_v29  ;;  %v3730_v25 = vpop.f32.mrf.mxu0  ;;  %v22624_v57 = vld [vmem:[#allocation23_spill] sm:$0xff] }
 0x233   : > { %v3984_v52 = vpop.f32.mrf.mxu1  ;;  %v3817_v5 = vadd.f32 %v3730_v25, %v19230_v1  ;;  %v19463_v25 = vld [vmem:[%s17153_s25 + $0x21] sm:$0xff] }
 0x234   : > { %v19449_v42 = vadd.f32 %v3984_v52, %v3809_v40  ;;  %v15858_v37 = vpop.f32.mrf.mxu0  ;;  %16157 = vmatmul.mubr.msk.f32.gmra.mxu0 %vm419_vm1, %v19319_v22  ;;  %22625 = vst [vmem:[#allocation5_spill] sm:$0xff] %v19463_v25 }
 0x235   : > { %v15896_v59 = vpop.f32.mrf.mxu1  ;;  %16195 = vmatmul.mubr.msk.f32.gmra.mxu1 %vm419_vm1, %v22623_v50  ;;  %v3820_v36 = vadd.f32 %v15858_v37, %v19238_v47  ;;  %16159 = vmatprep.mubr.msk.f32.mxu0 %vm419_vm1, %v19322_v18 }
 0x236   : > { %v19456_v17 = vadd.f32 %v15896_v59, %v3812_v54  ;;  %16197 = vmatprep.mubr.msk.f32.mxu1 %vm419_vm1, %v22624_v57  ;;  %v3740_v1 = vpop.f32.mrf.mxu0  ;;  %v22626_v54 = vld [vmem:[#allocation24_spill] sm:$0xff] }
 0x237   : > { %v3994_v40 = vpop.f32.mrf.mxu1  ;;  %v3819_v52 = vadd.f32 %v3740_v1, %v19255_v6  ;;  %v19480_v6 = vld [vmem:[%s17153_s25 + $0x31] sm:$0xff] }
 0x238   : > { %v19466_v22 = vadd.f32 %v3994_v40, %v3811_v9  ;;  %v15861_v55 = vpop.f32.mrf.mxu0  ;;  %16160 = vmatmul.mubr.msk.f32.gmra.mxu0 %vm419_vm1, %v19339_v12  ;;  %22627 = vst [vmem:[#allocation15_spill] sm:$0xff] %v19480_v6  ;;  %v19483_v40 = vld [vmem:[%s17153_s25 + $0x41] sm:$0xff] }
 0x239   : > { %v15899_v47 = vpop.f32.mrf.mxu1  ;;  %16198 = vmatmul.mubr.msk.f32.gmra.mxu1 %vm419_vm1, %v22626_v54  ;;  %v3822_v37 = vadd.f32 %v15861_v55, %v19263_v32  ;;  %16162 = vmatprep.mubr.msk.f32.mxu0 %vm419_vm1, %v19463_v25  ;;  %22628 = vst [vmem:[#allocation16_spill] sm:$0xff] %v19483_v40 }
 0x23a   : > { %v19473_v59 = vadd.f32 %v15899_v47, %v3814_v63  ;;  %16200 = vmatprep.mubr.msk.f32.mxu1 %vm419_vm1, %v19463_v25  ;;  %v3750_v9 = vpop.f32.mrf.mxu0 }
 0x23b   : > { %v4004_v1 = vpop.f32.mrf.mxu1  ;;  %v3821_v12 = vadd.f32 %v3750_v9, %v19276_v0  ;;  %v19500_v0 = vld [vmem:[%s17153_s25 + $0x51] sm:$0xff] }
 0x23c   : > { %v19486_v18 = vadd.f32 %v4004_v1, %v3813_v58  ;;  %v15864_v32 = vpop.f32.mrf.mxu0  ;;  %16163 = vmatmul.mubr.msk.f32.gmra.mxu0 %vm419_vm1, %v19480_v6  ;;  %22629 = vst [vmem:[#allocation7_spill] sm:$0xff] %v19500_v0  ;;  %v19503_v1 = vld [vmem:[%s17153_s25 + $0x61] sm:$0xff] }
 0x23d   : > { %v15902_v55 = vpop.f32.mrf.mxu1  ;;  %16201 = vmatmul.mubr.msk.f32.gmra.mxu1 %vm419_vm1, %v19480_v6  ;;  %v3824_v63 = vadd.f32 %v15864_v32, %v19287_v34  ;;  %16165 = vmatprep.mubr.msk.f32.mxu0 %vm419_vm1, %v19483_v40  ;;  %22630 = vst [vmem:[#allocation17_spill] sm:$0xff] %v19503_v1 }
 0x23e   : > { %v19493_v47 = vadd.f32 %v15902_v55, %v3816_v41  ;;  %16203 = vmatprep.mubr.msk.f32.mxu1 %vm419_vm1, %v19483_v40  ;;  %v3760_v58 = vpop.f32.mrf.mxu0 }
 0x23f   : > { %v4014_v9 = vpop.f32.mrf.mxu1  ;;  %v3823_v6 = vadd.f32 %v3760_v58, %v19304_v49  ;;  %v19520_v49 = vld [vmem:[%s17153_s25 + $0x71] sm:$0xff] }
 0x240   : > { %v19506_v25 = vadd.f32 %v4014_v9, %v3815_v51  ;;  %v15867_v34 = vpop.f32.mrf.mxu0  ;;  %16166 = vmatmul.mubr.msk.f32.gmra.mxu0 %vm419_vm1, %v19500_v0  ;;  %22631 = vst [vmem:[#allocation18_spill] sm:$0xff] %v19520_v49  ;;  %v19523_v9 = vld [vmem:[%s17153_s25 + $0x81] sm:$0xff] }
 0x241   : > { %v15905_v41 = vpop.f32.mrf.mxu1  ;;  %16204 = vmatmul.mubr.msk.f32.gmra.mxu1 %vm419_vm1, %v19500_v0  ;;  %v3826_v32 = vadd.f32 %v15867_v34, %v19311_v19  ;;  %16168 = vmatprep.mubr.msk.f32.mxu0 %vm419_vm1, %v19503_v1  ;;  %22632 = vst [vmem:[#allocation19_spill] sm:$0xff] %v19523_v9 }
 0x242   : > { %v19513_v55 = vadd.f32 %v15905_v41, %v3818_v61  ;;  %16206 = vmatprep.mubr.msk.f32.mxu1 %vm419_vm1, %v19503_v1  ;;  %v3770_v51 = vpop.f32.mrf.mxu0 }
 0x243   : > { %v4024_v58 = vpop.f32.mrf.mxu1  ;;  %v3825_v0 = vadd.f32 %v3770_v51, %v19324_v11  ;;  %v19540_v11 = vld [vmem:[%s17153_s25 + $0x91] sm:$0xff] }
 0x244   : > { %v19526_v40 = vadd.f32 %v4024_v58, %v3817_v5  ;;  %v15870_v19 = vpop.f32.mrf.mxu0  ;;  %16169 = vmatmul.mubr.msk.f32.gmra.mxu0 %vm419_vm1, %v19520_v49  ;;  %22633 = vst [vmem:[#allocation20_spill] sm:$0xff] %v19540_v11  ;;  %v19543_v58 = vld [vmem:[%s17153_s25 + $0xc1] sm:$0xff] }
 0x245   : > { %v15908_v61 = vpop.f32.mrf.mxu1  ;;  %16207 = vmatmul.mubr.msk.f32.gmra.mxu1 %vm419_vm1, %v19520_v49  ;;  %v3828_v34 = vadd.f32 %v15870_v19, %v19331_v31  ;;  %16171 = vmatprep.mubr.msk.f32.mxu0 %vm419_vm1, %v19523_v9 }
 0x246   : > { %v19533_v41 = vadd.f32 %v15908_v61, %v3820_v36  ;;  %16209 = vmatprep.mubr.msk.f32.mxu1 %vm419_vm1, %v19523_v9  ;;  %v3780_v5 = vpop.f32.mrf.mxu0 }
 0x247   : > { %v4034_v51 = vpop.f32.mrf.mxu1  ;;  %v3827_v49 = vadd.f32 %v3780_v5, %v19341_v44  ;;  %v19560_v44 = vld [vmem:[%s17153_s25 + $0xd1] sm:$0xff] }
 0x248   : > { %v19546_v1 = vadd.f32 %v4034_v51, %v3819_v52  ;;  %v15873_v31 = vpop.f32.mrf.mxu0  ;;  %16172 = vmatmul.mubr.msk.f32.gmra.mxu0 %vm419_vm1, %v19540_v11  ;;  %v19563_v51 = vld [vmem:[%s17153_s25 + $0xe1] sm:$0xff] }
 0x249   : > { %v15911_v36 = vpop.f32.mrf.mxu1  ;;  %16210 = vmatmul.mubr.msk.f32.gmra.mxu1 %vm419_vm1, %v19540_v11  ;;  %v3830_v19 = vadd.f32 %v15873_v31, %v19348_v53  ;;  %16226 = vmatprep.mubr.msk.f32.mxu0 %vm419_vm1, %v22618_v45  ;;  %v19571_v53 = vld [vmem:[%s22310_s1 + $0x58] sm:$0xf] }
 0x24a   : > { %v19553_v61 = vadd.f32 %v15911_v36, %v3822_v37  ;;  %16212 = vmatprep.mubr.msk.f32.mxu1 %vm419_vm1, %v19543_v58  ;;  %v3790_v52 = vpop.f32.mrf.mxu0 }
 0x24b   : > { %v4044_v5 = vpop.f32.mrf.mxu1  ;;  %v3829_v11 = vadd.f32 %v3790_v52, %v19355_v4 }
 0x24c   : > { %v19566_v9 = vadd.f32 %v4044_v5, %v3821_v12  ;;  %v15928_v31 = vpop.f32.mrf.mxu0  ;;  %16227 = vmatmul.mubr.msk.f32.vlgmr.msra.gmra.mxu0 %vm419_vm1, %v22619_v60  ;;  %v19585_v12 = vld [vmem:[%s17153_s25 + $0xf1] sm:$0xff]  ;;  %v19590_v60 = vld [vmem:[%s17153_s25 + $0x101] sm:$0xff] }
 0x24d   : > { %v15914_v37 = vpop.f32.mrf.mxu1  ;;  %16213 = vmatmul.mubr.msk.f32.gmra.mxu1 %vm419_vm1, %v19560_v44  ;;  %v4388_v36 = vadd.f32 %v15928_v31, %v19368_v43  ;;  %16325 = vmatpush3.msk.msra.mxu0 %vm516_vm0, %v19281_v39 }
 0x24e   : > { %v19577_v45 = vadd.f32 %v15914_v37, %v3824_v63  ;;  %16215 = vmatprep.mubr.msk.f32.mxu1 %vm419_vm1, %v19563_v51  ;;  %v4228_v52 = vpop.f32.mrf.mxu0  ;;  %16229 = vmatprep.mubr.msk.f32.mxu0 %vm419_vm1, %v22620_v46 }
 0x24f   : > { %v4054_v4 = vpop.f32.mrf.mxu1  ;;  %16424 = vmatprep.subr.msk.mxu0 %vm516_vm0, %v19571_v53  ;;  %v4387_v39 = vadd.f32 %v4228_v52, %v19377_v16  ;;  %v19609_v16 = vld [vmem:[%s17153_s25 + $0x111] sm:$0xff] }
 0x250   : > { %v19594_v43 = vadd.f32 %v4054_v4, %v3823_v6  ;;  %v15931_v5 = vpop.f32.mrf.mxu0  ;;  %16230 = vmatmul.mubr.msk.f32.gmra.mxu0 %vm419_vm1, %v22621_v3  ;;  %v19612_v4 = vld [vmem:[%s17153_s25 + $0x121] sm:$0xff] }
 0x251   : > { %v15917_v63 = vpop.f32.mrf.mxu1  ;;  %16216 = vmatmul.mubr.msk.f32.gmra.mxu1 %vm419_vm1, %v19585_v12  ;;  %v4390_v46 = vadd.f32 %v15931_v5, %v19386_v15  ;;  %16232 = vmatprep.mubr.msk.f32.mxu0 %vm419_vm1, %v22622_v29 }
 0x252   : > { %v19601_v37 = vadd.f32 %v15917_v63, %v3826_v32  ;;  %16218 = vmatprep.mubr.msk.f32.mxu1 %vm419_vm1, %v19590_v60  ;;  %v4238_v31 = vpop.f32.mrf.mxu0 }
 0x253   : > { %v4064_v6 = vpop.f32.mrf.mxu1  ;;  %v4389_v3 = vadd.f32 %v4238_v31, %v19393_v14 }
 0x254   : > { %v19614_v52 = vadd.f32 %v4064_v6, %v3825_v0  ;;  %v15934_v63 = vpop.f32.mrf.mxu0  ;;  %16233 = vmatmul.mubr.msk.f32.gmra.mxu0 %vm419_vm1, %v22623_v50  ;;  %v19629_v0 = vld [vmem:[%s17153_s25 + $0x131] sm:$0xff] }
 0x255   : > { %v15920_v32 = vpop.f32.mrf.mxu1  ;;  %16219 = vmatmul.mubr.msk.f32.gmra.mxu1 %vm419_vm1, %v19609_v16  ;;  %v4392_v29 = vadd.f32 %v15934_v63, %v19400_v28  ;;  %16235 = vmatprep.mubr.msk.f32.mxu0 %vm419_vm1, %v22624_v57 }
 0x256   : > { %v19621_v15 = vadd.f32 %v15920_v32, %v3828_v34  ;;  %16221 = vmatprep.mubr.msk.f32.mxu1 %vm419_vm1, %v19612_v4  ;;  %v4248_v5 = vpop.f32.mrf.mxu0 }
 0x257   : > { %v4074_v14 = vpop.f32.mrf.mxu1  ;;  %v4391_v31 = vadd.f32 %v4248_v5, %v19407_v7 }
 0x258   : > { %v19631_v6 = vadd.f32 %v4074_v14, %v3827_v49  ;;  %v15937_v50 = vpop.f32.mrf.mxu0  ;;  %16236 = vmatmul.mubr.msk.f32.gmra.mxu0 %vm419_vm1, %v22626_v54 }
 0x259   : > { %v15923_v10 = vpop.f32.mrf.mxu1  ;;  %16222 = vmatmul.mubr.msk.f32.gmra.mxu1 %vm419_vm1, %v19629_v0  ;;  %v4394_v57 = vadd.f32 %v15937_v50, %v19414_v2  ;;  %16238 = vmatprep.mubr.msk.f32.mxu0 %vm419_vm1, %v18927_v38 }
 0x25a   : > { %v19638_v28 = vadd.f32 %v15923_v10, %v3830_v19  ;;  %16276 = vmatprep.mubr.msk.f32.mxu1 %vm419_vm1, %v18927_v38  ;;  %v4258_v7 = vpop.f32.mrf.mxu0  ;;  %v19655_v10 = vld [vmem:[%s22310_s1 + $0x5c] sm:$0xf] }
 0x25b   : > { %v4084_v49 = vpop.f32.mrf.mxu1  ;;  %v4393_v32 = vadd.f32 %v4258_v7, %v19421_v35 }
 0x25c   : > { %v19645_v34 = vadd.f32 %v4084_v49, %v3829_v11  ;;  %v15940_v63 = vpop.f32.mrf.mxu0  ;;  %16239 = vmatmul.mubr.msk.f32.gmra.mxu0 %vm419_vm1, %v18944_v23 }
 0x25d   : > { %v15978_v14 = vpop.f32.mrf.mxu1  ;;  %16277 = vmatmul.mubr.msk.f32.vlgmr.msra.gmra.mxu1 %vm419_vm1, %v18944_v23  ;;  %v4396_v38 = vadd.f32 %v15940_v63, %v19428_v13  ;;  %16241 = vmatprep.mubr.msk.f32.mxu0 %vm419_vm1, %v18947_v27 }
 0x25e   : > { %v19658_v2 = vadd.f32 %v15978_v14, %v4388_v36  ;;  %16279 = vmatprep.mubr.msk.f32.mxu1 %vm419_vm1, %v18947_v27  ;;  %v4268_v35 = vpop.f32.mrf.mxu0  ;;  %16375 = vmatpush3.msk.msra.mxu1 %vm516_vm0, %v19365_v24  ;;  %v22634_v14 = vld [vmem:[#allocation25_spill] sm:$0xff] }
 0x25f   : > { %v4522_v54 = vpop.f32.mrf.mxu1  ;;  %v4395_v23 = vadd.f32 %v4268_v35, %v19435_v62  ;;  %16474 = vmatprep.subr.msk.mxu1 %vm516_vm0, %v19655_v10 }
 0x260   : > { %v19667_v11 = vadd.f32 %v4522_v54, %v4387_v39  ;;  %v15943_v13 = vpop.f32.mrf.mxu0  ;;  %16242 = vmatmul.mubr.msk.f32.gmra.mxu0 %vm419_vm1, %v18969_v21 }
 0x261   : > { %v15981_v19 = vpop.f32.mrf.mxu1  ;;  %16280 = vmatmul.mubr.msk.f32.gmra.mxu1 %vm419_vm1, %v18969_v21  ;;  %v4398_v27 = vadd.f32 %v15943_v13, %v19442_v30  ;;  %16244 = vmatprep.mubr.msk.f32.mxu0 %vm419_vm1, %v18974_v56 }
 0x262   : > { %v19676_v36 = vadd.f32 %v15981_v19, %v4390_v46  ;;  %16282 = vmatprep.mubr.msk.f32.mxu1 %vm419_vm1, %v18974_v56  ;;  %v4278_v24 = vpop.f32.mrf.mxu0 }
 0x263   : > { %v4532_v62 = vpop.f32.mrf.mxu1  ;;  %v4397_v39 = vadd.f32 %v4278_v24, %v19449_v42  ;;  %v22637_v24 = vld [vmem:[#allocation3_spill] sm:$0xff] }
 0x264   : > { %v19683_v5 = vadd.f32 %v4532_v62, %v4389_v3  ;;  %v15946_v50 = vpop.f32.mrf.mxu0  ;;  %16245 = vmatmul.mubr.msk.f32.gmra.mxu0 %vm419_vm1, %v18993_v20 }
 0x265   : > { %v15984_v49 = vpop.f32.mrf.mxu1  ;;  %16283 = vmatmul.mubr.msk.f32.gmra.mxu1 %vm419_vm1, %v18993_v20  ;;  %v4400_v21 = vadd.f32 %v15946_v50, %v19456_v17  ;;  %16247 = vmatprep.mubr.msk.f32.mxu0 %vm419_vm1, %v18996_v48 }
 0x266   : > { %v19690_v30 = vadd.f32 %v15984_v49, %v4392_v29  ;;  %16285 = vmatprep.mubr.msk.f32.mxu1 %vm419_vm1, %v18996_v48  ;;  %v4288_v56 = vpop.f32.mrf.mxu0  ;;  %v22635_v48 = vld [vmem:[#allocation26_spill] sm:$0xff] }
 0x267   : > { %v4542_v42 = vpop.f32.mrf.mxu1  ;;  %v4399_v46 = vadd.f32 %v4288_v56, %v19466_v22 }
 0x268   : > { %v19697_v3 = vadd.f32 %v4542_v42, %v4391_v31  ;;  %v15949_v7 = vpop.f32.mrf.mxu0  ;;  %16248 = vmatmul.mubr.msk.f32.gmra.mxu0 %vm419_vm1, %v22634_v14 }
 0x269   : > { %v15987_v63 = vpop.f32.mrf.mxu1  ;;  %16286 = vmatmul.mubr.msk.f32.gmra.mxu1 %vm419_vm1, %v22634_v14  ;;  %v4402_v20 = vadd.f32 %v15949_v7, %v19473_v59  ;;  %16250 = vmatprep.mubr.msk.f32.mxu0 %vm419_vm1, %v19543_v58  ;;  %v22636_v59 = vld [vmem:[#allocation30_spill] sm:$0xff]  ;;  %v22639_v7 = vld [vmem:[#allocation11_spill] sm:$0xff] }
 0x26a   : > { %v19704_v17 = vadd.f32 %v15987_v63, %v4394_v57  ;;  %16288 = vmatprep.mubr.msk.f32.mxu1 %vm419_vm1, %v22635_v48  ;;  %v4298_v22 = vpop.f32.mrf.mxu0 }
 0x26b   : > { %v4552_v29 = vpop.f32.mrf.mxu1  ;;  %v4401_v31 = vadd.f32 %v4298_v22, %v19486_v18 }
 0x26c   : > { %v19711_v35 = vadd.f32 %v4552_v29, %v4393_v32  ;;  %v15952_v54 = vpop.f32.mrf.mxu0  ;;  %16251 = vmatmul.mubr.msk.f32.gmra.mxu0 %vm419_vm1, %v19560_v44 }
 0x26d   : > { %v15990_v13 = vpop.f32.mrf.mxu1  ;;  %16289 = vmatmul.mubr.msk.f32.gmra.mxu1 %vm419_vm1, %v22636_v59  ;;  %v4404_v57 = vadd.f32 %v15952_v54, %v19493_v47  ;;  %16253 = vmatprep.mubr.msk.f32.mxu0 %vm419_vm1, %v19563_v51  ;;  %v22638_v47 = vld [vmem:[#allocation9_spill] sm:$0xff]  ;;  %v22641_v54 = vld [vmem:[#allocation4_spill] sm:$0xff] }
 0x26e   : > { %v19718_v19 = vadd.f32 %v15990_v13, %v4396_v38  ;;  %16291 = vmatprep.mubr.msk.f32.mxu1 %vm419_vm1, %v22637_v24  ;;  %v4308_v18 = vpop.f32.mrf.mxu0  ;;  %v19753_v13 = vld [vmem:[%s17153_s25 + $0x22] sm:$0xff] }
 0x26f   : > { %v4562_v32 = vpop.f32.mrf.mxu1  ;;  %v4403_v62 = vadd.f32 %v4308_v18, %v19506_v25 }
 0x270   : > { %v19725_v50 = vadd.f32 %v4562_v32, %v4395_v23  ;;  %v15955_v49 = vpop.f32.mrf.mxu0  ;;  %16254 = vmatmul.mubr.msk.f32.gmra.mxu0 %vm419_vm1, %v19585_v12 }
 0x271   : > { %v15993_v56 = vpop.f32.mrf.mxu1  ;;  %16292 = vmatmul.mubr.msk.f32.gmra.mxu1 %vm419_vm1, %v22638_v47  ;;  %v4406_v38 = vadd.f32 %v15955_v49, %v19513_v55  ;;  %16256 = vmatprep.mubr.msk.f32.mxu0 %vm419_vm1, %v19590_v60  ;;  %v22640_v55 = vld [vmem:[#allocation13_spill] sm:$0xff]  ;;  %v19773_v47 = vld [vmem:[%s17153_s25 + $0x42] sm:$0xff] }
 0x272   : > { %v19732_v42 = vadd.f32 %v15993_v56, %v4398_v27  ;;  %16294 = vmatprep.mubr.msk.f32.mxu1 %vm419_vm1, %v22639_v7  ;;  %v4318_v25 = vpop.f32.mrf.mxu0  ;;  %22643 = vst [vmem:[#allocation21_spill] sm:$0xff] %v19773_v47 }
 0x273   : > { %v4572_v23 = vpop.f32.mrf.mxu1  ;;  %v4405_v63 = vadd.f32 %v4318_v25, %v19526_v40 }
 0x274   : > { %v19739_v14 = vadd.f32 %v4572_v23, %v4397_v39  ;;  %v15958_v48 = vpop.f32.mrf.mxu0  ;;  %16257 = vmatmul.mubr.msk.f32.gmra.mxu0 %vm419_vm1, %v19609_v16 }
 0x275   : > { %v15996_v22 = vpop.f32.mrf.mxu1  ;;  %16295 = vmatmul.mubr.msk.f32.gmra.mxu1 %vm419_vm1, %v22640_v55  ;;  %v4408_v27 = vadd.f32 %v15958_v48, %v19533_v41  ;;  %16259 = vmatprep.mubr.msk.f32.mxu0 %vm419_vm1, %v19612_v4  ;;  %v19793_v55 = vld [vmem:[%s17153_s25 + $0x62] sm:$0xff] }
 0x276   : > { %v19746_v29 = vadd.f32 %v15996_v22, %v4400_v21  ;;  %16297 = vmatprep.mubr.msk.f32.mxu1 %vm419_vm1, %v22641_v54  ;;  %v4328_v40 = vpop.f32.mrf.mxu0  ;;  %v22642_v21 = vld [vmem:[#allocation14_spill] sm:$0xff]  ;;  %22645 = vst [vmem:[#allocation6_spill] sm:$0xff] %v19793_v55 }
 0x277   : > { %v4582_v39 = vpop.f32.mrf.mxu1  ;;  %v4407_v59 = vadd.f32 %v4328_v40, %v19546_v1  ;;  %v19770_v1 = vld [vmem:[%s17153_s25 + $0x32] sm:$0xff] }
 0x278   : > { %v19756_v24 = vadd.f32 %v4582_v39, %v4399_v46  ;;  %v15961_v18 = vpop.f32.mrf.mxu0  ;;  %16260 = vmatmul.mubr.msk.f32.gmra.mxu0 %vm419_vm1, %v19629_v0 }
 0x279   : > { %v15999_v41 = vpop.f32.mrf.mxu1  ;;  %16298 = vmatmul.mubr.msk.f32.gmra.mxu1 %vm419_vm1, %v22642_v21  ;;  %v4410_v32 = vadd.f32 %v15961_v18, %v19553_v61  ;;  %16262 = vmatprep.mubr.msk.f32.mxu0 %vm419_vm1, %v19753_v13  ;;  %v19813_v21 = vld [vmem:[%s17153_s25 + $0x82] sm:$0xff] }
 0x27a   : > { %v19763_v49 = vadd.f32 %v15999_v41, %v4402_v20  ;;  %16300 = vmatprep.mubr.msk.f32.mxu1 %vm419_vm1, %v19753_v13  ;;  %v4338_v46 = vpop.f32.mrf.mxu0  ;;  %22647 = vst [vmem:[#allocation24_spill] sm:$0xff] %v19813_v21 }
 0x27b   : > { %v4592_v56 = vpop.f32.mrf.mxu1  ;;  %v4409_v7 = vadd.f32 %v4338_v46, %v19566_v9  ;;  %v19790_v9 = vld [vmem:[%s17153_s25 + $0x52] sm:$0xff] }
 0x27c   : > { %v19776_v25 = vadd.f32 %v4592_v56, %v4401_v31  ;;  %v15964_v61 = vpop.f32.mrf.mxu0  ;;  %16263 = vmatmul.mubr.msk.f32.gmra.mxu0 %vm419_vm1, %v19770_v1  ;;  %22644 = vst [vmem:[#allocation22_spill] sm:$0xff] %v19790_v9 }
 0x27d   : > { %v16002_v20 = vpop.f32.mrf.mxu1  ;;  %16301 = vmatmul.mubr.msk.f32.gmra.mxu1 %vm419_vm1, %v19770_v1  ;;  %v4412_v23 = vadd.f32 %v15964_v61, %v19577_v45  ;;  %16265 = vmatprep.mubr.msk.f32.mxu0 %vm419_vm1, %v19773_v47 }
 0x27e   : > { %v19783_v48 = vadd.f32 %v16002_v20, %v4404_v57  ;;  %16303 = vmatprep.mubr.msk.f32.mxu1 %vm419_vm1, %v19773_v47  ;;  %v4348_v31 = vpop.f32.mrf.mxu0 }
 0x27f   : > { %v4602_v22 = vpop.f32.mrf.mxu1  ;;  %v4411_v54 = vadd.f32 %v4348_v31, %v19594_v43  ;;  %v19810_v43 = vld [vmem:[%s17153_s25 + $0x72] sm:$0xff] }
 0x280   : > { %v19796_v40 = vadd.f32 %v4602_v22, %v4403_v62  ;;  %v15967_v45 = vpop.f32.mrf.mxu0  ;;  %16266 = vmatmul.mubr.msk.f32.gmra.mxu0 %vm419_vm1, %v19790_v9  ;;  %22646 = vst [vmem:[#allocation23_spill] sm:$0xff] %v19810_v43  ;;  %v19833_v22 = vld [vmem:[%s17153_s25 + $0xc2] sm:$0xff] }
 0x281   : > { %v16005_v57 = vpop.f32.mrf.mxu1  ;;  %16304 = vmatmul.mubr.msk.f32.gmra.mxu1 %vm419_vm1, %v19790_v9  ;;  %v4414_v39 = vadd.f32 %v15967_v45, %v19601_v37  ;;  %16268 = vmatprep.mubr.msk.f32.mxu0 %vm419_vm1, %v19793_v55  ;;  %22649 = vst [vmem:[#allocation26_spill] sm:$0xff] %v19833_v22 }
 0x282   : > { %v19803_v18 = vadd.f32 %v16005_v57, %v4406_v38  ;;  %16306 = vmatprep.mubr.msk.f32.mxu1 %vm419_vm1, %v19793_v55  ;;  %v4358_v62 = vpop.f32.mrf.mxu0 }
 0x283   : > { %v4612_v41 = vpop.f32.mrf.mxu1  ;;  %v4413_v46 = vadd.f32 %v4358_v62, %v19614_v52  ;;  %v19830_v52 = vld [vmem:[%s17153_s25 + $0x92] sm:$0xff] }
 0x284   : > { %v19816_v56 = vadd.f32 %v4612_v41, %v4405_v63  ;;  %v15970_v37 = vpop.f32.mrf.mxu0  ;;  %16269 = vmatmul.mubr.msk.f32.gmra.mxu0 %vm419_vm1, %v19810_v43  ;;  %22648 = vst [vmem:[#allocation25_spill] sm:$0xff] %v19830_v52 }
 0x285   : > { %v16008_v38 = vpop.f32.mrf.mxu1  ;;  %16307 = vmatmul.mubr.msk.f32.gmra.mxu1 %vm419_vm1, %v19810_v43  ;;  %v4416_v61 = vadd.f32 %v15970_v37, %v19621_v15  ;;  %16271 = vmatprep.mubr.msk.f32.mxu0 %vm419_vm1, %v19813_v21  ;;  %v22650_v37 = vld [vmem:[#allocation27_spill] sm:$0xff] }
 0x286   : > { %v19823_v20 = vadd.f32 %v16008_v38, %v4408_v27  ;;  %16309 = vmatprep.mubr.msk.f32.mxu1 %vm419_vm1, %v19813_v21  ;;  %v4368_v63 = vpop.f32.mrf.mxu0 }
 0x287   : > { %v4622_v31 = vpop.f32.mrf.mxu1  ;;  %v4415_v45 = vadd.f32 %v4368_v63, %v19631_v6  ;;  %v19850_v6 = vld [vmem:[%s17153_s25 + $0xd2] sm:$0xff]  ;;  %v19853_v63 = vld [vmem:[%s17153_s25 + $0xe2] sm:$0xff] }
 0x288   : > { %v19836_v57 = vadd.f32 %v4622_v31, %v4407_v59  ;;  %v15973_v15 = vpop.f32.mrf.mxu0  ;;  %16272 = vmatmul.mubr.msk.f32.gmra.mxu0 %vm419_vm1, %v19830_v52  ;;  %22651 = vst [vmem:[#allocation30_spill] sm:$0xff] %v19850_v6  ;;  %22652 = vst [vmem:[#allocation3_spill] sm:$0xff] %v19853_v63 }
 0x289   : > { %v16011_v27 = vpop.f32.mrf.mxu1  ;;  %16310 = vmatmul.mubr.msk.f32.gmra.mxu1 %vm419_vm1, %v19830_v52  ;;  %v4418_v62 = vadd.f32 %v15973_v15, %v19638_v28  ;;  %16326 = vmatprep.mubr.msk.f32.mxu0 %vm419_vm1, %v22650_v37  ;;  %v19861_v28 = vld [vmem:[%s22310_s1 + $0x60] sm:$0xf] }
 0x28a   : > { %v19843_v41 = vadd.f32 %v16011_v27, %v4410_v32  ;;  %16312 = vmatprep.mubr.msk.f32.mxu1 %vm419_vm1, %v19833_v22  ;;  %v4378_v59 = vpop.f32.mrf.mxu0  ;;  %v22653_v27 = vld [vmem:[#allocation31_spill] sm:$0xff] }
 0x28b   : > { %v4632_v38 = vpop.f32.mrf.mxu1  ;;  %v4417_v31 = vadd.f32 %v4378_v59, %v19645_v34  ;;  %v19875_v34 = vld [vmem:[%s17153_s25 + $0xf2] sm:$0xff] }
 0x28c   : > { %v19856_v52 = vadd.f32 %v4632_v38, %v4409_v7  ;;  %v16028_v15 = vpop.f32.mrf.mxu0  ;;  %16327 = vmatmul.mubr.msk.f32.vlgmr.msra.gmra.mxu0 %vm419_vm1, %v22653_v27  ;;  %22654 = vst [vmem:[#allocation9_spill] sm:$0xff] %v19875_v34  ;;  %v22655_v38 = vld [vmem:[#allocation8_spill] sm:$0xff] }
 0x28d   : > { %v16014_v32 = vpop.f32.mrf.mxu1  ;;  %16313 = vmatmul.mubr.msk.f32.gmra.mxu1 %vm419_vm1, %v19850_v6  ;;  %v4976_v22 = vadd.f32 %v16028_v15, %v19658_v2  ;;  %16425 = vmatpush3.msk.msra.mxu0 %vm516_vm0, %v19571_v53  ;;  %v19880_v27 = vld [vmem:[%s17153_s25 + $0x102] sm:$0xff]  ;;  %v22657_v15 = vld [vmem:[#allocation10_spill] sm:$0xff] }
 0x28e   : > { %v19867_v37 = vadd.f32 %v16014_v32, %v4412_v23  ;;  %16315 = vmatprep.mubr.msk.f32.mxu1 %vm419_vm1, %v19853_v63  ;;  %v4816_v59 = vpop.f32.mrf.mxu0  ;;  %16329 = vmatprep.mubr.msk.f32.mxu0 %vm419_vm1, %v22655_v38  ;;  %22656 = vst [vmem:[#allocation11_spill] sm:$0xff] %v19880_v27  ;;  %v22658_v6 = vld [vmem:[#allocation12_spill] sm:$0xff] }
 0x28f   : > { %v4642_v7 = vpop.f32.mrf.mxu1  ;;  %16524 = vmatprep.subr.msk.mxu0 %vm516_vm0, %v19861_v28  ;;  %v4975_v53 = vadd.f32 %v4816_v59, %v19667_v11  ;;  %v19899_v11 = vld [vmem:[%s17153_s25 + $0x112] sm:$0xff]  ;;  %v19902_v59 = vld [vmem:[%s17153_s25 + $0x122] sm:$0xff] }
 0x290   : > { %v19884_v2 = vadd.f32 %v4642_v7, %v4411_v54  ;;  %v16031_v32 = vpop.f32.mrf.mxu0  ;;  %16330 = vmatmul.mubr.msk.f32.gmra.mxu0 %vm419_vm1, %v22657_v15  ;;  %22659 = vst [vmem:[#allocation13_spill] sm:$0xff] %v19899_v11  ;;  %22660 = vst [vmem:[#allocation4_spill] sm:$0xff] %v19902_v59 }
 0x291   : > { %v16017_v23 = vpop.f32.mrf.mxu1  ;;  %16316 = vmatmul.mubr.msk.f32.gmra.mxu1 %vm419_vm1, %v19875_v34  ;;  %v4978_v38 = vadd.f32 %v16031_v32, %v19676_v36  ;;  %16332 = vmatprep.mubr.msk.f32.mxu0 %vm419_vm1, %v22658_v6  ;;  %v22661_v36 = vld [vmem:[#allocation28_spill] sm:$0xff] }
 0x292   : > { %v19891_v63 = vadd.f32 %v16017_v23, %v4414_v39  ;;  %16318 = vmatprep.mubr.msk.f32.mxu1 %vm419_vm1, %v19880_v27  ;;  %v4826_v7 = vpop.f32.mrf.mxu0  ;;  %v22662_v27 = vld [vmem:[#allocation29_spill] sm:$0xff] }
 0x293   : > { %v4652_v54 = vpop.f32.mrf.mxu1  ;;  %v4977_v39 = vadd.f32 %v4826_v7, %v19683_v5 }
 0x294   : > { %v19904_v34 = vadd.f32 %v4652_v54, %v4413_v46  ;;  %v16034_v15 = vpop.f32.mrf.mxu0  ;;  %16333 = vmatmul.mubr.msk.f32.gmra.mxu0 %vm419_vm1, %v22661_v36  ;;  %v19919_v46 = vld [vmem:[%s17153_s25 + $0x132] sm:$0xff] }
 0x295   : > { %v16020_v23 = vpop.f32.mrf.mxu1  ;;  %16319 = vmatmul.mubr.msk.f32.gmra.mxu1 %vm419_vm1, %v19899_v11  ;;  %v4980_v6 = vadd.f32 %v16034_v15, %v19690_v30  ;;  %16335 = vmatprep.mubr.msk.f32.mxu0 %vm419_vm1, %v22662_v27  ;;  %22663 = vst [vmem:[#allocation14_spill] sm:$0xff] %v19919_v46  ;;  %v22664_v30 = vld [vmem:[#allocation32_spill] sm:$0xff] }
 0x296   : > { %v19911_v32 = vadd.f32 %v16020_v23, %v4416_v61  ;;  %16321 = vmatprep.mubr.msk.f32.mxu1 %vm419_vm1, %v19902_v59  ;;  %v4836_v54 = vpop.f32.mrf.mxu0 }
 0x297   : > { %v4662_v5 = vpop.f32.mrf.mxu1  ;;  %v4979_v11 = vadd.f32 %v4836_v54, %v19697_v3 }
 0x298   : > { %v19921_v7 = vadd.f32 %v4662_v5, %v4415_v45  ;;  %v16037_v36 = vpop.f32.mrf.mxu0  ;;  %16336 = vmatmul.mubr.msk.f32.gmra.mxu0 %vm419_vm1, %v22664_v30  ;;  %v22666_v30 = vld [vmem:[#allocation34_spill] sm:$0xff] }
 0x299   : > { %v16023_v21 = vpop.f32.mrf.mxu1  ;;  %16322 = vmatmul.mubr.msk.f32.gmra.mxu1 %vm419_vm1, %v19919_v46  ;;  %v4982_v27 = vadd.f32 %v16037_v36, %v19704_v17  ;;  %16338 = vmatprep.mubr.msk.f32.mxu0 %vm419_vm1, %v19251_v8 }
 0x29a   : > { %v19928_v61 = vadd.f32 %v16023_v21, %v4418_v62  ;;  %16376 = vmatprep.mubr.msk.f32.mxu1 %vm419_vm1, %v19251_v8  ;;  %v4846_v3 = vpop.f32.mrf.mxu0 }
 0x29b   : > { %v4672_v45 = vpop.f32.mrf.mxu1  ;;  %v4981_v15 = vadd.f32 %v4846_v3, %v19711_v35 }
 0x29c   : > { %v19935_v23 = vadd.f32 %v4672_v45, %v4417_v31  ;;  %v16040_v5 = vpop.f32.mrf.mxu0  ;;  %16339 = vmatmul.mubr.msk.f32.gmra.mxu0 %vm419_vm1, %v19270_v26 }
 0x29d   : > { %v16078_v54 = vpop.f32.mrf.mxu1  ;;  %16377 = vmatmul.mubr.msk.f32.vlgmr.msra.gmra.mxu1 %vm419_vm1, %v19270_v26  ;;  %v4984_v17 = vadd.f32 %v16040_v5, %v19718_v19  ;;  %16341 = vmatprep.mubr.msk.f32.mxu0 %vm419_vm1, %v19273_v33  ;;  %v22665_v19 = vld [vmem:[#allocation33_spill] sm:$0xff] }
 0x29e   : > { %v19943_v21 = vadd.f32 %v16078_v54, %v4976_v22  ;;  %16379 = vmatprep.mubr.msk.f32.mxu1 %vm419_vm1, %v19273_v33  ;;  %v4856_v8 = vpop.f32.mrf.mxu0  ;;  %16475 = vmatpush3.msk.msra.mxu1 %vm516_vm0, %v19655_v10  ;;  %v22667_v54 = vld [vmem:[#allocation35_spill] sm:$0xff] }
 0x29f   : > { %v5144_v35 = vpop.f32.mrf.mxu1  ;;  %v4983_v62 = vadd.f32 %v4856_v8, %v19725_v50  ;;  %v22668_v8 = vld [vmem:[#allocation36_spill] sm:$0xff] }
 0x2a0   : > { %v19952_v31 = vadd.f32 %v5144_v35, %v4975_v53  ;;  %v16043_v26 = vpop.f32.mrf.mxu0  ;;  %16342 = vmatmul.mubr.msk.f32.gmra.mxu0 %vm419_vm1, %v22665_v19  ;;  %v13696_v35 = vld [vmem:[%s17153_s25 + $0x160] sm:$0xff] }
 0x2a1   : > { %v16081_v36 = vpop.f32.mrf.mxu1  ;;  %16380 = vmatmul.mubr.msk.f32.gmra.mxu1 %vm419_vm1, %v22665_v19  ;;  %v4986_v22 = vadd.f32 %v16043_v26, %v19732_v42  ;;  %16344 = vmatprep.mubr.msk.f32.mxu0 %vm419_vm1, %v22666_v30 }
 0x2a2   : > { %v19959_v33 = vadd.f32 %v16081_v36, %v4978_v38  ;;  %16382 = vmatprep.mubr.msk.f32.mxu1 %vm419_vm1, %v22666_v30  ;;  %v4866_v10 = vpop.f32.mrf.mxu0 }
 0x2a3   : > { %v5154_v50 = vpop.f32.mrf.mxu1  ;;  %v4985_v53 = vadd.f32 %v4866_v10, %v19739_v14 }
 0x2a4   : > { %v19966_v45 = vadd.f32 %v5154_v50, %v4977_v39  ;;  %v16046_v3 = vpop.f32.mrf.mxu0  ;;  %16345 = vmatmul.mubr.msk.f32.gmra.mxu0 %vm419_vm1, %v22667_v54  ;;  %v22670_v50 = vld [vmem:[#allocation5_spill] sm:$0xff] }
 0x2a5   : > { %v16084_v5 = vpop.f32.mrf.mxu1  ;;  %16383 = vmatmul.mubr.msk.f32.gmra.mxu1 %vm419_vm1, %v22667_v54  ;;  %v4988_v42 = vadd.f32 %v16046_v3, %v19746_v29  ;;  %16347 = vmatprep.mubr.msk.f32.mxu0 %vm419_vm1, %v22668_v8  ;;  %v22669_v29 = vld [vmem:[#allocation37_spill] sm:$0xff] }
 0x2a6   : > { %v19973_v38 = vadd.f32 %v16084_v5, %v4980_v6  ;;  %16385 = vmatprep.mubr.msk.f32.mxu1 %vm419_vm1, %v22668_v8  ;;  %v4876_v14 = vpop.f32.mrf.mxu0  ;;  %v13698_v5 = vld [vmem:[%s17153_s25 + $0x180] sm:$0xff] }
 0x2a7   : > { %v5164_v39 = vpop.f32.mrf.mxu1  ;;  %v4987_v26 = vadd.f32 %v4876_v14, %v19756_v24  ;;  %v13697_v24 = vld [vmem:[%s17153_s25 + $0x170] sm:$0xff] }
 0x2a8   : > { %v19981_v36 = vadd.f32 %v5164_v39, %v4979_v11  ;;  %v16049_v19 = vpop.f32.mrf.mxu0  ;;  %16348 = vmatmul.mubr.msk.f32.gmra.mxu0 %vm419_vm1, %v22669_v29 }
 0x2a9   : > { %v16087_v30 = vpop.f32.mrf.mxu1  ;;  %16386 = vmatmul.mubr.msk.f32.gmra.mxu1 %vm419_vm1, %v22669_v29  ;;  %v4990_v6 = vadd.f32 %v16049_v19, %v19763_v49  ;;  %16350 = vmatprep.mubr.msk.f32.mxu0 %vm419_vm1, %v13696_v35  ;;  %v22671_v49 = vld [vmem:[#allocation15_spill] sm:$0xff]  ;;  %v22672_v19 = vld [vmem:[#allocation16_spill] sm:$0xff] }
 0x2aa   : > { %v19988_v10 = vadd.f32 %v16087_v30, %v4982_v27  ;;  %16388 = vmatprep.mubr.msk.f32.mxu1 %vm419_vm1, %v22670_v50  ;;  %v4886_v11 = vpop.f32.mrf.mxu0  ;;  %v13700_v29 = vld [vmem:[%s17153_s25 + $0x1a0] sm:$0xff] }
 0x2ab   : > { %v5174_v3 = vpop.f32.mrf.mxu1  ;;  %v4989_v54 = vadd.f32 %v4886_v11, %v19776_v25  ;;  %v13699_v25 = vld [vmem:[%s17153_s25 + $0x190] sm:$0xff] }
 0x2ac   : > { %v19996_v8 = vadd.f32 %v5174_v3, %v4981_v15  ;;  %v16052_v14 = vpop.f32.mrf.mxu0  ;;  %16351 = vmatmul.mubr.msk.f32.gmra.mxu0 %vm419_vm1, %v13697_v24 }
 0x2ad   : > { %v16090_v39 = vpop.f32.mrf.mxu1  ;;  %16389 = vmatmul.mubr.msk.f32.gmra.mxu1 %vm419_vm1, %v22671_v49  ;;  %v4992_v27 = vadd.f32 %v16052_v14, %v19783_v48  ;;  %16353 = vmatprep.mubr.msk.f32.mxu0 %vm419_vm1, %v13698_v5  ;;  %v22673_v48 = vld [vmem:[#allocation7_spill] sm:$0xff]  ;;  %v22674_v14 = vld [vmem:[#allocation17_spill] sm:$0xff] }
 0x2ae   : > { %v20002_v35 = vadd.f32 %v16090_v39, %v4984_v17  ;;  %16391 = vmatprep.mubr.msk.f32.mxu1 %vm419_vm1, %v22672_v19  ;;  %v4896_v15 = vpop.f32.mrf.mxu0 }
 0x2af   : > { %v5184_v30 = vpop.f32.mrf.mxu1  ;;  %v4991_v24 = vadd.f32 %v4896_v15, %v19796_v40  ;;  %v13701_v40 = vld [vmem:[%s17153_s25 + $0x1b0] sm:$0xff]  ;;  %v13702_v15 = vld [vmem:[%s17153_s25 + $0x1c0] sm:$0xff] }
 0x2b0   : > { %v20010_v11 = vadd.f32 %v5184_v30, %v4983_v62  ;;  %v16055_v3 = vpop.f32.mrf.mxu0  ;;  %16354 = vmatmul.mubr.msk.f32.gmra.mxu0 %vm419_vm1, %v13699_v25 }
 0x2b1   : > { %v16093_v46 = vpop.f32.mrf.mxu1  ;;  %16392 = vmatmul.mubr.msk.f32.gmra.mxu1 %vm419_vm1, %v22673_v48  ;;  %v4994_v17 = vadd.f32 %v16055_v3, %v19803_v18  ;;  %16356 = vmatprep.mubr.msk.f32.mxu0 %vm419_vm1, %v13700_v29  ;;  %v22675_v18 = vld [vmem:[#allocation18_spill] sm:$0xff]  ;;  %v22676_v29 = vld [vmem:[#allocation19_spill] sm:$0xff] }
 0x2b2   : > { %v20016_v5 = vadd.f32 %v16093_v46, %v4986_v22  ;;  %16394 = vmatprep.mubr.msk.f32.mxu1 %vm419_vm1, %v22674_v14  ;;  %v4906_v62 = vpop.f32.mrf.mxu0 }
 0x2b3   : > { %v5194_v39 = vpop.f32.mrf.mxu1  ;;  %v4993_v25 = vadd.f32 %v4906_v62, %v19816_v56  ;;  %v13703_v56 = vld [vmem:[%s17153_s25 + $0x1d0] sm:$0xff]  ;;  %v13704_v62 = vld [vmem:[%s17153_s25 + $0x200] sm:$0xff] }
 0x2b4   : > { %v20024_v30 = vadd.f32 %v5194_v39, %v4985_v53  ;;  %v16058_v59 = vpop.f32.mrf.mxu0  ;;  %16357 = vmatmul.mubr.msk.f32.gmra.mxu0 %vm419_vm1, %v13701_v40 }
 0x2b5   : > { %v16096_v43 = vpop.f32.mrf.mxu1  ;;  %16395 = vmatmul.mubr.msk.f32.gmra.mxu1 %vm419_vm1, %v22675_v18  ;;  %v4996_v46 = vadd.f32 %v16058_v59, %v19823_v20  ;;  %16359 = vmatprep.mubr.msk.f32.mxu0 %vm419_vm1, %v13702_v15  ;;  %v13706_v15 = vld [vmem:[%s17153_s25 + $0x220] sm:$0xff] }
 0x2b6   : > { %v20030_v22 = vadd.f32 %v16096_v43, %v4988_v42  ;;  %16397 = vmatprep.mubr.msk.f32.mxu1 %vm419_vm1, %v22676_v29  ;;  %v4916_v53 = vpop.f32.mrf.mxu0  ;;  %v22677_v43 = vld [vmem:[#allocation20_spill] sm:$0xff]  ;;  %v13705_v42 = vld [vmem:[%s17153_s25 + $0x210] sm:$0xff] }
 0x2b7   : > { %v5204_v3 = vpop.f32.mrf.mxu1  ;;  %v4995_v40 = vadd.f32 %v4916_v53, %v19836_v57 }
 0x2b8   : > { %v20038_v39 = vadd.f32 %v5204_v3, %v4987_v26  ;;  %v16061_v55 = vpop.f32.mrf.mxu0  ;;  %16360 = vmatmul.mubr.msk.f32.gmra.mxu0 %vm419_vm1, %v13703_v56 }
 0x2b9   : > { %v16099_v9 = vpop.f32.mrf.mxu1  ;;  %16398 = vmatmul.mubr.msk.f32.gmra.mxu1 %vm419_vm1, %v22677_v43  ;;  %v4998_v20 = vadd.f32 %v16061_v55, %v19843_v41  ;;  %16362 = vmatprep.mubr.msk.f32.mxu0 %vm419_vm1, %v13704_v62  ;;  %v13707_v41 = vld [vmem:[%s17153_s25 + $0x230] sm:$0xff] }
 0x2ba   : > { %v20044_v59 = vadd.f32 %v16099_v9, %v4990_v6  ;;  %16400 = vmatprep.mubr.msk.f32.mxu1 %vm419_vm1, %v13704_v62  ;;  %v4926_v57 = vpop.f32.mrf.mxu0 }
 0x2bb   : > { %v5214_v26 = vpop.f32.mrf.mxu1  ;;  %v4997_v53 = vadd.f32 %v4926_v57, %v19856_v52 }
 0x2bc   : > { %v20051_v56 = vadd.f32 %v5214_v26, %v4989_v54  ;;  %v16064_v3 = vpop.f32.mrf.mxu0  ;;  %16363 = vmatmul.mubr.msk.f32.gmra.mxu0 %vm419_vm1, %v13705_v42  ;;  %v13708_v54 = vld [vmem:[%s17153_s25 + $0x240] sm:$0xff] }
 0x2bd   : > { %v16102_v47 = vpop.f32.mrf.mxu1  ;;  %16401 = vmatmul.mubr.msk.f32.gmra.mxu1 %vm419_vm1, %v13705_v42  ;;  %v5000_v9 = vadd.f32 %v16064_v3, %v19867_v37  ;;  %16365 = vmatprep.mubr.msk.f32.mxu0 %vm419_vm1, %v13706_v15 }
 0x2be   : > { %v20056_v55 = vadd.f32 %v16102_v47, %v4992_v27  ;;  %16403 = vmatprep.mubr.msk.f32.mxu1 %vm419_vm1, %v13706_v15  ;;  %v4936_v6 = vpop.f32.mrf.mxu0  ;;  %v13709_v27 = vld [vmem:[%s17153_s25 + $0x250] sm:$0xff] }
 0x2bf   : > { %v5224_v52 = vpop.f32.mrf.mxu1  ;;  %v4999_v62 = vadd.f32 %v4936_v6, %v19884_v2 }
 0x2c0   : > { %v20063_v57 = vadd.f32 %v5224_v52, %v4991_v24  ;;  %v16067_v26 = vpop.f32.mrf.mxu0  ;;  %16366 = vmatmul.mubr.msk.f32.gmra.mxu0 %vm419_vm1, %v13707_v41  ;;  %v13710_v24 = vld [vmem:[%s17153_s25 + $0x260] sm:$0xff] }
 0x2c1   : > { %v16105_v42 = vpop.f32.mrf.mxu1  ;;  %16404 = vmatmul.mubr.msk.f32.gmra.mxu1 %vm419_vm1, %v13707_v41  ;;  %v5002_v47 = vadd.f32 %v16067_v26, %v19891_v63  ;;  %16368 = vmatprep.mubr.msk.f32.mxu0 %vm419_vm1, %v13708_v54 }
 0x2c2   : > { %v20068_v37 = vadd.f32 %v16105_v42, %v4994_v17  ;;  %16406 = vmatprep.mubr.msk.f32.mxu1 %vm419_vm1, %v13708_v54  ;;  %v4946_v15 = vpop.f32.mrf.mxu0  ;;  %v13711_v54 = vld [vmem:[%s17153_s25 + $0x270] sm:$0xff] }
 0x2c3   : > { %v5234_v2 = vpop.f32.mrf.mxu1  ;;  %v5001_v3 = vadd.f32 %v4946_v15, %v19904_v34 }
 0x2c4   : > { %v20075_v6 = vadd.f32 %v5234_v2, %v4993_v25  ;;  %v16070_v52 = vpop.f32.mrf.mxu0  ;;  %16369 = vmatmul.mubr.msk.f32.gmra.mxu0 %vm419_vm1, %v13709_v27  ;;  %v20086_v25 = vld [vmem:[%s17153_s25 + $0x161] sm:$0xff] }
 0x2c5   : > { %v16108_v41 = vpop.f32.mrf.mxu1  ;;  %16407 = vmatmul.mubr.msk.f32.gmra.mxu1 %vm419_vm1, %v13709_v27  ;;  %v5004_v63 = vadd.f32 %v16070_v52, %v19911_v32  ;;  %16371 = vmatprep.mubr.msk.f32.mxu0 %vm419_vm1, %v13710_v24  ;;  %v20104_v52 = vld [vmem:[%s17153_s25 + $0x181] sm:$0xff] }
 0x2c6   : > { %v20080_v17 = vadd.f32 %v16108_v41, %v4996_v46  ;;  %16409 = vmatprep.mubr.msk.f32.mxu1 %vm419_vm1, %v13710_v24  ;;  %v4956_v26 = vpop.f32.mrf.mxu0 }
 0x2c7   : > { %v5244_v34 = vpop.f32.mrf.mxu1  ;;  %v5003_v42 = vadd.f32 %v4956_v26, %v19921_v7  ;;  %v20101_v7 = vld [vmem:[%s17153_s25 + $0x171] sm:$0xff] }
 0x2c8   : > { %v20089_v15 = vadd.f32 %v5244_v34, %v4995_v40  ;;  %v16073_v27 = vpop.f32.mrf.mxu0  ;;  %16372 = vmatmul.mubr.msk.f32.gmra.mxu0 %vm419_vm1, %v13711_v54 }
 0x2c9   : > { %v16111_v2 = vpop.f32.mrf.mxu1  ;;  %16410 = vmatmul.mubr.msk.f32.gmra.mxu1 %vm419_vm1, %v13711_v54  ;;  %v5006_v32 = vadd.f32 %v16073_v27, %v19928_v61  ;;  %16426 = vmatprep.mubr.msk.f32.mxu0 %vm419_vm1, %v22670_v50 }
 0x2ca   : > { %v20094_v46 = vadd.f32 %v16111_v2, %v4998_v20  ;;  %16412 = vmatprep.mubr.msk.f32.mxu1 %vm419_vm1, %v20086_v25  ;;  %v4966_v40 = vpop.f32.mrf.mxu0 }
 0x2cb   : > { %v5254_v24 = vpop.f32.mrf.mxu1  ;;  %v5005_v41 = vadd.f32 %v4966_v40, %v19935_v23  ;;  %v20121_v23 = vld [vmem:[%s17153_s25 + $0x191] sm:$0xff] }
 0x2cc   : > { %v20107_v54 = vadd.f32 %v5254_v24, %v4997_v53  ;;  %v16128_v20 = vpop.f32.mrf.mxu0  ;;  %16427 = vmatmul.mubr.msk.f32.vlgmr.msra.gmra.mxu0 %vm419_vm1, %v22671_v49  ;;  %v20126_v49 = vld [vmem:[%s17153_s25 + $0x1a1] sm:$0xff] }
 0x2cd   : > { %v16114_v61 = vpop.f32.mrf.mxu1  ;;  %16413 = vmatmul.mubr.msk.f32.gmra.mxu1 %vm419_vm1, %v20101_v7  ;;  %v5598_v26 = vadd.f32 %v16128_v20, %v19943_v21  ;;  %16525 = vmatpush3.msk.msra.mxu0 %vm516_vm0, %v19861_v28  ;;  %v20146_v24 = vld [vmem:[%s17153_s25 + $0x1c1] sm:$0xff] }
 0x2ce   : > { %v20113_v50 = vadd.f32 %v16114_v61, %v5000_v9  ;;  %16415 = vmatprep.mubr.msk.f32.mxu1 %vm419_vm1, %v20104_v52  ;;  %v5438_v34 = vpop.f32.mrf.mxu0  ;;  %16429 = vmatprep.mubr.msk.f32.mxu0 %vm419_vm1, %v22672_v19 }
 0x2cf   : > { %v5264_v53 = vpop.f32.mrf.mxu1  ;;  %v5597_v21 = vadd.f32 %v5438_v34, %v19952_v31  ;;  %v20143_v31 = vld [vmem:[%s17153_s25 + $0x1b1] sm:$0xff] }
 0x2d0   : > { %v20128_v9 = vadd.f32 %v5264_v53, %v4999_v62  ;;  %v16131_v28 = vpop.f32.mrf.mxu0  ;;  %16430 = vmatmul.mubr.msk.f32.gmra.mxu0 %vm419_vm1, %v22673_v48 }
 0x2d1   : > { %v16117_v27 = vpop.f32.mrf.mxu1  ;;  %16416 = vmatmul.mubr.msk.f32.gmra.mxu1 %vm419_vm1, %v20121_v23  ;;  %v5600_v40 = vadd.f32 %v16131_v28, %v19959_v33  ;;  %16432 = vmatprep.mubr.msk.f32.mxu0 %vm419_vm1, %v22674_v14 }
 0x2d2   : > { %v20135_v2 = vadd.f32 %v16117_v27, %v5002_v47  ;;  %16418 = vmatprep.mubr.msk.f32.mxu1 %vm419_vm1, %v20126_v49  ;;  %v5448_v62 = vpop.f32.mrf.mxu0 }
 0x2d3   : > { %v5274_v19 = vpop.f32.mrf.mxu1  ;;  %v5599_v48 = vadd.f32 %v5448_v62, %v19966_v45 }
 0x2d4   : > { %v20148_v61 = vadd.f32 %v5274_v19, %v5001_v3  ;;  %v16134_v20 = vpop.f32.mrf.mxu0  ;;  %16433 = vmatmul.mubr.msk.f32.gmra.mxu0 %vm419_vm1, %v22675_v18  ;;  %v20163_v3 = vld [vmem:[%s17153_s25 + $0x1d1] sm:$0xff] }
 0x2d5   : > { %v16120_v47 = vpop.f32.mrf.mxu1  ;;  %16419 = vmatmul.mubr.msk.f32.gmra.mxu1 %vm419_vm1, %v20143_v31  ;;  %v5602_v14 = vadd.f32 %v16134_v20, %v19973_v38  ;;  %16435 = vmatprep.mubr.msk.f32.mxu0 %vm419_vm1, %v22676_v29 }
 0x2d6   : > { %v20155_v33 = vadd.f32 %v16120_v47, %v5004_v63  ;;  %16421 = vmatprep.mubr.msk.f32.mxu1 %vm419_vm1, %v20146_v24  ;;  %v5458_v53 = vpop.f32.mrf.mxu0 }
 0x2d7   : > { %v5284_v45 = vpop.f32.mrf.mxu1  ;;  %v5601_v27 = vadd.f32 %v5458_v53, %v19981_v36 }
 0x2d8   : > { %v20165_v34 = vadd.f32 %v5284_v45, %v5003_v42  ;;  %v16137_v18 = vpop.f32.mrf.mxu0  ;;  %16436 = vmatmul.mubr.msk.f32.gmra.mxu0 %vm419_vm1, %v22677_v43 }
 0x2d9   : > { %v16123_v28 = vpop.f32.mrf.mxu1  ;;  %16422 = vmatmul.mubr.msk.f32.gmra.mxu1 %vm419_vm1, %v20163_v3  ;;  %v5604_v29 = vadd.f32 %v16137_v18, %v19988_v10  ;;  %16438 = vmatprep.mubr.msk.f32.mxu0 %vm419_vm1, %v19543_v58 }
 0x2da   : > { %v20172_v38 = vadd.f32 %v16123_v28, %v5006_v32  ;;  %16476 = vmatprep.mubr.msk.f32.mxu1 %vm419_vm1, %v19543_v58  ;;  %v5468_v36 = vpop.f32.mrf.mxu0 }
 0x2db   : > { %v5294_v63 = vpop.f32.mrf.mxu1  ;;  %v5603_v19 = vadd.f32 %v5468_v36, %v19996_v8 }
 0x2dc   : > { %v20179_v42 = vadd.f32 %v5294_v63, %v5005_v41  ;;  %v16140_v62 = vpop.f32.mrf.mxu0  ;;  %16439 = vmatmul.mubr.msk.f32.gmra.mxu0 %vm419_vm1, %v19560_v44 }
 0x2dd   : > { %v16178_v47 = vpop.f32.mrf.mxu1  ;;  %16477 = vmatmul.mubr.msk.f32.vlgmr.msra.gmra.mxu1 %vm419_vm1, %v19560_v44  ;;  %v5606_v10 = vadd.f32 %v16140_v62, %v20002_v35  ;;  %16441 = vmatprep.mubr.msk.f32.mxu0 %vm419_vm1, %v19563_v51 }
 0x2de   : > { %v20187_v43 = vadd.f32 %v16178_v47, %v5598_v26  ;;  %16479 = vmatprep.mubr.msk.f32.mxu1 %vm419_vm1, %v19563_v51  ;;  %v5478_v58 = vpop.f32.mrf.mxu0 }
 0x2df   : > { %v5732_v8 = vpop.f32.mrf.mxu1  ;;  %v5605_v32 = vadd.f32 %v5478_v58, %v20010_v11 }
 0x2e0   : > { %v20194_v41 = vadd.f32 %v5732_v8, %v5597_v21  ;;  %v16143_v20 = vpop.f32.mrf.mxu0  ;;  %16442 = vmatmul.mubr.msk.f32.gmra.mxu0 %vm419_vm1, %v19585_v12  ;;  %v22681_v8 = vld [vmem:[#allocation6_spill] sm:$0xff] }
 0x2e1   : > { %v16181_v45 = vpop.f32.mrf.mxu1  ;;  %16480 = vmatmul.mubr.msk.f32.gmra.mxu1 %vm419_vm1, %v19585_v12  ;;  %v5608_v44 = vadd.f32 %v16143_v20, %v20016_v5  ;;  %16444 = vmatprep.mubr.msk.f32.mxu0 %vm419_vm1, %v19590_v60 }
 0x2e2   : > { %v20201_v35 = vadd.f32 %v16181_v45, %v5600_v40  ;;  %16482 = vmatprep.mubr.msk.f32.mxu1 %vm419_vm1, %v19590_v60  ;;  %v5488_v51 = vpop.f32.mrf.mxu0 }
 0x2e3   : > { %v5742_v11 = vpop.f32.mrf.mxu1  ;;  %v5607_v26 = vadd.f32 %v5488_v51, %v20024_v30 }
 0x2e4   : > { %v20208_v21 = vadd.f32 %v5742_v11, %v5599_v48  ;;  %v16146_v53 = vpop.f32.mrf.mxu0  ;;  %16445 = vmatmul.mubr.msk.f32.gmra.mxu0 %vm419_vm1, %v19609_v16 }
 0x2e5   : > { %v16184_v28 = vpop.f32.mrf.mxu1  ;;  %16483 = vmatmul.mubr.msk.f32.gmra.mxu1 %vm419_vm1, %v19609_v16  ;;  %v5610_v12 = vadd.f32 %v16146_v53, %v20030_v22  ;;  %16447 = vmatprep.mubr.msk.f32.mxu0 %vm419_vm1, %v19612_v4  ;;  %v13788_v53 = vld [vmem:[%s17153_s25 + $0x201] sm:$0xff] }
 0x2e6   : > { %v20215_v5 = vadd.f32 %v16184_v28, %v5602_v14  ;;  %16485 = vmatprep.mubr.msk.f32.mxu1 %vm419_vm1, %v19612_v4  ;;  %v5498_v60 = vpop.f32.mrf.mxu0 }
 0x2e7   : > { %v5752_v30 = vpop.f32.mrf.mxu1  ;;  %v5609_v40 = vadd.f32 %v5498_v60, %v20038_v39 }
 0x2e8   : > { %v20222_v48 = vadd.f32 %v5752_v30, %v5601_v27  ;;  %v16149_v18 = vpop.f32.mrf.mxu0  ;;  %16448 = vmatmul.mubr.msk.f32.gmra.mxu0 %vm419_vm1, %v19629_v0 }
 0x2e9   : > { %v16187_v63 = vpop.f32.mrf.mxu1  ;;  %16486 = vmatmul.mubr.msk.f32.gmra.mxu1 %vm419_vm1, %v19629_v0  ;;  %v5612_v16 = vadd.f32 %v16149_v18, %v20044_v59  ;;  %16450 = vmatprep.mubr.msk.f32.mxu0 %vm419_vm1, %v20086_v25  ;;  %v22678_v25 = vld [vmem:[#allocation21_spill] sm:$0xff] }
 0x2ea   : > { %v20229_v22 = vadd.f32 %v16187_v63, %v5604_v29  ;;  %16488 = vmatprep.mubr.msk.f32.mxu1 %vm419_vm1, %v19753_v13  ;;  %v5508_v4 = vpop.f32.mrf.mxu0  ;;  %v13790_v63 = vld [vmem:[%s17153_s25 + $0x221] sm:$0xff] }
 0x2eb   : > { %v5762_v39 = vpop.f32.mrf.mxu1  ;;  %v5611_v14 = vadd.f32 %v5508_v4, %v20051_v56 }
 0x2ec   : > { %v20236_v27 = vadd.f32 %v5762_v39, %v5603_v19  ;;  %v16152_v36 = vpop.f32.mrf.mxu0  ;;  %16451 = vmatmul.mubr.msk.f32.gmra.mxu0 %vm419_vm1, %v20101_v7 }
 0x2ed   : > { %v16190_v62 = vpop.f32.mrf.mxu1  ;;  %16489 = vmatmul.mubr.msk.f32.gmra.mxu1 %vm419_vm1, %v19770_v1  ;;  %v5614_v0 = vadd.f32 %v16152_v36, %v20056_v55  ;;  %16453 = vmatprep.mubr.msk.f32.mxu0 %vm419_vm1, %v20104_v52  ;;  %v22680_v55 = vld [vmem:[#allocation22_spill] sm:$0xff] }
 0x2ee   : > { %v20243_v59 = vadd.f32 %v16190_v62, %v5606_v10  ;;  %16491 = vmatprep.mubr.msk.f32.mxu1 %vm419_vm1, %v22678_v25  ;;  %v5518_v56 = vpop.f32.mrf.mxu0  ;;  %v13791_v62 = vld [vmem:[%s17153_s25 + $0x231] sm:$0xff] }
 0x2ef   : > { %v5772_v29 = vpop.f32.mrf.mxu1  ;;  %v20250_v19 = vadd.f32 %v5518_v56, %v20063_v57  ;;  %v13792_v56 = vld [vmem:[%s17153_s25 + $0x241] sm:$0xff] }
 0x2f0   : > { %v20252_v47 = vadd.f32 %v5772_v29, %v5605_v32  ;;  %v16155_v7 = vpop.f32.mrf.mxu0  ;;  %16454 = vmatmul.mubr.msk.f32.gmra.mxu0 %vm419_vm1, %v20121_v23 }
 0x2f1   : > { %22679 = vst [vmem:[#allocation27_spill] sm:$0xff] %v20250_v19  ;;  %v16193_v58 = vpop.f32.mrf.mxu1  ;;  %16492 = vmatmul.mubr.msk.f32.gmra.mxu1 %vm419_vm1, %v22680_v55  ;;  %v5616_v52 = vadd.f32 %v16155_v7, %v20068_v37  ;;  %16456 = vmatprep.mubr.msk.f32.mxu0 %vm419_vm1, %v20126_v49  ;;  %v22683_v37 = vld [vmem:[#allocation23_spill] sm:$0xff] }
 0x2f2   : > { %v20259_v10 = vadd.f32 %v16193_v58, %v5608_v44  ;;  %16494 = vmatprep.mubr.msk.f32.mxu1 %vm419_vm1, %v22681_v8  ;;  %v5528_v57 = vpop.f32.mrf.mxu0 }
 0x2f3   : > { %v5782_v32 = vpop.f32.mrf.mxu1  ;;  %v20266_v20 = vadd.f32 %v5528_v57, %v20075_v6  ;;  %v22684_v6 = vld [vmem:[#allocation24_spill] sm:$0xff]  ;;  %v13793_v57 = vld [vmem:[%s17153_s25 + $0x251] sm:$0xff] }
 0x2f4   : > { %v20268_v23 = vadd.f32 %v5782_v32, %v5607_v26  ;;  %v16158_v45 = vpop.f32.mrf.mxu0  ;;  %16457 = vmatmul.mubr.msk.f32.gmra.mxu0 %vm419_vm1, %v20143_v31 }
 0x2f5   : > { %22682 = vst [vmem:[#allocation31_spill] sm:$0xff] %v20266_v20  ;;  %v16196_v51 = vpop.f32.mrf.mxu1  ;;  %16495 = vmatmul.mubr.msk.f32.gmra.mxu1 %vm419_vm1, %v22683_v37  ;;  %v5618_v49 = vadd.f32 %v16158_v45, %v20080_v17  ;;  %16459 = vmatprep.mubr.msk.f32.mxu0 %vm419_vm1, %v20146_v24  ;;  %v13794_v45 = vld [vmem:[%s17153_s25 + $0x261] sm:$0xff] }
 0x2f6   : > { %v20275_v44 = vadd.f32 %v16196_v51, %v5610_v12  ;;  %16497 = vmatprep.mubr.msk.f32.mxu1 %vm419_vm1, %v22684_v6  ;;  %v5538_v11 = vpop.f32.mrf.mxu0  ;;  %v22686_v12 = vld [vmem:[#allocation25_spill] sm:$0xff] }
 0x2f7   : > { %v5792_v26 = vpop.f32.mrf.mxu1  ;;  %v20283_v31 = vadd.f32 %v5538_v11, %v20089_v15  ;;  %v13789_v15 = vld [vmem:[%s17153_s25 + $0x211] sm:$0xff] }
 0x2f8   : > { %v20285_v28 = vadd.f32 %v5792_v26, %v5609_v40  ;;  %v16161_v60 = vpop.f32.mrf.mxu0  ;;  %16460 = vmatmul.mubr.msk.f32.gmra.mxu0 %vm419_vm1, %v20163_v3 }
 0x2f9   : > { %22685 = vst [vmem:[#allocation8_spill] sm:$0xff] %v20283_v31  ;;  %v16199_v17 = vpop.f32.mrf.mxu1  ;;  %16498 = vmatmul.mubr.msk.f32.gmra.mxu1 %vm419_vm1, %v22686_v12  ;;  %v5620_v24 = vadd.f32 %v16161_v60, %v20094_v46  ;;  %16462 = vmatprep.mubr.msk.f32.mxu0 %vm419_vm1, %v13788_v53 }
 0x2fa   : > { %v20292_v30 = vadd.f32 %v16199_v17, %v5612_v16  ;;  %16500 = vmatprep.mubr.msk.f32.mxu1 %vm419_vm1, %v13788_v53  ;;  %v5548_v40 = vpop.f32.mrf.mxu0  ;;  %v13795_v53 = vld [vmem:[%s17153_s25 + $0x271] sm:$0xff]  ;;  %v20342_v17 = vld [vmem:[%s17153_s25 + $0x162] sm:$0xff] }
 0x2fb   : > { %v5802_v18 = vpop.f32.mrf.mxu1  ;;  %v20299_v4 = vadd.f32 %v5548_v40, %v20107_v54 }
 0x2fc   : > { %v20301_v3 = vadd.f32 %v5802_v18, %v5611_v14  ;;  %v16164_v39 = vpop.f32.mrf.mxu0  ;;  %16463 = vmatmul.mubr.msk.f32.gmra.mxu0 %vm419_vm1, %v13789_v15 }
 0x2fd   : > { %22687 = vst [vmem:[#allocation10_spill] sm:$0xff] %v20299_v4  ;;  %v16202_v36 = vpop.f32.mrf.mxu1  ;;  %16501 = vmatmul.mubr.msk.f32.gmra.mxu1 %vm419_vm1, %v13789_v15  ;;  %v5622_v46 = vadd.f32 %v16164_v39, %v20113_v50  ;;  %16465 = vmatprep.mubr.msk.f32.mxu0 %vm419_vm1, %v13790_v63 }
 0x2fe   : > { %v20306_v16 = vadd.f32 %v16202_v36, %v5614_v0  ;;  %16503 = vmatprep.mubr.msk.f32.mxu1 %vm419_vm1, %v13790_v63  ;;  %v5558_v54 = vpop.f32.mrf.mxu0  ;;  %v20357_v63 = vld [vmem:[%s17153_s25 + $0x172] sm:$0xff]  ;;  %v20362_v36 = vld [vmem:[%s17153_s25 + $0x182] sm:$0xff] }
 0x2ff   : > { %v20311_v14 = vpop.f32.mrf.mxu1  ;;  %v20315_v29 = vadd.f32 %v5558_v54, %v20128_v9 }
 0x300   : > { %22688 = vst [vmem:[#allocation12_spill] sm:$0xff] %v20311_v14  ;;  %v16167_v7 = vpop.f32.mrf.mxu0  ;;  %16466 = vmatmul.mubr.msk.f32.gmra.mxu0 %vm419_vm1, %v13791_v62 }
 0x301   : > { %22689 = vst [vmem:[#allocation28_spill] sm:$0xff] %v20315_v29  ;;  %v16205_v58 = vpop.f32.mrf.mxu1  ;;  %16504 = vmatmul.mubr.msk.f32.gmra.mxu1 %vm419_vm1, %v13791_v62  ;;  %v5624_v50 = vadd.f32 %v16167_v7, %v20135_v2  ;;  %16468 = vmatprep.mubr.msk.f32.mxu0 %vm419_vm1, %v13792_v56 }
 0x302   : > { %v20320_v0 = vadd.f32 %v16205_v58, %v5616_v52  ;;  %16506 = vmatprep.mubr.msk.f32.mxu1 %vm419_vm1, %v13792_v56  ;;  %v5568_v32 = vpop.f32.mrf.mxu0  ;;  %v20384_v58 = vld [vmem:[%s17153_s25 + $0x1a2] sm:$0xff] }
 0x303   : > { %v20325_v9 = vpop.f32.mrf.mxu1  ;;  %v20329_v51 = vadd.f32 %v5568_v32, %v20148_v61 }
 0x304   : > { %22690 = vst [vmem:[#allocation29_spill] sm:$0xff] %v20325_v9  ;;  %v16170_v11 = vpop.f32.mrf.mxu0  ;;  %16469 = vmatmul.mubr.msk.f32.gmra.mxu0 %vm419_vm1, %v13793_v57 }
 0x305   : > { %22691 = vst [vmem:[#allocation32_spill] sm:$0xff] %v20329_v51  ;;  %v16208_v26 = vpop.f32.mrf.mxu1  ;;  %16507 = vmatmul.mubr.msk.f32.gmra.mxu1 %vm419_vm1, %v13793_v57  ;;  %v5626_v2 = vadd.f32 %v16170_v11, %v20155_v33  ;;  %16471 = vmatprep.mubr.msk.f32.mxu0 %vm419_vm1, %v13794_v45  ;;  %v20406_v11 = vld [vmem:[%s17153_s25 + $0x1c2] sm:$0xff] }
 0x306   : > { %v20334_v52 = vadd.f32 %v16208_v26, %v5618_v49  ;;  %16509 = vmatprep.mubr.msk.f32.mxu1 %vm419_vm1, %v13794_v45  ;;  %v5578_v60 = vpop.f32.mrf.mxu0 }
 0x307   : > { %v20339_v61 = vpop.f32.mrf.mxu1  ;;  %v20345_v15 = vadd.f32 %v5578_v60, %v20165_v34 }
 0x308   : > { %22692 = vst [vmem:[#allocation33_spill] sm:$0xff] %v20339_v61  ;;  %v16173_v40 = vpop.f32.mrf.mxu0  ;;  %16472 = vmatmul.mubr.msk.f32.gmra.mxu0 %vm419_vm1, %v13795_v53 }
 0x309   : > { %22693 = vst [vmem:[#allocation34_spill] sm:$0xff] %v20345_v15  ;;  %v16211_v18 = vpop.f32.mrf.mxu1  ;;  %16510 = vmatmul.mubr.msk.f32.gmra.mxu1 %vm419_vm1, %v13795_v53  ;;  %v5628_v33 = vadd.f32 %v16173_v40, %v20172_v38  ;;  %16526 = vmatprep.mubr.msk.f32.mxu0 %vm419_vm1, %v19753_v13 }
 0x30a   : > { %v20350_v49 = vadd.f32 %v16211_v18, %v5620_v24  ;;  %16512 = vmatprep.mubr.msk.f32.mxu1 %vm419_vm1, %v20342_v17  ;;  %v5588_v34 = vpop.f32.mrf.mxu0 }
 0x30b   : > { %v20359_v39 = vpop.f32.mrf.mxu1  ;;  %v20365_v62 = vadd.f32 %v5588_v34, %v20179_v42  ;;  %v20379_v42 = vld [vmem:[%s17153_s25 + $0x192] sm:$0xff] }
 0x30c   : > { %22694 = vst [vmem:[#allocation35_spill] sm:$0xff] %v20359_v39  ;;  %v16228_v24 = vpop.f32.mrf.mxu0  ;;  %16527 = vmatmul.mubr.msk.f32.vlgmr.msra.gmra.mxu0 %vm419_vm1, %v19770_v1  ;;  %v22699_v34 = vld [vmem:[#allocation26_spill] sm:$0xff] }
 0x30d   : > { %22695 = vst [vmem:[#allocation36_spill] sm:$0xff] %v20365_v62  ;;  %v16214_v38 = vpop.f32.mrf.mxu1  ;;  %16513 = vmatmul.mubr.msk.f32.gmra.mxu1 %vm419_vm1, %v20357_v63  ;;  %v6186_v54 = vadd.f32 %v16228_v24, %v20187_v43  ;;  %16529 = vmatprep.mubr.msk.f32.mxu0 %vm419_vm1, %v22678_v25 }
 0x30e   : > { %v20371_v13 = vadd.f32 %v16214_v38, %v5622_v46  ;;  %16515 = vmatprep.mubr.msk.f32.mxu1 %vm419_vm1, %v20362_v36  ;;  %v6026_v7 = vpop.f32.mrf.mxu0 }
 0x30f   : > { %v20381_v56 = vpop.f32.mrf.mxu1  ;;  %v20387_v1 = vadd.f32 %v6026_v7, %v20194_v41  ;;  %v20401_v41 = vld [vmem:[%s17153_s25 + $0x1b2] sm:$0xff] }
 0x310   : > { %22696 = vst [vmem:[#allocation37_spill] sm:$0xff] %v20381_v56  ;;  %v16231_v43 = vpop.f32.mrf.mxu0  ;;  %16530 = vmatmul.mubr.msk.f32.gmra.mxu0 %vm419_vm1, %v22680_v55 }
 0x311   : > { %v16217_v46 = vpop.f32.mrf.mxu1  ;;  %16516 = vmatmul.mubr.msk.f32.gmra.mxu1 %vm419_vm1, %v20379_v42  ;;  %v6188_v57 = vadd.f32 %v16231_v43, %v20201_v35  ;;  %16532 = vmatprep.mubr.msk.f32.mxu0 %vm419_vm1, %v22681_v8  ;;  %v8055_v35 = vld [vmem:[%s22312_s3 + $0x8] sm:$0xf]  ;;  %v22701_v43 = vld [vmem:[#allocation30_spill] sm:$0xff] }
 0x312   : > { %v20393_v25 = vadd.f32 %v16217_v46, %v5624_v50  ;;  %16518 = vmatprep.mubr.msk.f32.mxu1 %vm419_vm1, %v20384_v58  ;;  %v6036_v45 = vpop.f32.mrf.mxu0  ;;  %16574 = vmatprep.subr.msk.mxu1 %vm516_vm0, %v8055_v35 }
 0x313   : > { %v20403_v32 = vpop.f32.mrf.mxu1  ;;  %v20409_v55 = vadd.f32 %v6036_v45, %v20208_v21  ;;  %v20426_v21 = vld [vmem:[%s17153_s25 + $0x1d2] sm:$0xff]  ;;  %16575 = vmatpush3.msk.msra.mxu1 %vm516_vm0, %v8055_v35  ;;  %v22702_v45 = vld [vmem:[#allocation3_spill] sm:$0xff] }
 0x314   : > { %22697 = vst [vmem:[#allocation5_spill] sm:$0xff] %v20403_v32  ;;  %v16234_v26 = vpop.f32.mrf.mxu0  ;;  %16533 = vmatmul.mubr.msk.f32.gmra.mxu0 %vm419_vm1, %v22683_v37 }
 0x315   : > { %v16220_v50 = vpop.f32.mrf.mxu1  ;;  %16519 = vmatmul.mubr.msk.f32.gmra.mxu1 %vm419_vm1, %v20401_v41  ;;  %v6190_v53 = vadd.f32 %v16234_v26, %v20215_v5  ;;  %16535 = vmatprep.mubr.msk.f32.mxu0 %vm419_vm1, %v22684_v6 }
 0x316   : > { %v20418_v8 = vadd.f32 %v16220_v50, %v5626_v2  ;;  %16521 = vmatprep.mubr.msk.f32.mxu1 %vm419_vm1, %v20406_v11  ;;  %v6046_v40 = vpop.f32.mrf.mxu0 }
 0x317   : > { %v20428_v60 = vpop.f32.mrf.mxu1  ;;  %v20432_v18 = vadd.f32 %v6046_v40, %v20222_v48  ;;  %v22703_v40 = vld [vmem:[#allocation9_spill] sm:$0xff] }
 0x318   : > { %22698 = vst [vmem:[#allocation15_spill] sm:$0xff] %v20428_v60  ;;  %v16237_v5 = vpop.f32.mrf.mxu0  ;;  %16536 = vmatmul.mubr.msk.f32.gmra.mxu0 %vm419_vm1, %v22686_v12 }
 0x319   : > { %v16223_v37 = vpop.f32.mrf.mxu1  ;;  %16522 = vmatmul.mubr.msk.f32.gmra.mxu1 %vm419_vm1, %v20426_v21  ;;  %v6192_v2 = vadd.f32 %v16237_v5, %v20229_v22  ;;  %16538 = vmatprep.mubr.msk.f32.mxu0 %vm419_vm1, %v22699_v34 }
 0x31a   : > { %v20439_v6 = vadd.f32 %v16223_v37, %v5628_v33  ;;  %v6056_v48 = vpop.f32.mrf.mxu0 }
 0x31b   : > { %v20444_v38 = vpop.f32.mrf.mxu1  ;;  %v20447_v24 = vadd.f32 %v6056_v48, %v20236_v27 }
 0x31c   : > { %22700 = vst [vmem:[#allocation16_spill] sm:$0xff] %v20444_v38  ;;  %v16240_v7 = vpop.f32.mrf.mxu0  ;;  %16539 = vmatmul.mubr.msk.f32.gmra.mxu0 %vm419_vm1, %v22701_v43 }
 0x31d   : > { %v16278_v46 = vpop.f32.mrf.mxu1  ;;  %v6194_v12 = vadd.f32 %v16240_v7, %v20243_v59  ;;  %16541 = vmatprep.mubr.msk.f32.mxu0 %vm419_vm1, %v22702_v45  ;;  %v22704_v59 = vld [vmem:[#allocation11_spill] sm:$0xff] }
 0x31e   : > { %v20452_v33 = vadd.f32 %v16278_v46, %v6186_v54  ;;  %v6066_v22 = vpop.f32.mrf.mxu0  ;;  %v22705_v46 = vld [vmem:[#allocation13_spill] sm:$0xff] }
 0x31f   : > { %v20456_v35 = vpop.f32.mrf.mxu1  ;;  %v20459_v50 = vadd.f32 %v6066_v22, %v20252_v47 }
 0x320   : > { %v16243_v27 = vpop.f32.mrf.mxu0  ;;  %16542 = vmatmul.mubr.msk.f32.gmra.mxu0 %vm419_vm1, %v22703_v40  ;;  %v22708_v40 = vld [vmem:[#allocation14_spill] sm:$0xff] }
 0x321   : > { %v16281_v26 = vpop.f32.mrf.mxu1  ;;  %v6196_v37 = vadd.f32 %v16243_v27, %v20259_v10  ;;  %16544 = vmatprep.mubr.msk.f32.mxu0 %vm419_vm1, %v22704_v59  ;;  %v22706_v10 = vld [vmem:[#allocation4_spill] sm:$0xff] }
 0x322   : > { %v20464_v5 = vadd.f32 %v16281_v26, %v6188_v57  ;;  %v6076_v54 = vpop.f32.mrf.mxu0 }
 0x323   : > { %v20468_v34 = vpop.f32.mrf.mxu1  ;;  %v20471_v48 = vadd.f32 %v6076_v54, %v20268_v23 }
 0x324   : > { %v16246_v47 = vpop.f32.mrf.mxu0  ;;  %16545 = vmatmul.mubr.msk.f32.gmra.mxu0 %vm419_vm1, %v22705_v46 }
 0x325   : > { %v16284_v7 = vpop.f32.mrf.mxu1  ;;  %v6198_v43 = vadd.f32 %v16246_v47, %v20275_v44  ;;  %16547 = vmatprep.mubr.msk.f32.mxu0 %vm419_vm1, %v22706_v10 }
 0x326   : > { %v20476_v45 = vadd.f32 %v16284_v7, %v6190_v53  ;;  %v6086_v57 = vpop.f32.mrf.mxu0 }
 0x327   : > { %v20480_v22 = vpop.f32.mrf.mxu1  ;;  %v20483_v27 = vadd.f32 %v6086_v57, %v20285_v28 }
 0x328   : > { %v16249_v23 = vpop.f32.mrf.mxu0  ;;  %16548 = vmatmul.mubr.msk.f32.gmra.mxu0 %vm419_vm1, %v22708_v40  ;;  %v13872_v40 = vld [vmem:[%s17153_s25 + $0x202] sm:$0xff] }
 0x329   : > { %22707 = vst [vmem:[#allocation7_spill] sm:$0xff] %v20483_v27  ;;  %v16287_v26 = vpop.f32.mrf.mxu1  ;;  %v6200_v59 = vadd.f32 %v16249_v23, %v20292_v30  ;;  %16550 = vmatprep.mubr.msk.f32.mxu0 %vm419_vm1, %v20342_v17 }
 0x32a   : > { %v20488_v54 = vadd.f32 %v16287_v26, %v6192_v2  ;;  %v6096_v44 = vpop.f32.mrf.mxu0 }
 0x32b   : > { %v20492_v53 = vpop.f32.mrf.mxu1  ;;  %v20495_v47 = vadd.f32 %v6096_v44, %v20301_v3 }
 0x32c   : > { %v16252_v28 = vpop.f32.mrf.mxu0  ;;  %16551 = vmatmul.mubr.msk.f32.gmra.mxu0 %vm419_vm1, %v20357_v63 }
 0x32d   : > { %22709 = vst [vmem:[#allocation17_spill] sm:$0xff] %v20495_v47  ;;  %v16290_v7 = vpop.f32.mrf.mxu1  ;;  %v6202_v46 = vadd.f32 %v16252_v28, %v20306_v16  ;;  %16553 = vmatprep.mubr.msk.f32.mxu0 %vm419_vm1, %v20362_v36 }
 0x32e   : > { %v20500_v10 = vadd.f32 %v16290_v7, %v6194_v12  ;;  %v20504_v30 = vpop.f32.mrf.mxu0  ;;  %v8054_v12 = vld [vmem:[%s22312_s3] sm:$0xff] }
 0x32f   : > { %22710 = vst [vmem:[#allocation18_spill] sm:$0xff] %v20504_v30  ;;  %v20506_v17 = vpop.f32.mrf.mxu1  ;;  %16576 = vmatprep.subr.mxu1 %v8054_v12 }
 0x330   : > { %v16255_v2 = vpop.f32.mrf.mxu0  ;;  %16554 = vmatmul.mubr.msk.f32.gmra.mxu0 %vm419_vm1, %v20379_v42  ;;  %16577 = vmatpush3.msra.mxu1 %v8054_v12 }
 0x331   : > { %v16293_v57 = vpop.f32.mrf.mxu1  ;;  %v6204_v3 = vadd.f32 %v16255_v2, %v20320_v0  ;;  %16556 = vmatprep.mubr.msk.f32.mxu0 %vm419_vm1, %v20384_v58  ;;  %v13874_v2 = vld [vmem:[%s17153_s25 + $0x222] sm:$0xff] }
 0x332   : > { %v20511_v63 = vadd.f32 %v16293_v57, %v6196_v37  ;;  %v20515_v16 = vpop.f32.mrf.mxu0 }
 0x333   : > { %22711 = vst [vmem:[#allocation19_spill] sm:$0xff] %v20515_v16  ;;  %v20517_v36 = vpop.f32.mrf.mxu1 }
 0x334   : > { %v16258_v23 = vpop.f32.mrf.mxu0  ;;  %16557 = vmatmul.mubr.msk.f32.gmra.mxu0 %vm419_vm1, %v20401_v41 }
 0x335   : > { %v16296_v26 = vpop.f32.mrf.mxu1  ;;  %v6206_v0 = vadd.f32 %v16258_v23, %v20334_v52  ;;  %16559 = vmatprep.mubr.msk.f32.mxu0 %vm419_vm1, %v20406_v11  ;;  %v13873_v11 = vld [vmem:[%s17153_s25 + $0x212] sm:$0xff] }
 0x336   : > { %v20525_v42 = vadd.f32 %v16296_v26, %v6198_v43  ;;  %v20529_v58 = vpop.f32.mrf.mxu0 }
 0x337   : > { %22712 = vst [vmem:[#allocation20_spill] sm:$0xff] %v20529_v58  ;;  %v20531_v37 = vpop.f32.mrf.mxu1 }
 0x338   : > { %22713 = vst [vmem:[#allocation21_spill] sm:$0xff] %v20531_v37  ;;  %v16261_v44 = vpop.f32.mrf.mxu0  ;;  %16560 = vmatmul.mubr.msk.f32.gmra.mxu0 %vm419_vm1, %v20426_v21 }
 0x339   : > { %v16299_v28 = vpop.f32.mrf.mxu1  ;;  %v6208_v52 = vadd.f32 %v16261_v44, %v20350_v49  ;;  %16562 = vmatprep.mubr.msk.f32.mxu0 %vm419_vm1, %v13872_v40  ;;  %v13876_v40 = vld [vmem:[%s17153_s25 + $0x242] sm:$0xff] }
 0x33a   : > { %v20537_v41 = vadd.f32 %v16299_v28, %v6200_v59  ;;  %v20541_v43 = vpop.f32.mrf.mxu0  ;;  %v13875_v59 = vld [vmem:[%s17153_s25 + $0x232] sm:$0xff] }
 0x33b   : > { %22714 = vst [vmem:[#allocation22_spill] sm:$0xff] %v20541_v43  ;;  %v20543_v7 = vpop.f32.mrf.mxu1 }
 0x33c   : > { %22715 = vst [vmem:[#allocation6_spill] sm:$0xff] %v20543_v7  ;;  %v16264_v57 = vpop.f32.mrf.mxu0  ;;  %16563 = vmatmul.mubr.msk.f32.gmra.mxu0 %vm419_vm1, %v13873_v11 }
 0x33d   : > { %v16302_v12 = vpop.f32.mrf.mxu1  ;;  %v6210_v21 = vadd.f32 %v16264_v57, %v20371_v13  ;;  %16565 = vmatprep.mubr.msk.f32.mxu0 %vm419_vm1, %v13874_v2  ;;  %v13877_v13 = vld [vmem:[%s17153_s25 + $0x252] sm:$0xff]  ;;  %v13878_v57 = vld [vmem:[%s17153_s25 + $0x262] sm:$0xff] }
 0x33e   : > { %v20548_v49 = vadd.f32 %v16302_v12, %v6202_v46  ;;  %v20552_v23 = vpop.f32.mrf.mxu0 }
 0x33f   : > { %22716 = vst [vmem:[#allocation23_spill] sm:$0xff] %v20552_v23  ;;  %v20554_v26 = vpop.f32.mrf.mxu1 }
 0x340   : > { %22717 = vst [vmem:[#allocation24_spill] sm:$0xff] %v20554_v26  ;;  %v16267_v44 = vpop.f32.mrf.mxu0  ;;  %16566 = vmatmul.mubr.msk.f32.gmra.mxu0 %vm419_vm1, %v13875_v59 }
 0x341   : > { %v16305_v28 = vpop.f32.mrf.mxu1  ;;  %v6212_v11 = vadd.f32 %v16267_v44, %v20393_v25  ;;  %16568 = vmatprep.mubr.msk.f32.mxu0 %vm419_vm1, %v13876_v40  ;;  %v13879_v25 = vld [vmem:[%s17153_s25 + $0x272] sm:$0xff] }
 0x342   : > { %v20559_v38 = vadd.f32 %v16305_v28, %v6204_v3  ;;  %v20563_v46 = vpop.f32.mrf.mxu0 }
 0x343   : > { %22718 = vst [vmem:[#allocation25_spill] sm:$0xff] %v20563_v46  ;;  %v20565_v2 = vpop.f32.mrf.mxu1 }
 0x344   : > { %22719 = vst [vmem:[#allocation26_spill] sm:$0xff] %v20565_v2  ;;  %v16270_v12 = vpop.f32.mrf.mxu0  ;;  %16569 = vmatmul.mubr.msk.f32.gmra.mxu0 %vm419_vm1, %v13877_v13 }
 0x345   : > { %v16308_v62 = vpop.f32.mrf.mxu1  ;;  %v6214_v60 = vadd.f32 %v16270_v12, %v20418_v8  ;;  %16571 = vmatprep.mubr.msk.f32.mxu0 %vm419_vm1, %v13878_v57 }
 0x346   : > { %v20570_v15 = vadd.f32 %v16308_v62, %v6206_v0  ;;  %v20574_v3 = vpop.f32.mrf.mxu0 }
 0x347   : > { %22720 = vst [vmem:[#allocation30_spill] sm:$0xff] %v20574_v3  ;;  %v20576_v59 = vpop.f32.mrf.mxu1 }
 0x348   : > { %22721 = vst [vmem:[#allocation3_spill] sm:$0xff] %v20576_v59  ;;  %v16273_v40 = vpop.f32.mrf.mxu0  ;;  %16572 = vmatmul.mubr.msk.f32.gmra.mxu0 %vm419_vm1, %v13879_v25 }
 0x349   : > { %v16311_v44 = vpop.f32.mrf.mxu1  ;;  %v6216_v28 = vadd.f32 %v16273_v40, %v20439_v6 }
 0x34a   : > { %v20580_v46 = vadd.f32 %v16311_v44, %v6208_v52  ;;  %v20582_v13 = vpop.f32.mrf.mxu0 }
 0x34b   : > { %22722 = vst [vmem:[#allocation9_spill] sm:$0xff] %v20582_v13  ;;  %v20584_v8 = vpop.f32.mrf.mxu1 }
 0x34c   : > { %22723 = vst [vmem:[#allocation11_spill] sm:$0xff] %v20584_v8  ;;  %v16328_v0 = vpop.f32.mrf.mxu0 }
 0x34d   : > { %v16314_v62 = vpop.f32.mrf.mxu1  ;;  %v20589_v12 = vadd.f32 %v16328_v0, %v20452_v33 }
 0x34e   : > { %v20586_v57 = vadd.f32 %v16314_v62, %v6210_v21  ;;  %v20593_v32 = vpop.f32.mrf.mxu0 }
 0x34f   : > { %v20591_v3 = vpop.f32.mrf.mxu1 }
 0x350   : > { %22724 = vst [vmem:[#allocation13_spill] sm:$0xff] %v20591_v3  ;;  %v16331_v51 = vpop.f32.mrf.mxu0 }
 0x351   : > { %v16317_v25 = vpop.f32.mrf.mxu1  ;;  %v20598_v52 = vadd.f32 %v16331_v51, %v20464_v5 }
 0x352   : > { %v20595_v6 = vadd.f32 %v16317_v25, %v6212_v11  ;;  %v20602_v44 = vpop.f32.mrf.mxu0 }
 0x353   : > { %v20600_v40 = vpop.f32.mrf.mxu1 }
 0x354   : > { %22725 = vst [vmem:[#allocation4_spill] sm:$0xff] %v20600_v40  ;;  %v16334_v62 = vpop.f32.mrf.mxu0 }
 0x355   : > { %v16320_v21 = vpop.f32.mrf.mxu1  ;;  %v20605_v33 = vadd.f32 %v16334_v62, %v20476_v45 }
 0x356   : > { %v6508_v13 = vadd.f32 %v16320_v21, %v6214_v60  ;;  %v20609_v3 = vpop.f32.mrf.mxu0 }
 0x357   : > { %v20607_v0 = vpop.f32.mrf.mxu1 }
 0x358   : > { %22726 = vst [vmem:[#allocation14_spill] sm:$0xff] %v20607_v0  ;;  %v16337_v11 = vpop.f32.mrf.mxu0 }
 0x359   : > { %v16323_v23 = vpop.f32.mrf.mxu1  ;;  %v20612_v51 = vadd.f32 %v16337_v11, %v20488_v54 }
 0x35a   : > { %v6510_v25 = vadd.f32 %v16323_v23, %v6216_v28  ;;  %v20616_v40 = vpop.f32.mrf.mxu0 }
 0x35b   : > { %v20614_v5 = vpop.f32.mrf.mxu1 }
 0x35c   : > { %22727 = vst [vmem:[#allocation38_spill] sm:$0xff] %v20614_v5  ;;  %v16340_v8 = vpop.f32.mrf.mxu0 }
 0x35d   : > { %v20618_v56 = vpop.f32.mrf.mxu1  ;;  %v20621_v60 = vadd.f32 %v16340_v8, %v20500_v10 }
 0x35e   : > { %v20623_v45 = vpop.f32.mrf.mxu0 }
 0x35f   : > { %v20625_v21 = vpop.f32.mrf.mxu1 }
 0x360   : > { %v16343_v62 = vpop.f32.mrf.mxu0 }
 0x361   : > { %v20627_v0 = vpop.f32.mrf.mxu1  ;;  %v20630_v54 = vadd.f32 %v16343_v62, %v20511_v63 }
 0x362   : > { %v20632_v23 = vpop.f32.mrf.mxu0 }
 0x363   : > { %v20634_v28 = vpop.f32.mrf.mxu1 }
 0x364   : > { %v16346_v11 = vpop.f32.mrf.mxu0 }
 0x365   : > { %v20636_v5 = vpop.f32.mrf.mxu1  ;;  %v20639_v10 = vadd.f32 %v16346_v11, %v20525_v42 }
 0x366   : > { %v20641_v8 = vpop.f32.mrf.mxu0 }
 0x367   : > { %22728 = vst [vmem:[#allocation39_spill] sm:$0xff] %v20639_v10  ;;  %22729 = vst [vmem:[#allocation40_spill] sm:$0xff] %v20641_v8  ;;  %v20643_v29 = vpop.f32.mrf.mxu1 }
 0x368   : > { %v16349_v43 = vpop.f32.mrf.mxu0 }
 0x369   : > { %v20645_v59 = vpop.f32.mrf.mxu1  ;;  %v20648_v63 = vadd.f32 %v16349_v43, %v20537_v41 }
 0x36a   : > { %v20650_v62 = vpop.f32.mrf.mxu0 }
 0x36b   : > { %22730 = vst [vmem:[#allocation41_spill] sm:$0xff] %v20648_v63  ;;  %22731 = vst [vmem:[#allocation42_spill] sm:$0xff] %v20650_v62  ;;  %v20652_v39 = vpop.f32.mrf.mxu1 }
 0x36c   : > { %v16352_v4 = vpop.f32.mrf.mxu0 }
 0x36d   : > { %v20654_v58 = vpop.f32.mrf.mxu1  ;;  %v20657_v42 = vadd.f32 %v16352_v4, %v20548_v49 }
 0x36e   : > { %v20659_v11 = vpop.f32.mrf.mxu0 }
 0x36f   : > { %22732 = vst [vmem:[#allocation43_spill] sm:$0xff] %v20657_v42  ;;  %22733 = vst [vmem:[#allocation44_spill] sm:$0xff] %v20659_v11  ;;  %v20661_v2 = vpop.f32.mrf.mxu1 }
 0x370   : > { %v16355_v61 = vpop.f32.mrf.mxu0 }
 0x371   : > { %v20663_v31 = vpop.f32.mrf.mxu1  ;;  %v20666_v41 = vadd.f32 %v16355_v61, %v20559_v38 }
 0x372   : > { %22734 = vst [vmem:[#allocation45_spill] sm:$0xff] %v20663_v31  ;;  %v20668_v43 = vpop.f32.mrf.mxu0 }
 0x373   : > { %22735 = vst [vmem:[#allocation46_spill] sm:$0xff] %v20666_v41  ;;  %22736 = vst [vmem:[#allocation47_spill] sm:$0xff] %v20668_v43  ;;  %v20670_v16 = vpop.f32.mrf.mxu1 }
 0x374   : > { %22737 = vst [vmem:[#allocation48_spill] sm:$0xff] %v20670_v16  ;;  %v16358_v26 = vpop.f32.mrf.mxu0 }
 0x375   : > { %v20672_v63 = vpop.f32.mrf.mxu1  ;;  %v20675_v4 = vadd.f32 %v16358_v26, %v20570_v15 }
 0x376   : > { %22738 = vst [vmem:[#allocation49_spill] sm:$0xff] %v20672_v63  ;;  %v20677_v49 = vpop.f32.mrf.mxu0 }
 0x377   : > { %22739 = vst [vmem:[#allocation50_spill] sm:$0xff] %v20675_v4  ;;  %22740 = vst [vmem:[#allocation51_spill] sm:$0xff] %v20677_v49  ;;  %v20679_v42 = vpop.f32.mrf.mxu1 }
 0x378   : > { %22741 = vst [vmem:[#allocation52_spill] sm:$0xff] %v20679_v42  ;;  %v16361_v11 = vpop.f32.mrf.mxu0 }
 0x379   : > { %v20681_v9 = vpop.f32.mrf.mxu1  ;;  %v20684_v61 = vadd.f32 %v16361_v11, %v20580_v46 }
 0x37a   : > { %22742 = vst [vmem:[#allocation53_spill] sm:$0xff] %v20681_v9  ;;  %v20686_v38 = vpop.f32.mrf.mxu0 }
 0x37b   : > { %22743 = vst [vmem:[#allocation54_spill] sm:$0xff] %v20684_v61  ;;  %22744 = vst [vmem:[#allocation55_spill] sm:$0xff] %v20686_v38  ;;  %v20688_v41 = vpop.f32.mrf.mxu1 }
 0x37c   : > { %22745 = vst [vmem:[#allocation56_spill] sm:$0xff] %v20688_v41  ;;  %v16364_v43 = vpop.f32.mrf.mxu0 }
 0x37d   : > { %v20690_v20 = vpop.f32.mrf.mxu1  ;;  %v20693_v15 = vadd.f32 %v16364_v43, %v20586_v57 }
 0x37e   : > { %22746 = vst [vmem:[#allocation57_spill] sm:$0xff] %v20690_v20  ;;  %v20695_v26 = vpop.f32.mrf.mxu0 }
 0x37f   : > { %22747 = vst [vmem:[#allocation58_spill] sm:$0xff] %v20693_v15  ;;  %22748 = vst [vmem:[#allocation59_spill] sm:$0xff] %v20695_v26  ;;  %v20697_v4 = vpop.f32.mrf.mxu1 }
 0x380   : > { %22749 = vst [vmem:[#allocation60_spill] sm:$0xff] %v20697_v4  ;;  %v16367_v49 = vpop.f32.mrf.mxu0 }
 0x381   : > { %v20699_v62 = vpop.f32.mrf.mxu1  ;;  %v20702_v46 = vadd.f32 %v16367_v49, %v20595_v6 }
 0x382   : > { %22750 = vst [vmem:[#allocation61_spill] sm:$0xff] %v20699_v62  ;;  %v20704_v11 = vpop.f32.mrf.mxu0 }
 0x383   : > { %22751 = vst [vmem:[#allocation62_spill] sm:$0xff] %v20702_v46  ;;  %22752 = vst [vmem:[#allocation63_spill] sm:$0xff] %v20704_v11  ;;  %v20706_v61 = vpop.f32.mrf.mxu1 }
 0x384   : > { %22753 = vst [vmem:[#allocation64_spill] sm:$0xff] %v20706_v61  ;;  %v16370_v38 = vpop.f32.mrf.mxu0 }
 0x385   : > { %v20708_v41 = vpop.f32.mrf.mxu1  ;;  %v20710_v20 = vadd.f32 %v16370_v38, %v6508_v13 }
 0x386   : > { %22754 = vst [vmem:[#allocation65_spill] sm:$0xff] %v20708_v41  ;;  %v20712_v57 = vpop.f32.mrf.mxu0 }
 0x387   : > { %22755 = vst [vmem:[#allocation66_spill] sm:$0xff] %v20710_v20  ;;  %22756 = vst [vmem:[#allocation67_spill] sm:$0xff] %v20712_v57  ;;  %v20714_v43 = vpop.f32.mrf.mxu1 }
 0x388   : > { %22757 = vst [vmem:[#allocation68_spill] sm:$0xff] %v20714_v43  ;;  %v16373_v15 = vpop.f32.mrf.mxu0 }
 0x389   : > { %v20716_v26 = vpop.f32.mrf.mxu1  ;;  %v20718_v62 = vadd.f32 %v16373_v15, %v6510_v25  ;;  %v13949_v25 = vld [vmem:[%s22314_s5 + $0x4] sm:$0xf]  ;;  %v20742_v15 = vld [vmem:[%s22314_s5] sm:$0xf] }
 0x38a   : > { %22758 = vst [vmem:[#allocation69_spill] sm:$0xff] %v20716_v26  ;;  %v20720_v6 = vpop.f32.mrf.mxu0  ;;  %16626 = vmatprep.subr.msk.mxu0 %vm516_vm0, %v13949_v25  ;;  %16640 = vmatprep.subr.msk.mxu1 %vm516_vm0, %v20742_v15 }
 0x38b   : > { %22759 = vst [vmem:[#allocation70_spill] sm:$0xff] %v20718_v62  ;;  %22760 = vst [vmem:[#allocation71_spill] sm:$0xff] %v20720_v6  ;;  %v20722_v49 = vpop.f32.mrf.mxu1  ;;  %16627 = vmatpush3.msk.msra.mxu0 %vm516_vm0, %v13949_v25 }
 0x38c   : > { %22761 = vst [vmem:[#allocation72_spill] sm:$0xff] %v20722_v49  ;;  %v20726_v11 = vpop.f32.mrf.mxu0 }
 0x38d   : > { %v20724_v46 = vpop.f32.mrf.mxu1 }
 0x38e   : > { %22762 = vst [vmem:[#allocation73_spill] sm:$0xff] %v20724_v46  ;;  %v20730_v13 = vpop.f32.mrf.mxu0 }
 0x38f   : > { %v20728_v41 = vpop.f32.mrf.mxu1 }
 0x390   : > { %22763 = vst [vmem:[#allocation74_spill] sm:$0xff] %v20728_v41  ;;  %v20734_v20 = vpop.f32.mrf.mxu0 }
 0x391   : > { %v20732_v38 = vpop.f32.mrf.mxu1 }
 0x392   : > { %22764 = vst [vmem:[#allocation75_spill] sm:$0xff] %v20732_v38  ;;  %v20749_v6 = vpop.f32.mrf.mxu0 }
 0x393   : > { %v20747_v62 = vpop.f32.mrf.mxu1 }
 0x394   : > { %22765 = vst [vmem:[#allocation76_spill] sm:$0xff] %v20747_v62  ;;  %v20754_v38 = vpop.f32.mrf.mxu0 }
 0x395   : > { %v20752_v57 = vpop.f32.mrf.mxu1 }
 0x396   : > { %22766 = vst [vmem:[#allocation77_spill] sm:$0xff] %v20752_v57  ;;  %v20758_v46 = vpop.f32.mrf.mxu0 }
 0x397   : > { %v20756_v41 = vpop.f32.mrf.mxu1 }
 0x398   : > { %22767 = vst [vmem:[#allocation78_spill] sm:$0xff] %v20756_v41  ;;  %v20762_v26 = vpop.f32.mrf.mxu0 }
 0x399   : > { %v20760_v49 = vpop.f32.mrf.mxu1 }
 0x39a   : > { %22768 = vst [vmem:[#allocation79_spill] sm:$0xff] %v20760_v49  ;;  %v20766_v61 = vpop.f32.mrf.mxu0 }
 0x39b   : > { %v20764_v43 = vpop.f32.mrf.mxu1 }
 0x39c   : > { %22769 = vst [vmem:[#allocation80_spill] sm:$0xff] %v20764_v43  ;;  %v20768_v62 = vpop.f32.mrf.mxu0 }
 0x39d   : > { %v16478_v4 = vpop.f32.mrf.mxu1 }
 0x39e   : > { %v20770_v25 = vpop.f32.mrf.mxu0 }
 0x39f   : > { %v7530_v57 = vpop.f32.mrf.mxu1 }
 0x3a0   : > { %v20772_v9 = vpop.f32.mrf.mxu0 }
 0x3a1   : > { %22770 = vst [vmem:[#allocation81_spill] sm:$0xff] %v20772_v9  ;;  %v16481_v30 = vpop.f32.mrf.mxu1 }
 0x3a2   : > { %v20774_v41 = vpop.f32.mrf.mxu0 }
 0x3a3   : > { %22771 = vst [vmem:[#allocation82_spill] sm:$0xff] %v20774_v41  ;;  %v7540_v42 = vpop.f32.mrf.mxu1 }
 0x3a4   : > { %v20776_v7 = vpop.f32.mrf.mxu0 }
 0x3a5   : > { %22772 = vst [vmem:[#allocation83_spill] sm:$0xff] %v20776_v7  ;;  %v20778_v49 = vpop.f32.mrf.mxu1 }
 0x3a6   : > { %v20780_v47 = vpop.f32.mrf.mxu0 }
 0x3a7   : > { %22773 = vst [vmem:[#allocation84_spill] sm:$0xff] %v20780_v47  ;;  %v20782_v43 = vpop.f32.mrf.mxu1 }
 0x3a8   : > { %v20784_v63 = vpop.f32.mrf.mxu0 }
 0x3a9   : > { %22774 = vst [vmem:[#allocation85_spill] sm:$0xff] %v20784_v63  ;;  %v20786_v10 = vpop.f32.mrf.mxu1 }
 0x3aa   : > { %v20788_v14 = vpop.f32.mrf.mxu0 }
 0x3ab   : > { %22775 = vst [vmem:[#allocation86_spill] sm:$0xff] %v20788_v14  ;;  %v20790_v19 = vpop.f32.mrf.mxu1 }
 0x3ac   : > { %v20792_v8 = vpop.f32.mrf.mxu0 }
 0x3ad   : > { %22776 = vst [vmem:[#allocation87_spill] sm:$0xff] %v20792_v8  ;;  %v20794_v41 = vpop.f32.mrf.mxu1 }
 0x3ae   : > { %22777 = vst [vmem:[#allocation88_spill] sm:$0xff] %v20794_v41  ;;  %v20796_v9 = vpop.f32.mrf.mxu0 }
 0x3af   : > { %22778 = vst [vmem:[#allocation89_spill] sm:$0xff] %v20796_v9  ;;  %v20798_v7 = vpop.f32.mrf.mxu1 }
 0x3b0   : > { %22779 = vst [vmem:[#allocation90_spill] sm:$0xff] %v20798_v7  ;;  %v20800_v16 = vpop.f32.mrf.mxu0 }
 0x3b1   : > { %22780 = vst [vmem:[#allocation91_spill] sm:$0xff] %v20800_v16  ;;  %v20802_v47 = vpop.f32.mrf.mxu1 }
 0x3b2   : > { %22781 = vst [vmem:[#allocation92_spill] sm:$0xff] %v20802_v47  ;;  %v20804_v37 = vpop.f32.mrf.mxu0 }
 0x3b3   : > { %22782 = vst [vmem:[#allocation93_spill] sm:$0xff] %v20804_v37  ;;  %v20808_v27 = vpop.f32.mrf.mxu1 }
 0x3b4   : > { %v20806_v63 = vpop.f32.mrf.mxu0  ;;  %22784 = vst [vmem:[#allocation95_spill] sm:$0xff] %v20808_v27 }
 0x3b5   : > { %22783 = vst [vmem:[#allocation94_spill] sm:$0xff] %v20806_v63  ;;  %v20814_v8 = vpop.f32.mrf.mxu1 }
 0x3b6   : > { %v20810_v14 = vpop.f32.mrf.mxu0 }
 0x3b7   : > { %22785 = vst [vmem:[#allocation96_spill] sm:$0xff] %v20810_v14  ;;  %v20820_v7 = vpop.f32.mrf.mxu1 }
 0x3b8   : > { %v20812_v31 = vpop.f32.mrf.mxu0  ;;  %22789 = vst [vmem:[#allocation100_spill] sm:$0xff] %v20820_v7 }
 0x3b9   : > { %22786 = vst [vmem:[#allocation97_spill] sm:$0xff] %v20812_v31  ;;  %v20826_v37 = vpop.f32.mrf.mxu1  ;;  %v6479_v31 = vadd.f32 %v20456_v35, %v20387_v1 }
 0x3ba   : > { %v20816_v41 = vpop.f32.mrf.mxu0  ;;  %22792 = vst [vmem:[#allocation103_spill] sm:$0xff] %v20826_v37 }
 0x3bb   : > { %22787 = vst [vmem:[#allocation98_spill] sm:$0xff] %v20816_v41  ;;  %v20834_v14 = vpop.f32.mrf.mxu1 }
 0x3bc   : > { %v20818_v9 = vpop.f32.mrf.mxu0 }
 0x3bd   : > { %22788 = vst [vmem:[#allocation99_spill] sm:$0xff] %v20818_v9  ;;  %v6807_v9 = vadd.f32 %v20593_v32, %v6479_v31  ;;  %v20847_v37 = vpop.f32.mrf.mxu1 }
 0x3be   : > { %v20822_v16 = vpop.f32.mrf.mxu0 }
 0x3bf   : > { %22790 = vst [vmem:[#allocation101_spill] sm:$0xff] %v20822_v16  ;;  %v7102_v16 = vadd.f32 %v20618_v56, %v20589_v12  ;;  %v7104_v56 = vadd.f32 %v20627_v0, %v20598_v52 }
 0x3c0   : > { %v20824_v47 = vpop.f32.mrf.mxu0 }
 0x3c1   : > { %22791 = vst [vmem:[#allocation102_spill] sm:$0xff] %v20824_v47  ;;  %v6481_v47 = vadd.f32 %v20468_v34, %v20409_v55  ;;  %v6483_v55 = vadd.f32 %v20480_v22, %v20432_v18  ;;  %v7106_v18 = vadd.f32 %v20636_v5, %v20605_v33 }
 0x3c2   : > { %v20828_v63 = vpop.f32.mrf.mxu0 }
 0x3c3   : > { %22793 = vst [vmem:[#allocation104_spill] sm:$0xff] %v20828_v63  ;;  %v7101_v63 = vadd.f32 %v20625_v21, %v6807_v9  ;;  %v6809_v35 = vadd.f32 %v20602_v44, %v6481_v47  ;;  %v20859_v21 = vpop.f32.mrf.mxu1  ;;  %v6811_v47 = vadd.f32 %v20609_v3, %v6483_v55 }
 0x3c4   : > { %v20830_v27 = vpop.f32.mrf.mxu0 }
 0x3c5   : > { %22794 = vst [vmem:[#allocation105_spill] sm:$0xff] %v20830_v27  ;;  %v7396_v27 = vadd.f32 %v20726_v11, %v7102_v16  ;;  %v7395_v31 = vadd.f32 %v20730_v13, %v7101_v63  ;;  %v7103_v9 = vadd.f32 %v20634_v28, %v6809_v35  ;;  %v7398_v16 = vadd.f32 %v20734_v20, %v7104_v56 }
 0x3c6   : > { %v20836_v41 = vpop.f32.mrf.mxu0  ;;  %v6485_v20 = vadd.f32 %v20492_v53, %v20447_v24  ;;  %v7105_v28 = vadd.f32 %v20643_v29, %v6811_v47  ;;  %v7108_v29 = vadd.f32 %v20645_v59, %v20612_v51  ;;  %v22799_v47 = vld [vmem:[#allocation21_spill] sm:$0xff] }
 0x3c7   : > { %v7690_v32 = vadd.f32 %v16478_v4, %v7396_v27  ;;  %v7689_v34 = vadd.f32 %v7530_v57, %v7395_v31  ;;  %v7397_v44 = vadd.f32 %v20749_v6, %v7103_v9  ;;  %v20866_v27 = vld [vmem:[%s22311_s2] ss:$0 sm:$0xff]  ;;  %v7692_v22 = vadd.f32 %v16481_v30, %v7398_v16  ;;  %v20875_v57 = vpop.f32.mrf.mxu1 }
 0x3c8   : > { %v20841_v7 = vpop.f32.mrf.mxu0  ;;  %v7400_v4 = vadd.f32 %v20754_v38, %v7106_v18  ;;  %v6813_v30 = vadd.f32 %v20616_v40, %v6485_v20  ;;  %v7399_v33 = vadd.f32 %v20758_v46, %v7105_v28  ;;  %v7402_v35 = vadd.f32 %v20762_v26, %v7108_v29 }
 0x3c9   : > { %v7691_v3 = vadd.f32 %v7540_v42, %v7397_v44  ;;  %v6487_v42 = vadd.f32 %v20506_v17, %v20459_v50  ;;  %v20893_v59 = vpop.f32.mrf.mxu1  ;;  %v7110_v17 = vadd.f32 %v20654_v58, %v20621_v60  ;;  %v6489_v26 = vadd.f32 %v20517_v36, %v20471_v48  ;;  %v22796_v48 = vld [vmem:[#allocation45_spill] sm:$0xff]  ;;  %v22797_v36 = vld [vmem:[#allocation88_spill] sm:$0xff] }
 0x3ca   : > { %v20849_v1 = vpop.f32.mrf.mxu0  ;;  %v7694_v24 = vadd.f32 %v20778_v49, %v7400_v4  ;;  %v7107_v38 = vadd.f32 %v20652_v39, %v6813_v30  ;;  %v7693_v40 = vadd.f32 %v20782_v43, %v7399_v33  ;;  %v7696_v43 = vadd.f32 %v20786_v10, %v7402_v35  ;;  %v22803_v4 = vld [vmem:[#allocation40_spill] sm:$0xff]  ;;  %v22805_v33 = vld [vmem:[#allocation27_spill] sm:$0xff]  ;;  %v22810_v35 = vld [vmem:[#allocation17_spill] sm:$0xff] }
 0x3cb   : > { %22795 = vst [vmem:[#allocation106_spill] sm:$0xff] %v20849_v1  ;;  %v6815_v56 = vadd.f32 %v20623_v45, %v6487_v42  ;;  %v20909_v55 = vpop.f32.mrf.mxu1  ;;  %v6817_v9 = vadd.f32 %v20632_v23, %v6489_v26 }
 0x3cc   : > { %v16528_v12 = vpop.f32.mrf.mxu0  ;;  %v7401_v50 = vadd.f32 %v20766_v61, %v7107_v38  ;;  %v22809_v38 = vld [vmem:[#allocation92_spill] sm:$0xff] }
 0x3cd   : > { %v7984_v11 = vadd.f32 %v16528_v12, %v7690_v32  ;;  %v7109_v32 = vadd.f32 %v20661_v2, %v6815_v56  ;;  %v7404_v12 = vadd.f32 %v20768_v62, %v7110_v17  ;;  %v22798_v62 = vld [vmem:[#allocation7_spill] sm:$0xff]  ;;  %v20925_v28 = vpop.f32.mrf.mxu1 }
 0x3ce   : > { %v7824_v1 = vpop.f32.mrf.mxu0  ;;  %v7695_v45 = vadd.f32 %v20790_v19, %v7401_v50  ;;  %v7112_v19 = vadd.f32 %v22796_v48, %v20630_v54  ;;  %v6491_v44 = vadd.f32 %v22799_v47, %v22798_v62  ;;  %v22813_v50 = vld [vmem:[#allocation95_spill] sm:$0xff] }
 0x3cf   : > { %v7983_v52 = vadd.f32 %v7824_v1, %v7689_v34  ;;  %v8023_v6 = vadd.f32 %v20866_v27, %v7984_v11  ;;  %v7403_v34 = vadd.f32 %v20770_v25, %v7109_v32  ;;  %v7698_v2 = vadd.f32 %v22797_v36, %v7404_v12  ;;  %v20943_v26 = vpop.f32.mrf.mxu1  ;;  %v22815_v12 = vld [vmem:[#allocation18_spill] sm:$0xff]  ;;  %v22818_v48 = vld [vmem:[#allocation31_spill] sm:$0xff] }
 0x3d0   : > { %v16531_v0 = vpop.f32.mrf.mxu0 }
 0x3d1   : > { %v8022_v63 = vadd.f32 %v20866_v27, %v7983_v52  ;;  %v7986_v13 = vadd.f32 %v16531_v0, %v7692_v22  ;;  %v22800_v52 = vld [vmem:[#allocation48_spill] sm:$0xff]  ;;  %v22801_v22 = vld [vmem:[#allocation90_spill] sm:$0xff]  ;;  %v22802_v0 = vld [vmem:[#allocation81_spill] sm:$0xff] }
 0x3d2   : > { %v7834_v1 = vpop.f32.mrf.mxu0  ;;  %v7111_v18 = vadd.f32 %v22800_v52, %v6817_v9  ;;  %v7697_v23 = vadd.f32 %v22801_v22, %v7403_v34  ;;  %v7406_v20 = vadd.f32 %v22802_v0, %v7112_v19  ;;  %v22817_v9 = vld [vmem:[#allocation84_spill] sm:$0xff]  ;;  %v22819_v19 = vld [vmem:[#allocation29_spill] sm:$0xff] }
 0x3d3   : > { %v7985_v5 = vadd.f32 %v7834_v1, %v7691_v3  ;;  %16578 = vmatprep.mubr.msk.f32.mxu1 %vm8063_vm2, %v8022_v63  ;;  %v8025_v51 = vadd.f32 %v20866_v27, %v7986_v13  ;;  %v22804_v13 = vld [vmem:[#allocation82_spill] sm:$0xff]  ;;  %v5909_v36 = vadd.f32 %v22819_v19, %v22818_v48  ;;  %v22822_v52 = vld [vmem:[#allocation24_spill] sm:$0xff]  ;;  %v22839_v48 = vld [vmem:[#allocation89_spill] sm:$0xff] }
 0x3d4   : > { %v16534_v53 = vpop.f32.mrf.mxu0  ;;  %16579 = vmatmul.mubr.msk.f32.vlgmr.msra.gmra.mxu1 %vm8063_vm2, %v8023_v6  ;;  %v6819_v6 = vadd.f32 %v22803_v4, %v6491_v44  ;;  %v7405_v1 = vadd.f32 %v22804_v13, %v7111_v18  ;;  %v22823_v22 = vld [vmem:[#allocation56_spill] sm:$0xff] }
 0x3d5   : > { %v8024_v46 = vadd.f32 %v20866_v27, %v7985_v5  ;;  %16641 = vmatpush3.msk.msra.mxu1 %vm516_vm0, %v20742_v15  ;;  %v7988_v49 = vadd.f32 %v16534_v53, %v7694_v24  ;;  %v22806_v5 = vld [vmem:[#allocation12_spill] sm:$0xff]  ;;  %v22807_v24 = vld [vmem:[#allocation39_spill] sm:$0xff]  ;;  %v22808_v53 = vld [vmem:[#allocation49_spill] sm:$0xff] }
 0x3d6   : > { %v7844_v31 = vpop.f32.mrf.mxu0  ;;  %v5907_v29 = vadd.f32 %v22806_v5, %v22805_v33  ;;  %v7114_v42 = vadd.f32 %v22808_v53, %v22807_v24  ;;  %v22828_v5 = vld [vmem:[#allocation86_spill] sm:$0xff]  ;;  %v22829_v53 = vld [vmem:[#allocation8_spill] sm:$0xff] }
 0x3d7   : > { %v7987_v39 = vadd.f32 %v7844_v31, %v7693_v40  ;;  %16581 = vmatprep.mubr.msk.f32.mxu1 %vm8063_vm2, %v8024_v46  ;;  %v8027_v58 = vadd.f32 %v20866_v27, %v7988_v49  ;;  %v7700_v40 = vadd.f32 %v22809_v38, %v7406_v20  ;;  %v22812_v31 = vld [vmem:[#allocation52_spill] sm:$0xff] }
 0x3d8   : > { %v16537_v15 = vpop.f32.mrf.mxu0  ;;  %16582 = vmatmul.mubr.msk.f32.gmra.mxu1 %vm8063_vm2, %v8025_v51  ;;  %v22811_v51 = vld [vmem:[#allocation6_spill] sm:$0xff]  ;;  %v7113_v56 = vadd.f32 %v22812_v31, %v6819_v6 }
 0x3d9   : > { %v8026_v61 = vadd.f32 %v20866_v27, %v7987_v39  ;;  %v7990_v60 = vadd.f32 %v16537_v15, %v7696_v43  ;;  %v6493_v49 = vadd.f32 %v22811_v51, %v22810_v35  ;;  %v7699_v39 = vadd.f32 %v22813_v50, %v7405_v1  ;;  %v22814_v43 = vld [vmem:[#allocation83_spill] sm:$0xff] }
 0x3da   : > { %v7854_v10 = vpop.f32.mrf.mxu0  ;;  %v7408_v15 = vadd.f32 %v22814_v43, %v7114_v42  ;;  %v7407_v34 = vadd.f32 %v22817_v9, %v7113_v56  ;;  %v22830_v42 = vld [vmem:[#allocation33_spill] sm:$0xff]  ;;  %v22833_v51 = vld [vmem:[#allocation103_spill] sm:$0xff]  ;;  %v22834_v56 = vld [vmem:[#allocation26_spill] sm:$0xff] }
 0x3db   : > { %v7989_v16 = vadd.f32 %v7854_v10, %v7695_v45  ;;  %16584 = vmatprep.mubr.msk.f32.mxu1 %vm8063_vm2, %v8026_v61  ;;  %v8029_v54 = vadd.f32 %v20866_v27, %v7990_v60  ;;  %v22816_v60 = vld [vmem:[#allocation42_spill] sm:$0xff]  ;;  %v5911_v38 = vadd.f32 %v22830_v42, %v22829_v53  ;;  %v22851_v42 = vld [vmem:[#allocation37_spill] sm:$0xff] }
 0x3dc   : > { %v16540_v11 = vpop.f32.mrf.mxu0  ;;  %16585 = vmatmul.mubr.msk.f32.gmra.mxu1 %vm8063_vm2, %v8027_v58  ;;  %v6201_v58 = vadd.f32 %v22815_v12, %v5907_v29  ;;  %v6821_v10 = vadd.f32 %v22816_v60, %v6493_v49  ;;  %v7702_v47 = vadd.f32 %v20814_v8, %v7408_v15  ;;  %v22826_v8 = vld [vmem:[#allocation19_spill] sm:$0xff] }
 0x3dd   : > { %v8028_v25 = vadd.f32 %v20866_v27, %v7989_v16  ;;  %v7992_v3 = vadd.f32 %v16540_v11, %v7698_v2  ;;  %v22820_v2 = vld [vmem:[#allocation41_spill] sm:$0xff]  ;;  %v6203_v1 = vadd.f32 %v22826_v8, %v5909_v36 }
 0x3de   : > { %v7864_v63 = vpop.f32.mrf.mxu0  ;;  %v22821_v11 = vld [vmem:[#allocation53_spill] sm:$0xff]  ;;  %v6495_v18 = vadd.f32 %v22822_v52, %v6201_v58 }
 0x3df   : > { %v7991_v30 = vadd.f32 %v7864_v63, %v7697_v23  ;;  %16587 = vmatprep.mubr.msk.f32.mxu1 %vm8063_vm2, %v8028_v25  ;;  %v8031_v32 = vadd.f32 %v20866_v27, %v7992_v3  ;;  %v7116_v62 = vadd.f32 %v22821_v11, %v22820_v2  ;;  %v7115_v23 = vadd.f32 %v22823_v22, %v6821_v10  ;;  %v22824_v25 = vld [vmem:[#allocation100_spill] sm:$0xff]  ;;  %v20961_v63 = vpop.f32.mrf.mxu1  ;;  %v22841_v2 = vld [vmem:[#allocation35_spill] sm:$0xff] }
 0x3e0   : > { %v16543_v46 = vpop.f32.mrf.mxu0  ;;  %16588 = vmatmul.mubr.msk.f32.gmra.mxu1 %vm8063_vm2, %v8029_v54  ;;  %v7701_v0 = vadd.f32 %v22824_v25, %v7407_v34  ;;  %v22825_v54 = vld [vmem:[#allocation85_spill] sm:$0xff]  ;;  %v6497_v50 = vadd.f32 %v22834_v56, %v6203_v1  ;;  %v22837_v10 = vld [vmem:[#allocation20_spill] sm:$0xff]  ;;  %v22838_v34 = vld [vmem:[#allocation47_spill] sm:$0xff] }
 0x3e1   : > { %v8030_v17 = vadd.f32 %v20866_v27, %v7991_v30  ;;  %v7994_v45 = vadd.f32 %v16543_v46, %v7700_v40  ;;  %v7410_v3 = vadd.f32 %v22825_v54, %v7116_v62  ;;  %v22827_v30 = vld [vmem:[#allocation44_spill] sm:$0xff]  ;;  %v7409_v29 = vadd.f32 %v22828_v5, %v7115_v23  ;;  %v22831_v40 = vld [vmem:[#allocation43_spill] sm:$0xff]  ;;  %v22832_v46 = vld [vmem:[#allocation57_spill] sm:$0xff] }
 0x3e2   : > { %v7874_v61 = vpop.f32.mrf.mxu0  ;;  %v6823_v33 = vadd.f32 %v22827_v30, %v6495_v18  ;;  %v7118_v35 = vadd.f32 %v22832_v46, %v22831_v40  ;;  %v6205_v9 = vadd.f32 %v22837_v10, %v5911_v38  ;;  %v22842_v62 = vld [vmem:[#allocation46_spill] sm:$0xff]  ;;  %v22844_v22 = vld [vmem:[#allocation3_spill] sm:$0xff]  ;;  %v22845_v25 = vld [vmem:[#allocation64_spill] sm:$0xff] }
 0x3e3   : > { %v7993_v16 = vadd.f32 %v7874_v61, %v7699_v39  ;;  %16590 = vmatprep.mubr.msk.f32.mxu1 %vm8063_vm2, %v8030_v17  ;;  %v8033_v4 = vadd.f32 %v20866_v27, %v7994_v45  ;;  %v7704_v49 = vadd.f32 %v22833_v51, %v7410_v3  ;;  %v22835_v39 = vld [vmem:[#allocation60_spill] sm:$0xff]  ;;  %v7703_v43 = vadd.f32 %v20834_v14, %v7409_v29  ;;  %v20979_v61 = vpop.f32.mrf.mxu1  ;;  %v22840_v14 = vld [vmem:[#allocation10_spill] sm:$0xff]  ;;  %v22846_v3 = vld [vmem:[#allocation91_spill] sm:$0xff] }
 0x3e4   : > { %v16546_v44 = vpop.f32.mrf.mxu0  ;;  %16591 = vmatmul.mubr.msk.f32.gmra.mxu1 %vm8063_vm2, %v8031_v32  ;;  %v7117_v17 = vadd.f32 %v22835_v39, %v6823_v33  ;;  %v22836_v32 = vld [vmem:[#allocation87_spill] sm:$0xff]  ;;  %v5913_v11 = vadd.f32 %v22841_v2, %v22840_v14  ;;  %v6499_v23 = vadd.f32 %v22844_v22, %v6205_v9  ;;  %v22849_v29 = vld [vmem:[#allocation93_spill] sm:$0xff]  ;;  %v22852_v40 = vld [vmem:[#allocation50_spill] sm:$0xff] }
 0x3e5   : > { %v8032_v20 = vadd.f32 %v20866_v27, %v7993_v16  ;;  %v7996_v6 = vadd.f32 %v16546_v44, %v7702_v47  ;;  %v7412_v45 = vadd.f32 %v22836_v32, %v7118_v35  ;;  %v6825_v16 = vadd.f32 %v22838_v34, %v6497_v50  ;;  %v22843_v47 = vld [vmem:[#allocation61_spill] sm:$0xff]  ;;  %v22848_v33 = vld [vmem:[#allocation51_spill] sm:$0xff]  ;;  %v22855_v50 = vld [vmem:[#allocation68_spill] sm:$0xff] }
 0x3e6   : > { %v7884_v13 = vpop.f32.mrf.mxu0  ;;  %v7411_v19 = vadd.f32 %v22839_v48, %v7117_v17  ;;  %v7120_v44 = vadd.f32 %v22843_v47, %v22842_v62  ;;  %v6827_v5 = vadd.f32 %v22848_v33, %v6499_v23  ;;  %v22853_v46 = vld [vmem:[#allocation65_spill] sm:$0xff]  ;;  %v22858_v9 = vld [vmem:[#allocation55_spill] sm:$0xff]  ;;  %v22862_v2 = vld [vmem:[#allocation54_spill] sm:$0xff] }
 0x3e7   : > { %v7995_v24 = vadd.f32 %v7884_v13, %v7701_v0  ;;  %16593 = vmatprep.mubr.msk.f32.mxu1 %vm8063_vm2, %v8032_v20  ;;  %v8035_v12 = vadd.f32 %v20866_v27, %v7996_v6  ;;  %v7706_v52 = vadd.f32 %v20847_v37, %v7412_v45  ;;  %v7119_v0 = vadd.f32 %v22845_v25, %v6825_v16  ;;  %v20997_v6 = vpop.f32.mrf.mxu1  ;;  %v22847_v37 = vld [vmem:[#allocation22_spill] sm:$0xff]  ;;  %v22859_v16 = vld [vmem:[#allocation96_spill] sm:$0xff] }
 0x3e8   : > { %v16549_v31 = vpop.f32.mrf.mxu0  ;;  %16594 = vmatmul.mubr.msk.f32.gmra.mxu1 %vm8063_vm2, %v8033_v4  ;;  %v7705_v20 = vadd.f32 %v20859_v21, %v7411_v19  ;;  %v7414_v4 = vadd.f32 %v22846_v3, %v7120_v44  ;;  %v6207_v30 = vadd.f32 %v22847_v37, %v5913_v11  ;;  %v22850_v21 = vld [vmem:[#allocation28_spill] sm:$0xff]  ;;  %v7122_v35 = vadd.f32 %v22853_v46, %v22852_v40  ;;  %v22863_v11 = vld [vmem:[#allocation69_spill] sm:$0xff]  ;;  %v22868_v37 = vld [vmem:[#allocation59_spill] sm:$0xff] }
 0x3e9   : > { %v8034_v15 = vadd.f32 %v20866_v27, %v7995_v24  ;;  %v7998_v58 = vadd.f32 %v16549_v31, %v7704_v49  ;;  %v7413_v24 = vadd.f32 %v22849_v29, %v7119_v0  ;;  %v5915_v38 = vadd.f32 %v22851_v42, %v22850_v21  ;;  %v22854_v31 = vld [vmem:[#allocation11_spill] sm:$0xff]  ;;  %v21015_v45 = vpop.f32.mrf.mxu1  ;;  %v22865_v22 = vld [vmem:[#allocation72_spill] sm:$0xff]  ;;  %v22869_v33 = vld [vmem:[#allocation98_spill] sm:$0xff] }
 0x3ea   : > { %v7894_v60 = vpop.f32.mrf.mxu0  ;;  %v7708_v51 = vadd.f32 %v20875_v57, %v7414_v4  ;;  %v6501_v56 = vadd.f32 %v22854_v31, %v6207_v30  ;;  %v7121_v39 = vadd.f32 %v22855_v50, %v6827_v5  ;;  %v22857_v57 = vld [vmem:[#allocation23_spill] sm:$0xff]  ;;  %v7124_v62 = vadd.f32 %v22863_v11, %v22862_v2  ;;  %v22872_v21 = vld [vmem:[#allocation58_spill] sm:$0xff]  ;;  %v22873_v42 = vld [vmem:[#allocation73_spill] sm:$0xff] }
 0x3eb   : > { %v7997_v36 = vadd.f32 %v7894_v60, %v7703_v43  ;;  %16596 = vmatprep.mubr.msk.f32.mxu1 %vm8063_vm2, %v8034_v15  ;;  %v8037_v13 = vadd.f32 %v20866_v27, %v7998_v58  ;;  %v7707_v17 = vadd.f32 %v20893_v59, %v7413_v24  ;;  %v22856_v15 = vld [vmem:[#allocation94_spill] sm:$0xff]  ;;  %v6209_v10 = vadd.f32 %v22857_v57, %v5915_v38  ;;  %v22860_v59 = vld [vmem:[#allocation32_spill] sm:$0xff]  ;;  %v7660_v3 = vpop.f32.mrf.mxu1 }
 0x3ec   : > { %v16552_v18 = vpop.f32.mrf.mxu0  ;;  %16597 = vmatmul.mubr.msk.f32.gmra.mxu1 %vm8063_vm2, %v8035_v12  ;;  %v7416_v32 = vadd.f32 %v22856_v15, %v7122_v35  ;;  %v6829_v34 = vadd.f32 %v22858_v9, %v6501_v56  ;;  %v7415_v48 = vadd.f32 %v22859_v16, %v7121_v39  ;;  %v22870_v24 = vld [vmem:[#allocation34_spill] sm:$0xff]  ;;  %v7126_v38 = vadd.f32 %v22873_v42, %v22872_v21  ;;  %v22874_v35 = vld [vmem:[#allocation4_spill] sm:$0xff]  ;;  %v22876_v39 = vld [vmem:[#allocation99_spill] sm:$0xff] }
 0x3ed   : > { %v8036_v54 = vadd.f32 %v20866_v27, %v7997_v36  ;;  %v8000_v8 = vadd.f32 %v16552_v18, %v7706_v52  ;;  %v22861_v36 = vld [vmem:[#allocation5_spill] sm:$0xff]  ;;  %v22880_v16 = vld [vmem:[#allocation36_spill] sm:$0xff]  ;;  %v22884_v11 = vld [vmem:[#allocation14_spill] sm:$0xff] }
 0x3ee   : > { %v7904_v1 = vpop.f32.mrf.mxu0  ;;  %v5917_v14 = vadd.f32 %v22861_v36, %v22860_v59  ;;  %v7710_v47 = vadd.f32 %v20909_v55, %v7416_v32  ;;  %v22864_v52 = vld [vmem:[#allocation13_spill] sm:$0xff]  ;;  %v7123_v23 = vadd.f32 %v22865_v22, %v6829_v34  ;;  %v7709_v25 = vadd.f32 %v20925_v28, %v7415_v48  ;;  %v22871_v28 = vld [vmem:[#allocation15_spill] sm:$0xff]  ;;  %v22886_v22 = vld [vmem:[#allocation102_spill] sm:$0xff] }
 0x3ef   : > { %v7999_v53 = vadd.f32 %v7904_v1, %v7705_v20  ;;  %16599 = vmatprep.mubr.msk.f32.mxu1 %vm8063_vm2, %v8036_v54  ;;  %v8039_v12 = vadd.f32 %v20866_v27, %v8000_v8  ;;  %v6503_v18 = vadd.f32 %v22864_v52, %v6209_v10  ;;  %v22866_v20 = vld [vmem:[#allocation97_spill] sm:$0xff]  ;;  %v22883_v59 = vld [vmem:[#allocation75_spill] sm:$0xff] }
 0x3f0   : > { %v16555_v49 = vpop.f32.mrf.mxu0  ;;  %16600 = vmatmul.mubr.msk.f32.gmra.mxu1 %vm8063_vm2, %v8037_v13  ;;  %v7418_v54 = vadd.f32 %v22866_v20, %v7124_v62  ;;  %v22867_v1 = vld [vmem:[#allocation25_spill] sm:$0xff]  ;;  %v7417_v5 = vadd.f32 %v22869_v33, %v7123_v23 }
 0x3f1   : > { %v8038_v43 = vadd.f32 %v20866_v27, %v7999_v53  ;;  %v8002_v58 = vadd.f32 %v16555_v49, %v7708_v51  ;;  %v6211_v55 = vadd.f32 %v22867_v1, %v5917_v14  ;;  %v6831_v30 = vadd.f32 %v22868_v37, %v6503_v18  ;;  %v22875_v49 = vld [vmem:[#allocation74_spill] sm:$0xff]  ;;  %v22879_v10 = vld [vmem:[#allocation101_spill] sm:$0xff]  ;;  %v22889_v1 = vld [vmem:[#allocation104_spill] sm:$0xff] }
 0x3f2   : > { %v7914_v60 = vpop.f32.mrf.mxu0  ;;  %v5919_v53 = vadd.f32 %v22871_v28, %v22870_v24  ;;  %v7712_v40 = vadd.f32 %v20943_v26, %v7418_v54  ;;  %v7711_v56 = vadd.f32 %v20961_v63, %v7417_v5  ;;  %v22881_v63 = vld [vmem:[#allocation16_spill] sm:$0xff]  ;;  %v22892_v24 = vld [vmem:[#allocation38_spill] sm:$0xff] }
 0x3f3   : > { %v8001_v19 = vadd.f32 %v7914_v60, %v7707_v17  ;;  %16602 = vmatprep.mubr.msk.f32.mxu1 %vm8063_vm2, %v8038_v43  ;;  %v8041_v4 = vadd.f32 %v20866_v27, %v8002_v58  ;;  %v6505_v51 = vadd.f32 %v22874_v35, %v6211_v55  ;;  %v7125_v31 = vadd.f32 %v22875_v49, %v6831_v30  ;;  %v16520_v43 = vpop.f32.mrf.mxu1  ;;  %v22877_v58 = vld [vmem:[#allocation30_spill] sm:$0xff]  ;;  %v22878_v60 = vld [vmem:[#allocation63_spill] sm:$0xff] }
 0x3f4   : > { %v16558_v44 = vpop.f32.mrf.mxu0  ;;  %16603 = vmatmul.mubr.msk.f32.gmra.mxu1 %vm8063_vm2, %v8039_v12  ;;  %v7420_v17 = vadd.f32 %v22876_v39, %v7126_v38  ;;  %v6213_v26 = vadd.f32 %v22877_v58, %v5919_v53  ;;  %v5921_v48 = vadd.f32 %v22881_v63, %v22880_v16  ;;  %v22890_v30 = vld [vmem:[#allocation66_spill] sm:$0xff]  ;;  %v22898_v58 = vld [vmem:[#allocation80_spill] sm:$0xff] }
 0x3f5   : > { %v8040_v0 = vadd.f32 %v20866_v27, %v8001_v19  ;;  %v8004_v13 = vadd.f32 %v16558_v44, %v7710_v47  ;;  %v6833_v57 = vadd.f32 %v22878_v60, %v6505_v51  ;;  %v7419_v9 = vadd.f32 %v22879_v10, %v7125_v31  ;;  %v22882_v19 = vld [vmem:[#allocation62_spill] sm:$0xff]  ;;  %v22885_v47 = vld [vmem:[#allocation76_spill] sm:$0xff] }
 0x3f6   : > { %v7924_v8 = vpop.f32.mrf.mxu0  ;;  %v7128_v36 = vadd.f32 %v22883_v59, %v22882_v19  ;;  %v7714_v14 = vadd.f32 %v20979_v61, %v7420_v17  ;;  %v6507_v62 = vadd.f32 %v22884_v11, %v6213_v26  ;;  %v22893_v53 = vld [vmem:[#allocation78_spill] sm:$0xff] }
 0x3f7   : > { %v8003_v29 = vadd.f32 %v7924_v8, %v7709_v25  ;;  %16605 = vmatprep.mubr.msk.f32.mxu1 %vm8063_vm2, %v8040_v0  ;;  %v8043_v15 = vadd.f32 %v20866_v27, %v8004_v13  ;;  %v7127_v44 = vadd.f32 %v22885_v47, %v6833_v57  ;;  %v7713_v52 = vadd.f32 %v20997_v6, %v7419_v9  ;;  %v7670_v25 = vpop.f32.mrf.mxu1  ;;  %v22888_v13 = vld [vmem:[#allocation67_spill] sm:$0xff]  ;;  %v22891_v6 = vld [vmem:[#allocation77_spill] sm:$0xff]  ;;  %v22896_v17 = vld [vmem:[#allocation70_spill] sm:$0xff] }
 0x3f8   : > { %v16561_v46 = vpop.f32.mrf.mxu0  ;;  %16606 = vmatmul.mubr.msk.f32.gmra.mxu1 %vm8063_vm2, %v8041_v4  ;;  %v7422_v23 = vadd.f32 %v22886_v22, %v7128_v36  ;;  %v22887_v4 = vld [vmem:[#allocation9_spill] sm:$0xff]  ;;  %v6835_v8 = vadd.f32 %v22888_v13, %v6507_v62  ;;  %v7130_v33 = vadd.f32 %v22891_v6, %v22890_v30  ;;  %v22899_v63 = vld [vmem:[#allocation106_spill] sm:$0xff] }
 0x3f9   : > { %v8042_v50 = vadd.f32 %v20866_v27, %v8003_v29  ;;  %v8006_v32 = vadd.f32 %v16561_v46, %v7712_v40  ;;  %v6215_v61 = vadd.f32 %v22887_v4, %v5921_v48  ;;  %v7421_v55 = vadd.f32 %v22889_v1, %v7127_v44  ;;  %v22894_v40 = vld [vmem:[#allocation105_spill] sm:$0xff]  ;;  %v16523_v35 = vpop.f32.mrf.mxu1 }
 0x3fa   : > { %v7934_v12 = vpop.f32.mrf.mxu0  ;;  %v7716_v5 = vadd.f32 %v21015_v45, %v7422_v23  ;;  %v7129_v21 = vadd.f32 %v22893_v53, %v6835_v8  ;;  %v7424_v46 = vadd.f32 %v22894_v40, %v7130_v33  ;;  %v21299_v23 = vld [vmem:[%s22314_s5 + $0x8] sm:$0xf] }
 0x3fb   : > { %v8005_v34 = vadd.f32 %v7934_v12, %v7711_v56  ;;  %16608 = vmatprep.mubr.msk.f32.mxu1 %vm8063_vm2, %v8042_v50  ;;  %v8045_v0 = vadd.f32 %v20866_v27, %v8006_v32  ;;  %v6509_v28 = vadd.f32 %v22892_v24, %v6215_v61  ;;  %v7715_v42 = vadd.f32 %v7660_v3, %v7421_v55  ;;  %v22895_v56 = vld [vmem:[#allocation71_spill] sm:$0xff]  ;;  %v7680_v9 = vpop.f32.mrf.mxu1 }
 0x3fc   : > { %v16564_v2 = vpop.f32.mrf.mxu0  ;;  %16609 = vmatmul.mubr.msk.f32.gmra.mxu1 %vm8063_vm2, %v8043_v15  ;;  %v7423_v45 = vadd.f32 %v20836_v41, %v7129_v21  ;;  %v22897_v15 = vld [vmem:[#allocation79_spill] sm:$0xff]  ;;  %v7718_v3 = vadd.f32 %v16520_v43, %v7424_v46  ;;  %16654 = vmatprep.subr.msk.mxu0 %vm516_vm0, %v21299_v23  ;;  %v21325_v46 = vld [vmem:[%s22314_s5 + $0x14] sm:$0xf] }
 0x3fd   : > { %v8044_v18 = vadd.f32 %v20866_v27, %v8005_v34  ;;  %v8008_v20 = vadd.f32 %v16564_v2, %v7714_v14  ;;  %v6837_v50 = vadd.f32 %v22895_v56, %v6509_v28  ;;  %v7132_v32 = vadd.f32 %v22897_v15, %v22896_v17 }
 0x3fe   : > { %v7944_v54 = vpop.f32.mrf.mxu0  ;;  %v7717_v60 = vadd.f32 %v7670_v25, %v7423_v45  ;;  %v21306_v25 = vld [vmem:[%s22313_s4] ss:$0 sm:$0xff] }
 0x3ff   : > { %v8007_v37 = vadd.f32 %v7944_v54, %v7713_v52  ;;  %16611 = vmatprep.mubr.msk.f32.mxu1 %vm8063_vm2, %v8044_v18  ;;  %v8047_v51 = vadd.f32 %v20866_v27, %v8008_v20  ;;  %v7131_v26 = vadd.f32 %v22898_v58, %v6837_v50  ;;  %v7426_v10 = vadd.f32 %v20841_v7, %v7132_v32  ;;  %v13978_v18 = vld [vmem:[%s22314_s5 + $0xc] sm:$0xf] }
 0x400   : > { %v16567_v29 = vpop.f32.mrf.mxu0  ;;  %16612 = vmatmul.mubr.msk.f32.gmra.mxu1 %vm8063_vm2, %v8045_v0  ;;  %v17068_v52 = vmov 0.0   ;;  %16668 = vmatprep.subr.msk.mxu1 %vm516_vm0, %v13978_v18 }
 0x401   : > { %v8046_v38 = vadd.f32 %v20866_v27, %v8007_v37  ;;  %v8010_v49 = vadd.f32 %v16567_v29, %v7716_v5  ;;  %v7425_v48 = vadd.f32 %v22899_v63, %v7131_v26  ;;  %v7720_v43 = vadd.f32 %v16523_v35, %v7426_v10  ;;  %8449 = vst.msk [vmem:[#allocation2 + $0xe0] sm:$0xff] %vm419_vm1, %v17068_v52 }
 0x402   : > { %v7954_v31 = vpop.f32.mrf.mxu0  ;;  %8442 = vst.msk [vmem:[#allocation2 + $0xa8] sm:$0xff] %vm419_vm1, %v17068_v52  ;;  %8443 = vst.msk [vmem:[#allocation2 + $0xb0] sm:$0xff] %vm419_vm1, %v17068_v52 }
 0x403   : > { %v8009_v39 = vadd.f32 %v7954_v31, %v7715_v42  ;;  %16614 = vmatprep.mubr.msk.f32.mxu1 %vm8063_vm2, %v8046_v38  ;;  %v8049_v41 = vadd.f32 %v20866_v27, %v8010_v49  ;;  %v7719_v36 = vadd.f32 %v7680_v9, %v7425_v48  ;;  %8445 = vst.msk [vmem:[#allocation2 + $0xc0] sm:$0xff] %vm419_vm1, %v17068_v52  ;;  %8446 = vst.msk [vmem:[#allocation2 + $0xc8] sm:$0xff] %vm419_vm1, %v17068_v52 }
 0x404   : > { %v16570_v12 = vpop.f32.mrf.mxu0  ;;  %16615 = vmatmul.mubr.msk.f32.gmra.mxu1 %vm8063_vm2, %v8047_v51  ;;  %8448 = vst.msk [vmem:[#allocation2 + $0xd8] sm:$0xff] %vm419_vm1, %v17068_v52  ;;  %8451 = vst.msk [vmem:[#allocation2 + $0xf0] sm:$0xff] %vm419_vm1, %v17068_v52 }
 0x405   : > { %v8048_v57 = vadd.f32 %v20866_v27, %v8009_v39  ;;  %v8012_v34 = vadd.f32 %v16570_v12, %v7718_v3  ;;  %8452 = vst.msk [vmem:[#allocation2 + $0xf8] sm:$0xff] %vm419_vm1, %v17068_v52  ;;  %8454 = vst.msk [vmem:[#allocation2 + $0x108] sm:$0xff] %vm419_vm1, %v17068_v52 }
 0x406   : > { %v7964_v16 = vpop.f32.mrf.mxu0  ;;  %8455 = vst.msk [vmem:[#allocation2 + $0x110] sm:$0xff] %vm419_vm1, %v17068_v52  ;;  %8457 = vst.msk [vmem:[#allocation2 + $0x120] sm:$0xff] %vm419_vm1, %v17068_v52 }
 0x407   : > { %v8011_v19 = vadd.f32 %v7964_v16, %v7717_v60  ;;  %16617 = vmatprep.mubr.msk.f32.mxu1 %vm8063_vm2, %v8048_v57  ;;  %v8051_v2 = vadd.f32 %v20866_v27, %v8012_v34  ;;  %8458 = vst.msk [vmem:[#allocation2 + $0x128] sm:$0xff] %vm419_vm1, %v17068_v52  ;;  %8460 = vst.msk [vmem:[#allocation2 + $0x138] sm:$0xff] %vm419_vm1, %v17068_v52 }
 0x408   : > { %v16573_v59 = vpop.f32.mrf.mxu0  ;;  %16618 = vmatmul.mubr.msk.f32.gmra.mxu1 %vm8063_vm2, %v8049_v41  ;;  %8461 = vst.msk [vmem:[#allocation2 + $0x140] sm:$0xff] %vm419_vm1, %v17068_v52  ;;  %8463 = vst.msk [vmem:[#allocation2 + $0x150] sm:$0xff] %vm419_vm1, %v17068_v52 }
 0x409   : > { %v8050_v14 = vadd.f32 %v20866_v27, %v8011_v19  ;;  %v8014_v7 = vadd.f32 %v16573_v59, %v7720_v43  ;;  %8464 = vst.msk [vmem:[#allocation2 + $0x158] sm:$0xff] %vm419_vm1, %v17068_v52  ;;  %8466 = vst.msk [vmem:[#allocation2 + $0x168] sm:$0xff] %vm419_vm1, %v17068_v52 }
 0x40a   : > { %v7974_v11 = vpop.f32.mrf.mxu0  ;;  %8467 = vst.msk [vmem:[#allocation2 + $0x170] sm:$0xff] %vm419_vm1, %v17068_v52  ;;  %8469 = vst.msk [vmem:[#allocation2 + $0x180] sm:$0xff] %vm419_vm1, %v17068_v52 }
 0x40b   : > { %v8013_v62 = vadd.f32 %v7974_v11, %v7719_v36  ;;  %16620 = vmatprep.mubr.msk.f32.mxu1 %vm8063_vm2, %v8050_v14  ;;  %v8053_v44 = vadd.f32 %v20866_v27, %v8014_v7  ;;  %8470 = vst.msk [vmem:[#allocation2 + $0x188] sm:$0xff] %vm419_vm1, %v17068_v52  ;;  %8493 = vst.msk [vmem:[#allocation2 + $0x240] sm:$0xff] %vm419_vm1, %v17068_v52 }
 0x40c   : > { %16621 = vmatmul.mubr.msk.f32.gmra.mxu1 %vm8063_vm2, %v8051_v2  ;;  %8494 = vst.msk [vmem:[#allocation2 + $0x248] sm:$0xff] %vm419_vm1, %v17068_v52  ;;  %8496 = vst.msk [vmem:[#allocation2 + $0x258] sm:$0xff] %vm419_vm1, %v17068_v52 }
 0x40d   : > { %v8052_v47 = vadd.f32 %v20866_v27, %v8013_v62  ;;  %8497 = vst.msk [vmem:[#allocation2 + $0x260] sm:$0xff] %vm419_vm1, %v17068_v52  ;;  %8499 = vst.msk [vmem:[#allocation2 + $0x270] sm:$0xff] %vm419_vm1, %v17068_v52  ;;  %v8662_v27 = vld [vmem:[#allocation2 + $0xaf] sm:$0xff] }
 0x40e   : > { %8500 = vst.msk [vmem:[#allocation2 + $0x278] sm:$0xff] %vm419_vm1, %v17068_v52  ;;  %8502 = vst.msk [vmem:[#allocation2 + $0x288] sm:$0xff] %vm419_vm1, %v17068_v52 }
 0x40f   : > { %16623 = vmatprep.mubr.msk.f32.mxu1 %vm8063_vm2, %v8052_v47  ;;  %8503 = vst.msk [vmem:[#allocation2 + $0x290] sm:$0xff] %vm419_vm1, %v17068_v52  ;;  %8505 = vst.msk [vmem:[#allocation2 + $0x2a0] sm:$0xff] %vm419_vm1, %v17068_v52  ;;  %v21380_v47 = vld [vmem:[%s22314_s5 + $0x10] sm:$0xf] }
 0x410   : > { %16624 = vmatmul.mubr.msk.f32.gmra.mxu1 %vm8063_vm2, %v8053_v44  ;;  %8506 = vst.msk [vmem:[#allocation2 + $0x2a8] sm:$0xff] %vm419_vm1, %v17068_v52  ;;  %8508 = vst.msk [vmem:[#allocation2 + $0x2b8] sm:$0xff] %vm419_vm1, %v17068_v52 }
 0x411   : > { %8509 = vst.msk [vmem:[#allocation2 + $0x2c0] sm:$0xff] %vm419_vm1, %v17068_v52  ;;  %8511 = vst.msk [vmem:[#allocation2 + $0x2d0] sm:$0xff] %vm419_vm1, %v17068_v52  ;;  %16642 = vmatprep.mubr.msk.f32.mxu1 %vm419_vm1, %v8662_v27 }
 0x412   : > { %8512 = vst.msk [vmem:[#allocation2 + $0x2d8] sm:$0xff] %vm419_vm1, %v17068_v52  ;;  %8514 = vst.msk [vmem:[#allocation2 + $0x2e8] sm:$0xff] %vm419_vm1, %v17068_v52 }
 0x413   : > { %8515 = vst.msk [vmem:[#allocation2 + $0x2f0] sm:$0xff] %vm419_vm1, %v17068_v52  ;;  %8517 = vst.msk [vmem:[#allocation2 + $0x300] sm:$0xff] %vm419_vm1, %v17068_v52  ;;  %v8672_v22 = vld [vmem:[#allocation2 + $0x247] sm:$0xff] }
 0x414   : > { %8518 = vst.msk [vmem:[#allocation2 + $0x308] sm:$0xff] %vm419_vm1, %v17068_v52  ;;  %8520 = vst.msk [vmem:[#allocation2 + $0x318] sm:$0xff] %vm419_vm1, %v17068_v52  ;;  %16628 = vmatprep.mubr.msk.f32.mxu0 %vm419_vm1, %v8672_v22  ;;  %v9096_v63 = vld [vmem:[#allocation2 + $0x248] sm:$0xff] }
 0x415   : > { %8521 = vst.msk [vmem:[#allocation2 + $0x320] sm:$0xff] %vm419_vm1, %v17068_v52  ;;  %8544 = vst.msk [vmem:[#allocation2 + $0x3d8] sm:$0xff] %vm419_vm1, %v17068_v52 }
 0x416   : > { %8545 = vst.msk [vmem:[#allocation2 + $0x3e0] sm:$0xff] %vm419_vm1, %v17068_v52  ;;  %8547 = vst.msk [vmem:[#allocation2 + $0x3f0] sm:$0xff] %vm419_vm1, %v17068_v52 }
 0x417   : > { %8548 = vst.msk [vmem:[#allocation2 + $0x3f8] sm:$0xff] %vm419_vm1, %v17068_v52  ;;  %8550 = vst.msk [vmem:[#allocation2 + $0x408] sm:$0xff] %vm419_vm1, %v17068_v52 }
 0x418   : > { %8551 = vst.msk [vmem:[#allocation2 + $0x410] sm:$0xff] %vm419_vm1, %v17068_v52  ;;  %8553 = vst.msk [vmem:[#allocation2 + $0x420] sm:$0xff] %vm419_vm1, %v17068_v52 }
 0x419   : > { %8554 = vst.msk [vmem:[#allocation2 + $0x428] sm:$0xff] %vm419_vm1, %v17068_v52  ;;  %8556 = vst.msk [vmem:[#allocation2 + $0x438] sm:$0xff] %vm419_vm1, %v17068_v52 }
 0x41a   : > { %8557 = vst.msk [vmem:[#allocation2 + $0x440] sm:$0xff] %vm419_vm1, %v17068_v52  ;;  %8559 = vst.msk [vmem:[#allocation2 + $0x450] sm:$0xff] %vm419_vm1, %v17068_v52 }
 0x41b   : > { %8560 = vst.msk [vmem:[#allocation2 + $0x458] sm:$0xff] %vm419_vm1, %v17068_v52  ;;  %8562 = vst.msk [vmem:[#allocation2 + $0x468] sm:$0xff] %vm419_vm1, %v17068_v52 }
 0x41c   : > { %8563 = vst.msk [vmem:[#allocation2 + $0x470] sm:$0xff] %vm419_vm1, %v17068_v52  ;;  %8565 = vst.msk [vmem:[#allocation2 + $0x480] sm:$0xff] %vm419_vm1, %v17068_v52 }
 0x41d   : > { %8566 = vst.msk [vmem:[#allocation2 + $0x488] sm:$0xff] %vm419_vm1, %v17068_v52  ;;  %8568 = vst.msk [vmem:[#allocation2 + $0x498] sm:$0xff] %vm419_vm1, %v17068_v52 }
 0x41e   : > { %8569 = vst.msk [vmem:[#allocation2 + $0x4a0] sm:$0xff] %vm419_vm1, %v17068_v52  ;;  %8595 = vst.msk [vmem:[#allocation2 + $0x570] sm:$0xff] %vm419_vm1, %v17068_v52 }
 0x41f   : > { %8596 = vst.msk [vmem:[#allocation2 + $0x578] sm:$0xff] %vm419_vm1, %v17068_v52  ;;  %8598 = vst.msk [vmem:[#allocation2 + $0x588] sm:$0xff] %vm419_vm1, %v17068_v52 }
 0x420   : > { %8599 = vst.msk [vmem:[#allocation2 + $0x590] sm:$0xff] %vm419_vm1, %v17068_v52  ;;  %8601 = vst.msk [vmem:[#allocation2 + $0x5a0] sm:$0xff] %vm419_vm1, %v17068_v52 }
 0x421   : > { %8602 = vst.msk [vmem:[#allocation2 + $0x5a8] sm:$0xff] %vm419_vm1, %v17068_v52  ;;  %8604 = vst.msk [vmem:[#allocation2 + $0x5b8] sm:$0xff] %vm419_vm1, %v17068_v52 }
 0x422   : > { %8605 = vst.msk [vmem:[#allocation2 + $0x5c0] sm:$0xff] %vm419_vm1, %v17068_v52  ;;  %8607 = vst.msk [vmem:[#allocation2 + $0x5d0] sm:$0xff] %vm419_vm1, %v17068_v52 }
 0x423   : > { %8608 = vst.msk [vmem:[#allocation2 + $0x5d8] sm:$0xff] %vm419_vm1, %v17068_v52  ;;  %8610 = vst.msk [vmem:[#allocation2 + $0x5e8] sm:$0xff] %vm419_vm1, %v17068_v52 }
 0x424   : > { %8611 = vst.msk [vmem:[#allocation2 + $0x5f0] sm:$0xff] %vm419_vm1, %v17068_v52  ;;  %8613 = vst.msk [vmem:[#allocation2 + $0x600] sm:$0xff] %vm419_vm1, %v17068_v52 }
 0x425   : > { %8614 = vst.msk [vmem:[#allocation2 + $0x608] sm:$0xff] %vm419_vm1, %v17068_v52  ;;  %8616 = vst.msk [vmem:[#allocation2 + $0x618] sm:$0xff] %vm419_vm1, %v17068_v52 }
 0x426   : > { %8617 = vst.msk [vmem:[#allocation2 + $0x620] sm:$0xff] %vm419_vm1, %v17068_v52  ;;  %8619 = vst.msk [vmem:[#allocation2 + $0x630] sm:$0xff] %vm419_vm1, %v17068_v52 }
 0x427   : > { %8620 = vst.msk [vmem:[#allocation2 + $0x638] sm:$0xff] %vm419_vm1, %v17068_v52 }
 0x428   : > { %8444 = vst.msk [vmem:[#allocation2 + $0xb8] sm:$0x1] %vm8422_vm3, %v17068_v52  ;;  %8447 = vst.msk [vmem:[#allocation2 + $0xd0] sm:$0x1] %vm8422_vm3, %v17068_v52 }
 0x429   : > { %8450 = vst.msk [vmem:[#allocation2 + $0xe8] sm:$0x1] %vm8422_vm3, %v17068_v52  ;;  %8453 = vst.msk [vmem:[#allocation2 + $0x100] sm:$0x1] %vm8422_vm3, %v17068_v52 }
 0x42a   : > { %8456 = vst.msk [vmem:[#allocation2 + $0x118] sm:$0x1] %vm8422_vm3, %v17068_v52  ;;  %8459 = vst.msk [vmem:[#allocation2 + $0x130] sm:$0x1] %vm8422_vm3, %v17068_v52 }
 0x42b   : > { %8462 = vst.msk [vmem:[#allocation2 + $0x148] sm:$0x1] %vm8422_vm3, %v17068_v52  ;;  %8465 = vst.msk [vmem:[#allocation2 + $0x160] sm:$0x1] %vm8422_vm3, %v17068_v52 }
 0x42c   : > { %8468 = vst.msk [vmem:[#allocation2 + $0x178] sm:$0x1] %vm8422_vm3, %v17068_v52  ;;  %8471 = vst.msk [vmem:[#allocation2 + $0x190] sm:$0x1] %vm8422_vm3, %v17068_v52 }
 0x42d   : > { %8546 = vst.msk [vmem:[#allocation2 + $0x3e8] sm:$0x1] %vm8422_vm3, %v17068_v52  ;;  %8549 = vst.msk [vmem:[#allocation2 + $0x400] sm:$0x1] %vm8422_vm3, %v17068_v52 }
 0x42e   : > { %8552 = vst.msk [vmem:[#allocation2 + $0x418] sm:$0x1] %vm8422_vm3, %v17068_v52  ;;  %8555 = vst.msk [vmem:[#allocation2 + $0x430] sm:$0x1] %vm8422_vm3, %v17068_v52 }
 0x42f   : > { %8558 = vst.msk [vmem:[#allocation2 + $0x448] sm:$0x1] %vm8422_vm3, %v17068_v52  ;;  %8561 = vst.msk [vmem:[#allocation2 + $0x460] sm:$0x1] %vm8422_vm3, %v17068_v52 }
 0x430   : > { %8564 = vst.msk [vmem:[#allocation2 + $0x478] sm:$0x1] %vm8422_vm3, %v17068_v52  ;;  %8567 = vst.msk [vmem:[#allocation2 + $0x490] sm:$0x1] %vm8422_vm3, %v17068_v52 }
 0x431   : > { %8570 = vst.msk [vmem:[#allocation2 + $0x4a8] sm:$0x1] %vm8422_vm3, %v17068_v52 }
 0x494   : > { %v16580_v0 = vpop.f32.mrf.mxu1 }
 0x495   : > { %v8235_v20 = vadd.f32 %v16580_v0, %v21306_v25 }
 0x496   : > { %v8229_v54 = vpop.f32.mrf.mxu1 }
 0x497   : > { %v8389_v4 = vmax.f32 %v8235_v20, 0.0  ;;  %v8230_v61 = vadd.f32 %v21306_v25, %v8229_v54 }
 0x498   : > { %v16583_v13 = vpop.f32.mrf.mxu1 }
 0x499   : > { %8627 = vst.msk [vmem:[#allocation2 + $0xe0] sm:$0xff] %vm419_vm1, %v8389_v4  ;;  %v8388_v8 = vmax.f32 %v8230_v61, 0.0  ;;  %v8245_v1 = vadd.f32 %v16583_v13, %v21306_v25  ;;  %v21411_v61 = vld [vmem:[%s22314_s5 + $0x1c] sm:$0xf] }
 0x49a   : > { %v8239_v55 = vpop.f32.mrf.mxu1 }
 0x49b   : > { %8626 = vst.msk [vmem:[#allocation2 + $0xc8] sm:$0xff] %vm419_vm1, %v8388_v8  ;;  %v8391_v37 = vmax.f32 %v8245_v1, 0.0  ;;  %v8240_v30 = vadd.f32 %v21306_v25, %v8239_v55 }
 0x49c   : > { %v16586_v6 = vpop.f32.mrf.mxu1 }
 0x49d   : > { %8629 = vst.msk [vmem:[#allocation2 + $0x110] sm:$0xff] %vm419_vm1, %v8391_v37  ;;  %v8390_v33 = vmax.f32 %v8240_v30, 0.0  ;;  %v8255_v5 = vadd.f32 %v16586_v6, %v21306_v25 }
 0x49e   : > { %v8249_v29 = vpop.f32.mrf.mxu1 }
 0x49f   : > { %8628 = vst.msk [vmem:[#allocation2 + $0xf8] sm:$0xff] %vm419_vm1, %v8390_v33  ;;  %v8393_v24 = vmax.f32 %v8255_v5, 0.0  ;;  %v8250_v28 = vadd.f32 %v21306_v25, %v8249_v29 }
 0x4a0   : > { %v16589_v53 = vpop.f32.mrf.mxu1  ;;  %v21331_v49 = vld [vmem:[#allocation2 + $0xdf] sm:$0xff] }
 0x4a1   : > { %8631 = vst.msk [vmem:[#allocation2 + $0x140] sm:$0xff] %vm419_vm1, %v8393_v24  ;;  %v8392_v21 = vmax.f32 %v8250_v28, 0.0  ;;  %v8265_v42 = vadd.f32 %v16589_v53, %v21306_v25 }
 0x4a2   : > { %v8259_v38 = vpop.f32.mrf.mxu1  ;;  %v21320_v40 = vld [vmem:[#allocation2 + $0xc7] sm:$0xff] }
 0x4a3   : > { %8630 = vst.msk [vmem:[#allocation2 + $0x128] sm:$0xff] %vm419_vm1, %v8392_v21  ;;  %v8395_v35 = vmax.f32 %v8265_v42, 0.0  ;;  %v8260_v51 = vadd.f32 %v21306_v25, %v8259_v38  ;;  %16643 = vmatmul.mubr.msk.f32.vlgmr.msra.gmra.mxu1 %vm419_vm1, %v21320_v40 }
 0x4a4   : > { %v16592_v31 = vpop.f32.mrf.mxu1  ;;  %16645 = vmatprep.mubr.msk.f32.mxu1 %vm419_vm1, %v21331_v49  ;;  %16669 = vmatpush3.msk.msra.mxu1 %vm516_vm0, %v13978_v18  ;;  %v21346_v32 = vld [vmem:[#allocation2 + $0x10f] sm:$0xff] }
 0x4a5   : > { %8633 = vst.msk [vmem:[#allocation2 + $0x170] sm:$0xff] %vm419_vm1, %v8395_v35  ;;  %v8394_v56 = vmax.f32 %v8260_v51, 0.0  ;;  %v8275_v50 = vadd.f32 %v16592_v31, %v21306_v25  ;;  %16696 = vmatprep.subr.msk.mxu1 %vm516_vm0, %v21325_v46  ;;  %v8946_v35 = vld [vmem:[#allocation2 + $0xb0] sm:$0xff]  ;;  %v9397_v51 = vld [vmem:[#allocation2 + $0x3df] sm:$0xff] }
 0x4a6   : > { %v8269_v45 = vpop.f32.mrf.mxu1  ;;  %v21340_v39 = vld [vmem:[#allocation2 + $0xf7] sm:$0xff] }
 0x4a7   : > { %8632 = vst.msk [vmem:[#allocation2 + $0x158] sm:$0xff] %vm419_vm1, %v8394_v56  ;;  %v8397_v17 = vmax.f32 %v8275_v50, 0.0  ;;  %v8270_v15 = vadd.f32 %v21306_v25, %v8269_v45  ;;  %16646 = vmatmul.mubr.msk.f32.gmra.mxu1 %vm419_vm1, %v21340_v39 }
 0x4a8   : > { %v16595_v3 = vpop.f32.mrf.mxu1  ;;  %16648 = vmatprep.mubr.msk.f32.mxu1 %vm419_vm1, %v21346_v32  ;;  %v21358_v9 = vld [vmem:[#allocation2 + $0x13f] sm:$0xff] }
 0x4a9   : > { %8636 = vst.msk [vmem:[#allocation2 + $0x278] sm:$0xff] %vm419_vm1, %v8397_v17  ;;  %v8396_v12 = vmax.f32 %v8270_v15, 0.0  ;;  %v8285_v58 = vadd.f32 %v16595_v3, %v21306_v25 }
 0x4aa   : > { %v8279_v26 = vpop.f32.mrf.mxu1  ;;  %v21352_v60 = vld [vmem:[#allocation2 + $0x127] sm:$0xff] }
 0x4ab   : > { %8635 = vst.msk [vmem:[#allocation2 + $0x260] sm:$0xff] %vm419_vm1, %v8396_v12  ;;  %v8399_v57 = vmax.f32 %v8285_v58, 0.0  ;;  %v8280_v10 = vadd.f32 %v21306_v25, %v8279_v26  ;;  %16649 = vmatmul.mubr.msk.f32.gmra.mxu1 %vm419_vm1, %v21352_v60  ;;  %v21465_v26 = vld [vmem:[#allocation2 + $0xc8] sm:$0xff] }
 0x4ac   : > { %v16598_v41 = vpop.f32.mrf.mxu1  ;;  %16651 = vmatprep.mubr.msk.f32.mxu1 %vm419_vm1, %v21358_v9 }
 0x4ad   : > { %8638 = vst.msk [vmem:[#allocation2 + $0x2a8] sm:$0xff] %vm419_vm1, %v8399_v57  ;;  %v8398_v34 = vmax.f32 %v8280_v10, 0.0  ;;  %v8295_v16 = vadd.f32 %v16598_v41, %v21306_v25  ;;  %v21472_v10 = vld [vmem:[%s22314_s5 + $0x18] sm:$0xf] }
 0x4ae   : > { %v8289_v48 = vpop.f32.mrf.mxu1  ;;  %v21364_v19 = vld [vmem:[#allocation2 + $0x157] sm:$0xff] }
 0x4af   : > { %8637 = vst.msk [vmem:[#allocation2 + $0x290] sm:$0xff] %vm419_vm1, %v8398_v34  ;;  %v8401_v43 = vmax.f32 %v8295_v16, 0.0  ;;  %v8290_v59 = vadd.f32 %v21306_v25, %v8289_v48  ;;  %16652 = vmatmul.mubr.msk.f32.gmra.mxu1 %vm419_vm1, %v21364_v19  ;;  %v21480_v16 = vld [vmem:[#allocation2 + $0xe0] sm:$0xff] }
 0x4b0   : > { %v16601_v36 = vpop.f32.mrf.mxu1  ;;  %16670 = vmatprep.mubr.msk.f32.mxu1 %vm419_vm1, %v9096_v63  ;;  %v21388_v27 = vld [vmem:[#allocation2 + $0x277] sm:$0xff] }
 0x4b1   : > { %8640 = vst.msk [vmem:[#allocation2 + $0x2d8] sm:$0xff] %vm419_vm1, %v8401_v43  ;;  %v8400_v14 = vmax.f32 %v8290_v59, 0.0  ;;  %v8305_v2 = vadd.f32 %v16601_v36, %v21306_v25  ;;  %v21394_v22 = vld [vmem:[#allocation2 + $0x278] sm:$0xff] }
 0x4b2   : > { %v8299_v7 = vpop.f32.mrf.mxu1  ;;  %v21373_v11 = vld [vmem:[#allocation2 + $0x25f] sm:$0xff] }
 0x4b3   : > { %v21375_v62 = vld [vmem:[#allocation2 + $0x260] sm:$0xff]  ;;  %8639 = vst.msk [vmem:[#allocation2 + $0x2c0] sm:$0xff] %vm419_vm1, %v8400_v14  ;;  %v8403_v44 = vmax.f32 %v8305_v2, 0.0  ;;  %v8300_v52 = vadd.f32 %v21306_v25, %v8299_v7  ;;  %16629 = vmatmul.mubr.msk.f32.vlgmr.msra.gmra.mxu0 %vm419_vm1, %v21373_v11  ;;  %v21494_v14 = vld [vmem:[#allocation2 + $0xf8] sm:$0xff] }
 0x4b4   : > { %16671 = vmatmul.mubr.msk.f32.vlgmr.msra.gmra.mxu1 %vm419_vm1, %v21375_v62  ;;  %16655 = vmatpush3.msk.msra.mxu0 %vm516_vm0, %v21299_v23  ;;  %v16604_v18 = vpop.f32.mrf.mxu1  ;;  %v21419_v1 = vld [vmem:[#allocation2 + $0x2a7] sm:$0xff] }
 0x4b5   : > { %16631 = vmatprep.mubr.msk.f32.mxu0 %vm419_vm1, %v21388_v27  ;;  %8642 = vst.msk [vmem:[#allocation2 + $0x308] sm:$0xff] %vm419_vm1, %v8403_v44  ;;  %v8402_v0 = vmax.f32 %v8300_v52, 0.0  ;;  %v8315_v20 = vadd.f32 %v16604_v18, %v21306_v25  ;;  %16673 = vmatprep.mubr.msk.f32.mxu1 %vm419_vm1, %v21394_v22  ;;  %v21421_v55 = vld [vmem:[#allocation2 + $0x2a8] sm:$0xff]  ;;  %v21503_v7 = vld [vmem:[%s22314_s5 + $0x24] sm:$0xf]  ;;  %v21511_v52 = vld [vmem:[#allocation2 + $0x110] sm:$0xff] }
 0x4b6   : > { %16682 = vmatprep.subr.msk.mxu0 %vm516_vm0, %v21380_v47  ;;  %v8309_v54 = vpop.f32.mrf.mxu1  ;;  %v21402_v4 = vld [vmem:[#allocation2 + $0x28f] sm:$0xff]  ;;  %16697 = vmatpush3.msk.msra.mxu1 %vm516_vm0, %v21325_v46 }
 0x4b7   : > { %v21404_v23 = vld [vmem:[#allocation2 + $0x290] sm:$0xff]  ;;  %8641 = vst.msk [vmem:[#allocation2 + $0x2f0] sm:$0xff] %vm419_vm1, %v8402_v0  ;;  %v8405_v13 = vmax.f32 %v8315_v20, 0.0  ;;  %v8310_v8 = vadd.f32 %v21306_v25, %v8309_v54  ;;  %16632 = vmatmul.mubr.msk.f32.gmra.mxu0 %vm419_vm1, %v21402_v4  ;;  %16724 = vmatprep.subr.msk.mxu1 %vm516_vm0, %v21411_v61 }
 0x4b8   : > { %16674 = vmatmul.mubr.msk.f32.gmra.mxu1 %vm419_vm1, %v21404_v23  ;;  %v16607_v37 = vpop.f32.mrf.mxu1  ;;  %16634 = vmatprep.mubr.msk.f32.mxu0 %vm419_vm1, %v21419_v1  ;;  %v21441_v53 = vld [vmem:[#allocation2 + $0x2d7] sm:$0xff] }
 0x4b9   : > { %16676 = vmatprep.mubr.msk.f32.mxu1 %vm419_vm1, %v21421_v55  ;;  %8645 = vst.msk [vmem:[#allocation2 + $0x410] sm:$0xff] %vm419_vm1, %v8405_v13  ;;  %v8404_v30 = vmax.f32 %v8310_v8, 0.0  ;;  %v8325_v6 = vadd.f32 %v16607_v37, %v21306_v25  ;;  %v21443_v21 = vld [vmem:[#allocation2 + $0x2d8] sm:$0xff]  ;;  %v21523_v13 = vld [vmem:[#allocation2 + $0x128] sm:$0xff] }
 0x4ba   : > { %v8319_v33 = vpop.f32.mrf.mxu1  ;;  %v21431_v5 = vld [vmem:[#allocation2 + $0x2bf] sm:$0xff] }
 0x4bb   : > { %22900 = vst [vmem:[#allocation45_spill] sm:$0xff] %v21431_v5  ;;  %v21433_v29 = vld [vmem:[#allocation2 + $0x2c0] sm:$0xff]  ;;  %8644 = vst.msk [vmem:[#allocation2 + $0x3f8] sm:$0xff] %vm419_vm1, %v8404_v30  ;;  %v8407_v24 = vmax.f32 %v8325_v6, 0.0  ;;  %v8320_v28 = vadd.f32 %v21306_v25, %v8319_v33  ;;  %16635 = vmatmul.mubr.msk.f32.gmra.mxu0 %vm419_vm1, %v21431_v5 }
 0x4bc   : > { %16677 = vmatmul.mubr.msk.f32.gmra.mxu1 %vm419_vm1, %v21433_v29  ;;  %v16610_v42 = vpop.f32.mrf.mxu1  ;;  %16637 = vmatprep.mubr.msk.f32.mxu0 %vm419_vm1, %v21441_v53  ;;  %v21533_v6 = vld [vmem:[#allocation2 + $0x140] sm:$0xff] }
 0x4bd   : > { %16679 = vmatprep.mubr.msk.f32.mxu1 %vm419_vm1, %v21443_v21  ;;  %8647 = vst.msk [vmem:[#allocation2 + $0x440] sm:$0xff] %vm419_vm1, %v8407_v24  ;;  %v8406_v38 = vmax.f32 %v8320_v28, 0.0  ;;  %v8335_v46 = vadd.f32 %v16610_v42, %v21306_v25 }
 0x4be   : > { %v8329_v31 = vpop.f32.mrf.mxu1  ;;  %v21451_v56 = vld [vmem:[#allocation2 + $0x2ef] sm:$0xff] }
 0x4bf   : > { %22901 = vst [vmem:[#allocation88_spill] sm:$0xff] %v21451_v56  ;;  %v21453_v50 = vld [vmem:[#allocation2 + $0x2f0] sm:$0xff]  ;;  %8646 = vst.msk [vmem:[#allocation2 + $0x428] sm:$0xff] %vm419_vm1, %v8406_v38  ;;  %v8409_v45 = vmax.f32 %v8335_v46, 0.0  ;;  %v8330_v17 = vadd.f32 %v21306_v25, %v8329_v31  ;;  %16638 = vmatmul.mubr.msk.f32.gmra.mxu0 %vm419_vm1, %v21451_v56  ;;  %v9698_v46 = vld [vmem:[#allocation2 + $0x3e0] sm:$0xff] }
 0x4c0   : > { %16680 = vmatmul.mubr.msk.f32.gmra.mxu1 %vm419_vm1, %v21453_v50  ;;  %v16613_v15 = vpop.f32.mrf.mxu1  ;;  %16656 = vmatprep.mubr.msk.f32.mxu0 %vm419_vm1, %v8946_v35  ;;  %v21486_v48 = vld [vmem:[#allocation2 + $0x40f] sm:$0xff] }
 0x4c1   : > { %16698 = vmatprep.mubr.msk.f32.mxu1 %vm419_vm1, %v9397_v51  ;;  %8649 = vst.msk [vmem:[#allocation2 + $0x470] sm:$0xff] %vm419_vm1, %v8409_v45  ;;  %v8408_v3 = vmax.f32 %v8330_v17, 0.0  ;;  %v8345_v12 = vadd.f32 %v16613_v15, %v21306_v25  ;;  %v9246_v38 = vld [vmem:[#allocation2 + $0xb1] sm:$0xff] }
 0x4c2   : > { %v8339_v58 = vpop.f32.mrf.mxu1  ;;  %v21467_v57 = vld [vmem:[#allocation2 + $0x3f7] sm:$0xff] }
 0x4c3   : > { %8648 = vst.msk [vmem:[#allocation2 + $0x458] sm:$0xff] %vm419_vm1, %v8408_v3  ;;  %v8411_v41 = vmax.f32 %v8345_v12, 0.0  ;;  %v8340_v34 = vadd.f32 %v21306_v25, %v8339_v58  ;;  %16657 = vmatmul.mubr.msk.f32.vlgmr.msra.gmra.mxu0 %vm419_vm1, %v21465_v26  ;;  %v21543_v51 = vld [vmem:[#allocation2 + $0x158] sm:$0xff] }
 0x4c4   : > { %16699 = vmatmul.mubr.msk.f32.vlgmr.msra.gmra.mxu1 %vm419_vm1, %v21467_v57  ;;  %16683 = vmatpush3.msk.msra.mxu0 %vm516_vm0, %v21380_v47  ;;  %v16616_v63 = vpop.f32.mrf.mxu1  ;;  %v21513_v18 = vld [vmem:[#allocation2 + $0x43f] sm:$0xff] }
 0x4c5   : > { %16659 = vmatprep.mubr.msk.f32.mxu0 %vm419_vm1, %v21480_v16  ;;  %8651 = vst.msk [vmem:[#allocation2 + $0x4a0] sm:$0xff] %vm419_vm1, %v8411_v41  ;;  %v8410_v43 = vmax.f32 %v8340_v34, 0.0  ;;  %v8355_v59 = vadd.f32 %v16616_v63, %v21306_v25  ;;  %16701 = vmatprep.mubr.msk.f32.mxu1 %vm419_vm1, %v21486_v48  ;;  %v21557_v41 = vld [vmem:[#allocation2 + $0xc9] sm:$0xff]  ;;  %v21559_v34 = vld [vmem:[#allocation2 + $0x3f8] sm:$0xff]  ;;  %v14028_v63 = vld [vmem:[%s22314_s5 + $0x20] sm:$0xf] }
 0x4c6   : > { %16710 = vmatprep.subr.msk.mxu0 %vm516_vm0, %v21472_v10  ;;  %v8349_v36 = vpop.f32.mrf.mxu1  ;;  %v21496_v2 = vld [vmem:[#allocation2 + $0x427] sm:$0xff]  ;;  %16725 = vmatpush3.msk.msra.mxu1 %vm516_vm0, %v21411_v61 }
 0x4c7   : > { %8650 = vst.msk [vmem:[#allocation2 + $0x488] sm:$0xff] %vm419_vm1, %v8410_v43  ;;  %v8413_v47 = vmax.f32 %v8355_v59, 0.0  ;;  %v8350_v44 = vadd.f32 %v21306_v25, %v8349_v36  ;;  %16660 = vmatmul.mubr.msk.f32.gmra.mxu0 %vm419_vm1, %v21494_v14  ;;  %16752 = vmatprep.subr.msk.mxu1 %vm516_vm0, %v21503_v7  ;;  %v21570_v36 = vld [vmem:[#allocation2 + $0xe1] sm:$0xff] }
 0x4c8   : > { %16702 = vmatmul.mubr.msk.f32.gmra.mxu1 %vm419_vm1, %v21496_v2  ;;  %v16619_v0 = vpop.f32.mrf.mxu1  ;;  %16662 = vmatprep.mubr.msk.f32.mxu0 %vm419_vm1, %v21511_v52  ;;  %v21535_v33 = vld [vmem:[#allocation2 + $0x46f] sm:$0xff] }
 0x4c9   : > { %16704 = vmatprep.mubr.msk.f32.mxu1 %vm419_vm1, %v21513_v18  ;;  %8654 = vst.msk [vmem:[#allocation2 + $0x5a8] sm:$0xff] %vm419_vm1, %v8413_v47  ;;  %v8412_v20 = vmax.f32 %v8350_v44, 0.0  ;;  %v8365_v54 = vadd.f32 %v16619_v0, %v21306_v25  ;;  %v21576_v47 = vld [vmem:[#allocation2 + $0x410] sm:$0xff]  ;;  %v21584_v0 = vld [vmem:[#allocation2 + $0x428] sm:$0xff] }
 0x4ca   : > { %v8359_v61 = vpop.f32.mrf.mxu1  ;;  %v21525_v8 = vld [vmem:[#allocation2 + $0x457] sm:$0xff] }
 0x4cb   : > { %8653 = vst.msk [vmem:[#allocation2 + $0x590] sm:$0xff] %vm419_vm1, %v8412_v20  ;;  %v8415_v37 = vmax.f32 %v8365_v54, 0.0  ;;  %v8360_v30 = vadd.f32 %v21306_v25, %v8359_v61  ;;  %16663 = vmatmul.mubr.msk.f32.gmra.mxu0 %vm419_vm1, %v21523_v13  ;;  %v21596_v20 = vld [vmem:[#allocation2 + $0x111] sm:$0xff]  ;;  %v21598_v54 = vld [vmem:[#allocation2 + $0x440] sm:$0xff] }
 0x4cc   : > { %16705 = vmatmul.mubr.msk.f32.gmra.mxu1 %vm419_vm1, %v21525_v8  ;;  %v16622_v24 = vpop.f32.mrf.mxu1  ;;  %16665 = vmatprep.mubr.msk.f32.mxu0 %vm419_vm1, %v21533_v6  ;;  %v21607_v61 = vld [vmem:[#allocation2 + $0x458] sm:$0xff] }
 0x4cd   : > { %16707 = vmatprep.mubr.msk.f32.mxu1 %vm419_vm1, %v21535_v33  ;;  %8656 = vst.msk [vmem:[#allocation2 + $0x5d8] sm:$0xff] %vm419_vm1, %v8415_v37  ;;  %v8414_v28 = vmax.f32 %v8360_v30, 0.0  ;;  %v8375_v42 = vadd.f32 %v16622_v24, %v21306_v25  ;;  %v21613_v37 = vld [vmem:[#allocation2 + $0x141] sm:$0xff]  ;;  %v21615_v30 = vld [vmem:[#allocation2 + $0x470] sm:$0xff] }
 0x4ce   : > { %v8369_v35 = vpop.f32.mrf.mxu1  ;;  %v21545_v31 = vld [vmem:[#allocation2 + $0x487] sm:$0xff]  ;;  %v9548_v24 = vld [vmem:[#allocation2 + $0x577] sm:$0xff] }
 0x4cf   : > { %8655 = vst.msk [vmem:[#allocation2 + $0x5c0] sm:$0xff] %vm419_vm1, %v8414_v28  ;;  %v8417_v45 = vmax.f32 %v8375_v42, 0.0  ;;  %v8370_v17 = vadd.f32 %v21306_v25, %v8369_v35  ;;  %16666 = vmatmul.mubr.msk.f32.gmra.mxu0 %vm419_vm1, %v21543_v51  ;;  %v9998_v28 = vld [vmem:[#allocation2 + $0x3e1] sm:$0xff]  ;;  %v21621_v42 = vld [vmem:[#allocation2 + $0x159] sm:$0xff] }
 0x4d0   : > { %16708 = vmatmul.mubr.msk.f32.gmra.mxu1 %vm419_vm1, %v21545_v31  ;;  %v16625_v15 = vpop.f32.mrf.mxu1  ;;  %16684 = vmatprep.mubr.msk.f32.mxu0 %vm419_vm1, %v9246_v38  ;;  %v21623_v38 = vld [vmem:[#allocation2 + $0x488] sm:$0xff]  ;;  %v21633_v35 = vld [vmem:[#allocation2 + $0x3f9] sm:$0xff] }
 0x4d1   : > { %16726 = vmatprep.mubr.msk.f32.mxu1 %vm419_vm1, %v9698_v46  ;;  %8658 = vst.msk [vmem:[#allocation2 + $0x608] sm:$0xff] %vm419_vm1, %v8417_v45  ;;  %v8416_v3 = vmax.f32 %v8370_v17, 0.0  ;;  %v8385_v12 = vadd.f32 %v16625_v15, %v21306_v25  ;;  %v14048_v45 = vld [vmem:[%s22314_s5 + $0x28] sm:$0xf]  ;;  %v21647_v15 = vld [vmem:[#allocation2 + $0x411] sm:$0xff] }
 0x4d2   : > { %v8379_v58 = vpop.f32.mrf.mxu1  ;;  %v21631_v46 = vld [vmem:[#allocation2 + $0x58f] sm:$0xff]  ;;  %v21642_v17 = vld [vmem:[#allocation2 + $0x5a7] sm:$0xff] }
 0x4d3   : > { %8657 = vst.msk [vmem:[#allocation2 + $0x5f0] sm:$0xff] %vm419_vm1, %v8416_v3  ;;  %v8419_v43 = vmax.f32 %v8385_v12, 0.0  ;;  %v8380_v59 = vadd.f32 %v21306_v25, %v8379_v58  ;;  %16685 = vmatmul.mubr.msk.f32.vlgmr.msra.gmra.mxu0 %vm419_vm1, %v21557_v41  ;;  %v21582_v25 = vld [vmem:[#allocation2 + $0xf9] sm:$0xff]  ;;  %v21654_v12 = vld [vmem:[#allocation2 + $0x429] sm:$0xff]  ;;  %v14078_v58 = vld [vmem:[%s22314_s5 + $0x34] sm:$0xf] }
 0x4d4   : > { %16727 = vmatmul.mubr.msk.f32.vlgmr.msra.gmra.mxu1 %vm419_vm1, %v21559_v34  ;;  %16711 = vmatpush3.msk.msra.mxu0 %vm516_vm0, %v21472_v10  ;;  %v14058_v10 = vld [vmem:[%s22314_s5 + $0x2c] sm:$0xf] }
 0x4d5   : > { %16687 = vmatprep.mubr.msk.f32.mxu0 %vm419_vm1, %v21570_v36  ;;  %8660 = vst.msk [vmem:[#allocation2 + $0x638] sm:$0xff] %vm419_vm1, %v8419_v43  ;;  %v8418_v44 = vmax.f32 %v8380_v59, 0.0  ;;  %16729 = vmatprep.mubr.msk.f32.mxu1 %vm419_vm1, %v21576_v47  ;;  %v21666_v43 = vld [vmem:[#allocation2 + $0x441] sm:$0xff] }
 0x4d6   : > { %16738 = vmatprep.subr.msk.mxu0 %vm516_vm0, %v14028_v63  ;;  %16753 = vmatpush3.msk.msra.mxu1 %vm516_vm0, %v21503_v7  ;;  %v21605_v7 = vld [vmem:[#allocation2 + $0x129] sm:$0xff]  ;;  %v21652_v3 = vld [vmem:[#allocation2 + $0x5bf] sm:$0xff]  ;;  %22903 = vst [vmem:[#allocation21_spill] sm:$0xff] %v21666_v43 }
 0x4d7   : > { %8659 = vst.msk [vmem:[#allocation2 + $0x620] sm:$0xff] %vm419_vm1, %v8418_v44  ;;  %16688 = vmatmul.mubr.msk.f32.gmra.mxu0 %vm419_vm1, %v21582_v25  ;;  %16780 = vmatprep.subr.msk.mxu1 %vm516_vm0, %v14058_v10  ;;  %v21675_v44 = vld [vmem:[#allocation2 + $0x459] sm:$0xff] }
 0x4d8   : > { %16730 = vmatmul.mubr.msk.f32.gmra.mxu1 %vm419_vm1, %v21584_v0  ;;  %16690 = vmatprep.mubr.msk.f32.mxu0 %vm419_vm1, %v21596_v20 }
 0x4d9   : > { %16732 = vmatprep.mubr.msk.f32.mxu1 %vm419_vm1, %v21598_v54 }
 0x4da   : > { %v21673_v59 = vld [vmem:[#allocation2 + $0x5ef] sm:$0xff] }
 0x4db   : > { %16691 = vmatmul.mubr.msk.f32.gmra.mxu0 %vm419_vm1, %v21605_v7 }
 0x4dc   : > { %16733 = vmatmul.mubr.msk.f32.gmra.mxu1 %vm419_vm1, %v21607_v61  ;;  %16693 = vmatprep.mubr.msk.f32.mxu0 %vm419_vm1, %v21613_v37 }
 0x4dd   : > { %16735 = vmatprep.mubr.msk.f32.mxu1 %vm419_vm1, %v21615_v30 }
 0x4df   : > { %16694 = vmatmul.mubr.msk.f32.gmra.mxu0 %vm419_vm1, %v21621_v42 }
 0x4e0   : > { %16736 = vmatmul.mubr.msk.f32.gmra.mxu1 %vm419_vm1, %v21623_v38  ;;  %16712 = vmatprep.mubr.msk.f32.mxu0 %vm419_vm1, %v9548_v24  ;;  %v21683_v24 = vld [vmem:[#allocation2 + $0x471] sm:$0xff] }
 0x4e1   : > { %16754 = vmatprep.mubr.msk.f32.mxu1 %vm419_vm1, %v9998_v28  ;;  %22905 = vst [vmem:[#allocation90_spill] sm:$0xff] %v21683_v24  ;;  %v9848_v28 = vld [vmem:[#allocation2 + $0x578] sm:$0xff] }
 0x4e3   : > { %16713 = vmatmul.mubr.msk.f32.vlgmr.msra.gmra.mxu0 %vm419_vm1, %v21631_v46 }
 0x4e4   : > { %16755 = vmatmul.mubr.msk.f32.vlgmr.msra.gmra.mxu1 %vm419_vm1, %v21633_v35  ;;  %16739 = vmatpush3.msk.msra.mxu0 %vm516_vm0, %v14028_v63  ;;  %v21664_v63 = vld [vmem:[#allocation2 + $0x5d7] sm:$0xff] }
 0x4e5   : > { %16715 = vmatprep.mubr.msk.f32.mxu0 %vm419_vm1, %v21642_v17  ;;  %16757 = vmatprep.mubr.msk.f32.mxu1 %vm419_vm1, %v21647_v15  ;;  %22902 = vst [vmem:[#allocation7_spill] sm:$0xff] %v21664_v63 }
 0x4e6   : > { %16766 = vmatprep.subr.msk.mxu0 %vm516_vm0, %v14048_v45  ;;  %16781 = vmatpush3.msk.msra.mxu1 %vm516_vm0, %v14058_v10  ;;  %v21681_v10 = vld [vmem:[#allocation2 + $0x607] sm:$0xff] }
 0x4e7   : > { %16716 = vmatmul.mubr.msk.f32.gmra.mxu0 %vm419_vm1, %v21652_v3  ;;  %16808 = vmatprep.subr.msk.mxu1 %vm516_vm0, %v14078_v58  ;;  %22904 = vst [vmem:[#allocation48_spill] sm:$0xff] %v21681_v10 }
 0x4e8   : > { %16758 = vmatmul.mubr.msk.f32.gmra.mxu1 %vm419_vm1, %v21654_v12  ;;  %16718 = vmatprep.mubr.msk.f32.mxu0 %vm419_vm1, %v21664_v63  ;;  %v21691_v63 = vld [vmem:[#allocation2 + $0x489] sm:$0xff] }
 0x4e9   : > { %16760 = vmatprep.mubr.msk.f32.mxu1 %vm419_vm1, %v21666_v43  ;;  %v21689_v43 = vld [vmem:[#allocation2 + $0x61f] sm:$0xff] }
 0x4ea   : > { %22906 = vst [vmem:[#allocation81_spill] sm:$0xff] %v21689_v43 }
 0x4eb   : > { %16719 = vmatmul.mubr.msk.f32.gmra.mxu0 %vm419_vm1, %v21673_v59 }
 0x4ec   : > { %16761 = vmatmul.mubr.msk.f32.gmra.mxu1 %vm419_vm1, %v21675_v44  ;;  %16721 = vmatprep.mubr.msk.f32.mxu0 %vm419_vm1, %v21681_v10  ;;  %v21700_v10 = vld [vmem:[#allocation2 + $0x590] sm:$0xff] }
 0x4ed   : > { %16763 = vmatprep.mubr.msk.f32.mxu1 %vm419_vm1, %v21683_v24  ;;  %v14068_v24 = vld [vmem:[%s22314_s5 + $0x30] sm:$0xf] }
 0x4ef   : > { %16722 = vmatmul.mubr.msk.f32.gmra.mxu0 %vm419_vm1, %v21689_v43  ;;  %v21709_v43 = vld [vmem:[#allocation2 + $0x5a8] sm:$0xff] }
 0x4f0   : > { %16764 = vmatmul.mubr.msk.f32.gmra.mxu1 %vm419_vm1, %v21691_v63  ;;  %16740 = vmatprep.mubr.msk.f32.mxu0 %vm419_vm1, %v9848_v28  ;;  %v14098_v28 = vld [vmem:[%s22314_s5 + $0x3c] sm:$0xf] }
 0x4f1   : > { %16782 = vmatprep.mubr.msk.f32.mxu1 %vm419_vm1, %v21373_v11  ;;  %v21717_v11 = vld [vmem:[#allocation2 + $0x5c0] sm:$0xff] }
 0x4f2   : > { %22907 = vst [vmem:[#allocation40_spill] sm:$0xff] %v21717_v11 }
 0x4f3   : > { %16741 = vmatmul.mubr.msk.f32.vlgmr.msra.gmra.mxu0 %vm419_vm1, %v21700_v10 }
 0x4f4   : > { %16783 = vmatmul.mubr.msk.f32.vlgmr.msra.gmra.mxu1 %vm419_vm1, %v21388_v27  ;;  %16767 = vmatpush3.msk.msra.mxu0 %vm516_vm0, %v14048_v45  ;;  %v21727_v45 = vld [vmem:[#allocation2 + $0x5d8] sm:$0xff] }
 0x4f5   : > { %16743 = vmatprep.mubr.msk.f32.mxu0 %vm419_vm1, %v21709_v43  ;;  %16785 = vmatprep.mubr.msk.f32.mxu1 %vm419_vm1, %v21402_v4  ;;  %22908 = vst [vmem:[#allocation82_spill] sm:$0xff] %v21727_v45 }
 0x4f6   : > { %16794 = vmatprep.subr.msk.mxu0 %vm516_vm0, %v14068_v24  ;;  %16809 = vmatpush3.msk.msra.mxu1 %vm516_vm0, %v14078_v58  ;;  %v21734_v58 = vld [vmem:[#allocation2 + $0x5f0] sm:$0xff] }
 0x4f7   : > { %16744 = vmatmul.mubr.msk.f32.gmra.mxu0 %vm419_vm1, %v21717_v11  ;;  %16836 = vmatprep.subr.msk.mxu1 %vm516_vm0, %v14098_v28  ;;  %v21740_v11 = vld [vmem:[#allocation2 + $0x608] sm:$0xff] }
 0x4f8   : > { %16786 = vmatmul.mubr.msk.f32.gmra.mxu1 %vm419_vm1, %v21419_v1  ;;  %16746 = vmatprep.mubr.msk.f32.mxu0 %vm419_vm1, %v21727_v45  ;;  %v21746_v45 = vld [vmem:[#allocation2 + $0x620] sm:$0xff] }
 0x4f9   : > { %16788 = vmatprep.mubr.msk.f32.mxu1 %vm419_vm1, %v21431_v5  ;;  %v21748_v5 = vld [vmem:[#allocation2 + $0x307] sm:$0xff] }
 0x4fb   : > { %16747 = vmatmul.mubr.msk.f32.gmra.mxu0 %vm419_vm1, %v21734_v58 }
 0x4fc   : > { %16789 = vmatmul.mubr.msk.f32.gmra.mxu1 %vm419_vm1, %v21441_v53  ;;  %16749 = vmatprep.mubr.msk.f32.mxu0 %vm419_vm1, %v21740_v11 }
 0x4fd   : > { %16791 = vmatprep.mubr.msk.f32.mxu1 %vm419_vm1, %v21451_v56  ;;  %v14088_v56 = vld [vmem:[%s22314_s5 + $0x38] sm:$0xf] }
 0x4ff   : > { %16750 = vmatmul.mubr.msk.f32.gmra.mxu0 %vm419_vm1, %v21746_v45 }
 0x500   : > { %16792 = vmatmul.mubr.msk.f32.gmra.mxu1 %vm419_vm1, %v21748_v5  ;;  %16768 = vmatprep.mubr.msk.f32.mxu0 %vm419_vm1, %v21320_v40  ;;  %v14118_v40 = vld [vmem:[%s22314_s5 + $0x44] sm:$0xf] }
 0x501   : > { %16810 = vmatprep.mubr.msk.f32.mxu1 %vm419_vm1, %v21375_v62 }
 0x503   : > { %16769 = vmatmul.mubr.msk.f32.vlgmr.msra.gmra.mxu0 %vm419_vm1, %v21331_v49  ;;  %v21792_v49 = vld [vmem:[#allocation2 + $0x16f] sm:$0xff] }
 0x504   : > { %16811 = vmatmul.mubr.msk.f32.vlgmr.msra.gmra.mxu1 %vm419_vm1, %v21394_v22  ;;  %16795 = vmatpush3.msk.msra.mxu0 %vm516_vm0, %v14068_v24  ;;  %v12100_v24 = vld [vmem:[#allocation2 + $0x278] sm:$0xff] }
 0x505   : > { %16771 = vmatprep.mubr.msk.f32.mxu0 %vm419_vm1, %v21340_v39  ;;  %16813 = vmatprep.mubr.msk.f32.mxu1 %vm419_vm1, %v21404_v23  ;;  %v21794_v39 = vld [vmem:[#allocation2 + $0x308] sm:$0xff] }
 0x506   : > { %16822 = vmatprep.subr.msk.mxu0 %vm516_vm0, %v14088_v56  ;;  %16837 = vmatpush3.msk.msra.mxu1 %vm516_vm0, %v14098_v28  ;;  %v11650_v28 = vld [vmem:[#allocation2 + $0xf7] sm:$0xff] }
 0x507   : > { %16772 = vmatmul.mubr.msk.f32.gmra.mxu0 %vm419_vm1, %v21346_v32  ;;  %16864 = vmatprep.subr.msk.mxu1 %vm516_vm0, %v14118_v40  ;;  %v14108_v32 = vld [vmem:[%s22314_s5 + $0x40] sm:$0xf] }
 0x508   : > { %16814 = vmatmul.mubr.msk.f32.gmra.mxu1 %vm419_vm1, %v21421_v55  ;;  %16774 = vmatprep.mubr.msk.f32.mxu0 %vm419_vm1, %v21352_v60  ;;  %v14138_v60 = vld [vmem:[%s22314_s5 + $0x4c] sm:$0xf] }
 0x509   : > { %16816 = vmatprep.mubr.msk.f32.mxu1 %vm419_vm1, %v21433_v29 }
 0x50b   : > { %16775 = vmatmul.mubr.msk.f32.gmra.mxu0 %vm419_vm1, %v21358_v9  ;;  %v21838_v9 = vld [vmem:[#allocation2 + $0x170] sm:$0xff] }
 0x50c   : > { %16817 = vmatmul.mubr.msk.f32.gmra.mxu1 %vm419_vm1, %v21443_v21  ;;  %16777 = vmatprep.mubr.msk.f32.mxu0 %vm419_vm1, %v21364_v19  ;;  %v10905_v19 = vld [vmem:[#allocation2 + $0x49f] sm:$0xff] }
 0x50d   : > { %16819 = vmatprep.mubr.msk.f32.mxu1 %vm419_vm1, %v21453_v50 }
 0x50f   : > { %16778 = vmatmul.mubr.msk.f32.gmra.mxu0 %vm419_vm1, %v21792_v49 }
 0x510   : > { %16820 = vmatmul.mubr.msk.f32.gmra.mxu1 %vm419_vm1, %v21794_v39  ;;  %16796 = vmatprep.mubr.msk.f32.mxu0 %vm419_vm1, %v21465_v26 }
 0x511   : > { %16838 = vmatprep.mubr.msk.f32.mxu1 %vm419_vm1, %v21467_v57  ;;  %v14158_v57 = vld [vmem:[%s22314_s5 + $0x54] sm:$0xf] }
 0x513   : > { %16797 = vmatmul.mubr.msk.f32.vlgmr.msra.gmra.mxu0 %vm419_vm1, %v21480_v16 }
 0x514   : > { %16839 = vmatmul.mubr.msk.f32.vlgmr.msra.gmra.mxu1 %vm419_vm1, %v21486_v48  ;;  %16823 = vmatpush3.msk.msra.mxu0 %vm516_vm0, %v14088_v56  ;;  %v14128_v56 = vld [vmem:[%s22314_s5 + $0x48] sm:$0xf]  ;;  %v21881_v48 = vld [vmem:[#allocation2 + $0x171] sm:$0xff] }
 0x515   : > { %16799 = vmatprep.mubr.msk.f32.mxu0 %vm419_vm1, %v21494_v14  ;;  %16841 = vmatprep.mubr.msk.f32.mxu1 %vm419_vm1, %v21496_v2  ;;  %v21883_v2 = vld [vmem:[#allocation2 + $0x4a0] sm:$0xff] }
 0x516   : > { %16850 = vmatprep.subr.msk.mxu0 %vm516_vm0, %v14108_v32  ;;  %16865 = vmatpush3.msk.msra.mxu1 %vm516_vm0, %v14118_v40  ;;  %v12101_v40 = vld [vmem:[#allocation2 + $0x290] sm:$0xff] }
 0x517   : > { %16800 = vmatmul.mubr.msk.f32.gmra.mxu0 %vm419_vm1, %v21511_v52  ;;  %16892 = vmatprep.subr.msk.mxu1 %vm516_vm0, %v14138_v60 }
 0x518   : > { %16842 = vmatmul.mubr.msk.f32.gmra.mxu1 %vm419_vm1, %v21513_v18  ;;  %16802 = vmatprep.mubr.msk.f32.mxu0 %vm419_vm1, %v21523_v13  ;;  %v14148_v18 = vld [vmem:[%s22314_s5 + $0x50] sm:$0xf] }
 0x519   : > { %16844 = vmatprep.mubr.msk.f32.mxu1 %vm419_vm1, %v21525_v8  ;;  %v14178_v8 = vld [vmem:[%s22314_s5 + $0x5c] sm:$0xf] }
 0x51b   : > { %16803 = vmatmul.mubr.msk.f32.gmra.mxu0 %vm419_vm1, %v21533_v6 }
 0x51c   : > { %16845 = vmatmul.mubr.msk.f32.gmra.mxu1 %vm419_vm1, %v21535_v33  ;;  %16805 = vmatprep.mubr.msk.f32.mxu0 %vm419_vm1, %v21543_v51  ;;  %v22909_v33 = vld [vmem:[#allocation7_spill] sm:$0xff] }
 0x51d   : > { %16847 = vmatprep.mubr.msk.f32.mxu1 %vm419_vm1, %v21545_v31  ;;  %v22910_v31 = vld [vmem:[#allocation21_spill] sm:$0xff] }
 0x51f   : > { %16806 = vmatmul.mubr.msk.f32.gmra.mxu0 %vm419_vm1, %v21838_v9 }
 0x520   : > { %16848 = vmatmul.mubr.msk.f32.gmra.mxu1 %vm419_vm1, %v10905_v19  ;;  %16824 = vmatprep.mubr.msk.f32.mxu0 %vm419_vm1, %v21557_v41  ;;  %v22911_v41 = vld [vmem:[#allocation48_spill] sm:$0xff] }
 0x521   : > { %16866 = vmatprep.mubr.msk.f32.mxu1 %vm419_vm1, %v21559_v34  ;;  %v11652_v19 = vld [vmem:[#allocation2 + $0x127] sm:$0xff] }
 0x523   : > { %16825 = vmatmul.mubr.msk.f32.vlgmr.msra.gmra.mxu0 %vm419_vm1, %v21570_v36 }
 0x524   : > { %16867 = vmatmul.mubr.msk.f32.vlgmr.msra.gmra.mxu1 %vm419_vm1, %v21576_v47  ;;  %16851 = vmatpush3.msk.msra.mxu0 %vm516_vm0, %v14108_v32  ;;  %v11651_v32 = vld [vmem:[#allocation2 + $0x10f] sm:$0xff] }
 0x525   : > { %16827 = vmatprep.mubr.msk.f32.mxu0 %vm419_vm1, %v21582_v25  ;;  %16869 = vmatprep.mubr.msk.f32.mxu1 %vm419_vm1, %v21584_v0 }
 0x526   : > { %16878 = vmatprep.subr.msk.mxu0 %vm516_vm0, %v14128_v56  ;;  %16893 = vmatpush3.msk.msra.mxu1 %vm516_vm0, %v14138_v60  ;;  %v12102_v60 = vld [vmem:[#allocation2 + $0x2a8] sm:$0xff] }
 0x527   : > { %16828 = vmatmul.mubr.msk.f32.gmra.mxu0 %vm419_vm1, %v21596_v20  ;;  %16920 = vmatprep.subr.msk.mxu1 %vm516_vm0, %v14158_v57 }
 0x528   : > { %16870 = vmatmul.mubr.msk.f32.gmra.mxu1 %vm419_vm1, %v21598_v54  ;;  %16830 = vmatprep.mubr.msk.f32.mxu0 %vm419_vm1, %v21605_v7 }
 0x529   : > { %16872 = vmatprep.mubr.msk.f32.mxu1 %vm419_vm1, %v21607_v61 }
 0x52b   : > { %16831 = vmatmul.mubr.msk.f32.gmra.mxu0 %vm419_vm1, %v21613_v37 }
 0x52c   : > { %16873 = vmatmul.mubr.msk.f32.gmra.mxu1 %vm419_vm1, %v21615_v30  ;;  %16833 = vmatprep.mubr.msk.f32.mxu0 %vm419_vm1, %v21621_v42 }
 0x52d   : > { %16875 = vmatprep.mubr.msk.f32.mxu1 %vm419_vm1, %v21623_v38 }
 0x52f   : > { %16834 = vmatmul.mubr.msk.f32.gmra.mxu0 %vm419_vm1, %v21881_v48 }
 0x530   : > { %16876 = vmatmul.mubr.msk.f32.gmra.mxu1 %vm419_vm1, %v21883_v2  ;;  %16852 = vmatprep.mubr.msk.f32.mxu0 %vm419_vm1, %v21631_v46  ;;  %v22912_v46 = vld [vmem:[#allocation90_spill] sm:$0xff] }
 0x531   : > { %16894 = vmatprep.mubr.msk.f32.mxu1 %vm419_vm1, %v21633_v35  ;;  %v22913_v35 = vld [vmem:[#allocation81_spill] sm:$0xff] }
 0x533   : > { %16853 = vmatmul.mubr.msk.f32.vlgmr.msra.gmra.mxu0 %vm419_vm1, %v21642_v17  ;;  %v11055_v17 = vld [vmem:[#allocation2 + $0x637] sm:$0xff] }
 0x534   : > { %16895 = vmatmul.mubr.msk.f32.vlgmr.msra.gmra.mxu1 %vm419_vm1, %v21647_v15  ;;  %16879 = vmatpush3.msk.msra.mxu0 %vm516_vm0, %v14128_v56  ;;  %v11505_v15 = vld [vmem:[#allocation2 + $0x4a1] sm:$0xff] }
 0x535   : > { %16855 = vmatprep.mubr.msk.f32.mxu0 %vm419_vm1, %v21652_v3  ;;  %16897 = vmatprep.mubr.msk.f32.mxu1 %vm419_vm1, %v21654_v12  ;;  %v14168_v3 = vld [vmem:[%s22314_s5 + $0x58] sm:$0xf]  ;;  %v22914_v12 = vld [vmem:[#allocation40_spill] sm:$0xff]  ;;  %v12103_v56 = vld [vmem:[#allocation2 + $0x2c0] sm:$0xff] }
 0x536   : > { %16906 = vmatprep.subr.msk.mxu0 %vm516_vm0, %v14148_v18  ;;  %16921 = vmatpush3.msk.msra.mxu1 %vm516_vm0, %v14158_v57  ;;  %v11653_v57 = vld [vmem:[#allocation2 + $0x13f] sm:$0xff] }
 0x537   : > { %16856 = vmatmul.mubr.msk.f32.gmra.mxu0 %vm419_vm1, %v22909_v33  ;;  %16948 = vmatprep.subr.msk.mxu1 %vm516_vm0, %v14178_v8  ;;  %v12415_v33 = vmax.f32 %v21465_v26, %v21375_v62  ;;  %v12417_v62 = vmax.f32 %v21494_v14, %v21404_v23  ;;  %v12419_v23 = vmax.f32 %v21523_v13, %v21433_v29 }
 0x538   : > { %16898 = vmatmul.mubr.msk.f32.gmra.mxu1 %vm419_vm1, %v22910_v31  ;;  %16858 = vmatprep.mubr.msk.f32.mxu0 %vm419_vm1, %v21673_v59  ;;  %v11807_v59 = vld [vmem:[#allocation2 + $0x31f] sm:$0xff]  ;;  %v11656_v31 = vld [vmem:[#allocation2 + $0x187] sm:$0xff] }
 0x539   : > { %16900 = vmatprep.mubr.msk.f32.mxu1 %vm419_vm1, %v21675_v44  ;;  %v21967_v44 = vld [vmem:[#allocation2 + $0x638] sm:$0xff] }
 0x53b   : > { %16859 = vmatmul.mubr.msk.f32.gmra.mxu0 %vm419_vm1, %v22911_v41  ;;  %v12107_v41 = vld [vmem:[#allocation2 + $0x320] sm:$0xff] }
 0x53c   : > { %16901 = vmatmul.mubr.msk.f32.gmra.mxu1 %vm419_vm1, %v22912_v46  ;;  %16861 = vmatprep.mubr.msk.f32.mxu0 %vm419_vm1, %v22913_v35  ;;  %v12416_v46 = vmax.f32 %v21480_v16, %v21394_v22  ;;  %v12425_v35 = vmax.f32 %v21584_v0, %v22914_v12  ;;  %v12427_v22 = vmax.f32 %v21607_v61, %v21734_v58 }
 0x53d   : > { %16903 = vmatprep.mubr.msk.f32.mxu1 %vm419_vm1, %v21691_v63  ;;  %v22915_v63 = vld [vmem:[#allocation82_spill] sm:$0xff]  ;;  %v12418_v0 = vmax.f32 %v21511_v52, %v21421_v55 }
 0x53e   : > { %v12435_v61 = vmax.f32 %v12419_v23, %v12427_v22 }
 0x53f   : > { %16862 = vmatmul.mubr.msk.f32.gmra.mxu0 %vm419_vm1, %v11055_v17 }
 0x540   : > { %16904 = vmatmul.mubr.msk.f32.gmra.mxu1 %vm419_vm1, %v11505_v15  ;;  %16880 = vmatprep.mubr.msk.f32.mxu0 %vm419_vm1, %v21700_v10 }
 0x541   : > { %16922 = vmatprep.mubr.msk.f32.mxu1 %vm419_vm1, %v21388_v27  ;;  %v12441_v27 = vld [vmem:[%s22317_s8] sm:$0xf] }
 0x543   : > { %16881 = vmatmul.mubr.msk.f32.vlgmr.msra.gmra.mxu0 %vm419_vm1, %v21709_v43 }
 0x544   : > { %16923 = vmatmul.mubr.msk.f32.vlgmr.msra.gmra.mxu1 %vm419_vm1, %v21402_v4  ;;  %16907 = vmatpush3.msk.msra.mxu0 %vm516_vm0, %v14148_v18  ;;  %v22916_v4 = vld [vmem:[#allocation45_spill] sm:$0xff]  ;;  %v12423_v18 = vmax.f32 %v21559_v34, %v21700_v10  ;;  %v12424_v34 = vmax.f32 %v21576_v47, %v21709_v43  ;;  %v12426_v47 = vmax.f32 %v21598_v54, %v22915_v63 }
 0x545   : > { %16883 = vmatprep.mubr.msk.f32.mxu0 %vm419_vm1, %v22914_v12  ;;  %16925 = vmatprep.mubr.msk.f32.mxu1 %vm419_vm1, %v21419_v1  ;;  %v22917_v1 = vld [vmem:[#allocation88_spill] sm:$0xff]  ;;  %v12433_v43 = vmax.f32 %v12417_v62, %v12425_v35  ;;  %v12428_v54 = vmax.f32 %v21615_v30, %v21740_v11 }
 0x546   : > { %16934 = vmatprep.subr.msk.mxu0 %vm516_vm0, %v14168_v3  ;;  %16949 = vmatpush3.msk.msra.mxu1 %vm516_vm0, %v14178_v8  ;;  %v11654_v8 = vld [vmem:[#allocation2 + $0x157] sm:$0xff]  ;;  %v12431_v10 = vmax.f32 %v12415_v33, %v12423_v18  ;;  %v12432_v26 = vmax.f32 %v12416_v46, %v12424_v34 }
 0x547   : > { %16884 = vmatmul.mubr.msk.f32.gmra.mxu0 %vm419_vm1, %v22915_v63  ;;  %16976 = vmatprep.subr.msk.mxu1 %vm516_vm0, %v12441_v27 }
 0x548   : > { %16926 = vmatmul.mubr.msk.f32.gmra.mxu1 %vm419_vm1, %v22916_v4  ;;  %16886 = vmatprep.mubr.msk.f32.mxu0 %vm419_vm1, %v21734_v58  ;;  %v12420_v58 = vmax.f32 %v21533_v6, %v21443_v21 }
 0x549   : > { %16928 = vmatprep.mubr.msk.f32.mxu1 %vm419_vm1, %v21441_v53  ;;  %v11649_v53 = vld [vmem:[#allocation2 + $0xdf] sm:$0xff] }
 0x54a   : > { %v12436_v30 = vmax.f32 %v12420_v58, %v12428_v54 }
 0x54b   : > { %16887 = vmatmul.mubr.msk.f32.gmra.mxu0 %vm419_vm1, %v21740_v11 }
 0x54c   : > { %16929 = vmatmul.mubr.msk.f32.gmra.mxu1 %vm419_vm1, %v22917_v1  ;;  %16889 = vmatprep.mubr.msk.f32.mxu0 %vm419_vm1, %v21746_v45 }
 0x54d   : > { %16931 = vmatprep.mubr.msk.f32.mxu1 %vm419_vm1, %v21748_v5  ;;  %v14188_v5 = vld [vmem:[%s22314_s5 + $0x60] sm:$0xf] }
 0x54f   : > { %16890 = vmatmul.mubr.msk.f32.gmra.mxu0 %vm419_vm1, %v21967_v44 }
 0x550   : > { %16932 = vmatmul.mubr.msk.f32.gmra.mxu1 %vm419_vm1, %v11807_v59  ;;  %16908 = vmatprep.mubr.msk.f32.mxu0 %vm419_vm1, %v11649_v53 }
 0x551   : > { %16950 = vmatprep.mubr.msk.f32.mxu1 %vm419_vm1, %v12100_v24  ;;  %v12257_v24 = vld [vmem:[#allocation2 + $0x189] sm:$0xff] }
 0x553   : > { %16909 = vmatmul.mubr.msk.f32.vlgmr.msra.gmra.mxu0 %vm419_vm1, %v11650_v28 }
 0x554   : > { %16951 = vmatmul.mubr.msk.f32.vlgmr.msra.gmra.mxu1 %vm419_vm1, %v12101_v40  ;;  %16935 = vmatpush3.msk.msra.mxu0 %vm516_vm0, %v14168_v3 }
 0x555   : > { %16911 = vmatprep.mubr.msk.f32.mxu0 %vm419_vm1, %v11651_v32  ;;  %16953 = vmatprep.mubr.msk.f32.mxu1 %vm419_vm1, %v12102_v60 }
 0x556   : > { %16962 = vmatprep.subr.msk.mxu0 %vm516_vm0, %v14188_v5  ;;  %16977 = vmatpush3.msk.msra.mxu1 %vm516_vm0, %v12441_v27 }
 0x557   : > { %16912 = vmatmul.mubr.msk.f32.gmra.mxu0 %vm419_vm1, %v11652_v19 }
 0x558   : > { %16954 = vmatmul.mubr.msk.f32.gmra.mxu1 %vm419_vm1, %v12103_v56  ;;  %16914 = vmatprep.mubr.msk.f32.mxu0 %vm419_vm1, %v11653_v57 }
 0x559   : > { %16956 = vmatprep.mubr.msk.f32.mxu1 %vm419_vm1, %v21443_v21 }
 0x55b   : > { %16915 = vmatmul.mubr.msk.f32.gmra.mxu0 %vm419_vm1, %v11654_v8 }
 0x55c   : > { %16957 = vmatmul.mubr.msk.f32.gmra.mxu1 %vm419_vm1, %v21453_v50  ;;  %16917 = vmatprep.mubr.msk.f32.mxu0 %vm419_vm1, %v21792_v49 }
 0x55d   : > { %16959 = vmatprep.mubr.msk.f32.mxu1 %vm419_vm1, %v21794_v39 }
 0x55f   : > { %16918 = vmatmul.mubr.msk.f32.gmra.mxu0 %vm419_vm1, %v11656_v31 }
 0x560   : > { %16960 = vmatmul.mubr.msk.f32.gmra.mxu1 %vm419_vm1, %v12107_v41  ;;  %16936 = vmatprep.mubr.msk.f32.mxu0 %vm419_vm1, %v21480_v16  ;;  %v12434_v16 = vmax.f32 %v12418_v0, %v12426_v47 }
 0x561   : > { %16978 = vmatprep.mubr.msk.f32.mxu1 %vm419_vm1, %v12431_v10 }
 0x563   : > { %v16644_v49 = vpop.f32.mrf.mxu1  ;;  %16937 = vmatmul.mubr.msk.f32.vlgmr.msra.gmra.mxu0 %vm419_vm1, %v21494_v14  ;;  %v12429_v14 = vmax.f32 %v21623_v38, %v21746_v45  ;;  %v12430_v38 = vmax.f32 %v21883_v2, %v21967_v44  ;;  %v12422_v45 = vmax.f32 %v21838_v9, %v21794_v39 }
 0x564   : > { %16979 = vmatmul.mubr.msk.f32.vlgmr.msra.gmra.mxu1 %vm419_vm1, %v12432_v26  ;;  %16963 = vmatpush3.msk.msra.mxu0 %vm516_vm0, %v14188_v5 }
 0x565   : > { %16939 = vmatprep.mubr.msk.f32.mxu0 %vm419_vm1, %v21511_v52  ;;  %16981 = vmatprep.mubr.msk.f32.mxu1 %vm419_vm1, %v12433_v43  ;;  %v8907_v55 = vpop.f32.mrf.mxu1  ;;  %v12421_v52 = vmax.f32 %v21543_v51, %v21453_v50  ;;  %v11957_v50 = vld [vmem:[#allocation2 + $0x188] sm:$0xff] }
 0x567   : > { %v16647_v29 = vpop.f32.mrf.mxu1  ;;  %16940 = vmatmul.mubr.msk.f32.gmra.mxu0 %vm419_vm1, %v21523_v13  ;;  %v12437_v21 = vmax.f32 %v12421_v52, %v12429_v14 }
 0x568   : > { %16982 = vmatmul.mubr.msk.f32.gmra.mxu1 %vm419_vm1, %v12434_v16  ;;  %16942 = vmatprep.mubr.msk.f32.mxu0 %vm419_vm1, %v21533_v6  ;;  %v12438_v6 = vmax.f32 %v12422_v45, %v12430_v38 }
 0x569   : > { %16984 = vmatprep.mubr.msk.f32.mxu1 %vm419_vm1, %v12435_v61  ;;  %v8917_v11 = vpop.f32.mrf.mxu1 }
 0x56b   : > { %v16650_v13 = vpop.f32.mrf.mxu1  ;;  %16943 = vmatmul.mubr.msk.f32.gmra.mxu0 %vm419_vm1, %v21543_v51 }
 0x56c   : > { %16985 = vmatmul.mubr.msk.f32.gmra.mxu1 %vm419_vm1, %v12436_v30  ;;  %16945 = vmatprep.mubr.msk.f32.mxu0 %vm419_vm1, %v21838_v9 }
 0x56d   : > { %16987 = vmatprep.mubr.msk.f32.mxu1 %vm419_vm1, %v12437_v21  ;;  %v8927_v17 = vpop.f32.mrf.mxu1 }
 0x56f   : > { %v16653_v2 = vpop.f32.mrf.mxu1  ;;  %16946 = vmatmul.mubr.msk.f32.gmra.mxu0 %vm419_vm1, %v11957_v50 }
 0x570   : > { %16988 = vmatmul.mubr.msk.f32.gmra.mxu1 %vm419_vm1, %v12438_v6  ;;  %16964 = vmatprep.mubr.msk.f32.mxu0 %vm419_vm1, %v21570_v36 }
 0x571   : > { %v8937_v39 = vpop.f32.mrf.mxu1 }
 0x573   : > { %v16630_v51 = vpop.f32.mrf.mxu0  ;;  %16965 = vmatmul.mubr.msk.f32.vlgmr.msra.gmra.mxu0 %vm419_vm1, %v21582_v25 }
 0x574   : > { %v16672_v15 = vpop.f32.mrf.mxu1  ;;  %v8913_v9 = vadd.f32 %v16644_v49, %v16630_v51  ;;  %16967 = vmatprep.mubr.msk.f32.mxu0 %vm419_vm1, %v21596_v20 }
 0x575   : > { %v8775_v3 = vpop.f32.mrf.mxu0 }
 0x576   : > { %v9199_v12 = vpop.f32.mrf.mxu1  ;;  %v8908_v27 = vadd.f32 %v8907_v55, %v8775_v3 }
 0x577   : > { %v16633_v63 = vpop.f32.mrf.mxu0  ;;  %16968 = vmatmul.mubr.msk.f32.gmra.mxu0 %vm419_vm1, %v21605_v7 }
 0x578   : > { %v16675_v4 = vpop.f32.mrf.mxu1  ;;  %v8923_v1 = vadd.f32 %v16647_v29, %v16633_v63  ;;  %16970 = vmatprep.mubr.msk.f32.mxu0 %vm419_vm1, %v21613_v37 }
 0x579   : > { %v8785_v36 = vpop.f32.mrf.mxu0 }
 0x57a   : > { %v9209_v59 = vpop.f32.mrf.mxu1  ;;  %v8918_v44 = vadd.f32 %v8917_v11, %v8785_v36 }
 0x57b   : > { %v16636_v25 = vpop.f32.mrf.mxu0  ;;  %16971 = vmatmul.mubr.msk.f32.gmra.mxu0 %vm419_vm1, %v21621_v42 }
 0x57c   : > { %v16678_v53 = vpop.f32.mrf.mxu1  ;;  %v8933_v20 = vadd.f32 %v16650_v13, %v16636_v25  ;;  %16973 = vmatprep.mubr.msk.f32.mxu0 %vm419_vm1, %v21881_v48 }
 0x57d   : > { %v8795_v28 = vpop.f32.mrf.mxu0 }
 0x57e   : > { %v9219_v40 = vpop.f32.mrf.mxu1  ;;  %v8928_v7 = vadd.f32 %v8927_v17, %v8795_v28 }
 0x57f   : > { %v16639_v5 = vpop.f32.mrf.mxu0  ;;  %16974 = vmatmul.mubr.msk.f32.gmra.mxu0 %vm419_vm1, %v12257_v24 }
 0x580   : > { %v16681_v32 = vpop.f32.mrf.mxu1  ;;  %v8943_v37 = vadd.f32 %v16653_v2, %v16639_v5 }
 0x581   : > { %v8805_v60 = vpop.f32.mrf.mxu0 }
 0x582   : > { %v9229_v19 = vpop.f32.mrf.mxu1  ;;  %v8938_v56 = vadd.f32 %v8937_v39, %v8805_v60 }
 0x583   : > { %v16658_v57 = vpop.f32.mrf.mxu0 }
 0x584   : > { %v16700_v18 = vpop.f32.mrf.mxu1  ;;  %v9089_v8 = vadd.f32 %v16658_v57, %v8913_v9 }
 0x585   : > { %v9049_v42 = vpop.f32.mrf.mxu0 }
 0x586   : > { %v9500_v33 = vpop.f32.mrf.mxu1  ;;  %v9088_v31 = vadd.f32 %v9049_v42, %v8908_v27  ;;  %v9239_v41 = vadd.f32 %v16672_v15, %v9089_v8 }
 0x587   : > { %v16661_v48 = vpop.f32.mrf.mxu0 }
 0x588   : > { %v16703_v34 = vpop.f32.mrf.mxu1  ;;  %v9091_v10 = vadd.f32 %v16661_v48, %v8923_v1  ;;  %v9238_v46 = vadd.f32 %v9199_v12, %v9088_v31 }
 0x589   : > { %v9059_v35 = vpop.f32.mrf.mxu0 }
 0x58a   : > { %v9510_v62 = vpop.f32.mrf.mxu1  ;;  %v9090_v26 = vadd.f32 %v9059_v35, %v8918_v44  ;;  %v9241_v47 = vadd.f32 %v16675_v4, %v9091_v10 }
 0x58b   : > { %v16664_v22 = vpop.f32.mrf.mxu0 }
 0x58c   : > { %v16706_v0 = vpop.f32.mrf.mxu1  ;;  %v9093_v43 = vadd.f32 %v16664_v22, %v8933_v20  ;;  %v9240_v49 = vadd.f32 %v9209_v59, %v9090_v26  ;;  %v12440_v22 = vld [vmem:[%s22316_s7 + $0x8] sm:$0xf] }
 0x58d   : > { %v9069_v23 = vpop.f32.mrf.mxu0  ;;  %16990 = vmatprep.subr.msk.mxu0 %vm516_vm0, %v12440_v22 }
 0x58e   : > { %v9520_v16 = vpop.f32.mrf.mxu1  ;;  %v9092_v54 = vadd.f32 %v9069_v23, %v8928_v7  ;;  %v9243_v55 = vadd.f32 %v16678_v53, %v9093_v43  ;;  %16991 = vmatpush3.msk.msra.mxu0 %vm516_vm0, %v12440_v22 }
 0x58f   : > { %v16667_v61 = vpop.f32.mrf.mxu0 }
 0x590   : > { %v16709_v14 = vpop.f32.mrf.mxu1  ;;  %v9095_v58 = vadd.f32 %v16667_v61, %v8943_v37  ;;  %v9242_v29 = vadd.f32 %v9219_v40, %v9092_v54 }
 0x591   : > { %v9079_v52 = vpop.f32.mrf.mxu0 }
 0x592   : > { %v9530_v30 = vpop.f32.mrf.mxu1  ;;  %v9094_v38 = vadd.f32 %v9079_v52, %v8938_v56  ;;  %v9245_v11 = vadd.f32 %v16681_v32, %v9095_v58 }
 0x593   : > { %v16686_v21 = vpop.f32.mrf.mxu0 }
 0x594   : > { %v16728_v45 = vpop.f32.mrf.mxu1  ;;  %v9389_v13 = vadd.f32 %v16686_v21, %v9239_v41  ;;  %v9244_v50 = vadd.f32 %v9229_v19, %v9094_v38 }
 0x595   : > { %v9349_v6 = vpop.f32.mrf.mxu0 }
 0x596   : > { %v9801_v17 = vpop.f32.mrf.mxu1  ;;  %v9388_v2 = vadd.f32 %v9349_v6, %v9238_v46  ;;  %v9540_v39 = vadd.f32 %v16700_v18, %v9389_v13 }
 0x597   : > { %v16689_v51 = vpop.f32.mrf.mxu0 }
 0x598   : > { %v16731_v15 = vpop.f32.mrf.mxu1  ;;  %v9391_v9 = vadd.f32 %v16689_v51, %v9241_v47  ;;  %v9539_v3 = vadd.f32 %v9500_v33, %v9388_v2 }
 0x599   : > { %v9359_v12 = vpop.f32.mrf.mxu0 }
 0x59a   : > { %v9811_v27 = vpop.f32.mrf.mxu1  ;;  %v9390_v63 = vadd.f32 %v9359_v12, %v9240_v49  ;;  %v9542_v4 = vadd.f32 %v16703_v34, %v9391_v9 }
 0x59b   : > { %v16692_v1 = vpop.f32.mrf.mxu0 }
 0x59c   : > { %v16734_v36 = vpop.f32.mrf.mxu1  ;;  %v9393_v59 = vadd.f32 %v16692_v1, %v9243_v55  ;;  %v9541_v44 = vadd.f32 %v9510_v62, %v9390_v63 }
 0x59d   : > { %v9369_v25 = vpop.f32.mrf.mxu0 }
 0x59e   : > { %v9821_v53 = vpop.f32.mrf.mxu1  ;;  %v9392_v20 = vadd.f32 %v9369_v25, %v9242_v29  ;;  %v9544_v24 = vadd.f32 %v16706_v0, %v9393_v59 }
 0x59f   : > { %v16695_v28 = vpop.f32.mrf.mxu0 }
 0x5a0   : > { %v16737_v40 = vpop.f32.mrf.mxu1  ;;  %v9395_v7 = vadd.f32 %v16695_v28, %v9245_v11  ;;  %v9543_v5 = vadd.f32 %v9520_v16, %v9392_v20 }
 0x5a1   : > { %v9379_v32 = vpop.f32.mrf.mxu0 }
 0x5a2   : > { %v9831_v37 = vpop.f32.mrf.mxu1  ;;  %v9394_v60 = vadd.f32 %v9379_v32, %v9244_v50  ;;  %v9546_v19 = vadd.f32 %v16709_v14, %v9395_v7 }
 0x5a3   : > { %v16714_v56 = vpop.f32.mrf.mxu0 }
 0x5a4   : > { %v16756_v57 = vpop.f32.mrf.mxu1  ;;  %v9691_v18 = vadd.f32 %v16714_v56, %v9540_v39  ;;  %v9545_v8 = vadd.f32 %v9530_v30, %v9394_v60 }
 0x5a5   : > { %v9651_v42 = vpop.f32.mrf.mxu0 }
 0x5a6   : > { %v10101_v33 = vpop.f32.mrf.mxu1  ;;  %v9690_v31 = vadd.f32 %v9651_v42, %v9539_v3  ;;  %v9841_v41 = vadd.f32 %v16728_v45, %v9691_v18  ;;  %v12439_v45 = vld [vmem:[%s22316_s7] sm:$0xff] }
 0x5a7   : > { %v16717_v48 = vpop.f32.mrf.mxu0  ;;  %16992 = vmatprep.subr.mxu0 %v12439_v45 }
 0x5a8   : > { %v16759_v34 = vpop.f32.mrf.mxu1  ;;  %v9693_v10 = vadd.f32 %v16717_v48, %v9542_v4  ;;  %v9840_v46 = vadd.f32 %v9801_v17, %v9690_v31  ;;  %16993 = vmatpush3.msra.mxu0 %v12439_v45 }
 0x5a9   : > { %v9661_v35 = vpop.f32.mrf.mxu0 }
 0x5aa   : > { %v10111_v62 = vpop.f32.mrf.mxu1  ;;  %v9692_v26 = vadd.f32 %v9661_v35, %v9541_v44  ;;  %v9843_v47 = vadd.f32 %v16731_v15, %v9693_v10 }
 0x5ab   : > { %v16720_v0 = vpop.f32.mrf.mxu0 }
 0x5ac   : > { %v16762_v43 = vpop.f32.mrf.mxu1  ;;  %v9695_v49 = vadd.f32 %v16720_v0, %v9544_v24  ;;  %v9842_v23 = vadd.f32 %v9811_v27, %v9692_v26 }
 0x5ad   : > { %v9671_v16 = vpop.f32.mrf.mxu0 }
 0x5ae   : > { %v10121_v54 = vpop.f32.mrf.mxu1  ;;  %v9694_v55 = vadd.f32 %v9671_v16, %v9543_v5  ;;  %v9845_v61 = vadd.f32 %v16734_v36, %v9695_v49 }
 0x5af   : > { %v16723_v14 = vpop.f32.mrf.mxu0 }
 0x5b0   : > { %v16765_v58 = vpop.f32.mrf.mxu1  ;;  %v9697_v29 = vadd.f32 %v16723_v14, %v9546_v19  ;;  %v9844_v52 = vadd.f32 %v9821_v53, %v9694_v55 }
 0x5b1   : > { %v9681_v30 = vpop.f32.mrf.mxu0 }
 0x5b2   : > { %v10131_v38 = vpop.f32.mrf.mxu1  ;;  %v9696_v11 = vadd.f32 %v9681_v30, %v9545_v8  ;;  %v9847_v21 = vadd.f32 %v16737_v40, %v9697_v29 }
 0x5b3   : > { %v16742_v13 = vpop.f32.mrf.mxu0 }
 0x5b4   : > { %v16784_v50 = vpop.f32.mrf.mxu1  ;;  %v9991_v6 = vadd.f32 %v16742_v13, %v9841_v41  ;;  %v9846_v17 = vadd.f32 %v9831_v37, %v9696_v11 }
 0x5b5   : > { %v9951_v2 = vpop.f32.mrf.mxu0 }
 0x5b6   : > { %v10401_v39 = vpop.f32.mrf.mxu1  ;;  %v9990_v51 = vadd.f32 %v9951_v2, %v9840_v46  ;;  %v10141_v15 = vadd.f32 %v16756_v57, %v9991_v6 }
 0x5b7   : > { %v16745_v9 = vpop.f32.mrf.mxu0 }
 0x5b8   : > { %v16787_v3 = vpop.f32.mrf.mxu1  ;;  %v9993_v12 = vadd.f32 %v16745_v9, %v9843_v47  ;;  %v10140_v27 = vadd.f32 %v10101_v33, %v9990_v51 }
 0x5b9   : > { %v9961_v63 = vpop.f32.mrf.mxu0 }
 0x5ba   : > { %v10411_v4 = vpop.f32.mrf.mxu1  ;;  %v9992_v1 = vadd.f32 %v9961_v63, %v9842_v23  ;;  %v10143_v36 = vadd.f32 %v16759_v34, %v9993_v12 }
 0x5bb   : > { %v16748_v59 = vpop.f32.mrf.mxu0 }
 0x5bc   : > { %v16790_v44 = vpop.f32.mrf.mxu1  ;;  %v9995_v25 = vadd.f32 %v16748_v59, %v9845_v61  ;;  %v10142_v53 = vadd.f32 %v10111_v62, %v9992_v1 }
 0x5bd   : > { %v9971_v20 = vpop.f32.mrf.mxu0 }
 0x5be   : > { %v10421_v24 = vpop.f32.mrf.mxu1  ;;  %v9994_v28 = vadd.f32 %v9971_v20, %v9844_v52  ;;  %v10145_v40 = vadd.f32 %v16762_v43, %v9995_v25 }
 0x5bf   : > { %v16751_v7 = vpop.f32.mrf.mxu0 }
 0x5c0   : > { %v16793_v5 = vpop.f32.mrf.mxu1  ;;  %v9997_v32 = vadd.f32 %v16751_v7, %v9847_v21  ;;  %v10144_v37 = vadd.f32 %v10121_v54, %v9994_v28 }
 0x5c1   : > { %v9981_v60 = vpop.f32.mrf.mxu0 }
 0x5c2   : > { %v10431_v19 = vpop.f32.mrf.mxu1  ;;  %v9996_v56 = vadd.f32 %v9981_v60, %v9846_v17  ;;  %v10147_v57 = vadd.f32 %v16765_v58, %v9997_v32 }
 0x5c3   : > { %v16770_v18 = vpop.f32.mrf.mxu0 }
 0x5c4   : > { %v22077_v8 = vpop.f32.mrf.mxu1  ;;  %v10291_v42 = vadd.f32 %v16770_v18, %v10141_v15  ;;  %v10146_v33 = vadd.f32 %v10131_v38, %v9996_v56 }
 0x5c5   : > { %v10251_v31 = vpop.f32.mrf.mxu0 }
 0x5c6   : > { %v22079_v41 = vpop.f32.mrf.mxu1  ;;  %v10290_v48 = vadd.f32 %v10251_v31, %v10140_v27  ;;  %v10441_v34 = vadd.f32 %v16784_v50, %v10291_v42 }
 0x5c7   : > { %v16773_v10 = vpop.f32.mrf.mxu0 }
 0x5c8   : > { %v22081_v46 = vpop.f32.mrf.mxu1  ;;  %v10293_v35 = vadd.f32 %v16773_v10, %v10143_v36  ;;  %v10440_v62 = vadd.f32 %v10401_v39, %v10290_v48 }
 0x5c9   : > { %v10261_v26 = vpop.f32.mrf.mxu0 }
 0x5ca   : > { %v22083_v47 = vpop.f32.mrf.mxu1  ;;  %v10292_v22 = vadd.f32 %v10261_v26, %v10142_v53  ;;  %v10443_v0 = vadd.f32 %v16787_v3, %v10293_v35 }
 0x5cb   : > { %v16776_v43 = vpop.f32.mrf.mxu0 }
 0x5cc   : > { %v22085_v49 = vpop.f32.mrf.mxu1  ;;  %v10295_v23 = vadd.f32 %v16776_v43, %v10145_v40  ;;  %v10442_v16 = vadd.f32 %v10411_v4, %v10292_v22 }
 0x5cd   : > { %v10271_v54 = vpop.f32.mrf.mxu0 }
 0x5ce   : > { %v22087_v55 = vpop.f32.mrf.mxu1  ;;  %v10294_v61 = vadd.f32 %v10271_v54, %v10144_v37  ;;  %v10445_v14 = vadd.f32 %v16790_v44, %v10295_v23 }
 0x5cf   : > { %v16779_v58 = vpop.f32.mrf.mxu0 }
 0x5d0   : > { %v22089_v29 = vpop.f32.mrf.mxu1  ;;  %v10297_v52 = vadd.f32 %v16779_v58, %v10147_v57  ;;  %v10444_v30 = vadd.f32 %v10421_v24, %v10294_v61 }
 0x5d1   : > { %v10281_v38 = vpop.f32.mrf.mxu0 }
 0x5d2   : > { %v22091_v11 = vpop.f32.mrf.mxu1  ;;  %v10296_v21 = vadd.f32 %v10281_v38, %v10146_v33  ;;  %v10447_v45 = vadd.f32 %v16793_v5, %v10297_v52 }
 0x5d3   : > { %v16798_v13 = vpop.f32.mrf.mxu0 }
 0x5d4   : > { %v22093_v50 = vpop.f32.mrf.mxu1  ;;  %v22095_v6 = vadd.f32 %v16798_v13, %v10441_v34  ;;  %v10446_v17 = vadd.f32 %v10431_v19, %v10296_v21 }
 0x5d5   : > { %v10551_v2 = vpop.f32.mrf.mxu0 }
 0x5d6   : > { %v22097_v39 = vpop.f32.mrf.mxu1  ;;  %v22099_v51 = vadd.f32 %v10551_v2, %v10440_v62 }
 0x5d7   : > { %v16801_v15 = vpop.f32.mrf.mxu0 }
 0x5d8   : > { %v22101_v9 = vpop.f32.mrf.mxu1  ;;  %v22103_v3 = vadd.f32 %v16801_v15, %v10443_v0 }
 0x5d9   : > { %v10561_v12 = vpop.f32.mrf.mxu0 }
 0x5da   : > { %v22105_v27 = vpop.f32.mrf.mxu1  ;;  %v22107_v63 = vadd.f32 %v10561_v12, %v10442_v16 }
 0x5db   : > { %v16804_v4 = vpop.f32.mrf.mxu0 }
 0x5dc   : > { %v22109_v1 = vpop.f32.mrf.mxu1  ;;  %v22111_v36 = vadd.f32 %v16804_v4, %v10445_v14 }
 0x5dd   : > { %v10571_v59 = vpop.f32.mrf.mxu0 }
 0x5de   : > { %v22113_v44 = vpop.f32.mrf.mxu1  ;;  %v22115_v25 = vadd.f32 %v10571_v59, %v10444_v30 }
 0x5df   : > { %v16807_v53 = vpop.f32.mrf.mxu0 }
 0x5e0   : > { %v22117_v20 = vpop.f32.mrf.mxu1  ;;  %v22119_v24 = vadd.f32 %v16807_v53, %v10447_v45 }
 0x5e1   : > { %v10581_v28 = vpop.f32.mrf.mxu0 }
 0x5e2   : > { %v22121_v40 = vpop.f32.mrf.mxu1  ;;  %v22123_v7 = vadd.f32 %v10581_v28, %v10446_v17 }
 0x5e3   : > { %v16826_v5 = vpop.f32.mrf.mxu0 }
 0x5e4   : > { %v22125_v32 = vpop.f32.mrf.mxu1 }
 0x5e5   : > { %v10851_v37 = vpop.f32.mrf.mxu0 }
 0x5e6   : > { %v22127_v60 = vpop.f32.mrf.mxu1 }
 0x5e7   : > { %v16829_v19 = vpop.f32.mrf.mxu0 }
 0x5e8   : > { %v22129_v56 = vpop.f32.mrf.mxu1 }
 0x5e9   : > { %v10861_v57 = vpop.f32.mrf.mxu0 }
 0x5ea   : > { %v22131_v18 = vpop.f32.mrf.mxu1 }
 0x5eb   : > { %v16832_v42 = vpop.f32.mrf.mxu0 }
 0x5ec   : > { %v22133_v33 = vpop.f32.mrf.mxu1 }
 0x5ed   : > { %v10871_v31 = vpop.f32.mrf.mxu0 }
 0x5ee   : > { %v22135_v48 = vpop.f32.mrf.mxu1 }
 0x5ef   : > { %v22137_v34 = vpop.f32.mrf.mxu0 }
 0x5f0   : > { %v22139_v10 = vpop.f32.mrf.mxu1 }
 0x5f1   : > { %22918 = vst [vmem:[#allocation27_spill] sm:$0xff] %v22139_v10  ;;  %v22141_v35 = vpop.f32.mrf.mxu0 }
 0x5f2   : > { %v22143_v62 = vpop.f32.mrf.mxu1 }
 0x5f3   : > { %22919 = vst [vmem:[#allocation12_spill] sm:$0xff] %v22143_v62  ;;  %v16854_v26 = vpop.f32.mrf.mxu0 }
 0x5f4   : > { %v22145_v22 = vpop.f32.mrf.mxu1 }
 0x5f5   : > { %v11151_v0 = vpop.f32.mrf.mxu0 }
 0x5f6   : > { %v22147_v43 = vpop.f32.mrf.mxu1 }
 0x5f7   : > { %v16857_v23 = vpop.f32.mrf.mxu0 }
 0x5f8   : > { %v22149_v16 = vpop.f32.mrf.mxu1 }
 0x5f9   : > { %22920 = vst [vmem:[#allocation39_spill] sm:$0xff] %v22149_v16  ;;  %v11161_v54 = vpop.f32.mrf.mxu0 }
 0x5fa   : > { %v22151_v61 = vpop.f32.mrf.mxu1 }
 0x5fb   : > { %22921 = vst [vmem:[#allocation49_spill] sm:$0xff] %v22151_v61  ;;  %v22153_v14 = vpop.f32.mrf.mxu0 }
 0x5fc   : > { %v22155_v58 = vpop.f32.mrf.mxu1 }
 0x5fd   : > { %22922 = vst [vmem:[#allocation92_spill] sm:$0xff] %v22155_v58  ;;  %v22157_v52 = vpop.f32.mrf.mxu0 }
 0x5fe   : > { %v22159_v30 = vpop.f32.mrf.mxu1 }
 0x5ff   : > { %22923 = vst [vmem:[#allocation17_spill] sm:$0xff] %v22159_v30  ;;  %v22161_v38 = vpop.f32.mrf.mxu0 }
 0x600   : > { %v22163_v21 = vpop.f32.mrf.mxu1 }
 0x601   : > { %22924 = vst [vmem:[#allocation6_spill] sm:$0xff] %v22163_v21  ;;  %v22165_v45 = vpop.f32.mrf.mxu0 }
 0x602   : > { %v22167_v13 = vpop.f32.mrf.mxu1 }
 0x603   : > { %22925 = vst [vmem:[#allocation52_spill] sm:$0xff] %v22167_v13  ;;  %v16882_v17 = vpop.f32.mrf.mxu0 }
 0x604   : > { %v22169_v2 = vpop.f32.mrf.mxu1 }
 0x605   : > { %22926 = vst [vmem:[#allocation95_spill] sm:$0xff] %v22169_v2  ;;  %v11451_v15 = vpop.f32.mrf.mxu0 }
 0x606   : > { %v22171_v12 = vpop.f32.mrf.mxu1 }
 0x607   : > { %22927 = vst [vmem:[#allocation83_spill] sm:$0xff] %v22171_v12  ;;  %v16885_v4 = vpop.f32.mrf.mxu0  ;;  %v10741_v12 = vadd.f32 %v22077_v8, %v22095_v6 }
 0x608   : > { %v22173_v53 = vpop.f32.mrf.mxu1 }
 0x609   : > { %v11461_v59 = vpop.f32.mrf.mxu0  ;;  %22928 = vst [vmem:[#allocation18_spill] sm:$0xff] %v22173_v53  ;;  %v10740_v53 = vadd.f32 %v22079_v41, %v22099_v51  ;;  %v10891_v61 = vadd.f32 %v16826_v5, %v10741_v12 }
 0x60a   : > { %v22179_v58 = vpop.f32.mrf.mxu1 }
 0x60b   : > { %v22175_v28 = vpop.f32.mrf.mxu0  ;;  %22931 = vst [vmem:[#allocation31_spill] sm:$0xff] %v22179_v58  ;;  %v10890_v58 = vadd.f32 %v10851_v37, %v10740_v53  ;;  %v11041_v8 = vadd.f32 %v22093_v50, %v10891_v61  ;;  %v10745_v37 = vadd.f32 %v22085_v49, %v22111_v36  ;;  %v10747_v49 = vadd.f32 %v22089_v29, %v22119_v24 }
 0x60c   : > { %22929 = vst [vmem:[#allocation42_spill] sm:$0xff] %v22175_v28  ;;  %v22185_v13 = vpop.f32.mrf.mxu1 }
 0x60d   : > { %v22177_v30 = vpop.f32.mrf.mxu0  ;;  %22934 = vst [vmem:[#allocation53_spill] sm:$0xff] %v22185_v13  ;;  %v10742_v13 = vadd.f32 %v22083_v47, %v22107_v63  ;;  %v11040_v5 = vadd.f32 %v22097_v39, %v10890_v58  ;;  %v11191_v12 = vadd.f32 %v16854_v26, %v11041_v8  ;;  %v10895_v63 = vadd.f32 %v16832_v42, %v10745_v37 }
 0x60e   : > { %22930 = vst [vmem:[#allocation84_spill] sm:$0xff] %v22177_v30  ;;  %v22191_v16 = vpop.f32.mrf.mxu1  ;;  %v10897_v42 = vadd.f32 %v22137_v34, %v10747_v49 }
 0x60f   : > { %v22181_v21 = vpop.f32.mrf.mxu0  ;;  %v10892_v51 = vadd.f32 %v10861_v57, %v10742_v13  ;;  %v11190_v47 = vadd.f32 %v11151_v0, %v11040_v5  ;;  %v11341_v26 = vadd.f32 %v22125_v32, %v11191_v12 }
 0x610   : > { %22932 = vst [vmem:[#allocation29_spill] sm:$0xff] %v22181_v21  ;;  %v10743_v21 = vadd.f32 %v22081_v46, %v22103_v3  ;;  %v22202_v6 = vpop.f32.mrf.mxu1  ;;  %v10744_v3 = vadd.f32 %v22087_v55, %v22115_v25  ;;  %v10746_v55 = vadd.f32 %v22091_v11, %v22123_v7  ;;  %v11047_v34 = vadd.f32 %v22117_v20, %v10897_v42 }
 0x611   : > { %v22183_v62 = vpop.f32.mrf.mxu0  ;;  %v11042_v39 = vadd.f32 %v22105_v27, %v10892_v51  ;;  %v11491_v0 = vadd.f32 %v16882_v17, %v11341_v26  ;;  %v22936_v51 = vld [vmem:[#allocation39_spill] sm:$0xff] }
 0x612   : > { %22933 = vst [vmem:[#allocation41_spill] sm:$0xff] %v22183_v62  ;;  %v10893_v28 = vadd.f32 %v16829_v19, %v10743_v21  ;;  %v22214_v19 = vpop.f32.mrf.mxu1  ;;  %v10894_v57 = vadd.f32 %v10871_v31, %v10744_v3  ;;  %v11045_v31 = vadd.f32 %v22109_v1, %v10895_v63  ;;  %v10896_v29 = vadd.f32 %v22141_v35, %v10746_v55  ;;  %v22944_v55 = vld [vmem:[#allocation92_spill] sm:$0xff] }
 0x613   : > { %v16910_v2 = vpop.f32.mrf.mxu0  ;;  %v11192_v25 = vadd.f32 %v11161_v54, %v11042_v39  ;;  %v11641_v54 = vadd.f32 %v22145_v22, %v11491_v0  ;;  %v22935_v8 = vld [vmem:[#allocation42_spill] sm:$0xff] }
 0x614   : > { %v11043_v50 = vadd.f32 %v22101_v9, %v10893_v28  ;;  %v11340_v9 = vadd.f32 %v22127_v60, %v11190_v47  ;;  %v16952_v27 = vpop.f32.mrf.mxu1  ;;  %v11044_v24 = vadd.f32 %v22113_v44, %v10894_v57  ;;  %v11046_v35 = vadd.f32 %v22121_v40, %v10896_v29  ;;  %v22942_v57 = vld [vmem:[#allocation83_spill] sm:$0xff]  ;;  %v22946_v29 = vld [vmem:[#allocation17_spill] sm:$0xff] }
 0x615   : > { %v11752_v10 = vpop.f32.mrf.mxu0  ;;  %v11342_v60 = vadd.f32 %v22131_v18, %v11192_v25  ;;  %v11792_v28 = vadd.f32 %v16910_v2, %v11641_v54  ;;  %v22940_v2 = vld [vmem:[#allocation95_spill] sm:$0xff]  ;;  %v22949_v54 = vld [vmem:[#allocation6_spill] sm:$0xff] }
 0x616   : > { %v11193_v36 = vadd.f32 %v16857_v23, %v11043_v50  ;;  %v11490_v32 = vadd.f32 %v11451_v15, %v11340_v9  ;;  %v11195_v23 = vadd.f32 %v22153_v14, %v11045_v31  ;;  %v11194_v7 = vadd.f32 %v22157_v52, %v11044_v24  ;;  %v12203_v17 = vpop.f32.mrf.mxu1  ;;  %v22941_v50 = vld [vmem:[#allocation12_spill] sm:$0xff] }
 0x617   : > { %v22193_v30 = vpop.f32.mrf.mxu0  ;;  %v11492_v44 = vadd.f32 %v11461_v59, %v11342_v60  ;;  %v11197_v14 = vadd.f32 %v22161_v38, %v11047_v34  ;;  %v11196_v18 = vadd.f32 %v22165_v45, %v11046_v35  ;;  %v22937_v59 = vld [vmem:[#allocation84_spill] sm:$0xff]  ;;  %v22939_v38 = vld [vmem:[#allocation27_spill] sm:$0xff]  ;;  %v11943_v63 = vadd.f32 %v22940_v2, %v11792_v28  ;;  %v22943_v49 = vld [vmem:[#allocation29_spill] sm:$0xff] }
 0x618   : > { %v11343_v13 = vadd.f32 %v22129_v56, %v11193_v36  ;;  %v11640_v15 = vadd.f32 %v22147_v43, %v11490_v32  ;;  %v11345_v56 = vadd.f32 %v22133_v33, %v11195_v23  ;;  %v11344_v20 = vadd.f32 %v22135_v48, %v11194_v7  ;;  %v16955_v37 = vpop.f32.mrf.mxu1  ;;  %v22938_v43 = vld [vmem:[#allocation49_spill] sm:$0xff]  ;;  %v22947_v23 = vld [vmem:[#allocation18_spill] sm:$0xff]  ;;  %v22948_v60 = vld [vmem:[#allocation31_spill] sm:$0xff] }
 0x619   : > { %v22197_v62 = vpop.f32.mrf.mxu0  ;;  %v11642_v3 = vadd.f32 %v22938_v43, %v11492_v44  ;;  %v11347_v47 = vadd.f32 %v22939_v38, %v11197_v14  ;;  %v11346_v48 = vadd.f32 %v22941_v50, %v11196_v18  ;;  %v22945_v31 = vld [vmem:[#allocation41_spill] sm:$0xff]  ;;  %v22950_v14 = vld [vmem:[#allocation52_spill] sm:$0xff] }
 0x61a   : > { %v11493_v1 = vadd.f32 %v16885_v4, %v11343_v13  ;;  %v11791_v4 = vadd.f32 %v11752_v10, %v11640_v15  ;;  %v11495_v22 = vadd.f32 %v22935_v8, %v11345_v56  ;;  %v11494_v12 = vadd.f32 %v22937_v59, %v11344_v20  ;;  %v12213_v26 = vpop.f32.mrf.mxu1 }
 0x61b   : > { %v22204_v41 = vpop.f32.mrf.mxu0  ;;  %v11793_v10 = vadd.f32 %v22197_v62, %v11642_v3  ;;  %v11497_v36 = vadd.f32 %v22943_v49, %v11347_v47  ;;  %v11496_v0 = vadd.f32 %v22945_v31, %v11346_v48 }
 0x61c   : > { %v11643_v5 = vadd.f32 %v22936_v51, %v11493_v1  ;;  %v11942_v39 = vadd.f32 %v22942_v57, %v11791_v4  ;;  %v11645_v25 = vadd.f32 %v22944_v55, %v11495_v22  ;;  %v16958_v1 = vpop.f32.mrf.mxu1 }
 0x61d   : > { %v22209_v46 = vpop.f32.mrf.mxu0  ;;  %v11944_v34 = vadd.f32 %v22948_v60, %v11793_v10  ;;  %v11647_v35 = vadd.f32 %v22949_v54, %v11497_v36  ;;  %v11646_v56 = vadd.f32 %v22950_v14, %v11496_v0 }
 0x61e   : > { %v11794_v33 = vadd.f32 %v22193_v30, %v11643_v5  ;;  %v11644_v30 = vadd.f32 %v22946_v29, %v11494_v12  ;;  %v11796_v32 = vadd.f32 %v22204_v41, %v11645_v25  ;;  %v22951_v41 = vld [vmem:[#allocation53_spill] sm:$0xff]  ;;  %v12223_v51 = vpop.f32.mrf.mxu1 }
 0x61f   : > { %v22216_v61 = vpop.f32.mrf.mxu0 }
 0x620   : > { %v11945_v13 = vadd.f32 %v22947_v23, %v11794_v33  ;;  %v11795_v62 = vadd.f32 %v22209_v46, %v11644_v30  ;;  %v11947_v20 = vadd.f32 %v22951_v41, %v11796_v32  ;;  %v16961_v33 = vpop.f32.mrf.mxu1 }
 0x621   : > { %v22222_v58 = vpop.f32.mrf.mxu0 }
 0x622   : > { %v11797_v46 = vadd.f32 %v22222_v58, %v11646_v56  ;;  %v11946_v22 = vadd.f32 %v22191_v16, %v11795_v62 }
 0x623   : > { %v16938_v21 = vpop.f32.mrf.mxu0 }
 0x624   : > { %v12093_v9 = vadd.f32 %v16938_v21, %v11943_v63  ;;  %v11948_v58 = vadd.f32 %v22214_v19, %v11797_v46 }
 0x625   : > { %v12053_v11 = vpop.f32.mrf.mxu0 }
 0x626   : > { %v12092_v24 = vadd.f32 %v12053_v11, %v11942_v39  ;;  %v12243_v21 = vadd.f32 %v16952_v27, %v12093_v9  ;;  %v11798_v11 = vadd.f32 %v22216_v61, %v11647_v35  ;;  %v12233_v39 = vpop.f32.mrf.mxu1 }
 0x627   : > { %v16941_v53 = vpop.f32.mrf.mxu0 }
 0x628   : > { %v12095_v44 = vadd.f32 %v16941_v53, %v11945_v13  ;;  %v12242_v18 = vadd.f32 %v12203_v17, %v12092_v24  ;;  %v14198_v53 = vld [vmem:[%s22315_s6] ss:$0 sm:$0xff]  ;;  %v11949_v43 = vadd.f32 %v22202_v6, %v11798_v11  ;;  %v16980_v29 = vpop.f32.mrf.mxu1 }
 0x629   : > { %v12063_v52 = vpop.f32.mrf.mxu0  ;;  %v14217_v13 = vld [vmem:[%s22318_s9] ss:$0 sm:$0xff] }
 0x62a   : > { %v12094_v28 = vadd.f32 %v12063_v52, %v11944_v34  ;;  %v12245_v59 = vadd.f32 %v16955_v37, %v12095_v44  ;;  %v12535_v30 = vpop.f32.mrf.mxu1 }
 0x62b   : > { %v16944_v40 = vpop.f32.mrf.mxu0 }
 0x62c   : > { %v12097_v5 = vadd.f32 %v16944_v40, %v11947_v20  ;;  %v12244_v61 = vadd.f32 %v12213_v26, %v12094_v28  ;;  %v16983_v24 = vpop.f32.mrf.mxu1 }
 0x62d   : > { %v12073_v45 = vpop.f32.mrf.mxu0 }
 0x62e   : > { %v12096_v17 = vadd.f32 %v12073_v45, %v11946_v22  ;;  %v12247_v63 = vadd.f32 %v16958_v1, %v12097_v5  ;;  %v12545_v32 = vpop.f32.mrf.mxu1 }
 0x62f   : > { %v16947_v42 = vpop.f32.mrf.mxu0 }
 0x630   : > { %v12099_v2 = vadd.f32 %v16947_v42, %v11949_v43  ;;  %v12246_v45 = vadd.f32 %v12223_v51, %v12096_v17  ;;  %v16986_v62 = vpop.f32.mrf.mxu1 }
 0x631   : > { %v12083_v7 = vpop.f32.mrf.mxu0 }
 0x632   : > { %v12098_v37 = vadd.f32 %v12083_v7, %v11948_v58  ;;  %v12249_v19 = vadd.f32 %v16961_v33, %v12099_v2 }
 0x633   : > { %v16966_v15 = vpop.f32.mrf.mxu0 }
 0x634   : > { %v12393_v4 = vadd.f32 %v16966_v15, %v12243_v21  ;;  %v12248_v26 = vadd.f32 %v12233_v39, %v12098_v37  ;;  %v12555_v15 = vpop.f32.mrf.mxu1 }
 0x635   : > { %v12353_v8 = vpop.f32.mrf.mxu0 }
 0x636   : > { %v12392_v27 = vadd.f32 %v12353_v8, %v12242_v18  ;;  %v12408_v3 = vadd.f32 %v14198_v53, %v12393_v4  ;;  %v16989_v8 = vpop.f32.mrf.mxu1 }
 0x637   : > { %v16969_v52 = vpop.f32.mrf.mxu0 }
 0x638   : > { %v12407_v12 = vadd.f32 %v14198_v53, %v12392_v27  ;;  %v12395_v38 = vadd.f32 %v16969_v52, %v12245_v59  ;;  %v12565_v17 = vpop.f32.mrf.mxu1 }
 0x639   : > { %v12363_v47 = vpop.f32.mrf.mxu0 }
 0x63a   : > { %v12394_v16 = vadd.f32 %v12363_v47, %v12244_v61  ;;  %16994 = vmatprep.mubr.msk.f32.mxu0 %vm8063_vm2, %v12407_v12  ;;  %v12410_v48 = vadd.f32 %v14198_v53, %v12395_v38 }
 0x63b   : > { %v16972_v50 = vpop.f32.mrf.mxu0  ;;  %16995 = vmatmul.mubr.msk.f32.vlgmr.msra.gmra.mxu0 %vm8063_vm2, %v12408_v3 }
 0x63c   : > { %v12409_v40 = vadd.f32 %v14198_v53, %v12394_v16  ;;  %v12397_v10 = vadd.f32 %v16972_v50, %v12247_v63 }
 0x63d   : > { %v12373_v6 = vpop.f32.mrf.mxu0 }
 0x63e   : > { %v12396_v57 = vadd.f32 %v12373_v6, %v12246_v45  ;;  %16997 = vmatprep.mubr.msk.f32.mxu0 %vm8063_vm2, %v12409_v40  ;;  %v12412_v55 = vadd.f32 %v14198_v53, %v12397_v10 }
 0x63f   : > { %v16975_v49 = vpop.f32.mrf.mxu0  ;;  %16998 = vmatmul.mubr.msk.f32.gmra.mxu0 %vm8063_vm2, %v12410_v48 }
 0x640   : > { %v12411_v36 = vadd.f32 %v14198_v53, %v12396_v57  ;;  %v12399_v25 = vadd.f32 %v16975_v49, %v12249_v19 }
 0x641   : > { %v12383_v9 = vpop.f32.mrf.mxu0 }
 0x642   : > { %v12398_v42 = vadd.f32 %v12383_v9, %v12248_v26  ;;  %17000 = vmatprep.mubr.msk.f32.mxu0 %vm8063_vm2, %v12411_v36  ;;  %v12414_v0 = vadd.f32 %v14198_v53, %v12399_v25 }
 0x643   : > { %17001 = vmatmul.mubr.msk.f32.gmra.mxu0 %vm8063_vm2, %v12412_v55 }
 0x644   : > { %v12413_v31 = vadd.f32 %v14198_v53, %v12398_v42 }
 0x646   : > { %17003 = vmatprep.mubr.msk.f32.mxu0 %vm8063_vm2, %v12413_v31 }
 0x647   : > { %17004 = vmatmul.mubr.msk.f32.gmra.mxu0 %vm8063_vm2, %v12414_v0 }
 0x6fb   : > { %v16996_v23 = vpop.f32.mrf.mxu0 }
 0x6fc   : > { %v12673_v7 = vadd.f32 %v16996_v23, %v16980_v29 }
 0x6fd   : > { %v12667_v60 = vpop.f32.mrf.mxu0 }
 0x6fe   : > { %v12714_v34 = vadd.f32 %v14217_v13, %v12673_v7  ;;  %v12668_v1 = vadd.f32 %v12667_v60, %v12535_v30 }
 0x6ff   : > { %v16999_v54 = vpop.f32.mrf.mxu0 }
 0x700   : > { %v12722_v35 = vmax.f32 %v12714_v34, 0.0  ;;  %v12713_v44 = vadd.f32 %v14217_v13, %v12668_v1  ;;  %v12683_v21 = vadd.f32 %v16999_v54, %v16983_v24 }
 0x701   : > { %v12677_v14 = vpop.f32.mrf.mxu0 }
 0x702   : > { %12730 = vst.msk [vmem:[%s22288_s17 + $0x8] sm:$0xff] %vm419_vm1, %v12722_v35  ;;  %v12721_v56 = vmax.f32 %v12713_v44, 0.0  ;;  %v12716_v28 = vadd.f32 %v14217_v13, %v12683_v21  ;;  %v12678_v18 = vadd.f32 %v12677_v14, %v12545_v32 }
 0x703   : > { %v17002_v11 = vpop.f32.mrf.mxu0 }
 0x704   : > { %12729 = vst.msk [vmem:[%s22288_s17] sm:$0xff] %vm419_vm1, %v12721_v56  ;;  %v12724_v41 = vmax.f32 %v12716_v28, 0.0  ;;  %v12715_v20 = vadd.f32 %v14217_v13, %v12678_v18  ;;  %v12693_v4 = vadd.f32 %v17002_v11, %v16986_v62 }
 0x705   : > { %v12687_v46 = vpop.f32.mrf.mxu0 }
 0x706   : > { %12732 = vst.msk [vmem:[%s22288_s17 + $0x18] sm:$0xff] %vm419_vm1, %v12724_v41  ;;  %v12723_v22 = vmax.f32 %v12715_v20, 0.0  ;;  %v12718_v53 = vadd.f32 %v14217_v13, %v12693_v4  ;;  %v12688_v27 = vadd.f32 %v12687_v46, %v12555_v15 }
 0x707   : > { %v17005_v51 = vpop.f32.mrf.mxu0 }
 0x708   : > { %12731 = vst.msk [vmem:[%s22288_s17 + $0x10] sm:$0xff] %vm419_vm1, %v12723_v22  ;;  %v12726_v5 = vmax.f32 %v12718_v53, 0.0  ;;  %v12717_v59 = vadd.f32 %v14217_v13, %v12688_v27  ;;  %v12703_v52 = vadd.f32 %v17005_v51, %v16989_v8 }
 0x709   : > { %v12697_v12 = vpop.f32.mrf.mxu0 }
 0x70a   : > { %12734 = vst.msk [vmem:[%s22288_s17 + $0x28] sm:$0xff] %vm419_vm1, %v12726_v5  ;;  %v12725_v61 = vmax.f32 %v12717_v59, 0.0  ;;  %v12720_v43 = vadd.f32 %v14217_v13, %v12703_v52  ;;  %v12698_v3 = vadd.f32 %v12697_v12, %v12565_v17 }
 0x70c   : > { %12733 = vst.msk [vmem:[%s22288_s17 + $0x20] sm:$0xff] %vm419_vm1, %v12725_v61  ;;  %v12728_v38 = vmax.f32 %v12720_v43, 0.0  ;;  %v12719_v47 = vadd.f32 %v14217_v13, %v12698_v3 }
 0x70e   : > { %12736 = vst.msk [vmem:[%s22288_s17 + $0x38] sm:$0xff] %vm419_vm1, %v12728_v38  ;;  %v12727_v58 = vmax.f32 %v12719_v47, 0.0 }
 0x710   : > { %12735 = vst.msk [vmem:[%s22288_s17 + $0x30] sm:$0xff] %vm419_vm1, %v12727_v58 }
 0x711 PF: > { %s20_s13 = sadd.s32 1, %s17066_s13  }
 0x712   : > { %p17_p5 = scmp.ge.s32.totalorder %s20_s13, 4  }
 0x714   :  { %19 = sbr.rel (!%p17_p5) target bundleno = 1 (0x1), region = 159 }

</bundles_post_ra>
